<compile_context>
chip_gen: v7x
topology: tpu7x:2x2x1
jax: 0.10.0
libtpu: 0.0.40
codegen_flags: <defaults>
</compile_context>

<pallas_src>
import functools

import numpy as np
import jax
import jax.numpy as jnp
from jax.experimental import pallas as pl
from jax.experimental.pallas import tpu as pltpu


MXU_DTYPE = jnp.bfloat16     # matmul operand dtype (accumulation stays f32)
SLAB_DTYPE = jnp.float32     # resident-activation dtype.
                             # TODO(synk): flip to bfloat16 on v6e/v7x to halve
                             # slab bytes; keep f32 on v5e (no bf16 VPU).

# Non-zero spatial taps of the 3x3 PixelCNN masks, as (dy, dx).  The center tap
# (0, 0) has its weights zeroed for the type-'A' first layer.
TAPS = ((-1, -1), (-1, 0), (-1, 1), (0, -1), (0, 0))


def _round_up(x, m):
    return ((x + m - 1) // m) * m


# ----------------------------------------------------------------------------
# Fused Pallas kernel: the whole PixelCNN stack for B_tile images.
# ----------------------------------------------------------------------------
def _pixelcnn_fused_kernel(x_ref, mask_ref, w0_ref, b0_ref, wb_ref, bb_ref,
                           wout_ref, bout_ref, o_ref, slab, lhs,
                           *, G, TOT, K, F, num_blocks, tap_offs):
    # x_ref   : (1, TOT, K)      input, pre-laid-out in gap layout, SLAB_DTYPE
    # mask_ref: (ROWS, 1)        1.0 at real pixel rows, 0.0 at pad/gap rows, f32
    # w0_ref  : (T*K, F)         layer-0 tap-stacked weights (actnorm folded), bf16
    # b0_ref  : (1, F)           layer-0 fused bias, f32
    # wb_ref  : (nb, T*K, F)     block tap-stacked weights, bf16
    # bb_ref  : (nb, 1, F)       block fused biases, f32
    # wout_ref: (C, K)           final 1x1 conv weight (channel-major), f32
    # bout_ref: (C, 1)           final 1x1 conv bias, f32
    # o_ref   : (1, C, TOT)      lane-dense output, f32
    # slab    : VMEM (TOT, K)    resident activation (gap layout), SLAB_DTYPE
    # lhs     : VMEM (ROWS, T*K) tap-stacked matmul LHS, bf16
    ROWS = TOT - G

    # Resident activation slab: the input block already carries the zero pad
    # rows / zero gap columns / zero channel padding, so no per-step zeroing --
    # just one bulk copy.
    slab[...] = x_ref[0]

    mask = mask_ref[...]   # hoisted once; reused by every layer

    def masked_conv_layer(w_flat, bias):
        # Tap-stacked LHS: T shifted copies of the slab laid side by side along
        # the contraction dim -> ONE MXU matmul per layer.  Boundary handling is
        # free: dx = +/-1 wraps land in the zero gap column, dy = -1 at the top
        # lands in the zero pad rows.
        for t, off in enumerate(tap_offs):
            lhs[:, t * K:(t + 1) * K] = (
                slab[G + off: G + off + ROWS, :].astype(MXU_DTYPE))
        acc = jnp.dot(lhs[...], w_flat, preferred_element_type=jnp.float32)
        # Folded conv-bias + actnorm, relu; the mask re-zeroes gap/pad rows so
        # the next layer's shifted reads remain exact.
        h = jnp.maximum(acc + bias, 0.0) * mask
        slab[G:TOT, 0:F] = h.astype(slab.dtype)

    # Layer 0: masked conv type 'A' (its center-tap weight rows are zero).
    masked_conv_layer(w0_ref[...], b0_ref[...])
    if F < K:
        # C > F case: drop the stale input channels once instead of relying on
        # zero-padded weight rows in every block.
        slab[G:TOT, F:K] = jnp.zeros((ROWS, K - F), slab.dtype)

    # Masked type-'B' blocks; the activation never leaves VMEM.
    if num_blocks <= 8:
        for i in range(num_blocks):                      # small: unrolled
            masked_conv_layer(wb_ref[i], bb_ref[i])
    else:
        def block_body(i, carry):                        # large: bounded code size
            masked_conv_layer(wb_ref[i], bb_ref[i])
            return carry
        jax.lax.fori_loop(0, num_blocks, block_body, 0)

    # Final 1x1 conv (F -> C), channel-major via an NT dot_general so the output
    # store and HBM writeback are lane-dense (TOT on the lane axis).
    yt = jax.lax.dot_general(
        wout_ref[...], slab[...].astype(jnp.float32),
        dimension_numbers=(((1,), (1,)), ((), ())),
        preferred_element_type=jnp.float32)              # (C, TOT)
    o_ref[0] = (yt + bout_ref[...]).astype(o_ref.dtype)


# ----------------------------------------------------------------------------
# One-time parameter preparation (runs once, outside the jitted forward):
# mask taps, fold actnorm, stack taps along the contraction dim, pad to K, bf16.
# ----------------------------------------------------------------------------
def prepare_params(params, c, num_fmaps, num_blocks):
    F = num_fmaps
    K = max(c, F)

    def fold(w_oikk, b, s, t, cin, zero_center):
        # w_oikk: (F_out, C_in, 3, 3) torch-layout conv weight.
        blocks = []
        for (dy, dx) in TAPS:
            wt = jnp.transpose(w_oikk[:, :, dy + 1, dx + 1], (1, 0))   # (C_in, F)
            if zero_center and (dy, dx) == (0, 0):
                wt = jnp.zeros_like(wt)          # mask 'A': no center tap
            wt = wt * s[None, :]                 # fold actnorm scale
            wt = jnp.pad(wt, ((0, K - cin), (0, 0)))
            blocks.append(wt)
        w_flat = jnp.concatenate(blocks, axis=0).astype(MXU_DTYPE)     # (T*K, F)
        b_f = (b * s + t).reshape(1, F).astype(jnp.float32)            # fold actnorm bias
        return w_flat, b_f

    w0, b0 = fold(params["w0"], params["b0"], params["s0"], params["t0"],
                  cin=c, zero_center=True)
    wbs, bbs = [], []
    for blk in params["blocks"]:
        w, b = fold(blk["w"], blk["b"], blk["s"], blk["t"], cin=F, zero_center=False)
        wbs.append(w)
        bbs.append(b)
    wb = jnp.stack(wbs, axis=0)                                        # (nb, T*K, F)
    bb = jnp.stack(bbs, axis=0)                                        # (nb, 1, F)

    wout = params["w_out"][:, :, 0, 0]                                 # (C, F)
    wout = jnp.pad(wout, ((0, 0), (0, K - F))).astype(jnp.float32)     # (C, K)
    bout = params["b_out"].reshape(c, 1).astype(jnp.float32)           # (C, 1)
    return dict(w0=w0, b0=b0, wb=wb, bb=bb, wout=wout, bout=bout)


def init_params(key, c, num_fmaps, num_blocks):
    params = {}
    keys = jax.random.split(key, 4 + 4 * num_blocks)
    ki = iter(range(len(keys)))

    params["w0"] = 0.1 * jax.random.normal(keys[next(ki)], (num_fmaps, c, 3, 3), jnp.float32)
    params["b0"] = 0.01 * jax.random.normal(keys[next(ki)], (num_fmaps,), jnp.float32)
    params["s0"] = 1.0 + 0.01 * jax.random.normal(keys[next(ki)], (num_fmaps,), jnp.float32)
    params["t0"] = 0.01 * jax.random.normal(keys[next(ki)], (num_fmaps,), jnp.float32)

    params["blocks"] = []
    for _ in range(num_blocks):
        blk = {
            "w": 0.1 * jax.random.normal(keys[next(ki)], (num_fmaps, num_fmaps, 3, 3), jnp.float32),
            "b": 0.01 * jax.random.normal(keys[next(ki)], (num_fmaps,), jnp.float32),
            "s": 1.0 + 0.01 * jax.random.normal(keys[next(ki)], (num_fmaps,), jnp.float32),
            "t": 0.01 * jax.random.normal(keys[next(ki)], (num_fmaps,), jnp.float32),
        }
        params["blocks"].append(blk)

    kf1, kf2 = jax.random.split(keys[-1])
    params["w_out"] = 0.1 * jax.random.normal(kf1, (c, num_fmaps, 1, 1), jnp.float32)
    params["b_out"] = 0.01 * jax.random.normal(kf2, (c,), jnp.float32)
    return params


# ----------------------------------------------------------------------------
# PixelCNNConditioner forward: one pallas_call for the whole stack.
# ----------------------------------------------------------------------------
def _pick_b_tile(n):
    # Amortize the ~0.35us per-grid-step overhead over several images, but keep
    # >= 2 grid steps when possible so both v7x TensorCores get work.
    best = 1
    for bt in range(1, min(n, 8) + 1):
        if n % bt == 0 and n // bt >= 2:
            best = bt
    return best


def pixelcnn_conditioner_forward(prepared, x_nchw, *, num_fmaps, num_blocks):
    """x: (N, C, H, W) f32 -> shift: (N, C, H, W) f32."""
    N, C, H, W = x_nchw.shape
    F = num_fmaps
    K = max(C, F)
    T = len(TAPS)

    # Flattened "gap" layout: one extra always-zero column per image row (row
    # stride W+1) absorbs dx = +/-1 boundary wraps; G >= W+2 zero rows above
    # each image absorb the dy = -1 taps of the first row.  Sublane-aligned.
    Wg = W + 1
    HWg = H * Wg
    G = _round_up(W + 2, 8)
    SEG_DATA = _round_up(HWg, 8)
    SEG = G + SEG_DATA

    b_tile = _pick_b_tile(N)
    num_tiles = N // b_tile
    TOT = b_tile * SEG
    ROWS = TOT - G
    tap_offs = tuple(dy * Wg + dx for (dy, dx) in TAPS)

    # --- thin XLA glue: lay the input out exactly as the resident slab ---
    x_nhwc = jnp.transpose(x_nchw, (0, 2, 3, 1)).astype(SLAB_DTYPE)
    x_pad = jnp.pad(x_nhwc, ((0, 0), (0, 0), (0, 1), (0, K - C)))   # gap col + chan pad
    x_rows = x_pad.reshape(N, HWg, K)
    x_seg = jnp.pad(x_rows, ((0, 0), (G, SEG_DATA - HWg), (0, 0)))  # zero pad rows
    x_slab = x_seg.reshape(num_tiles, TOT, K)

    # Static 0/1 mask of the real-pixel rows (vs pad / gap / junk rows) over the
    # matmul rows of one grid step.  Pure trace-time constant.
    m = np.zeros((TOT, 1), np.float32)
    row_pat = np.ones((H, Wg), np.float32)
    row_pat[:, W] = 0.0
    for b in range(b_tile):
        m[b * SEG + G: b * SEG + G + HWg, 0] = row_pat.reshape(-1)
    mask = jnp.asarray(m[G:])                                        # (ROWS, 1)

    kernel = functools.partial(
        _pixelcnn_fused_kernel,
        G=G, TOT=TOT, K=K, F=F, num_blocks=num_blocks, tap_offs=tap_offs)

    y = pl.pallas_call(
        kernel,
        out_shape=jax.ShapeDtypeStruct((num_tiles, C, TOT), jnp.float32),
        grid=(num_tiles,),
        in_specs=[
            pl.BlockSpec((1, TOT, K), lambda n: (n, 0, 0)),
            pl.BlockSpec((ROWS, 1), lambda n: (0, 0)),
            pl.BlockSpec((T * K, F), lambda n: (0, 0)),
            pl.BlockSpec((1, F), lambda n: (0, 0)),
            pl.BlockSpec((num_blocks, T * K, F), lambda n: (0, 0, 0)),
            pl.BlockSpec((num_blocks, 1, F), lambda n: (0, 0, 0)),
            pl.BlockSpec((C, K), lambda n: (0, 0)),
            pl.BlockSpec((C, 1), lambda n: (0, 0)),
        ],
        out_specs=pl.BlockSpec((1, C, TOT), lambda n: (n, 0, 0)),
        scratch_shapes=[
            pltpu.VMEM((TOT, K), SLAB_DTYPE),        # resident activation slab
            pltpu.VMEM((ROWS, T * K), MXU_DTYPE),    # tap-stacked matmul LHS
        ],
        compiler_params=pltpu.CompilerParams(
            dimension_semantics=("parallel",)),      # batch tiles -> both TCs (v7x)
        # TODO(synk): for large H/W/F configs set vmem_limit_bytes and fall back
        # to a row-band (halo=1) spatial tiling; trivial at these sizes.
    )(x_slab, mask, prepared["w0"], prepared["b0"], prepared["wb"],
      prepared["bb"], prepared["wout"], prepared["bout"])

    # --- thin XLA glue: un-gap / un-pad back to NCHW ---
    y = y.reshape(num_tiles, C, b_tile, SEG)
    y = jnp.transpose(y, (0, 2, 1, 3)).reshape(N, C, SEG)
    y = y[:, :, G:G + HWg].reshape(N, C, H, Wg)[:, :, :, :W]
    return y


# ----------------------------------------------------------------------------
if __name__ == "__main__":
    # Small shapes consistent with the module: batch=2, c=4, h=w=16.
    N, C, H, W = 2, 4, 16, 16
    NUM_FMAPS, NUM_BLOCKS = 16, 4

    key = jax.random.PRNGKey(0)
    k_param, k_x = jax.random.split(key)
    params = init_params(k_param, C, NUM_FMAPS, NUM_BLOCKS)
    prepared = prepare_params(params, C, NUM_FMAPS, NUM_BLOCKS)   # once, outside jit
    x = jax.random.normal(k_x, (N, C, H, W), jnp.float32)

    fwd = jax.jit(functools.partial(
        pixelcnn_conditioner_forward, num_fmaps=NUM_FMAPS, num_blocks=NUM_BLOCKS))
    shift = fwd(prepared, x)
    jax.block_until_ready(shift)

    assert shift.shape == (N, C, H, W), shift.shape
    assert shift.dtype == jnp.float32
    assert bool(jnp.isfinite(shift).all())
    print("KERNEL_OK")
</pallas_src>

<mosaic_0001>
module attributes {stable_mosaic.version = 11 : i64} {
  func.func @_pixelcnn_fused_kernel(%arg0: i32, %arg1: memref<1x296x16xf32, #tpu.memory_space<vmem>>, %arg2: memref<272x1xf32, #tpu.memory_space<vmem>>, %arg3: memref<80x16xbf16, #tpu.memory_space<vmem>>, %arg4: memref<1x16xf32, #tpu.memory_space<vmem>>, %arg5: memref<4x80x16xbf16, #tpu.memory_space<vmem>>, %arg6: memref<4x1x16xf32, #tpu.memory_space<vmem>>, %arg7: memref<4x16xf32, #tpu.memory_space<vmem>>, %arg8: memref<4x1xf32, #tpu.memory_space<vmem>>, %arg9: memref<1x4x296xf32, #tpu.memory_space<vmem>>, %arg10: memref<296x16xf32, #tpu.memory_space<vmem>>, %arg11: memref<272x80xbf16, #tpu.memory_space<vmem>>) attributes {dimension_semantics = [#tpu.dimension_semantics<parallel>], iteration_bounds = array<i64: 2>, scalar_prefetch = 0 : i64, scratch_operands = 2 : i64, tpu.core_type = #tpu.core_type<tc>, window_params = [{transform_indices = @transform_0, window_bounds = array<i64: 1, 296, 16>}, {pipeline_mode = #tpu.pipeline_mode<synchronous>, transform_indices = @transform_1, window_bounds = array<i64: 272, 1>}, {pipeline_mode = #tpu.pipeline_mode<synchronous>, transform_indices = @transform_2, window_bounds = array<i64: 80, 16>}, {pipeline_mode = #tpu.pipeline_mode<synchronous>, transform_indices = @transform_3, window_bounds = array<i64: 1, 16>}, {pipeline_mode = #tpu.pipeline_mode<synchronous>, transform_indices = @transform_4, window_bounds = array<i64: 4, 80, 16>}, {pipeline_mode = #tpu.pipeline_mode<synchronous>, transform_indices = @transform_5, window_bounds = array<i64: 4, 1, 16>}, {pipeline_mode = #tpu.pipeline_mode<synchronous>, transform_indices = @transform_6, window_bounds = array<i64: 4, 16>}, {pipeline_mode = #tpu.pipeline_mode<synchronous>, transform_indices = @transform_7, window_bounds = array<i64: 4, 1>}, {transform_indices = @transform_8, window_bounds = array<i64: 1, 4, 296>}]} {
    %c0 = arith.constant 0 : index
    %c0_0 = arith.constant 0 : index
    %c0_1 = arith.constant 0 : index
    %0 = vector.load %arg1[%c0, %c0_0, %c0_1] : memref<1x296x16xf32, #tpu.memory_space<vmem>>, vector<1x296x16xf32>
    %1 = vector.shape_cast %0 : vector<1x296x16xf32> to vector<296x16xf32>
    %c0_2 = arith.constant 0 : index
    %c0_3 = arith.constant 0 : index
    %2 = vector.load %arg10[%c0_2, %c0_3] : memref<296x16xf32, #tpu.memory_space<vmem>>, vector<296x16xf32>
    tpu.vector_store %arg10[%c0_2, %c0_3], %1 {strides = array<i32>} : memref<296x16xf32, #tpu.memory_space<vmem>>, vector<296x16xf32>,
    %c0_4 = arith.constant 0 : index
    %c0_5 = arith.constant 0 : index
    %3 = vector.load %arg2[%c0_4, %c0_5] : memref<272x1xf32, #tpu.memory_space<vmem>>, vector<272x1xf32>
    %c0_6 = arith.constant 0 : index
    %c0_7 = arith.constant 0 : index
    %4 = vector.load %arg3[%c0_6, %c0_7] : memref<80x16xbf16, #tpu.memory_space<vmem>>, vector<80x16xbf16>
    %c0_8 = arith.constant 0 : index
    %c0_9 = arith.constant 0 : index
    %5 = vector.load %arg4[%c0_8, %c0_9] : memref<1x16xf32, #tpu.memory_space<vmem>>, vector<1x16xf32>
    %c6 = arith.constant 6 : index
    %c0_10 = arith.constant 0 : index
    %6 = vector.load %arg10[%c6, %c0_10] : memref<296x16xf32, #tpu.memory_space<vmem>>, vector<272x16xf32>
    %7 = arith.truncf %6 : vector<272x16xf32> to vector<272x16xbf16>
    %c0_11 = arith.constant 0 : index
    %c0_12 = arith.constant 0 : index
    %8 = vector.load %arg11[%c0_11, %c0_12] : memref<272x80xbf16, #tpu.memory_space<vmem>>, vector<272x16xbf16>
    tpu.vector_store %arg11[%c0_11, %c0_12], %7 {strides = array<i32>} : memref<272x80xbf16, #tpu.memory_space<vmem>>, vector<272x16xbf16>,
    %c7 = arith.constant 7 : index
    %c0_13 = arith.constant 0 : index
    %9 = vector.load %arg10[%c7, %c0_13] : memref<296x16xf32, #tpu.memory_space<vmem>>, vector<272x16xf32>
    %10 = arith.truncf %9 : vector<272x16xf32> to vector<272x16xbf16>
    %c0_14 = arith.constant 0 : index
    %c16 = arith.constant 16 : index
    %11 = vector.load %arg11[%c0_14, %c16] : memref<272x80xbf16, #tpu.memory_space<vmem>>, vector<272x16xbf16>
    tpu.vector_store %arg11[%c0_14, %c16], %10 {strides = array<i32>} : memref<272x80xbf16, #tpu.memory_space<vmem>>, vector<272x16xbf16>,
    %c8 = arith.constant 8 : index
    %c0_15 = arith.constant 0 : index
    %12 = vector.load %arg10[%c8, %c0_15] : memref<296x16xf32, #tpu.memory_space<vmem>>, vector<272x16xf32>
    %13 = arith.truncf %12 : vector<272x16xf32> to vector<272x16xbf16>
    %c0_16 = arith.constant 0 : index
    %c32 = arith.constant 32 : index
    %14 = vector.load %arg11[%c0_16, %c32] : memref<272x80xbf16, #tpu.memory_space<vmem>>, vector<272x16xbf16>
    tpu.vector_store %arg11[%c0_16, %c32], %13 {strides = array<i32>} : memref<272x80xbf16, #tpu.memory_space<vmem>>, vector<272x16xbf16>,
    %c23 = arith.constant 23 : index
    %c0_17 = arith.constant 0 : index
    %15 = vector.load %arg10[%c23, %c0_17] : memref<296x16xf32, #tpu.memory_space<vmem>>, vector<272x16xf32>
    %16 = arith.truncf %15 : vector<272x16xf32> to vector<272x16xbf16>
    %c0_18 = arith.constant 0 : index
    %c48 = arith.constant 48 : index
    %17 = vector.load %arg11[%c0_18, %c48] : memref<272x80xbf16, #tpu.memory_space<vmem>>, vector<272x16xbf16>
    tpu.vector_store %arg11[%c0_18, %c48], %16 {strides = array<i32>} : memref<272x80xbf16, #tpu.memory_space<vmem>>, vector<272x16xbf16>,
    %c24 = arith.constant 24 : index
    %c0_19 = arith.constant 0 : index
    %18 = vector.load %arg10[%c24, %c0_19] : memref<296x16xf32, #tpu.memory_space<vmem>>, vector<272x16xf32>
    %19 = arith.truncf %18 : vector<272x16xf32> to vector<272x16xbf16>
    %c0_20 = arith.constant 0 : index
    %c64 = arith.constant 64 : index
    %20 = vector.load %arg11[%c0_20, %c64] : memref<272x80xbf16, #tpu.memory_space<vmem>>, vector<272x16xbf16>
    tpu.vector_store %arg11[%c0_20, %c64], %19 {strides = array<i32>} : memref<272x80xbf16, #tpu.memory_space<vmem>>, vector<272x16xbf16>,
    %c0_21 = arith.constant 0 : index
    %c0_22 = arith.constant 0 : index
    %21 = vector.load %arg11[%c0_21, %c0_22] : memref<272x80xbf16, #tpu.memory_space<vmem>>, vector<272x80xbf16>
    %cst = arith.constant dense<0.000000e+00> : vector<272x16xf32>
    %22 = tpu.matmul %21, %4, %cst {dimension_numbers = #tpu.dot_dimension_numbers<[1], [0], [0], [1], [0, 0, 1, 1], [], []>} : vector<272x80xbf16>, vector<80x16xbf16>, vector<272x16xf32> -> vector<272x16xf32>
    %23 = vector.broadcast %5 : vector<1x16xf32> to vector<272x16xf32>
    %24 = arith.addf %22, %23 : vector<272x16xf32>
    %cst_23 = arith.constant 0.000000e+00 : f32
    %25 = vector.broadcast %cst_23 : f32 to vector<272x16xf32>
    %26 = arith.maximumf %24, %25 : vector<272x16xf32>
    %27 = vector.broadcast %3 : vector<272x1xf32> to vector<272x16xf32>
    %28 = arith.mulf %26, %27 : vector<272x16xf32>
    %c24_24 = arith.constant 24 : index
    %c0_25 = arith.constant 0 : index
    %29 = vector.load %arg10[%c24_24, %c0_25] : memref<296x16xf32, #tpu.memory_space<vmem>>, vector<272x16xf32>
    tpu.vector_store %arg10[%c24_24, %c0_25], %28 {strides = array<i32>} : memref<296x16xf32, #tpu.memory_space<vmem>>, vector<272x16xf32>,
    %c0_26 = arith.constant 0 : index
    %c0_27 = arith.constant 0 : index
    %c0_28 = arith.constant 0 : index
    %30 = vector.load %arg5[%c0_26, %c0_27, %c0_28] : memref<4x80x16xbf16, #tpu.memory_space<vmem>>, vector<1x80x16xbf16>
    %31 = vector.shape_cast %30 : vector<1x80x16xbf16> to vector<80x16xbf16>
    %c0_29 = arith.constant 0 : index
    %c0_30 = arith.constant 0 : index
    %c0_31 = arith.constant 0 : index
    %32 = vector.load %arg6[%c0_29, %c0_30, %c0_31] : memref<4x1x16xf32, #tpu.memory_space<vmem>>, vector<1x1x16xf32>
    %33 = vector.shape_cast %32 : vector<1x1x16xf32> to vector<1x16xf32>
    %c6_32 = arith.constant 6 : index
    %c0_33 = arith.constant 0 : index
    %34 = vector.load %arg10[%c6_32, %c0_33] : memref<296x16xf32, #tpu.memory_space<vmem>>, vector<272x16xf32>
    %35 = arith.truncf %34 : vector<272x16xf32> to vector<272x16xbf16>
    %c0_34 = arith.constant 0 : index
    %c0_35 = arith.constant 0 : index
    %36 = vector.load %arg11[%c0_34, %c0_35] : memref<272x80xbf16, #tpu.memory_space<vmem>>, vector<272x16xbf16>
    tpu.vector_store %arg11[%c0_34, %c0_35], %35 {strides = array<i32>} : memref<272x80xbf16, #tpu.memory_space<vmem>>, vector<272x16xbf16>,
    %c7_36 = arith.constant 7 : index
    %c0_37 = arith.constant 0 : index
    %37 = vector.load %arg10[%c7_36, %c0_37] : memref<296x16xf32, #tpu.memory_space<vmem>>, vector<272x16xf32>
    %38 = arith.truncf %37 : vector<272x16xf32> to vector<272x16xbf16>
    %c0_38 = arith.constant 0 : index
    %c16_39 = arith.constant 16 : index
    %39 = vector.load %arg11[%c0_38, %c16_39] : memref<272x80xbf16, #tpu.memory_space<vmem>>, vector<272x16xbf16>
    tpu.vector_store %arg11[%c0_38, %c16_39], %38 {strides = array<i32>} : memref<272x80xbf16, #tpu.memory_space<vmem>>, vector<272x16xbf16>,
    %c8_40 = arith.constant 8 : index
    %c0_41 = arith.constant 0 : index
    %40 = vector.load %arg10[%c8_40, %c0_41] : memref<296x16xf32, #tpu.memory_space<vmem>>, vector<272x16xf32>
    %41 = arith.truncf %40 : vector<272x16xf32> to vector<272x16xbf16>
    %c0_42 = arith.constant 0 : index
    %c32_43 = arith.constant 32 : index
    %42 = vector.load %arg11[%c0_42, %c32_43] : memref<272x80xbf16, #tpu.memory_space<vmem>>, vector<272x16xbf16>
    tpu.vector_store %arg11[%c0_42, %c32_43], %41 {strides = array<i32>} : memref<272x80xbf16, #tpu.memory_space<vmem>>, vector<272x16xbf16>,
    %c23_44 = arith.constant 23 : index
    %c0_45 = arith.constant 0 : index
    %43 = vector.load %arg10[%c23_44, %c0_45] : memref<296x16xf32, #tpu.memory_space<vmem>>, vector<272x16xf32>
    %44 = arith.truncf %43 : vector<272x16xf32> to vector<272x16xbf16>
    %c0_46 = arith.constant 0 : index
    %c48_47 = arith.constant 48 : index
    %45 = vector.load %arg11[%c0_46, %c48_47] : memref<272x80xbf16, #tpu.memory_space<vmem>>, vector<272x16xbf16>
    tpu.vector_store %arg11[%c0_46, %c48_47], %44 {strides = array<i32>} : memref<272x80xbf16, #tpu.memory_space<vmem>>, vector<272x16xbf16>,
    %c24_48 = arith.constant 24 : index
    %c0_49 = arith.constant 0 : index
    %46 = vector.load %arg10[%c24_48, %c0_49] : memref<296x16xf32, #tpu.memory_space<vmem>>, vector<272x16xf32>
    %47 = arith.truncf %46 : vector<272x16xf32> to vector<272x16xbf16>
    %c0_50 = arith.constant 0 : index
    %c64_51 = arith.constant 64 : index
    %48 = vector.load %arg11[%c0_50, %c64_51] : memref<272x80xbf16, #tpu.memory_space<vmem>>, vector<272x16xbf16>
    tpu.vector_store %arg11[%c0_50, %c64_51], %47 {strides = array<i32>} : memref<272x80xbf16, #tpu.memory_space<vmem>>, vector<272x16xbf16>,
    %c0_52 = arith.constant 0 : index
    %c0_53 = arith.constant 0 : index
    %49 = vector.load %arg11[%c0_52, %c0_53] : memref<272x80xbf16, #tpu.memory_space<vmem>>, vector<272x80xbf16>
    %cst_54 = arith.constant dense<0.000000e+00> : vector<272x16xf32>
    %50 = tpu.matmul %49, %31, %cst_54 {dimension_numbers = #tpu.dot_dimension_numbers<[1], [0], [0], [1], [0, 0, 1, 1], [], []>} : vector<272x80xbf16>, vector<80x16xbf16>, vector<272x16xf32> -> vector<272x16xf32>
    %51 = vector.broadcast %33 : vector<1x16xf32> to vector<272x16xf32>
    %52 = arith.addf %50, %51 : vector<272x16xf32>
    %cst_55 = arith.constant 0.000000e+00 : f32
    %53 = vector.broadcast %cst_55 : f32 to vector<272x16xf32>
    %54 = arith.maximumf %52, %53 : vector<272x16xf32>
    %55 = vector.broadcast %3 : vector<272x1xf32> to vector<272x16xf32>
    %56 = arith.mulf %54, %55 : vector<272x16xf32>
    %c24_56 = arith.constant 24 : index
    %c0_57 = arith.constant 0 : index
    %57 = vector.load %arg10[%c24_56, %c0_57] : memref<296x16xf32, #tpu.memory_space<vmem>>, vector<272x16xf32>
    tpu.vector_store %arg10[%c24_56, %c0_57], %56 {strides = array<i32>} : memref<296x16xf32, #tpu.memory_space<vmem>>, vector<272x16xf32>,
    %c1 = arith.constant 1 : index
    %c0_58 = arith.constant 0 : index
    %c0_59 = arith.constant 0 : index
    %58 = vector.load %arg5[%c1, %c0_58, %c0_59] : memref<4x80x16xbf16, #tpu.memory_space<vmem>>, vector<1x80x16xbf16>
    %59 = vector.shape_cast %58 : vector<1x80x16xbf16> to vector<80x16xbf16>
    %c1_60 = arith.constant 1 : index
    %c0_61 = arith.constant 0 : index
    %c0_62 = arith.constant 0 : index
    %60 = vector.load %arg6[%c1_60, %c0_61, %c0_62] : memref<4x1x16xf32, #tpu.memory_space<vmem>>, vector<1x1x16xf32>
    %61 = vector.shape_cast %60 : vector<1x1x16xf32> to vector<1x16xf32>
    %c6_63 = arith.constant 6 : index
    %c0_64 = arith.constant 0 : index
    %62 = vector.load %arg10[%c6_63, %c0_64] : memref<296x16xf32, #tpu.memory_space<vmem>>, vector<272x16xf32>
    %63 = arith.truncf %62 : vector<272x16xf32> to vector<272x16xbf16>
    %c0_65 = arith.constant 0 : index
    %c0_66 = arith.constant 0 : index
    %64 = vector.load %arg11[%c0_65, %c0_66] : memref<272x80xbf16, #tpu.memory_space<vmem>>, vector<272x16xbf16>
    tpu.vector_store %arg11[%c0_65, %c0_66], %63 {strides = array<i32>} : memref<272x80xbf16, #tpu.memory_space<vmem>>, vector<272x16xbf16>,
    %c7_67 = arith.constant 7 : index
    %c0_68 = arith.constant 0 : index
    %65 = vector.load %arg10[%c7_67, %c0_68] : memref<296x16xf32, #tpu.memory_space<vmem>>, vector<272x16xf32>
    %66 = arith.truncf %65 : vector<272x16xf32> to vector<272x16xbf16>
    %c0_69 = arith.constant 0 : index
    %c16_70 = arith.constant 16 : index
    %67 = vector.load %arg11[%c0_69, %c16_70] : memref<272x80xbf16, #tpu.memory_space<vmem>>, vector<272x16xbf16>
    tpu.vector_store %arg11[%c0_69, %c16_70], %66 {strides = array<i32>} : memref<272x80xbf16, #tpu.memory_space<vmem>>, vector<272x16xbf16>,
    %c8_71 = arith.constant 8 : index
    %c0_72 = arith.constant 0 : index
    %68 = vector.load %arg10[%c8_71, %c0_72] : memref<296x16xf32, #tpu.memory_space<vmem>>, vector<272x16xf32>
    %69 = arith.truncf %68 : vector<272x16xf32> to vector<272x16xbf16>
    %c0_73 = arith.constant 0 : index
    %c32_74 = arith.constant 32 : index
    %70 = vector.load %arg11[%c0_73, %c32_74] : memref<272x80xbf16, #tpu.memory_space<vmem>>, vector<272x16xbf16>
    tpu.vector_store %arg11[%c0_73, %c32_74], %69 {strides = array<i32>} : memref<272x80xbf16, #tpu.memory_space<vmem>>, vector<272x16xbf16>,
    %c23_75 = arith.constant 23 : index
    %c0_76 = arith.constant 0 : index
    %71 = vector.load %arg10[%c23_75, %c0_76] : memref<296x16xf32, #tpu.memory_space<vmem>>, vector<272x16xf32>
    %72 = arith.truncf %71 : vector<272x16xf32> to vector<272x16xbf16>
    %c0_77 = arith.constant 0 : index
    %c48_78 = arith.constant 48 : index
    %73 = vector.load %arg11[%c0_77, %c48_78] : memref<272x80xbf16, #tpu.memory_space<vmem>>, vector<272x16xbf16>
    tpu.vector_store %arg11[%c0_77, %c48_78], %72 {strides = array<i32>} : memref<272x80xbf16, #tpu.memory_space<vmem>>, vector<272x16xbf16>,
    %c24_79 = arith.constant 24 : index
    %c0_80 = arith.constant 0 : index
    %74 = vector.load %arg10[%c24_79, %c0_80] : memref<296x16xf32, #tpu.memory_space<vmem>>, vector<272x16xf32>
    %75 = arith.truncf %74 : vector<272x16xf32> to vector<272x16xbf16>
    %c0_81 = arith.constant 0 : index
    %c64_82 = arith.constant 64 : index
    %76 = vector.load %arg11[%c0_81, %c64_82] : memref<272x80xbf16, #tpu.memory_space<vmem>>, vector<272x16xbf16>
    tpu.vector_store %arg11[%c0_81, %c64_82], %75 {strides = array<i32>} : memref<272x80xbf16, #tpu.memory_space<vmem>>, vector<272x16xbf16>,
    %c0_83 = arith.constant 0 : index
    %c0_84 = arith.constant 0 : index
    %77 = vector.load %arg11[%c0_83, %c0_84] : memref<272x80xbf16, #tpu.memory_space<vmem>>, vector<272x80xbf16>
    %cst_85 = arith.constant dense<0.000000e+00> : vector<272x16xf32>
    %78 = tpu.matmul %77, %59, %cst_85 {dimension_numbers = #tpu.dot_dimension_numbers<[1], [0], [0], [1], [0, 0, 1, 1], [], []>} : vector<272x80xbf16>, vector<80x16xbf16>, vector<272x16xf32> -> vector<272x16xf32>
    %79 = vector.broadcast %61 : vector<1x16xf32> to vector<272x16xf32>
    %80 = arith.addf %78, %79 : vector<272x16xf32>
    %cst_86 = arith.constant 0.000000e+00 : f32
    %81 = vector.broadcast %cst_86 : f32 to vector<272x16xf32>
    %82 = arith.maximumf %80, %81 : vector<272x16xf32>
    %83 = vector.broadcast %3 : vector<272x1xf32> to vector<272x16xf32>
    %84 = arith.mulf %82, %83 : vector<272x16xf32>
    %c24_87 = arith.constant 24 : index
    %c0_88 = arith.constant 0 : index
    %85 = vector.load %arg10[%c24_87, %c0_88] : memref<296x16xf32, #tpu.memory_space<vmem>>, vector<272x16xf32>
    tpu.vector_store %arg10[%c24_87, %c0_88], %84 {strides = array<i32>} : memref<296x16xf32, #tpu.memory_space<vmem>>, vector<272x16xf32>,
    %c2 = arith.constant 2 : index
    %c0_89 = arith.constant 0 : index
    %c0_90 = arith.constant 0 : index
    %86 = vector.load %arg5[%c2, %c0_89, %c0_90] : memref<4x80x16xbf16, #tpu.memory_space<vmem>>, vector<1x80x16xbf16>
    %87 = vector.shape_cast %86 : vector<1x80x16xbf16> to vector<80x16xbf16>
    %c2_91 = arith.constant 2 : index
    %c0_92 = arith.constant 0 : index
    %c0_93 = arith.constant 0 : index
    %88 = vector.load %arg6[%c2_91, %c0_92, %c0_93] : memref<4x1x16xf32, #tpu.memory_space<vmem>>, vector<1x1x16xf32>
    %89 = vector.shape_cast %88 : vector<1x1x16xf32> to vector<1x16xf32>
    %c6_94 = arith.constant 6 : index
    %c0_95 = arith.constant 0 : index
    %90 = vector.load %arg10[%c6_94, %c0_95] : memref<296x16xf32, #tpu.memory_space<vmem>>, vector<272x16xf32>
    %91 = arith.truncf %90 : vector<272x16xf32> to vector<272x16xbf16>
    %c0_96 = arith.constant 0 : index
    %c0_97 = arith.constant 0 : index
    %92 = vector.load %arg11[%c0_96, %c0_97] : memref<272x80xbf16, #tpu.memory_space<vmem>>, vector<272x16xbf16>
    tpu.vector_store %arg11[%c0_96, %c0_97], %91 {strides = array<i32>} : memref<272x80xbf16, #tpu.memory_space<vmem>>, vector<272x16xbf16>,
    %c7_98 = arith.constant 7 : index
    %c0_99 = arith.constant 0 : index
    %93 = vector.load %arg10[%c7_98, %c0_99] : memref<296x16xf32, #tpu.memory_space<vmem>>, vector<272x16xf32>
    %94 = arith.truncf %93 : vector<272x16xf32> to vector<272x16xbf16>
    %c0_100 = arith.constant 0 : index
    %c16_101 = arith.constant 16 : index
    %95 = vector.load %arg11[%c0_100, %c16_101] : memref<272x80xbf16, #tpu.memory_space<vmem>>, vector<272x16xbf16>
    tpu.vector_store %arg11[%c0_100, %c16_101], %94 {strides = array<i32>} : memref<272x80xbf16, #tpu.memory_space<vmem>>, vector<272x16xbf16>,
    %c8_102 = arith.constant 8 : index
    %c0_103 = arith.constant 0 : index
    %96 = vector.load %arg10[%c8_102, %c0_103] : memref<296x16xf32, #tpu.memory_space<vmem>>, vector<272x16xf32>
    %97 = arith.truncf %96 : vector<272x16xf32> to vector<272x16xbf16>
    %c0_104 = arith.constant 0 : index
    %c32_105 = arith.constant 32 : index
    %98 = vector.load %arg11[%c0_104, %c32_105] : memref<272x80xbf16, #tpu.memory_space<vmem>>, vector<272x16xbf16>
    tpu.vector_store %arg11[%c0_104, %c32_105], %97 {strides = array<i32>} : memref<272x80xbf16, #tpu.memory_space<vmem>>, vector<272x16xbf16>,
    %c23_106 = arith.constant 23 : index
    %c0_107 = arith.constant 0 : index
    %99 = vector.load %arg10[%c23_106, %c0_107] : memref<296x16xf32, #tpu.memory_space<vmem>>, vector<272x16xf32>
    %100 = arith.truncf %99 : vector<272x16xf32> to vector<272x16xbf16>
    %c0_108 = arith.constant 0 : index
    %c48_109 = arith.constant 48 : index
    %101 = vector.load %arg11[%c0_108, %c48_109] : memref<272x80xbf16, #tpu.memory_space<vmem>>, vector<272x16xbf16>
    tpu.vector_store %arg11[%c0_108, %c48_109], %100 {strides = array<i32>} : memref<272x80xbf16, #tpu.memory_space<vmem>>, vector<272x16xbf16>,
    %c24_110 = arith.constant 24 : index
    %c0_111 = arith.constant 0 : index
    %102 = vector.load %arg10[%c24_110, %c0_111] : memref<296x16xf32, #tpu.memory_space<vmem>>, vector<272x16xf32>
    %103 = arith.truncf %102 : vector<272x16xf32> to vector<272x16xbf16>
    %c0_112 = arith.constant 0 : index
    %c64_113 = arith.constant 64 : index
    %104 = vector.load %arg11[%c0_112, %c64_113] : memref<272x80xbf16, #tpu.memory_space<vmem>>, vector<272x16xbf16>
    tpu.vector_store %arg11[%c0_112, %c64_113], %103 {strides = array<i32>} : memref<272x80xbf16, #tpu.memory_space<vmem>>, vector<272x16xbf16>,
    %c0_114 = arith.constant 0 : index
    %c0_115 = arith.constant 0 : index
    %105 = vector.load %arg11[%c0_114, %c0_115] : memref<272x80xbf16, #tpu.memory_space<vmem>>, vector<272x80xbf16>
    %cst_116 = arith.constant dense<0.000000e+00> : vector<272x16xf32>
    %106 = tpu.matmul %105, %87, %cst_116 {dimension_numbers = #tpu.dot_dimension_numbers<[1], [0], [0], [1], [0, 0, 1, 1], [], []>} : vector<272x80xbf16>, vector<80x16xbf16>, vector<272x16xf32> -> vector<272x16xf32>
    %107 = vector.broadcast %89 : vector<1x16xf32> to vector<272x16xf32>
    %108 = arith.addf %106, %107 : vector<272x16xf32>
    %cst_117 = arith.constant 0.000000e+00 : f32
    %109 = vector.broadcast %cst_117 : f32 to vector<272x16xf32>
    %110 = arith.maximumf %108, %109 : vector<272x16xf32>
    %111 = vector.broadcast %3 : vector<272x1xf32> to vector<272x16xf32>
    %112 = arith.mulf %110, %111 : vector<272x16xf32>
    %c24_118 = arith.constant 24 : index
    %c0_119 = arith.constant 0 : index
    %113 = vector.load %arg10[%c24_118, %c0_119] : memref<296x16xf32, #tpu.memory_space<vmem>>, vector<272x16xf32>
    tpu.vector_store %arg10[%c24_118, %c0_119], %112 {strides = array<i32>} : memref<296x16xf32, #tpu.memory_space<vmem>>, vector<272x16xf32>,
    %c3 = arith.constant 3 : index
    %c0_120 = arith.constant 0 : index
    %c0_121 = arith.constant 0 : index
    %114 = vector.load %arg5[%c3, %c0_120, %c0_121] : memref<4x80x16xbf16, #tpu.memory_space<vmem>>, vector<1x80x16xbf16>
    %115 = vector.shape_cast %114 : vector<1x80x16xbf16> to vector<80x16xbf16>
    %c3_122 = arith.constant 3 : index
    %c0_123 = arith.constant 0 : index
    %c0_124 = arith.constant 0 : index
    %116 = vector.load %arg6[%c3_122, %c0_123, %c0_124] : memref<4x1x16xf32, #tpu.memory_space<vmem>>, vector<1x1x16xf32>
    %117 = vector.shape_cast %116 : vector<1x1x16xf32> to vector<1x16xf32>
    %c6_125 = arith.constant 6 : index
    %c0_126 = arith.constant 0 : index
    %118 = vector.load %arg10[%c6_125, %c0_126] : memref<296x16xf32, #tpu.memory_space<vmem>>, vector<272x16xf32>
    %119 = arith.truncf %118 : vector<272x16xf32> to vector<272x16xbf16>
    %c0_127 = arith.constant 0 : index
    %c0_128 = arith.constant 0 : index
    %120 = vector.load %arg11[%c0_127, %c0_128] : memref<272x80xbf16, #tpu.memory_space<vmem>>, vector<272x16xbf16>
    tpu.vector_store %arg11[%c0_127, %c0_128], %119 {strides = array<i32>} : memref<272x80xbf16, #tpu.memory_space<vmem>>, vector<272x16xbf16>,
    %c7_129 = arith.constant 7 : index
    %c0_130 = arith.constant 0 : index
    %121 = vector.load %arg10[%c7_129, %c0_130] : memref<296x16xf32, #tpu.memory_space<vmem>>, vector<272x16xf32>
    %122 = arith.truncf %121 : vector<272x16xf32> to vector<272x16xbf16>
    %c0_131 = arith.constant 0 : index
    %c16_132 = arith.constant 16 : index
    %123 = vector.load %arg11[%c0_131, %c16_132] : memref<272x80xbf16, #tpu.memory_space<vmem>>, vector<272x16xbf16>
    tpu.vector_store %arg11[%c0_131, %c16_132], %122 {strides = array<i32>} : memref<272x80xbf16, #tpu.memory_space<vmem>>, vector<272x16xbf16>,
    %c8_133 = arith.constant 8 : index
    %c0_134 = arith.constant 0 : index
    %124 = vector.load %arg10[%c8_133, %c0_134] : memref<296x16xf32, #tpu.memory_space<vmem>>, vector<272x16xf32>
    %125 = arith.truncf %124 : vector<272x16xf32> to vector<272x16xbf16>
    %c0_135 = arith.constant 0 : index
    %c32_136 = arith.constant 32 : index
    %126 = vector.load %arg11[%c0_135, %c32_136] : memref<272x80xbf16, #tpu.memory_space<vmem>>, vector<272x16xbf16>
    tpu.vector_store %arg11[%c0_135, %c32_136], %125 {strides = array<i32>} : memref<272x80xbf16, #tpu.memory_space<vmem>>, vector<272x16xbf16>,
    %c23_137 = arith.constant 23 : index
    %c0_138 = arith.constant 0 : index
    %127 = vector.load %arg10[%c23_137, %c0_138] : memref<296x16xf32, #tpu.memory_space<vmem>>, vector<272x16xf32>
    %128 = arith.truncf %127 : vector<272x16xf32> to vector<272x16xbf16>
    %c0_139 = arith.constant 0 : index
    %c48_140 = arith.constant 48 : index
    %129 = vector.load %arg11[%c0_139, %c48_140] : memref<272x80xbf16, #tpu.memory_space<vmem>>, vector<272x16xbf16>
    tpu.vector_store %arg11[%c0_139, %c48_140], %128 {strides = array<i32>} : memref<272x80xbf16, #tpu.memory_space<vmem>>, vector<272x16xbf16>,
    %c24_141 = arith.constant 24 : index
    %c0_142 = arith.constant 0 : index
    %130 = vector.load %arg10[%c24_141, %c0_142] : memref<296x16xf32, #tpu.memory_space<vmem>>, vector<272x16xf32>
    %131 = arith.truncf %130 : vector<272x16xf32> to vector<272x16xbf16>
    %c0_143 = arith.constant 0 : index
    %c64_144 = arith.constant 64 : index
    %132 = vector.load %arg11[%c0_143, %c64_144] : memref<272x80xbf16, #tpu.memory_space<vmem>>, vector<272x16xbf16>
    tpu.vector_store %arg11[%c0_143, %c64_144], %131 {strides = array<i32>} : memref<272x80xbf16, #tpu.memory_space<vmem>>, vector<272x16xbf16>,
    %c0_145 = arith.constant 0 : index
    %c0_146 = arith.constant 0 : index
    %133 = vector.load %arg11[%c0_145, %c0_146] : memref<272x80xbf16, #tpu.memory_space<vmem>>, vector<272x80xbf16>
    %cst_147 = arith.constant dense<0.000000e+00> : vector<272x16xf32>
    %134 = tpu.matmul %133, %115, %cst_147 {dimension_numbers = #tpu.dot_dimension_numbers<[1], [0], [0], [1], [0, 0, 1, 1], [], []>} : vector<272x80xbf16>, vector<80x16xbf16>, vector<272x16xf32> -> vector<272x16xf32>
    %135 = vector.broadcast %117 : vector<1x16xf32> to vector<272x16xf32>
    %136 = arith.addf %134, %135 : vector<272x16xf32>
    %cst_148 = arith.constant 0.000000e+00 : f32
    %137 = vector.broadcast %cst_148 : f32 to vector<272x16xf32>
    %138 = arith.maximumf %136, %137 : vector<272x16xf32>
    %139 = vector.broadcast %3 : vector<272x1xf32> to vector<272x16xf32>
    %140 = arith.mulf %138, %139 : vector<272x16xf32>
    %c24_149 = arith.constant 24 : index
    %c0_150 = arith.constant 0 : index
    %141 = vector.load %arg10[%c24_149, %c0_150] : memref<296x16xf32, #tpu.memory_space<vmem>>, vector<272x16xf32>
    tpu.vector_store %arg10[%c24_149, %c0_150], %140 {strides = array<i32>} : memref<296x16xf32, #tpu.memory_space<vmem>>, vector<272x16xf32>,
    %c0_151 = arith.constant 0 : index
    %c0_152 = arith.constant 0 : index
    %142 = vector.load %arg7[%c0_151, %c0_152] : memref<4x16xf32, #tpu.memory_space<vmem>>, vector<4x16xf32>
    %c0_153 = arith.constant 0 : index
    %c0_154 = arith.constant 0 : index
    %143 = vector.load %arg10[%c0_153, %c0_154] : memref<296x16xf32, #tpu.memory_space<vmem>>, vector<296x16xf32>
    %cst_155 = arith.constant dense<0.000000e+00> : vector<4x296xf32>
    %144 = tpu.matmul %142, %143, %cst_155 {dimension_numbers = #tpu.dot_dimension_numbers<[1], [1], [0], [0], [0, 0, 1, 0], [], []>} : vector<4x16xf32>, vector<296x16xf32>, vector<4x296xf32> -> vector<4x296xf32>
    %c0_156 = arith.constant 0 : index
    %c0_157 = arith.constant 0 : index
    %145 = vector.load %arg8[%c0_156, %c0_157] : memref<4x1xf32, #tpu.memory_space<vmem>>, vector<4x1xf32>
    %146 = vector.broadcast %145 : vector<4x1xf32> to vector<4x296xf32>
    %147 = arith.addf %144, %146 : vector<4x296xf32>
    %c0_158 = arith.constant 0 : index
    %c0_159 = arith.constant 0 : index
    %c0_160 = arith.constant 0 : index
    %148 = vector.load %arg9[%c0_158, %c0_159, %c0_160] : memref<1x4x296xf32, #tpu.memory_space<vmem>>, vector<1x4x296xf32>
    %149 = vector.shape_cast %148 : vector<1x4x296xf32> to vector<4x296xf32>
    %150 = vector.shape_cast %147 : vector<4x296xf32> to vector<1x4x296xf32>
    tpu.vector_store %arg9[%c0_158, %c0_159, %c0_160], %150 {strides = array<i32>} : memref<1x4x296xf32, #tpu.memory_space<vmem>>, vector<1x4x296xf32>,
    return
  }
  func.func @transform_0(%arg0: i32) -> (i32, i32, i32) {
    %c0_i32 = arith.constant 0 : i32
    %c0_i32_0 = arith.constant 0 : i32
    %c0_i32_1 = arith.constant 0 : i32
    return %arg0, %c0_i32, %c0_i32_0 : i32, i32, i32
  }
  func.func @transform_1(%arg0: i32) -> (i32, i32) {
    %c0_i32 = arith.constant 0 : i32
    %c0_i32_0 = arith.constant 0 : i32
    %c0_i32_1 = arith.constant 0 : i32
    return %c0_i32, %c0_i32_0 : i32, i32
  }
  func.func @transform_2(%arg0: i32) -> (i32, i32) {
    %c0_i32 = arith.constant 0 : i32
    %c0_i32_0 = arith.constant 0 : i32
    %c0_i32_1 = arith.constant 0 : i32
    return %c0_i32, %c0_i32_0 : i32, i32
  }
  func.func @transform_3(%arg0: i32) -> (i32, i32) {
    %c0_i32 = arith.constant 0 : i32
    %c0_i32_0 = arith.constant 0 : i32
    %c0_i32_1 = arith.constant 0 : i32
    return %c0_i32, %c0_i32_0 : i32, i32
  }
  func.func @transform_4(%arg0: i32) -> (i32, i32, i32) {
    %c0_i32 = arith.constant 0 : i32
    %c0_i32_0 = arith.constant 0 : i32
    %c0_i32_1 = arith.constant 0 : i32
    %c0_i32_2 = arith.constant 0 : i32
    return %c0_i32, %c0_i32_0, %c0_i32_1 : i32, i32, i32
  }
  func.func @transform_5(%arg0: i32) -> (i32, i32, i32) {
    %c0_i32 = arith.constant 0 : i32
    %c0_i32_0 = arith.constant 0 : i32
    %c0_i32_1 = arith.constant 0 : i32
    %c0_i32_2 = arith.constant 0 : i32
    return %c0_i32, %c0_i32_0, %c0_i32_1 : i32, i32, i32
  }
  func.func @transform_6(%arg0: i32) -> (i32, i32) {
    %c0_i32 = arith.constant 0 : i32
    %c0_i32_0 = arith.constant 0 : i32
    %c0_i32_1 = arith.constant 0 : i32
    return %c0_i32, %c0_i32_0 : i32, i32
  }
  func.func @transform_7(%arg0: i32) -> (i32, i32) {
    %c0_i32 = arith.constant 0 : i32
    %c0_i32_0 = arith.constant 0 : i32
    %c0_i32_1 = arith.constant 0 : i32
    return %c0_i32, %c0_i32_0 : i32, i32
  }
  func.func @transform_8(%arg0: i32) -> (i32, i32, i32) {
    %c0_i32 = arith.constant 0 : i32
    %c0_i32_0 = arith.constant 0 : i32
    %c0_i32_1 = arith.constant 0 : i32
    return %arg0, %c0_i32, %c0_i32_0 : i32, i32, i32
  }
}

</mosaic_0001>

<bundles_post_ra>
// kernel: pixelcnn_conditioner_forward.1
= control target key start
LH: loop header
LB: loop body
LE: loop exit
PB: predicated region body
PF: predicated region fallthrough
CT: control target
= control target key end

     0   :  { %s6869_s27 = smov 0   ;;  %s8860_s0 = inlined_call_operand.vmem [shape: f32[2,296,16], index: 0, kind: input, shape index: {}]   ;;  %s8861_s1 = inlined_call_operand.vmem [shape: f32[272,1], index: 1, kind: input, shape index: {}]   ;;  %s8862_s2 = inlined_call_operand.vmem [shape: bf16[80,16], index: 2, kind: input, shape index: {}]   ;;  %s8863_s3 = inlined_call_operand.vmem [shape: f32[1,16], index: 3, kind: input, shape index: {}]   ;;  %s8864_s4 = inlined_call_operand.vmem [shape: bf16[4,80,16], index: 4, kind: input, shape index: {}]   ;;  %s8865_s5 = inlined_call_operand.vmem [shape: f32[4,1,16], index: 5, kind: input, shape index: {}]   ;;  %s8866_s6 = inlined_call_operand.vmem [shape: f32[4,16], index: 6, kind: input, shape index: {}]   ;;  %s8867_s7 = inlined_call_operand.vmem [shape: f32[4,1], index: 7, kind: input, shape index: {}]   ;;  %s8868_s8 = inlined_call_operand.vmem [shape: f32[2,4,296], index: 8, kind: output, shape index: {}]  }
   0x1 LB: > { %s5948_s28 = sadd.s32 4294967295, %s6814_s27   ;;  %p5952_p0 = scmp.ge.s32.totalorder %s6814_s27, 1  ;;  %s6814_s27 = sphi %s6869_s27, %s18_s27  }
   0x2   : > { %p262_p1 = scmp.lt.s32.totalorder %s6814_s27, 3 }
   0x4   : > { %p263_p2 = pnand %p5952_p0, %p262_p1 }
   0x5   : > { %p296_p3 = scmp.lt.s32.totalorder (!%p263_p2), %s5948_s28, 1  ;;  %v6816_v0 = vmov (!%p263_p2), 0.0   ;;  %v6783_v1 = vld [vmem:[%s8862_s2] sm:$0xff] (!%p263_p2)   ;;  %v6784_v2 = vld [vmem:[%s8862_s2 + $0x8] sm:$0xff] (!%p263_p2)   ;;  %vm344_vm0 = vcmask (!%p263_p2), 130048   ;;  %v6785_v3 = vld [vmem:[%s8862_s2 + $0x10] sm:$0xff] (!%p263_p2)  }
   0x6   : > { %266 = sbr.rel (%p263_p2) target bundleno = 2164 (0x874), region = 52  ;;  %6294 = vmatprep.subr.bf16.mxu0 (!%p263_p2), %v6816_v0  ;;  %6753 = vmatprep.subr.bf16.mxu1 (!%p263_p2), %v6816_v0  ;;  %s6817_s17 = smov (!%p263_p2), 16   ;;  %vm6818_vm1 = vmmov (!%p263_p2), 0   ;;  %v6786_v63 = vld [vmem:[%s8862_s2 + $0x18] sm:$0xff] (!%p263_p2)   ;;  %vm614_vm2 = vcmask (!%p263_p2), 261248   ;;  %vm751_vm3 = vcmask (!%p263_p2), 392448   ;;  %vm8754_vm7 = vmpackc.low (!%p263_p2), %vm344_vm0, %vm344_vm0 }
   0x7   : > { %6295 = vmatpush3.bf16.msra.mxu0 (!%p263_p2), %v6783_v1  ;;  %6758 = vmatpush3.bf16.msra.mxu1 (!%p263_p2), %v6783_v1  ;;  %s6819_s18 = smov (!%p263_p2), 48   ;;  %s6820_s19 = smov (!%p263_p2), 32   ;;  %vm888_vm4 = vcmask (!%p263_p2), 523648   ;;  %vm1025_vm5 = vcmask (!%p263_p2), 654848   ;;  %vm1096_vm6 = vcmask (!%p263_p2), 654336   ;;  %vm5891_vm8 = vcmask (!%p263_p2), 322560  }
   0x8   : > { %6296 = vmatprep.subr.bf16.mxu0 (!%p263_p2), %v6816_v0  ;;  %6754 = vmatprep.subr.bf16.mxu1 (!%p263_p2), %v6816_v0  ;;  %s6821_s20 = smov (!%p263_p2), 64  }
   0x9   : > { %6304 = vmatprep.mubr.msk.bf16.mxu0 (!%p263_p2), %vm6818_vm1, %v6816_v0  ;;  %6344 = vmatprep.mubr.msk.bf16.mxu1 (!%p263_p2), %vm6818_vm1, %v6816_v0 }
   0xb   : > { %6297 = vmatpush3.bf16.msra.mxu0 (!%p263_p2), %v6784_v2  ;;  %6759 = vmatpush3.bf16.msra.mxu1 (!%p263_p2), %v6784_v2 }
   0xc   : > { %6298 = vmatprep.subr.bf16.mxu0 (!%p263_p2), %v6816_v0  ;;  %6755 = vmatprep.subr.bf16.mxu1 (!%p263_p2), %v6816_v0 }
   0xd   : > { %s8872_s28 = smov (!%p296_p3, %s5948_s28), 1 }
   0xe   : > { %s6763_s11 = smul.u32 296, %s8872_s28 }
   0xf   : > { %6299 = vmatpush3.bf16.msra.mxu0 %v6785_v3  ;;  %6760 = vmatpush3.bf16.msra.mxu1 %v6785_v3 }
  0x10   : > { %s6893_s14 = scalar_lea.vmem %s8860_s0, %s6763_s11  ;;  %6300 = vmatprep.subr.bf16.mxu0 %v6816_v0  ;;  %6756 = vmatprep.subr.bf16.mxu1 %v6816_v0  ;;  %s6764_s11 = smul.u32 12, %s8872_s28 }
  0x11   : > { %v307_v4 = vld [vmem:[%s6893_s14] sm:$0xff]  ;;  %v308_v5 = vld [vmem:[%s6893_s14 + $0x8] sm:$0xff]  ;;  %v309_v6 = vld [vmem:[%s6893_s14 + $0x10] sm:$0xff] }
  0x12   : > { %345 = vst.msk [vmem:[#allocation2] sm:$0xff] %vm344_vm0, %v307_v4  ;;  %346 = vst.msk [vmem:[#allocation2 + $0x8] sm:$0xff] %vm344_vm0, %v308_v5  ;;  %v310_v7 = vld [vmem:[%s6893_s14 + $0x18] sm:$0xff]  ;;  %v311_v8 = vld [vmem:[%s6893_s14 + $0x20] sm:$0xff] }
  0x13   : > { %347 = vst.msk [vmem:[#allocation2 + $0x10] sm:$0xff] %vm344_vm0, %v309_v6  ;;  %v312_v9 = vld [vmem:[%s6893_s14 + $0x28] sm:$0xff]  ;;  %348 = vst.msk [vmem:[#allocation2 + $0x18] sm:$0xff] %vm344_vm0, %v310_v7  ;;  %v313_v10 = vld [vmem:[%s6893_s14 + $0x30] sm:$0xff]  ;;  %6301 = vmatpush3.bf16.msra.mxu0 %v6786_v63  ;;  %6761 = vmatpush3.bf16.msra.mxu1 %v6786_v63 }
  0x14   : > { %349 = vst.msk [vmem:[#allocation2 + $0x20] sm:$0xff] %vm344_vm0, %v311_v8  ;;  %350 = vst.msk [vmem:[#allocation2 + $0x28] sm:$0xff] %vm344_vm0, %v312_v9  ;;  %v314_v11 = vld [vmem:[%s6893_s14 + $0x38] sm:$0xff]  ;;  %v315_v12 = vld [vmem:[%s6893_s14 + $0x40] sm:$0xff]  ;;  %6302 = vmatprep.subr.bf16.mxu0 %v6816_v0  ;;  %6757 = vmatprep.subr.bf16.mxu1 %v6816_v0 }
  0x15   : > { %351 = vst.msk [vmem:[#allocation2 + $0x30] sm:$0xff] %vm344_vm0, %v313_v10  ;;  %352 = vst.msk [vmem:[#allocation2 + $0x38] sm:$0xff] %vm344_vm0, %v314_v11  ;;  %v316_v13 = vld [vmem:[%s6893_s14 + $0x48] sm:$0xff]  ;;  %v317_v14 = vld [vmem:[%s6893_s14 + $0x50] sm:$0xff] }
  0x16   : > { %353 = vst.msk [vmem:[#allocation2 + $0x40] sm:$0xff] %vm344_vm0, %v315_v12  ;;  %v318_v15 = vld [vmem:[%s6893_s14 + $0x58] sm:$0xff]  ;;  %354 = vst.msk [vmem:[#allocation2 + $0x48] sm:$0xff] %vm344_vm0, %v316_v13  ;;  %v319_v16 = vld [vmem:[%s6893_s14 + $0x60] sm:$0xff] }
  0x17   : > { %355 = vst.msk [vmem:[#allocation2 + $0x50] sm:$0xff] %vm344_vm0, %v317_v14  ;;  %356 = vst.msk [vmem:[#allocation2 + $0x58] sm:$0xff] %vm344_vm0, %v318_v15  ;;  %v320_v17 = vld [vmem:[%s6893_s14 + $0x68] sm:$0xff]  ;;  %v321_v18 = vld [vmem:[%s6893_s14 + $0x70] sm:$0xff]  ;;  %v6822_v15 = vmov 0  }
  0x18   : > { %357 = vst.msk [vmem:[#allocation2 + $0x60] sm:$0xff] %vm344_vm0, %v319_v16  ;;  %358 = vst.msk [vmem:[#allocation2 + $0x68] sm:$0xff] %vm344_vm0, %v320_v17  ;;  %v322_v19 = vld [vmem:[%s6893_s14 + $0x78] sm:$0xff]  ;;  %v323_v20 = vld [vmem:[%s6893_s14 + $0x80] sm:$0xff]  ;;  %6781 = vset.pattern.permute.xlu0 %v6822_v15  ;;  %6782 = vset.pattern.permute.xlu1 %v6822_v15 }
  0x19   : > { %359 = vst.msk [vmem:[#allocation2 + $0x70] sm:$0xff] %vm344_vm0, %v321_v18  ;;  %v324_v21 = vld [vmem:[%s6893_s14 + $0x88] sm:$0xff]  ;;  %360 = vst.msk [vmem:[#allocation2 + $0x78] sm:$0xff] %vm344_vm0, %v322_v19  ;;  %v325_v22 = vld [vmem:[%s6893_s14 + $0x90] sm:$0xff] }
  0x1a   : > { %361 = vst.msk [vmem:[#allocation2 + $0x80] sm:$0xff] %vm344_vm0, %v323_v20  ;;  %362 = vst.msk [vmem:[#allocation2 + $0x88] sm:$0xff] %vm344_vm0, %v324_v21  ;;  %v326_v23 = vld [vmem:[%s6893_s14 + $0x98] sm:$0xff]  ;;  %v327_v24 = vld [vmem:[%s6893_s14 + $0xa0] sm:$0xff] }
  0x1b   : > { %363 = vst.msk [vmem:[#allocation2 + $0x90] sm:$0xff] %vm344_vm0, %v325_v22  ;;  %364 = vst.msk [vmem:[#allocation2 + $0x98] sm:$0xff] %vm344_vm0, %v326_v23  ;;  %v328_v25 = vld [vmem:[%s6893_s14 + $0xa8] sm:$0xff]  ;;  %v329_v26 = vld [vmem:[%s6893_s14 + $0xb0] sm:$0xff] }
  0x1c   : > { %365 = vst.msk [vmem:[#allocation2 + $0xa0] sm:$0xff] %vm344_vm0, %v327_v24  ;;  %v330_v27 = vld [vmem:[%s6893_s14 + $0xb8] sm:$0xff]  ;;  %v495_v28 = vld [vmem:[#allocation2 + $0x7] sm:$0xff]  ;;  %v496_v29 = vld [vmem:[#allocation2 + $0xf] sm:$0xff] }
  0x1d   : > { %v632_v30 = vld [vmem:[#allocation2 + $0x8] sm:$0xff]  ;;  %366 = vst.msk [vmem:[#allocation2 + $0xa8] sm:$0xff] %vm344_vm0, %v328_v25  ;;  %367 = vst.msk [vmem:[#allocation2 + $0xb0] sm:$0xff] %vm344_vm0, %v329_v26  ;;  %v529_v31 = vpack.c.bf16 %v496_v29, %v495_v28  ;;  %v769_v32 = vld [vmem:[#allocation2 + $0x17] sm:$0xff] }
  0x1e   : > { %368 = vst.msk [vmem:[#allocation2 + $0xb8] sm:$0xff] %vm344_vm0, %v330_v27  ;;  %v770_v33 = vld [vmem:[#allocation2 + $0x1f] sm:$0xff]  ;;  %v633_v34 = vld [vmem:[#allocation2 + $0x10] sm:$0xff]  ;;  %v771_v40 = vld [vmem:[#allocation2 + $0x27] sm:$0xff] }
  0x1f   : > { %v803_v35 = vpack.c.bf16 %v770_v33, %v769_v32  ;;  %v906_v36 = vld [vmem:[#allocation2 + $0x18] sm:$0xff]  ;;  %v907_v37 = vld [vmem:[#allocation2 + $0x20] sm:$0xff]  ;;  %563 = vrot.lane.b32.xlu0 %v529_v31, %s6817_s17  ;;  %v666_v38 = vpack.c.bf16 %v633_v34, %v632_v30  ;;  %v772_v41 = vld [vmem:[#allocation2 + $0x2f] sm:$0xff] }
  0x20   : > { %v940_v39 = vpack.c.bf16 %v907_v37, %v906_v36  ;;  %v908_v42 = vld [vmem:[#allocation2 + $0x28] sm:$0xff]  ;;  %v909_v43 = vld [vmem:[#allocation2 + $0x30] sm:$0xff]  ;;  %v804_v44 = vpack.c.bf16 %v772_v41, %v771_v40  ;;  %v774_v47 = vld [vmem:[#allocation2 + $0x3f] sm:$0xff] }
  0x21   : > { %837 = vrot.lane.b32.xlu1 %v803_v35, %s6819_s18  ;;  %v941_v45 = vpack.c.bf16 %v909_v43, %v908_v42  ;;  %v773_v46 = vld [vmem:[#allocation2 + $0x37] sm:$0xff]  ;;  %v331_v48 = vld [vmem:[%s6893_s14 + $0xc0] sm:$0xff]  ;;  %v332_v51 = vld [vmem:[%s6893_s14 + $0xc8] sm:$0xff] }
  0x22   : > { %v910_v49 = vld [vmem:[#allocation2 + $0x38] sm:$0xff]  ;;  %v911_v50 = vld [vmem:[#allocation2 + $0x40] sm:$0xff]  ;;  %369 = vst.msk [vmem:[#allocation2 + $0xc0] sm:$0xff] %vm344_vm0, %v331_v48  ;;  %v333_v52 = vld [vmem:[%s6893_s14 + $0xd0] sm:$0xff]  ;;  %v805_v61 = vpack.c.bf16 %v774_v47, %v773_v46 }
  0x23   : > { %700 = vrot.lane.b32.xlu0 %v666_v38, %s6820_s19  ;;  %370 = vst.msk [vmem:[#allocation2 + $0xc8] sm:$0xff] %vm344_vm0, %v332_v51  ;;  %v334_v53 = vld [vmem:[%s6893_s14 + $0xd8] sm:$0xff]  ;;  %v335_v54 = vld [vmem:[%s6893_s14 + $0xe0] sm:$0xff]  ;;  %371 = vst.msk [vmem:[#allocation2 + $0xd0] sm:$0xff] %vm344_vm0, %v333_v52  ;;  %v942_v3 = vpack.c.bf16 %v911_v50, %v910_v49 }
  0x24   : > { %372 = vst.msk [vmem:[#allocation2 + $0xd8] sm:$0xff] %vm344_vm0, %v334_v53  ;;  %373 = vst.msk [vmem:[#allocation2 + $0xe0] sm:$0xff] %vm344_vm0, %v335_v54  ;;  %v336_v55 = vld [vmem:[%s6893_s14 + $0xe8] sm:$0xff]  ;;  %v337_v56 = vld [vmem:[%s6893_s14 + $0xf0] sm:$0xff] }
  0x25   : > { %974 = vrot.lane.b32.xlu1 %v940_v39, %s6821_s20  ;;  %v428_v57 = vld [vmem:[#allocation2 + $0xe] sm:$0xff]  ;;  %374 = vst.msk [vmem:[#allocation2 + $0xe8] sm:$0xff] %vm344_vm0, %v336_v55  ;;  %375 = vst.msk [vmem:[#allocation2 + $0xf0] sm:$0xff] %vm344_vm0, %v337_v56  ;;  %v427_v58 = vld [vmem:[#allocation2 + $0x6] sm:$0xff] }
  0x26   : > { %v338_v59 = vld [vmem:[%s6893_s14 + $0xf8] sm:$0xff]  ;;  %v339_v60 = vld [vmem:[%s6893_s14 + $0x100] sm:$0xff]  ;;  %v6979_v62 = vpack.c.bf16 %v428_v57, %v427_v58  ;;  %v340_v5 = vld [vmem:[%s6893_s14 + $0x108] sm:$0xff] }
  0x27   : > { %565 = vrot.lane.b32.xlu0 %v803_v35, %s6817_s17  ;;  %376 = vst.msk [vmem:[#allocation2 + $0xf8] sm:$0xff] %vm344_vm0, %v338_v59  ;;  %377 = vst.msk [vmem:[#allocation2 + $0x100] sm:$0xff] %vm344_vm0, %v339_v60  ;;  %v429_v1 = vld [vmem:[#allocation2 + $0x16] sm:$0xff]  ;;  %v430_v2 = vld [vmem:[#allocation2 + $0x1e] sm:$0xff] }
  0x28   : > { %v462_v4 = vpack.c.bf16 %v430_v2, %v429_v1  ;;  %v341_v6 = vld [vmem:[%s6893_s14 + $0x110] sm:$0xff]  ;;  %v6787_v7 = vld [vmem:[%s8862_s2 + $0x20] sm:$0xff]   ;;  %478 = vst.msk [vmem:[#allocation3] sm:$0xff] %vm344_vm0, %v6979_v62  ;;  %378 = vst.msk [vmem:[#allocation2 + $0x108] sm:$0xff] %vm344_vm0, %v340_v5 }
  0x29   : > { %702 = vrot.lane.b32.xlu1 %v940_v39, %s6820_s19  ;;  %379 = vst.msk [vmem:[#allocation2 + $0x110] sm:$0xff] %vm344_vm0, %v341_v6  ;;  %v431_v8 = vld [vmem:[#allocation2 + $0x26] sm:$0xff]  ;;  %v432_v9 = vld [vmem:[#allocation2 + $0x2e] sm:$0xff]  ;;  %v342_v10 = vld [vmem:[%s6893_s14 + $0x118] sm:$0xff]  ;;  %6303 = vmatpush3.bf16.msra.mxu0 %v6787_v7 }
  0x2a   : > { %479 = vst.msk [vmem:[#allocation3 + $0x8] sm:$0xff] %vm344_vm0, %v462_v4  ;;  %v463_v11 = vpack.c.bf16 %v432_v9, %v431_v8  ;;  %v343_v12 = vld [vmem:[%s6893_s14 + $0x120] sm:$0xff]  ;;  %380 = vst.msk [vmem:[#allocation2 + $0x118] sm:$0xff] %vm344_vm0, %v342_v10  ;;  %v776_v14 = vld [vmem:[#allocation2 + $0x4f] sm:$0xff]  ;;  %6762 = vmatpush3.bf16.msra.mxu1 %v6787_v7  ;;  %6450 = vmatprep.subr.bf16.mxu0 %v6816_v0  ;;  %s305_s14 = scalar_lea.vmem %s8868_s8, %s6764_s11 }
  0x2b   : > { %839 = vrot.lane.b32.xlu0 %v804_v44, %s6819_s18  ;;  %381 = vst.msk [vmem:[#allocation2 + $0x120] sm:$0xff] %vm344_vm0, %v343_v12  ;;  %v775_v13 = vld [vmem:[#allocation2 + $0x47] sm:$0xff]  ;;  %v913_v17 = vld [vmem:[#allocation2 + $0x50] sm:$0xff]  ;;  %6372 = vmatprep.subr.bf16.mxu1 %v6816_v0  ;;  %v434_v22 = vld [vmem:[#allocation2 + $0x3e] sm:$0xff] }
  0x2c   : > { %480 = vst.msk [vmem:[#allocation3 + $0x10] sm:$0xff] %vm344_vm0, %v463_v11  ;;  %v912_v16 = vld [vmem:[#allocation2 + $0x48] sm:$0xff]  ;;  %v806_v18 = vpack.c.bf16 %v776_v14, %v775_v13  ;;  %v433_v20 = vld [vmem:[#allocation2 + $0x36] sm:$0xff]  ;;  %v778_v24 = vld [vmem:[#allocation2 + $0x5f] sm:$0xff] }
  0x2d   : > { %976 = vrot.lane.b32.xlu1 %v941_v45, %s6821_s20  ;;  %v943_v19 = vpack.c.bf16 %v913_v17, %v912_v16  ;;  %v777_v21 = vld [vmem:[#allocation2 + $0x57] sm:$0xff]  ;;  %v435_v23 = vld [vmem:[#allocation2 + $0x46] sm:$0xff]  ;;  %v464_v26 = vpack.c.bf16 %v434_v22, %v433_v20  ;;  %v436_v27 = vld [vmem:[#allocation2 + $0x4e] sm:$0xff] }
  0x2e   : > { %v914_v25 = vld [vmem:[#allocation2 + $0x58] sm:$0xff]  ;;  %v915_v28 = vld [vmem:[#allocation2 + $0x60] sm:$0xff]  ;;  %v465_v29 = vpack.c.bf16 %v436_v27, %v435_v23  ;;  %v807_v33 = vpack.c.bf16 %v778_v24, %v777_v21  ;;  %v440_v35 = vld [vmem:[#allocation2 + $0x6e] sm:$0xff] }
  0x2f   : > { %567 = vrot.lane.b32.xlu0 %v804_v44, %s6817_s17  ;;  %v437_v30 = vld [vmem:[#allocation2 + $0x56] sm:$0xff]  ;;  %v438_v31 = vld [vmem:[#allocation2 + $0x5e] sm:$0xff]  ;;  %481 = vst.msk [vmem:[#allocation3 + $0x18] sm:$0xff] %vm344_vm0, %v464_v26  ;;  %v439_v34 = vld [vmem:[#allocation2 + $0x66] sm:$0xff]  ;;  %v944_v36 = vpack.c.bf16 %v915_v28, %v914_v25 }
  0x30   : > { %v466_v32 = vpack.c.bf16 %v438_v31, %v437_v30  ;;  %482 = vst.msk [vmem:[#allocation3 + $0x20] sm:$0xff] %vm344_vm0, %v465_v29  ;;  %v467_v37 = vpack.c.bf16 %v440_v35, %v439_v34  ;;  %v779_v38 = vld [vmem:[#allocation2 + $0x67] sm:$0xff]  ;;  %v780_v39 = vld [vmem:[#allocation2 + $0x6f] sm:$0xff]  ;;  %v442_v44 = vld [vmem:[#allocation2 + $0x7e] sm:$0xff] }
  0x31   : > { %704 = vrot.lane.b32.xlu1 %v941_v45, %s6820_s19  ;;  %v916_v40 = vld [vmem:[#allocation2 + $0x68] sm:$0xff]  ;;  %v917_v41 = vld [vmem:[#allocation2 + $0x70] sm:$0xff]  ;;  %v808_v42 = vpack.c.bf16 %v780_v39, %v779_v38  ;;  %v782_v48 = vld [vmem:[#allocation2 + $0x7f] sm:$0xff] }
  0x32   : > { %483 = vst.msk [vmem:[#allocation3 + $0x28] sm:$0xff] %vm344_vm0, %v466_v32  ;;  %484 = vst.msk [vmem:[#allocation3 + $0x30] sm:$0xff] %vm344_vm0, %v467_v37  ;;  %v441_v43 = vld [vmem:[#allocation2 + $0x76] sm:$0xff]  ;;  %v945_v45 = vpack.c.bf16 %v917_v41, %v916_v40  ;;  %v919_v50 = vld [vmem:[#allocation2 + $0x80] sm:$0xff] }
  0x33   : > { %841 = vrot.lane.b32.xlu0 %v805_v61, %s6819_s18  ;;  %v468_v46 = vpack.c.bf16 %v442_v44, %v441_v43  ;;  %v781_v47 = vld [vmem:[#allocation2 + $0x77] sm:$0xff]  ;;  %v443_v52 = vld [vmem:[#allocation2 + $0x86] sm:$0xff]  ;;  %v444_v53 = vld [vmem:[#allocation2 + $0x8e] sm:$0xff] }
  0x34   : > { %v918_v49 = vld [vmem:[#allocation2 + $0x78] sm:$0xff]  ;;  %v809_v51 = vpack.c.bf16 %v782_v48, %v781_v47  ;;  %v469_v55 = vpack.c.bf16 %v444_v53, %v443_v52  ;;  %v783_v56 = vld [vmem:[#allocation2 + $0x87] sm:$0xff]  ;;  %v784_v57 = vld [vmem:[#allocation2 + $0x8f] sm:$0xff] }
  0x35   : > { %978 = vrot.lane.b32.xlu1 %v942_v3, %s6821_s20  ;;  %485 = vst.msk [vmem:[#allocation3 + $0x38] sm:$0xff] %vm344_vm0, %v468_v46  ;;  %v946_v54 = vpack.c.bf16 %v919_v50, %v918_v49  ;;  %v920_v58 = vld [vmem:[#allocation2 + $0x88] sm:$0xff]  ;;  %v921_v59 = vld [vmem:[#allocation2 + $0x90] sm:$0xff]  ;;  %v810_v60 = vpack.c.bf16 %v784_v57, %v783_v56  ;;  %v446_v63 = vld [vmem:[#allocation2 + $0x9e] sm:$0xff] }
  0x36   : > { %486 = vst.msk [vmem:[#allocation3 + $0x40] sm:$0xff] %vm344_vm0, %v469_v55  ;;  %v947_v1 = vpack.c.bf16 %v921_v59, %v920_v58  ;;  %v786_v4 = vld [vmem:[#allocation2 + $0x9f] sm:$0xff]  ;;  %v448_v9 = vld [vmem:[#allocation2 + $0xae] sm:$0xff]  ;;  %v449_v17 = vld [vmem:[#allocation2 + $0xb6] sm:$0xff] }
  0x37   : > { %569 = vrot.lane.b32.xlu0 %v805_v61, %s6817_s17  ;;  %v445_v61 = vld [vmem:[#allocation2 + $0x96] sm:$0xff]  ;;  %v923_v6 = vld [vmem:[#allocation2 + $0xa0] sm:$0xff]  ;;  %v924_v14 = vld [vmem:[#allocation2 + $0xa8] sm:$0xff] }
  0x38   : > { %v470_v2 = vpack.c.bf16 %v446_v63, %v445_v61  ;;  %v922_v5 = vld [vmem:[#allocation2 + $0x98] sm:$0xff]  ;;  %v447_v8 = vld [vmem:[#allocation2 + $0xa6] sm:$0xff]  ;;  %v788_v13 = vld [vmem:[#allocation2 + $0xaf] sm:$0xff] }
  0x39   : > { %706 = vrot.lane.b32.xlu1 %v942_v3, %s6820_s19  ;;  %v785_v3 = vld [vmem:[#allocation2 + $0x97] sm:$0xff]  ;;  %v948_v10 = vpack.c.bf16 %v923_v6, %v922_v5  ;;  %v471_v11 = vpack.c.bf16 %v448_v9, %v447_v8  ;;  %v787_v12 = vld [vmem:[#allocation2 + $0xa7] sm:$0xff]  ;;  %v790_v22 = vld [vmem:[#allocation2 + $0xbf] sm:$0xff] }
  0x3a   : > { %487 = vst.msk [vmem:[#allocation3 + $0x48] sm:$0xff] %vm344_vm0, %v470_v2  ;;  %v811_v7 = vpack.c.bf16 %v786_v4, %v785_v3  ;;  %v925_v15 = vld [vmem:[#allocation2 + $0xb0] sm:$0xff]  ;;  %v812_v16 = vpack.c.bf16 %v788_v13, %v787_v12  ;;  %v926_v23 = vld [vmem:[#allocation2 + $0xb8] sm:$0xff]  ;;  %v927_v24 = vld [vmem:[#allocation2 + $0xc0] sm:$0xff] }
  0x3b   : > { %843 = vrot.lane.b32.xlu0 %v806_v18, %s6819_s18  ;;  %488 = vst.msk [vmem:[#allocation3 + $0x50] sm:$0xff] %vm344_vm0, %v471_v11  ;;  %v789_v21 = vld [vmem:[#allocation2 + $0xb7] sm:$0xff]  ;;  %v451_v26 = vld [vmem:[#allocation2 + $0xc6] sm:$0xff]  ;;  %v452_v27 = vld [vmem:[#allocation2 + $0xce] sm:$0xff]  ;;  %v950_v28 = vpack.c.bf16 %v927_v24, %v926_v23 }
  0x3c   : > { %v813_v25 = vpack.c.bf16 %v790_v22, %v789_v21  ;;  %v473_v29 = vpack.c.bf16 %v452_v27, %v451_v26  ;;  %v791_v30 = vld [vmem:[#allocation2 + $0xc7] sm:$0xff]  ;;  %v792_v31 = vld [vmem:[#allocation2 + $0xcf] sm:$0xff]  ;;  %v793_v39 = vld [vmem:[#allocation2 + $0xd7] sm:$0xff] }
  0x3d   : > { %980 = vrot.lane.b32.xlu1 %v943_v19, %s6821_s20  ;;  %v928_v32 = vld [vmem:[#allocation2 + $0xc8] sm:$0xff]  ;;  %v814_v34 = vpack.c.bf16 %v792_v31, %v791_v30  ;;  %v453_v35 = vld [vmem:[#allocation2 + $0xd6] sm:$0xff]  ;;  %v794_v40 = vld [vmem:[#allocation2 + $0xdf] sm:$0xff] }
  0x3e   : > { %490 = vst.msk [vmem:[#allocation3 + $0x60] sm:$0xff] %vm344_vm0, %v473_v29  ;;  %v930_v41 = vld [vmem:[#allocation2 + $0xd8] sm:$0xff]  ;;  %v815_v43 = vpack.c.bf16 %v794_v40, %v793_v39  ;;  %v455_v44 = vld [vmem:[#allocation2 + $0xe6] sm:$0xff]  ;;  %v796_v49 = vld [vmem:[#allocation2 + $0xef] sm:$0xff] }
  0x3f   : > { %571 = vrot.lane.b32.xlu0 %v806_v18, %s6817_s17  ;;  %v450_v18 = vld [vmem:[#allocation2 + $0xbe] sm:$0xff]  ;;  %v795_v48 = vld [vmem:[#allocation2 + $0xe7] sm:$0xff]  ;;  %v457_v53 = vld [vmem:[#allocation2 + $0xf6] sm:$0xff] }
  0x40   : > { %v472_v20 = vpack.c.bf16 %v450_v18, %v449_v17  ;;  %v932_v50 = vld [vmem:[#allocation2 + $0xe8] sm:$0xff]  ;;  %v816_v52 = vpack.c.bf16 %v796_v49, %v795_v48  ;;  %v797_v57 = vld [vmem:[#allocation2 + $0xf7] sm:$0xff]  ;;  %v798_v58 = vld [vmem:[#allocation2 + $0xff] sm:$0xff] }
  0x41   : > { %708 = vrot.lane.b32.xlu1 %v943_v19, %s6820_s19  ;;  %v949_v19 = vpack.c.bf16 %v925_v15, %v924_v14  ;;  %v934_v59 = vld [vmem:[#allocation2 + $0xf8] sm:$0xff]  ;;  %v817_v61 = vpack.c.bf16 %v798_v58, %v797_v57  ;;  %v459_v63 = vld [vmem:[#allocation2 + $0x106] sm:$0xff] }
  0x42   : > { %489 = vst.msk [vmem:[#allocation3 + $0x58] sm:$0xff] %vm344_vm0, %v472_v20  ;;  %v799_v6 = vld [vmem:[#allocation2 + $0x107] sm:$0xff]  ;;  %v802_v17 = vld [vmem:[#allocation2 + $0x11f] sm:$0xff] }
  0x43   : > { %845 = vrot.lane.b32.xlu0 %v807_v33, %s6819_s18  ;;  %v936_v9 = vld [vmem:[#allocation2 + $0x108] sm:$0xff]  ;;  %v939_v20 = vld [vmem:[#allocation2 + $0x120] sm:$0xff]  ;;  %v385_v31 = vld [vmem:[%s8861_s1 + $0x18] sm:$0xff] }
  0x44   : > { %v382_v27 = vld [vmem:[%s8861_s1] sm:$0xff]  ;;  %v389_v40 = vld [vmem:[%s8861_s1 + $0x38] sm:$0xff] }
  0x45   : > { %982 = vrot.lane.b32.xlu1 %v944_v36, %s6821_s20  ;;  %v393_v49 = vld [vmem:[%s8861_s1 + $0x58] sm:$0xff] }
  0x46   : > { %v397_v58 = vld [vmem:[%s8861_s1 + $0x78] sm:$0xff] }
  0x47   : > { %573 = vrot.lane.b32.xlu0 %v807_v33, %s6817_s17  ;;  %v929_v33 = vld [vmem:[#allocation2 + $0xd0] sm:$0xff] }
  0x48   : > { %v951_v37 = vpack.c.bf16 %v929_v33, %v928_v32  ;;  %v384_v33 = vld [vmem:[%s8861_s1 + $0x10] sm:$0xff] }
  0x49   : > { %710 = vrot.lane.b32.xlu1 %v944_v36, %s6820_s19  ;;  %v454_v36 = vld [vmem:[#allocation2 + $0xde] sm:$0xff] }
  0x4a   : > { %v474_v38 = vpack.c.bf16 %v454_v36, %v453_v35  ;;  %v387_v35 = vld [vmem:[%s8861_s1 + $0x28] sm:$0xff] }
  0x4b   : > { %847 = vrot.lane.b32.xlu0 %v808_v42, %s6819_s18 }
  0x4c   : > { %491 = vst.msk [vmem:[#allocation3 + $0x68] sm:$0xff] %vm344_vm0, %v474_v38 }
  0x4d   : > { %984 = vrot.lane.b32.xlu1 %v945_v45, %s6821_s20 }
  0x4f   : > { %575 = vrot.lane.b32.xlu0 %v808_v42, %s6817_s17  ;;  %v931_v42 = vld [vmem:[#allocation2 + $0xe0] sm:$0xff] }
  0x50   : > { %v952_v46 = vpack.c.bf16 %v931_v42, %v930_v41  ;;  %v388_v42 = vld [vmem:[%s8861_s1 + $0x30] sm:$0xff] }
  0x51   : > { %712 = vrot.lane.b32.xlu1 %v945_v45, %s6820_s19  ;;  %v456_v45 = vld [vmem:[#allocation2 + $0xee] sm:$0xff] }
  0x52   : > { %v475_v47 = vpack.c.bf16 %v456_v45, %v455_v44  ;;  %v391_v44 = vld [vmem:[%s8861_s1 + $0x48] sm:$0xff] }
  0x53   : > { %849 = vrot.lane.b32.xlu0 %v809_v51, %s6819_s18 }
  0x54   : > { %492 = vst.msk [vmem:[#allocation3 + $0x70] sm:$0xff] %vm344_vm0, %v475_v47 }
  0x55   : > { %986 = vrot.lane.b32.xlu1 %v946_v54, %s6821_s20 }
  0x57   : > { %577 = vrot.lane.b32.xlu0 %v809_v51, %s6817_s17  ;;  %v933_v51 = vld [vmem:[#allocation2 + $0xf0] sm:$0xff] }
  0x58   : > { %v953_v55 = vpack.c.bf16 %v933_v51, %v932_v50  ;;  %v392_v51 = vld [vmem:[%s8861_s1 + $0x50] sm:$0xff] }
  0x59   : > { %714 = vrot.lane.b32.xlu1 %v946_v54, %s6820_s19  ;;  %v458_v54 = vld [vmem:[#allocation2 + $0xfe] sm:$0xff] }
  0x5a   : > { %v476_v56 = vpack.c.bf16 %v458_v54, %v457_v53  ;;  %v395_v53 = vld [vmem:[%s8861_s1 + $0x68] sm:$0xff] }
  0x5b   : > { %851 = vrot.lane.b32.xlu0 %v810_v60, %s6819_s18 }
  0x5c   : > { %493 = vst.msk [vmem:[#allocation3 + $0x78] sm:$0xff] %vm344_vm0, %v476_v56 }
  0x5d   : > { %988 = vrot.lane.b32.xlu1 %v947_v1, %s6821_s20 }
  0x5f   : > { %579 = vrot.lane.b32.xlu0 %v810_v60, %s6817_s17  ;;  %v935_v60 = vld [vmem:[#allocation2 + $0x100] sm:$0xff] }
  0x60   : > { %v954_v2 = vpack.c.bf16 %v935_v60, %v934_v59  ;;  %v396_v60 = vld [vmem:[%s8861_s1 + $0x70] sm:$0xff] }
  0x61   : > { %716 = vrot.lane.b32.xlu1 %v947_v1, %s6820_s19  ;;  %v460_v1 = vld [vmem:[#allocation2 + $0x10e] sm:$0xff] }
  0x62   : > { %v477_v3 = vpack.c.bf16 %v460_v1, %v459_v63  ;;  %v399_v63 = vld [vmem:[%s8861_s1 + $0x88] sm:$0xff] }
  0x63   : > { %853 = vrot.lane.b32.xlu0 %v811_v7, %s6819_s18 }
  0x64   : > { %494 = vst.msk [vmem:[#allocation3 + $0x80] sm:$0xff] %vm344_vm0, %v477_v3 }
  0x65   : > { %990 = vrot.lane.b32.xlu1 %v948_v10, %s6821_s20 }
  0x67   : > { %581 = vrot.lane.b32.xlu0 %v811_v7, %s6817_s17  ;;  %v800_v7 = vld [vmem:[#allocation2 + $0x10f] sm:$0xff] }
  0x68   : > { %v818_v12 = vpack.c.bf16 %v800_v7, %v799_v6  ;;  %v1804_v6 = vld [vmem:[#allocation2 + $0x8] sm:$0xff]  ;;  %v1805_v7 = vld [vmem:[#allocation2 + $0x10] sm:$0xff] }
  0x69   : > { %718 = vrot.lane.b32.xlu1 %v948_v10, %s6820_s19  ;;  %v937_v10 = vld [vmem:[#allocation2 + $0x110] sm:$0xff] }
  0x6a   : > { %v955_v13 = vpack.c.bf16 %v937_v10, %v936_v9  ;;  %v400_v9 = vld [vmem:[%s8861_s1 + $0x90] sm:$0xff]  ;;  %v1668_v10 = vld [vmem:[#allocation2 + $0x7] sm:$0xff] }
  0x6b   : > { %855 = vrot.lane.b32.xlu0 %v812_v16, %s6819_s18 }
  0x6d   : > { %992 = vrot.lane.b32.xlu1 %v949_v19, %s6821_s20 }
  0x6f   : > { %583 = vrot.lane.b32.xlu0 %v812_v16, %s6817_s17  ;;  %v801_v16 = vld [vmem:[#allocation2 + $0x117] sm:$0xff] }
  0x70   : > { %v819_v23 = vpack.c.bf16 %v802_v17, %v801_v16 }
  0x71   : > { %720 = vrot.lane.b32.xlu1 %v949_v19, %s6820_s19  ;;  %v938_v19 = vld [vmem:[#allocation2 + $0x118] sm:$0xff] }
  0x72   : > { %v956_v24 = vpack.c.bf16 %v939_v20, %v938_v19  ;;  %v402_v20 = vld [vmem:[%s8861_s1 + $0xa0] sm:$0xff] }
  0x73   : > { %857 = vrot.lane.b32.xlu0 %v813_v25, %s6819_s18 }
  0x75   : > { %994 = vrot.lane.b32.xlu1 %v950_v28, %s6821_s20 }
  0x77   : > { %585 = vrot.lane.b32.xlu0 %v813_v25, %s6817_s17 }
  0x79   : > { %722 = vrot.lane.b32.xlu1 %v950_v28, %s6820_s19 }
  0x7b   : > { %859 = vrot.lane.b32.xlu0 %v814_v34, %s6819_s18 }
  0x7d   : > { %996 = vrot.lane.b32.xlu1 %v951_v37, %s6821_s20 }
  0x7f   : > { %587 = vrot.lane.b32.xlu0 %v814_v34, %s6817_s17 }
  0x81   : > { %724 = vrot.lane.b32.xlu1 %v951_v37, %s6820_s19  ;;  %v386_v37 = vld [vmem:[%s8861_s1 + $0x20] sm:$0xff] }
  0x83   : > { %861 = vrot.lane.b32.xlu0 %v815_v43, %s6819_s18 }
  0x85   : > { %998 = vrot.lane.b32.xlu1 %v952_v46, %s6821_s20 }
  0x87   : > { %589 = vrot.lane.b32.xlu0 %v815_v43, %s6817_s17 }
  0x89   : > { %726 = vrot.lane.b32.xlu1 %v952_v46, %s6820_s19  ;;  %v390_v46 = vld [vmem:[%s8861_s1 + $0x40] sm:$0xff] }
  0x8b   : > { %863 = vrot.lane.b32.xlu0 %v816_v52, %s6819_s18 }
  0x8d   : > { %1000 = vrot.lane.b32.xlu1 %v953_v55, %s6821_s20 }
  0x8f   : > { %591 = vrot.lane.b32.xlu0 %v816_v52, %s6817_s17 }
  0x91   : > { %728 = vrot.lane.b32.xlu1 %v953_v55, %s6820_s19  ;;  %v564_v4 = vpop.permute.xlu0 %563  ;;  %v394_v55 = vld [vmem:[%s8861_s1 + $0x60] sm:$0xff] }
  0x92   : > { %615 = vst.msk [vmem:[#allocation3] sm:$0xff] %vm614_vm2, %v564_v4 }
  0x93   : > { %v838_v5 = vpop.permute.xlu1 %837  ;;  %865 = vrot.lane.b32.xlu0 %v817_v61, %s6819_s18 }
  0x95   : > { %1002 = vrot.lane.b32.xlu1 %v954_v2, %s6821_s20  ;;  %v701_v8 = vpop.permute.xlu0 %700 }
  0x96   : > { %752 = vst.msk [vmem:[#allocation3] sm:$0xff] %vm751_vm3, %v701_v8 }
  0x97   : > { %v975_v11 = vpop.permute.xlu1 %974  ;;  %889 = vst.msk [vmem:[#allocation3] sm:$0xff] %vm888_vm4, %v838_v5  ;;  %593 = vrot.lane.b32.xlu0 %v817_v61, %s6817_s17  ;;  %v401_v5 = vld [vmem:[%s8861_s1 + $0x98] sm:$0xff] }
  0x98   : > { %1026 = vst.msk [vmem:[#allocation3] sm:$0xff] %vm1025_vm5, %v975_v11  ;;  %v1669_v11 = vld [vmem:[#allocation2 + $0xf] sm:$0xff] }
  0x99   : > { %730 = vrot.lane.b32.xlu1 %v954_v2, %s6820_s19  ;;  %v566_v14 = vpop.permute.xlu0 %565  ;;  %v398_v2 = vld [vmem:[%s8861_s1 + $0x80] sm:$0xff] }
  0x9a   : > { %616 = vst.msk [vmem:[#allocation3 + $0x8] sm:$0xff] %vm614_vm2, %v566_v14  ;;  %v1702_v14 = vpack.c.bf16 %v1669_v11, %v1668_v10 }
  0x9b   : > { %v703_v15 = vpop.permute.xlu1 %702  ;;  %867 = vrot.lane.b32.xlu0 %v818_v12, %s6819_s18 }
  0x9c   : > { %753 = vst.msk [vmem:[#allocation3 + $0x8] sm:$0xff] %vm751_vm3, %v703_v15 }
  0x9d   : > { %1004 = vrot.lane.b32.xlu1 %v955_v13, %s6821_s20  ;;  %v840_v18 = vpop.permute.xlu0 %839 }
  0x9e   : > { %890 = vst.msk [vmem:[#allocation3 + $0x8] sm:$0xff] %vm888_vm4, %v840_v18  ;;  %v403_v18 = vld [vmem:[%s8861_s1 + $0xa8] sm:$0xff] }
  0x9f   : > { %v977_v21 = vpop.permute.xlu1 %976  ;;  %595 = vrot.lane.b32.xlu0 %v818_v12, %s6817_s17  ;;  %v1043_v22 = vld [vmem:[#allocation3] sm:$0xff] }
  0xa0   : > { %1027 = vst.msk [vmem:[#allocation3 + $0x8] sm:$0xff] %vm1025_vm5, %v977_v21  ;;  %6305 = vmatmul.mubr.msk.bf16.vlgmr.msra.gmra.mrb[0].mxu0 %vm1096_vm6, %v1043_v22  ;;  %v405_v22 = vld [vmem:[%s8861_s1 + $0xb8] sm:$0xff] }
  0xa1   : > { %732 = vrot.lane.b32.xlu1 %v955_v13, %s6820_s19  ;;  %1651 = vst.msk [vmem:[#allocation3] sm:$0xff] %vm344_vm0, %v6979_v62  ;;  %v568_v25 = vpop.permute.xlu0 %567  ;;  %6308 = vmatprep.mubr.msk.bf16.mxu0 %vm6818_vm1, %v6816_v0  ;;  %v383_v62 = vld [vmem:[%s8861_s1 + $0x8] sm:$0xff]  ;;  %v1838_v13 = vpack.c.bf16 %v1805_v7, %v1804_v6 }
  0xa2   : > { %617 = vst.msk [vmem:[#allocation3 + $0x10] sm:$0xff] %vm614_vm2, %v568_v25 }
  0xa3   : > { %v705_v26 = vpop.permute.xlu1 %704  ;;  %869 = vrot.lane.b32.xlu0 %v819_v23, %s6819_s18 }
  0xa4   : > { %754 = vst.msk [vmem:[#allocation3 + $0x10] sm:$0xff] %vm751_vm3, %v705_v26 }
  0xa5   : > { %1006 = vrot.lane.b32.xlu1 %v956_v24, %s6821_s20  ;;  %v842_v28 = vpop.permute.xlu0 %841  ;;  %v404_v24 = vld [vmem:[%s8861_s1 + $0xb0] sm:$0xff] }
  0xa6   : > { %891 = vst.msk [vmem:[#allocation3 + $0x10] sm:$0xff] %vm888_vm4, %v842_v28 }
  0xa7   : > { %v979_v29 = vpop.permute.xlu1 %978  ;;  %v1044_v30 = vld [vmem:[#allocation3 + $0x8] sm:$0xff]  ;;  %1353 = vperm.xlu0 %6781, %v382_v27   ;;  %v407_v27 = vld [vmem:[%s8861_s1 + $0xc8] sm:$0xff] }
  0xa8   : > { %1028 = vst.msk [vmem:[#allocation3 + $0x10] sm:$0xff] %vm1025_vm5, %v979_v29  ;;  %6309 = vmatmul.mubr.msk.bf16.gmra.mrb[4].mxu0 %vm1096_vm6, %v1044_v30  ;;  %v409_v30 = vld [vmem:[%s8861_s1 + $0xd8] sm:$0xff] }
  0xa9   : > { %1358 = vperm.xlu1 %6782, %v383_v62   ;;  %v570_v32 = vpop.permute.xlu0 %569  ;;  %6312 = vmatprep.mubr.msk.bf16.mxu0 %vm6818_vm1, %v6816_v0  ;;  %v406_v62 = vld [vmem:[%s8861_s1 + $0xc0] sm:$0xff] }
  0xaa   : > { %618 = vst.msk [vmem:[#allocation3 + $0x18] sm:$0xff] %vm614_vm2, %v570_v32  ;;  %v408_v32 = vld [vmem:[%s8861_s1 + $0xd0] sm:$0xff] }
  0xab   : > { %v707_v34 = vpop.permute.xlu1 %706  ;;  %1368 = vperm.xlu0 %6781, %v385_v31  }
  0xac   : > { %755 = vst.msk [vmem:[#allocation3 + $0x18] sm:$0xff] %vm751_vm3, %v707_v34 }
  0xad   : > { %1363 = vperm.xlu1 %6782, %v384_v33   ;;  %v844_v36 = vpop.permute.xlu0 %843 }
  0xae   : > { %892 = vst.msk [vmem:[#allocation3 + $0x18] sm:$0xff] %vm888_vm4, %v844_v36 }
  0xaf   : > { %v981_v38 = vpop.permute.xlu1 %980  ;;  %v1045_v39 = vld [vmem:[#allocation3 + $0x10] sm:$0xff]  ;;  %1378 = vperm.xlu0 %6781, %v387_v35   ;;  %v411_v35 = vld [vmem:[%s8861_s1 + $0xe8] sm:$0xff] }
  0xb0   : > { %1029 = vst.msk [vmem:[#allocation3 + $0x18] sm:$0xff] %vm1025_vm5, %v981_v38  ;;  %6313 = vmatmul.mubr.msk.bf16.gmra.mrb[8].mxu0 %vm1096_vm6, %v1045_v39  ;;  %v413_v39 = vld [vmem:[%s8861_s1 + $0xf8] sm:$0xff] }
  0xb1   : > { %1373 = vperm.xlu1 %6782, %v386_v37   ;;  %v572_v41 = vpop.permute.xlu0 %571  ;;  %6316 = vmatprep.mubr.msk.bf16.mxu0 %vm6818_vm1, %v6816_v0  ;;  %v410_v37 = vld [vmem:[%s8861_s1 + $0xe0] sm:$0xff] }
  0xb2   : > { %619 = vst.msk [vmem:[#allocation3 + $0x20] sm:$0xff] %vm614_vm2, %v572_v41  ;;  %v412_v41 = vld [vmem:[%s8861_s1 + $0xf0] sm:$0xff] }
  0xb3   : > { %v709_v43 = vpop.permute.xlu1 %708  ;;  %1388 = vperm.xlu0 %6781, %v389_v40  }
  0xb4   : > { %756 = vst.msk [vmem:[#allocation3 + $0x20] sm:$0xff] %vm751_vm3, %v709_v43 }
  0xb5   : > { %1383 = vperm.xlu1 %6782, %v388_v42   ;;  %v846_v45 = vpop.permute.xlu0 %845 }
  0xb6   : > { %893 = vst.msk [vmem:[#allocation3 + $0x20] sm:$0xff] %vm888_vm4, %v846_v45 }
  0xb7   : > { %v983_v47 = vpop.permute.xlu1 %982  ;;  %v1046_v48 = vld [vmem:[#allocation3 + $0x18] sm:$0xff]  ;;  %1398 = vperm.xlu0 %6781, %v391_v44   ;;  %v415_v44 = vld [vmem:[%s8861_s1 + $0x108] sm:$0xff] }
  0xb8   : > { %1030 = vst.msk [vmem:[#allocation3 + $0x20] sm:$0xff] %vm1025_vm5, %v983_v47  ;;  %6317 = vmatmul.mubr.msk.bf16.gmra.mrb[12].mxu0 %vm1096_vm6, %v1046_v48 }
  0xb9   : > { %1393 = vperm.xlu1 %6782, %v390_v46   ;;  %v574_v50 = vpop.permute.xlu0 %573  ;;  %6320 = vmatprep.mubr.msk.bf16.mxu0 %vm6818_vm1, %v6816_v0  ;;  %v414_v46 = vld [vmem:[%s8861_s1 + $0x100] sm:$0xff] }
  0xba   : > { %620 = vst.msk [vmem:[#allocation3 + $0x28] sm:$0xff] %vm614_vm2, %v574_v50 }
  0xbb   : > { %v711_v52 = vpop.permute.xlu1 %710  ;;  %1408 = vperm.xlu0 %6781, %v393_v49  }
  0xbc   : > { %757 = vst.msk [vmem:[#allocation3 + $0x28] sm:$0xff] %vm751_vm3, %v711_v52 }
  0xbd   : > { %1403 = vperm.xlu1 %6782, %v392_v51   ;;  %v848_v54 = vpop.permute.xlu0 %847 }
  0xbe   : > { %894 = vst.msk [vmem:[#allocation3 + $0x28] sm:$0xff] %vm888_vm4, %v848_v54 }
  0xbf   : > { %v985_v56 = vpop.permute.xlu1 %984  ;;  %v1047_v57 = vld [vmem:[#allocation3 + $0x20] sm:$0xff]  ;;  %1418 = vperm.xlu0 %6781, %v395_v53  }
  0xc0   : > { %1031 = vst.msk [vmem:[#allocation3 + $0x28] sm:$0xff] %vm1025_vm5, %v985_v56  ;;  %6321 = vmatmul.mubr.msk.bf16.gmra.mrb[16].mxu0 %vm1096_vm6, %v1047_v57 }
  0xc1   : > { %1413 = vperm.xlu1 %6782, %v394_v55   ;;  %v576_v59 = vpop.permute.xlu0 %575  ;;  %6324 = vmatprep.mubr.msk.bf16.mxu0 %vm6818_vm1, %v6816_v0 }
  0xc2   : > { %621 = vst.msk [vmem:[#allocation3 + $0x30] sm:$0xff] %vm614_vm2, %v576_v59 }
  0xc3   : > { %v713_v61 = vpop.permute.xlu1 %712  ;;  %1428 = vperm.xlu0 %6781, %v397_v58  }
  0xc4   : > { %758 = vst.msk [vmem:[#allocation3 + $0x30] sm:$0xff] %vm751_vm3, %v713_v61 }
  0xc5   : > { %1423 = vperm.xlu1 %6782, %v396_v60   ;;  %v850_v1 = vpop.permute.xlu0 %849 }
  0xc6   : > { %895 = vst.msk [vmem:[#allocation3 + $0x30] sm:$0xff] %vm888_vm4, %v850_v1 }
  0xc7   : > { %v987_v3 = vpop.permute.xlu1 %986  ;;  %v1048_v4 = vld [vmem:[#allocation3 + $0x28] sm:$0xff]  ;;  %1438 = vperm.xlu0 %6781, %v399_v63  }
  0xc8   : > { %1032 = vst.msk [vmem:[#allocation3 + $0x30] sm:$0xff] %vm1025_vm5, %v987_v3  ;;  %6325 = vmatmul.mubr.msk.bf16.gmra.mrb[20].mxu0 %vm1096_vm6, %v1048_v4 }
  0xc9   : > { %1433 = vperm.xlu1 %6782, %v398_v2   ;;  %v578_v8 = vpop.permute.xlu0 %577  ;;  %6328 = vmatprep.mubr.msk.bf16.mxu0 %vm6818_vm1, %v6816_v0 }
  0xca   : > { %622 = vst.msk [vmem:[#allocation3 + $0x38] sm:$0xff] %vm614_vm2, %v578_v8 }
  0xcb   : > { %v715_v12 = vpop.permute.xlu1 %714  ;;  %1448 = vperm.xlu0 %6781, %v401_v5  }
  0xcc   : > { %759 = vst.msk [vmem:[#allocation3 + $0x38] sm:$0xff] %vm751_vm3, %v715_v12 }
  0xcd   : > { %1443 = vperm.xlu1 %6782, %v400_v9   ;;  %v852_v15 = vpop.permute.xlu0 %851 }
  0xce   : > { %896 = vst.msk [vmem:[#allocation3 + $0x38] sm:$0xff] %vm888_vm4, %v852_v15 }
  0xcf   : > { %v989_v16 = vpop.permute.xlu1 %988  ;;  %v1049_v17 = vld [vmem:[#allocation3 + $0x30] sm:$0xff]  ;;  %1872 = vrot.lane.b32.xlu0 %v1838_v13, %s6820_s19 }
  0xd0   : > { %1033 = vst.msk [vmem:[#allocation3 + $0x38] sm:$0xff] %vm1025_vm5, %v989_v16  ;;  %6329 = vmatmul.mubr.msk.bf16.gmra.mrb[24].mxu0 %vm1096_vm6, %v1049_v17 }
  0xd1   : > { %1736 = vrot.lane.b32.xlu1 %v1702_v14, %s6817_s17  ;;  %v580_v19 = vpop.permute.xlu0 %579  ;;  %6332 = vmatprep.mubr.msk.bf16.mxu0 %vm6818_vm1, %v6816_v0 }
  0xd2   : > { %623 = vst.msk [vmem:[#allocation3 + $0x40] sm:$0xff] %vm614_vm2, %v580_v19 }
  0xd3   : > { %v717_v21 = vpop.permute.xlu1 %716  ;;  %1458 = vperm.xlu0 %6781, %v403_v18  }
  0xd4   : > { %760 = vst.msk [vmem:[#allocation3 + $0x40] sm:$0xff] %vm751_vm3, %v717_v21 }
  0xd5   : > { %1453 = vperm.xlu1 %6782, %v402_v20   ;;  %v854_v23 = vpop.permute.xlu0 %853 }
  0xd6   : > { %897 = vst.msk [vmem:[#allocation3 + $0x40] sm:$0xff] %vm888_vm4, %v854_v23 }
  0xd7   : > { %v991_v25 = vpop.permute.xlu1 %990  ;;  %v1050_v26 = vld [vmem:[#allocation3 + $0x38] sm:$0xff]  ;;  %1468 = vperm.xlu0 %6781, %v405_v22  }
  0xd8   : > { %1034 = vst.msk [vmem:[#allocation3 + $0x40] sm:$0xff] %vm1025_vm5, %v991_v25  ;;  %6333 = vmatmul.mubr.msk.bf16.gmra.mrb[28].mxu0 %vm1096_vm6, %v1050_v26 }
  0xd9   : > { %1463 = vperm.xlu1 %6782, %v404_v24   ;;  %v582_v28 = vpop.permute.xlu0 %581  ;;  %6336 = vmatprep.mubr.msk.bf16.mxu0 %vm6818_vm1, %v6816_v0 }
  0xda   : > { %624 = vst.msk [vmem:[#allocation3 + $0x48] sm:$0xff] %vm614_vm2, %v582_v28 }
  0xdb   : > { %v719_v29 = vpop.permute.xlu1 %718  ;;  %1478 = vperm.xlu0 %6781, %v407_v27  }
  0xdc   : > { %761 = vst.msk [vmem:[#allocation3 + $0x48] sm:$0xff] %vm751_vm3, %v719_v29 }
  0xdd   : > { %1473 = vperm.xlu1 %6782, %v406_v62   ;;  %v856_v31 = vpop.permute.xlu0 %855 }
  0xde   : > { %898 = vst.msk [vmem:[#allocation3 + $0x48] sm:$0xff] %vm888_vm4, %v856_v31 }
  0xdf   : > { %v993_v33 = vpop.permute.xlu1 %992  ;;  %v1051_v34 = vld [vmem:[#allocation3 + $0x40] sm:$0xff]  ;;  %1488 = vperm.xlu0 %6781, %v409_v30  }
  0xe0   : > { %1035 = vst.msk [vmem:[#allocation3 + $0x48] sm:$0xff] %vm1025_vm5, %v993_v33  ;;  %6337 = vmatmul.mubr.msk.bf16.gmra.mrb[32].mxu0 %vm1096_vm6, %v1051_v34 }
  0xe1   : > { %1483 = vperm.xlu1 %6782, %v408_v32   ;;  %v584_v36 = vpop.permute.xlu0 %583  ;;  %6340 = vmatprep.mubr.msk.bf16.mxu0 %vm6818_vm1, %v6816_v0 }
  0xe2   : > { %625 = vst.msk [vmem:[#allocation3 + $0x50] sm:$0xff] %vm614_vm2, %v584_v36  ;;  %v6788_v36 = vld [vmem:[%s8864_s4] sm:$0xff]  }
  0xe3   : > { %v721_v38 = vpop.permute.xlu1 %720  ;;  %1498 = vperm.xlu0 %6781, %v411_v35  }
  0xe4   : > { %762 = vst.msk [vmem:[#allocation3 + $0x50] sm:$0xff] %vm751_vm3, %v721_v38  ;;  %v6789_v38 = vld [vmem:[%s8864_s4 + $0x8] sm:$0xff]  }
  0xe5   : > { %1493 = vperm.xlu1 %6782, %v410_v37   ;;  %v858_v40 = vpop.permute.xlu0 %857  ;;  %v7352_v37 = vld [vmem:[%s8863_s3] ss:$0 sm:$0xff] }
  0xe6   : > { %899 = vst.msk [vmem:[#allocation3 + $0x50] sm:$0xff] %vm888_vm4, %v858_v40 }
  0xe7   : > { %v995_v42 = vpop.permute.xlu1 %994  ;;  %v1052_v43 = vld [vmem:[#allocation3 + $0x48] sm:$0xff]  ;;  %1508 = vperm.xlu0 %6781, %v413_v39  }
  0xe8   : > { %1036 = vst.msk [vmem:[#allocation3 + $0x50] sm:$0xff] %vm1025_vm5, %v995_v42  ;;  %6341 = vmatmul.mubr.msk.bf16.gmra.mrb[36].mxu0 %vm1096_vm6, %v1052_v43  ;;  %v6790_v43 = vld [vmem:[%s8864_s4 + $0x10] sm:$0xff]  }
  0xe9   : > { %1503 = vperm.xlu1 %6782, %v412_v41   ;;  %v586_v45 = vpop.permute.xlu0 %585  ;;  %6460 = vmatprep.mubr.msk.bf16.mxu0 %vm6818_vm1, %v6816_v0 }
  0xea   : > { %626 = vst.msk [vmem:[#allocation3 + $0x58] sm:$0xff] %vm614_vm2, %v586_v45 }
  0xeb   : > { %v723_v47 = vpop.permute.xlu1 %722  ;;  %1518 = vperm.xlu0 %6781, %v415_v44  }
  0xec   : > { %763 = vst.msk [vmem:[#allocation3 + $0x58] sm:$0xff] %vm751_vm3, %v723_v47 }
  0xed   : > { %1513 = vperm.xlu1 %6782, %v414_v46   ;;  %v860_v48 = vpop.permute.xlu0 %859 }
  0xee   : > { %900 = vst.msk [vmem:[#allocation3 + $0x58] sm:$0xff] %vm888_vm4, %v860_v48 }
  0xef   : > { %v997_v49 = vpop.permute.xlu1 %996  ;;  %v1053_v50 = vld [vmem:[#allocation3 + $0x50] sm:$0xff] }
  0xf0   : > { %1037 = vst.msk [vmem:[#allocation3 + $0x58] sm:$0xff] %vm1025_vm5, %v997_v49  ;;  %6345 = vmatmul.mubr.msk.bf16.vlgmr.msra.gmra.mrb[0].mxu1 %vm1096_vm6, %v1053_v50  ;;  %v6791_v49 = vld [vmem:[%s8864_s4 + $0x18] sm:$0xff]  }
  0xf1   : > { %6348 = vmatprep.mubr.msk.bf16.mxu1 %vm6818_vm1, %v6816_v0  ;;  %v588_v51 = vpop.permute.xlu0 %587  ;;  %6373 = vmatpush3.bf16.msra.mxu1 %v6788_v36 }
  0xf2   : > { %627 = vst.msk [vmem:[#allocation3 + $0x60] sm:$0xff] %vm614_vm2, %v588_v51  ;;  %6374 = vmatprep.subr.bf16.mxu1 %v6816_v0 }
  0xf3   : > { %v725_v52 = vpop.permute.xlu1 %724 }
  0xf4   : > { %764 = vst.msk [vmem:[#allocation3 + $0x60] sm:$0xff] %vm751_vm3, %v725_v52 }
  0xf5   : > { %v862_v53 = vpop.permute.xlu0 %861  ;;  %6375 = vmatpush3.bf16.msra.mxu1 %v6789_v38 }
  0xf6   : > { %901 = vst.msk [vmem:[#allocation3 + $0x60] sm:$0xff] %vm888_vm4, %v862_v53  ;;  %6376 = vmatprep.subr.bf16.mxu1 %v6816_v0 }
  0xf7   : > { %v999_v54 = vpop.permute.xlu1 %998  ;;  %v1054_v55 = vld [vmem:[#allocation3 + $0x58] sm:$0xff] }
  0xf8   : > { %1038 = vst.msk [vmem:[#allocation3 + $0x60] sm:$0xff] %vm1025_vm5, %v999_v54  ;;  %6349 = vmatmul.mubr.msk.bf16.gmra.mrb[4].mxu1 %vm1096_vm6, %v1054_v55  ;;  %v6792_v55 = vld [vmem:[%s8864_s4 + $0x20] sm:$0xff]  }
  0xf9   : > { %6352 = vmatprep.mubr.msk.bf16.mxu1 %vm6818_vm1, %v6816_v0  ;;  %v590_v56 = vpop.permute.xlu0 %589  ;;  %6377 = vmatpush3.bf16.msra.mxu1 %v6790_v43 }
  0xfa   : > { %628 = vst.msk [vmem:[#allocation3 + $0x68] sm:$0xff] %vm614_vm2, %v590_v56  ;;  %6378 = vmatprep.subr.bf16.mxu1 %v6816_v0 }
  0xfb   : > { %v727_v57 = vpop.permute.xlu1 %726 }
  0xfc   : > { %765 = vst.msk [vmem:[#allocation3 + $0x68] sm:$0xff] %vm751_vm3, %v727_v57 }
  0xfd   : > { %v864_v58 = vpop.permute.xlu0 %863  ;;  %6379 = vmatpush3.bf16.msra.mxu1 %v6791_v49 }
  0xfe   : > { %902 = vst.msk [vmem:[#allocation3 + $0x68] sm:$0xff] %vm888_vm4, %v864_v58  ;;  %6380 = vmatprep.subr.bf16.mxu1 %v6816_v0 }
  0xff   : > { %v1001_v59 = vpop.permute.xlu1 %1000  ;;  %v1055_v60 = vld [vmem:[#allocation3 + $0x60] sm:$0xff] }
 0x100   : > { %1039 = vst.msk [vmem:[#allocation3 + $0x68] sm:$0xff] %vm1025_vm5, %v1001_v59  ;;  %6353 = vmatmul.mubr.msk.bf16.gmra.mrb[8].mxu1 %vm1096_vm6, %v1055_v60 }
 0x101   : > { %6356 = vmatprep.mubr.msk.bf16.mxu1 %vm6818_vm1, %v6816_v0  ;;  %v592_v61 = vpop.permute.xlu0 %591  ;;  %6381 = vmatpush3.bf16.msra.mxu1 %v6792_v55 }
 0x102   : > { %629 = vst.msk [vmem:[#allocation3 + $0x70] sm:$0xff] %vm614_vm2, %v592_v61  ;;  %6528 = vmatprep.subr.bf16.mxu1 %v6816_v0 }
 0x103   : > { %v729_v63 = vpop.permute.xlu1 %728 }
 0x104   : > { %766 = vst.msk [vmem:[#allocation3 + $0x70] sm:$0xff] %vm751_vm3, %v729_v63 }
 0x105   : > { %v866_v1 = vpop.permute.xlu0 %865 }
 0x106   : > { %903 = vst.msk [vmem:[#allocation3 + $0x70] sm:$0xff] %vm888_vm4, %v866_v1 }
 0x107   : > { %v1003_v2 = vpop.permute.xlu1 %1002  ;;  %v1056_v3 = vld [vmem:[#allocation3 + $0x68] sm:$0xff] }
 0x108   : > { %1040 = vst.msk [vmem:[#allocation3 + $0x70] sm:$0xff] %vm1025_vm5, %v1003_v2  ;;  %6357 = vmatmul.mubr.msk.bf16.gmra.mrb[12].mxu1 %vm1096_vm6, %v1056_v3 }
 0x109   : > { %6360 = vmatprep.mubr.msk.bf16.mxu1 %vm6818_vm1, %v6816_v0  ;;  %v594_v4 = vpop.permute.xlu0 %593 }
 0x10a   : > { %630 = vst.msk [vmem:[#allocation3 + $0x78] sm:$0xff] %vm614_vm2, %v594_v4 }
 0x10b   : > { %v731_v5 = vpop.permute.xlu1 %730 }
 0x10c   : > { %767 = vst.msk [vmem:[#allocation3 + $0x78] sm:$0xff] %vm751_vm3, %v731_v5 }
 0x10d   : > { %v868_v6 = vpop.permute.xlu0 %867 }
 0x10e   : > { %904 = vst.msk [vmem:[#allocation3 + $0x78] sm:$0xff] %vm888_vm4, %v868_v6 }
 0x10f   : > { %v1005_v7 = vpop.permute.xlu1 %1004  ;;  %v1057_v8 = vld [vmem:[#allocation3 + $0x70] sm:$0xff] }
 0x110   : > { %1041 = vst.msk [vmem:[#allocation3 + $0x78] sm:$0xff] %vm1025_vm5, %v1005_v7  ;;  %6361 = vmatmul.mubr.msk.bf16.gmra.mrb[16].mxu1 %vm1096_vm6, %v1057_v8 }
 0x111   : > { %6364 = vmatprep.mubr.msk.bf16.mxu1 %vm6818_vm1, %v6816_v0  ;;  %v596_v9 = vpop.permute.xlu0 %595 }
 0x112   : > { %631 = vst.msk [vmem:[#allocation3 + $0x80] sm:$0xff] %vm614_vm2, %v596_v9 }
 0x113   : > { %v733_v10 = vpop.permute.xlu1 %732 }
 0x114   : > { %768 = vst.msk [vmem:[#allocation3 + $0x80] sm:$0xff] %vm751_vm3, %v733_v10 }
 0x115   : > { %v870_v11 = vpop.permute.xlu0 %869 }
 0x116   : > { %905 = vst.msk [vmem:[#allocation3 + $0x80] sm:$0xff] %vm888_vm4, %v870_v11 }
 0x117   : > { %v1007_v12 = vpop.permute.xlu1 %1006  ;;  %v1058_v13 = vld [vmem:[#allocation3 + $0x78] sm:$0xff] }
 0x118   : > { %1042 = vst.msk [vmem:[#allocation3 + $0x80] sm:$0xff] %vm1025_vm5, %v1007_v12  ;;  %6365 = vmatmul.mubr.msk.bf16.gmra.mrb[20].mxu1 %vm1096_vm6, %v1058_v13 }
 0x119   : > { %6368 = vmatprep.mubr.msk.bf16.mxu1 %vm6818_vm1, %v6816_v0 }
 0x11f   : > { %v1059_v14 = vld [vmem:[#allocation3 + $0x80] sm:$0xff] }
 0x120   : > { %6369 = vmatmul.mubr.msk.bf16.gmra.mrb[24].mxu1 %vm1096_vm6, %v1059_v14 }
 0x121   : > { %6382 = vmatprep.mubr.msk.bf16.mxu1 %vm6818_vm1, %v6816_v0 }
 0x126   : > { %v7303_v15 = vpop.permute.xlu0 %1353 }
 0x128   : > { %v7305_v16 = vpop.permute.xlu1 %1358 }
 0x12a   : > { %v7307_v17 = vpop.permute.xlu0 %1368 }
 0x12c   : > { %v7309_v18 = vpop.permute.xlu1 %1363 }
 0x12e   : > { %v7311_v19 = vpop.permute.xlu0 %1378 }
 0x130   : > { %v7313_v20 = vpop.permute.xlu1 %1373 }
 0x132   : > { %v7315_v21 = vpop.permute.xlu0 %1388 }
 0x134   : > { %v7317_v22 = vpop.permute.xlu1 %1383 }
 0x136   : > { %v7319_v23 = vpop.permute.xlu0 %1398 }
 0x138   : > { %v7321_v24 = vpop.permute.xlu1 %1393 }
 0x13a   : > { %v7323_v25 = vpop.permute.xlu0 %1408 }
 0x13c   : > { %v7325_v26 = vpop.permute.xlu1 %1403 }
 0x13e   : > { %v7327_v27 = vpop.permute.xlu0 %1418 }
 0x140   : > { %v7329_v28 = vpop.permute.xlu1 %1413 }
 0x142   : > { %v7331_v62 = vpop.permute.xlu0 %1428 }
 0x144   : > { %v7333_v29 = vpop.permute.xlu1 %1423 }
 0x146   : > { %v7335_v30 = vpop.permute.xlu0 %1438 }
 0x148   : > { %v7337_v31 = vpop.permute.xlu1 %1433 }
 0x14a   : > { %v7339_v32 = vpop.permute.xlu0 %1448 }
 0x14c   : > { %v7341_v33 = vpop.permute.xlu1 %1443 }
 0x14e   : > { %v1873_v35 = vpop.permute.xlu0 %1872 }
 0x150   : > { %v1737_v34 = vpop.permute.xlu1 %1736 }
 0x151   : > { %1787 = vst.msk [vmem:[#allocation3] sm:$0xff] %vm614_vm2, %v1737_v34 }
 0x152   : > { %1923 = vst.msk [vmem:[#allocation3] sm:$0xff] %vm751_vm3, %v1873_v35 }
 0x173   : > { %v1182_v39 = vpop.f32.mrb[0].mxu0 }
 0x174   : > { %v1183_v40 = vadd.f32 %v7352_v37, %v1182_v39  ;;  %v6306_v41 = vpop.f32.mrb[1].mxu0 }
 0x175   : > { %v1185_v42 = vpop.f32.mrb[2].mxu0 }
 0x176   : > { %v1317_v44 = vmax.f32 %v1183_v40, 0.0  ;;  %v1186_v45 = vadd.f32 %v7352_v37, %v1185_v42  ;;  %v6307_v46 = vpop.f32.mrb[3].mxu0 }
 0x178   : > { %v1521_v47 = vmul.f32 %v7303_v15, %v1317_v44  ;;  %v1318_v48 = vmax.f32 %v1186_v45, 0.0 }
 0x17a   : > { %1555 = vst.msk [vmem:[#allocation2 + $0x18] sm:$0xff] %vm344_vm0, %v1521_v47  ;;  %v1522_v50 = vmul.f32 %v7305_v16, %v1318_v48 }
 0x17b   : > { %v1190_v51 = vpop.f32.mrb[4].mxu0 }
 0x17c   : > { %1556 = vst.msk [vmem:[#allocation2 + $0x20] sm:$0xff] %vm344_vm0, %v1522_v50  ;;  %v1191_v52 = vadd.f32 %v7352_v37, %v1190_v51  ;;  %v6310_v53 = vpop.f32.mrb[5].mxu0 }
 0x17d   : > { %v1193_v54 = vpop.f32.mrb[6].mxu0 }
 0x17e   : > { %v1319_v56 = vmax.f32 %v1191_v52, 0.0  ;;  %v1194_v57 = vadd.f32 %v7352_v37, %v1193_v54  ;;  %v6311_v58 = vpop.f32.mrb[7].mxu0 }
 0x180   : > { %v1523_v59 = vmul.f32 %v7309_v18, %v1319_v56  ;;  %v1320_v60 = vmax.f32 %v1194_v57, 0.0 }
 0x181   : > { %v2076_v63 = vld [vmem:[#allocation2 + $0x18] sm:$0xff] }
 0x182   : > { %1557 = vst.msk [vmem:[#allocation2 + $0x28] sm:$0xff] %vm344_vm0, %v1523_v59  ;;  %v1524_v61 = vmul.f32 %v7307_v17, %v1320_v60  ;;  %v1940_v1 = vld [vmem:[#allocation2 + $0x17] sm:$0xff] }
 0x183   : > { %v1602_v2 = vld [vmem:[#allocation2 + $0x16] sm:$0xff]  ;;  %v1198_v3 = vpop.f32.mrb[8].mxu0  ;;  %v2077_v4 = vld [vmem:[#allocation2 + $0x20] sm:$0xff] }
 0x184   : > { %v1941_v5 = vld [vmem:[#allocation2 + $0x1f] sm:$0xff]  ;;  %1558 = vst.msk [vmem:[#allocation2 + $0x30] sm:$0xff] %vm344_vm0, %v1524_v61  ;;  %v1199_v7 = vadd.f32 %v7352_v37, %v1198_v3  ;;  %v6314_v8 = vpop.f32.mrb[9].mxu0  ;;  %v2110_v9 = vpack.c.bf16 %v2077_v4, %v2076_v63 }
 0x185   : > { %v1603_v6 = vld [vmem:[#allocation2 + $0x1e] sm:$0xff]  ;;  %v1974_v10 = vpack.c.bf16 %v1941_v5, %v1940_v1  ;;  %v1201_v12 = vpop.f32.mrb[10].mxu0 }
 0x186   : > { %v1635_v11 = vpack.c.bf16 %v1603_v6, %v1602_v2  ;;  %v1321_v13 = vmax.f32 %v1199_v7, 0.0  ;;  %v1202_v14 = vadd.f32 %v7352_v37, %v1201_v12  ;;  %2144 = vrot.lane.b32.xlu0 %v2110_v9, %s6821_s20  ;;  %v6315_v34 = vpop.f32.mrb[11].mxu0 }
 0x187   : > { %2008 = vrot.lane.b32.xlu1 %v1974_v10, %s6819_s18 }
 0x188   : > { %1652 = vst.msk [vmem:[#allocation3 + $0x8] sm:$0xff] %vm344_vm0, %v1635_v11  ;;  %v1525_v35 = vmul.f32 %v7313_v20, %v1321_v13  ;;  %v1322_v36 = vmax.f32 %v1202_v14, 0.0 }
 0x189   : > { %v2078_v39 = vld [vmem:[#allocation2 + $0x28] sm:$0xff] }
 0x18a   : > { %1559 = vst.msk [vmem:[#allocation2 + $0x38] sm:$0xff] %vm344_vm0, %v1525_v35  ;;  %v1526_v38 = vmul.f32 %v7311_v19, %v1322_v36  ;;  %1874 = vrot.lane.b32.xlu0 %v2110_v9, %s6820_s19  ;;  %v1942_v40 = vld [vmem:[#allocation2 + $0x27] sm:$0xff] }
 0x18b   : > { %1738 = vrot.lane.b32.xlu1 %v1974_v10, %s6817_s17  ;;  %v1604_v41 = vld [vmem:[#allocation2 + $0x26] sm:$0xff]  ;;  %v1206_v42 = vpop.f32.mrb[12].mxu0  ;;  %v2079_v43 = vld [vmem:[#allocation2 + $0x30] sm:$0xff] }
 0x18c   : > { %v1943_v44 = vld [vmem:[#allocation2 + $0x2f] sm:$0xff]  ;;  %1560 = vst.msk [vmem:[#allocation2 + $0x40] sm:$0xff] %vm344_vm0, %v1526_v38  ;;  %v1207_v46 = vadd.f32 %v7352_v37, %v1206_v42  ;;  %v6318_v47 = vpop.f32.mrb[13].mxu0  ;;  %v2111_v48 = vpack.c.bf16 %v2079_v43, %v2078_v39 }
 0x18d   : > { %v1605_v45 = vld [vmem:[#allocation2 + $0x2e] sm:$0xff]  ;;  %v1975_v49 = vpack.c.bf16 %v1943_v44, %v1942_v40  ;;  %v1209_v51 = vpop.f32.mrb[14].mxu0 }
 0x18e   : > { %v1636_v50 = vpack.c.bf16 %v1605_v45, %v1604_v41  ;;  %v1323_v52 = vmax.f32 %v1207_v46, 0.0  ;;  %v1210_v53 = vadd.f32 %v7352_v37, %v1209_v51  ;;  %2146 = vrot.lane.b32.xlu0 %v2111_v48, %s6821_s20  ;;  %v6319_v54 = vpop.f32.mrb[15].mxu0 }
 0x18f   : > { %2010 = vrot.lane.b32.xlu1 %v1975_v49, %s6819_s18 }
 0x190   : > { %1653 = vst.msk [vmem:[#allocation3 + $0x10] sm:$0xff] %vm344_vm0, %v1636_v50  ;;  %v1527_v55 = vmul.f32 %v7317_v22, %v1323_v52  ;;  %v1324_v56 = vmax.f32 %v1210_v53, 0.0 }
 0x191   : > { %v2080_v58 = vld [vmem:[#allocation2 + $0x38] sm:$0xff] }
 0x192   : > { %1561 = vst.msk [vmem:[#allocation2 + $0x48] sm:$0xff] %vm344_vm0, %v1527_v55  ;;  %v1528_v57 = vmul.f32 %v7315_v21, %v1324_v56  ;;  %1876 = vrot.lane.b32.xlu0 %v2111_v48, %s6820_s19  ;;  %v1944_v59 = vld [vmem:[#allocation2 + $0x37] sm:$0xff] }
 0x193   : > { %1740 = vrot.lane.b32.xlu1 %v1975_v49, %s6817_s17  ;;  %v1606_v60 = vld [vmem:[#allocation2 + $0x36] sm:$0xff]  ;;  %v1214_v61 = vpop.f32.mrb[16].mxu0  ;;  %v2081_v63 = vld [vmem:[#allocation2 + $0x40] sm:$0xff] }
 0x194   : > { %v1945_v1 = vld [vmem:[#allocation2 + $0x3f] sm:$0xff]  ;;  %1562 = vst.msk [vmem:[#allocation2 + $0x50] sm:$0xff] %vm344_vm0, %v1528_v57  ;;  %v1215_v3 = vadd.f32 %v7352_v37, %v1214_v61  ;;  %v6322_v4 = vpop.f32.mrb[17].mxu0  ;;  %v2112_v5 = vpack.c.bf16 %v2081_v63, %v2080_v58 }
 0x195   : > { %v1607_v2 = vld [vmem:[#allocation2 + $0x3e] sm:$0xff]  ;;  %v1976_v6 = vpack.c.bf16 %v1945_v1, %v1944_v59  ;;  %v1217_v8 = vpop.f32.mrb[18].mxu0 }
 0x196   : > { %v1637_v7 = vpack.c.bf16 %v1607_v2, %v1606_v60  ;;  %v1325_v9 = vmax.f32 %v1215_v3, 0.0  ;;  %v1218_v10 = vadd.f32 %v7352_v37, %v1217_v8  ;;  %2148 = vrot.lane.b32.xlu0 %v2112_v5, %s6821_s20  ;;  %v6323_v11 = vpop.f32.mrb[19].mxu0 }
 0x197   : > { %2012 = vrot.lane.b32.xlu1 %v1976_v6, %s6819_s18 }
 0x198   : > { %1654 = vst.msk [vmem:[#allocation3 + $0x18] sm:$0xff] %vm344_vm0, %v1637_v7  ;;  %v1529_v12 = vmul.f32 %v7321_v24, %v1325_v9  ;;  %v1326_v13 = vmax.f32 %v1218_v10, 0.0 }
 0x199   : > { %v2082_v34 = vld [vmem:[#allocation2 + $0x48] sm:$0xff] }
 0x19a   : > { %1563 = vst.msk [vmem:[#allocation2 + $0x58] sm:$0xff] %vm344_vm0, %v1529_v12  ;;  %v1530_v14 = vmul.f32 %v7319_v23, %v1326_v13  ;;  %1878 = vrot.lane.b32.xlu0 %v2112_v5, %s6820_s19  ;;  %v1946_v35 = vld [vmem:[#allocation2 + $0x47] sm:$0xff] }
 0x19b   : > { %1742 = vrot.lane.b32.xlu1 %v1976_v6, %s6817_s17  ;;  %v1608_v36 = vld [vmem:[#allocation2 + $0x46] sm:$0xff]  ;;  %v1222_v38 = vpop.f32.mrb[20].mxu0  ;;  %v2083_v39 = vld [vmem:[#allocation2 + $0x50] sm:$0xff] }
 0x19c   : > { %v1947_v40 = vld [vmem:[#allocation2 + $0x4f] sm:$0xff]  ;;  %1564 = vst.msk [vmem:[#allocation2 + $0x60] sm:$0xff] %vm344_vm0, %v1530_v14  ;;  %v1223_v42 = vadd.f32 %v7352_v37, %v1222_v38  ;;  %v6326_v43 = vpop.f32.mrb[21].mxu0  ;;  %v2113_v44 = vpack.c.bf16 %v2083_v39, %v2082_v34 }
 0x19d   : > { %v1609_v41 = vld [vmem:[#allocation2 + $0x4e] sm:$0xff]  ;;  %v1977_v45 = vpack.c.bf16 %v1947_v40, %v1946_v35  ;;  %v1225_v47 = vpop.f32.mrb[22].mxu0 }
 0x19e   : > { %v1638_v46 = vpack.c.bf16 %v1609_v41, %v1608_v36  ;;  %v1327_v48 = vmax.f32 %v1223_v42, 0.0  ;;  %v1226_v49 = vadd.f32 %v7352_v37, %v1225_v47  ;;  %2150 = vrot.lane.b32.xlu0 %v2113_v44, %s6821_s20  ;;  %v6327_v50 = vpop.f32.mrb[23].mxu0 }
 0x19f   : > { %2014 = vrot.lane.b32.xlu1 %v1977_v45, %s6819_s18 }
 0x1a0   : > { %1655 = vst.msk [vmem:[#allocation3 + $0x20] sm:$0xff] %vm344_vm0, %v1638_v46  ;;  %v1531_v51 = vmul.f32 %v7325_v26, %v1327_v48  ;;  %v1328_v52 = vmax.f32 %v1226_v49, 0.0 }
 0x1a1   : > { %v2084_v54 = vld [vmem:[#allocation2 + $0x58] sm:$0xff] }
 0x1a2   : > { %1565 = vst.msk [vmem:[#allocation2 + $0x68] sm:$0xff] %vm344_vm0, %v1531_v51  ;;  %v1532_v53 = vmul.f32 %v7323_v25, %v1328_v52  ;;  %1880 = vrot.lane.b32.xlu0 %v2113_v44, %s6820_s19  ;;  %v1948_v55 = vld [vmem:[#allocation2 + $0x57] sm:$0xff] }
 0x1a3   : > { %1744 = vrot.lane.b32.xlu1 %v1977_v45, %s6817_s17  ;;  %v1610_v56 = vld [vmem:[#allocation2 + $0x56] sm:$0xff]  ;;  %v1230_v57 = vpop.f32.mrb[24].mxu0  ;;  %v2085_v58 = vld [vmem:[#allocation2 + $0x60] sm:$0xff] }
 0x1a4   : > { %v1949_v59 = vld [vmem:[#allocation2 + $0x5f] sm:$0xff]  ;;  %1566 = vst.msk [vmem:[#allocation2 + $0x70] sm:$0xff] %vm344_vm0, %v1532_v53  ;;  %v1231_v61 = vadd.f32 %v7352_v37, %v1230_v57  ;;  %v6330_v63 = vpop.f32.mrb[25].mxu0  ;;  %v2114_v1 = vpack.c.bf16 %v2085_v58, %v2084_v54 }
 0x1a5   : > { %v1611_v60 = vld [vmem:[#allocation2 + $0x5e] sm:$0xff]  ;;  %v1978_v2 = vpack.c.bf16 %v1949_v59, %v1948_v55  ;;  %v1233_v4 = vpop.f32.mrb[26].mxu0 }
 0x1a6   : > { %v1639_v3 = vpack.c.bf16 %v1611_v60, %v1610_v56  ;;  %v1329_v5 = vmax.f32 %v1231_v61, 0.0  ;;  %v1234_v6 = vadd.f32 %v7352_v37, %v1233_v4  ;;  %2152 = vrot.lane.b32.xlu0 %v2114_v1, %s6821_s20  ;;  %v6331_v7 = vpop.f32.mrb[27].mxu0 }
 0x1a7   : > { %2016 = vrot.lane.b32.xlu1 %v1978_v2, %s6819_s18 }
 0x1a8   : > { %1656 = vst.msk [vmem:[#allocation3 + $0x28] sm:$0xff] %vm344_vm0, %v1639_v3  ;;  %v1533_v8 = vmul.f32 %v7329_v28, %v1329_v5  ;;  %v1330_v9 = vmax.f32 %v1234_v6, 0.0 }
 0x1a9   : > { %v2086_v11 = vld [vmem:[#allocation2 + $0x68] sm:$0xff] }
 0x1aa   : > { %1567 = vst.msk [vmem:[#allocation2 + $0x78] sm:$0xff] %vm344_vm0, %v1533_v8  ;;  %v1534_v10 = vmul.f32 %v7327_v27, %v1330_v9  ;;  %1882 = vrot.lane.b32.xlu0 %v2114_v1, %s6820_s19  ;;  %v1950_v12 = vld [vmem:[#allocation2 + $0x67] sm:$0xff] }
 0x1ab   : > { %1746 = vrot.lane.b32.xlu1 %v1978_v2, %s6817_s17  ;;  %v1612_v13 = vld [vmem:[#allocation2 + $0x66] sm:$0xff]  ;;  %v1238_v14 = vpop.f32.mrb[28].mxu0  ;;  %v2087_v34 = vld [vmem:[#allocation2 + $0x70] sm:$0xff] }
 0x1ac   : > { %v1951_v35 = vld [vmem:[#allocation2 + $0x6f] sm:$0xff]  ;;  %1568 = vst.msk [vmem:[#allocation2 + $0x80] sm:$0xff] %vm344_vm0, %v1534_v10  ;;  %v1239_v38 = vadd.f32 %v7352_v37, %v1238_v14  ;;  %v6334_v39 = vpop.f32.mrb[29].mxu0  ;;  %v2115_v40 = vpack.c.bf16 %v2087_v34, %v2086_v11 }
 0x1ad   : > { %v1613_v36 = vld [vmem:[#allocation2 + $0x6e] sm:$0xff]  ;;  %v1979_v41 = vpack.c.bf16 %v1951_v35, %v1950_v12  ;;  %v1241_v43 = vpop.f32.mrb[30].mxu0 }
 0x1ae   : > { %v1640_v42 = vpack.c.bf16 %v1613_v36, %v1612_v13  ;;  %v1331_v44 = vmax.f32 %v1239_v38, 0.0  ;;  %v1242_v45 = vadd.f32 %v7352_v37, %v1241_v43  ;;  %2154 = vrot.lane.b32.xlu0 %v2115_v40, %s6821_s20  ;;  %v6335_v46 = vpop.f32.mrb[31].mxu0 }
 0x1af   : > { %2018 = vrot.lane.b32.xlu1 %v1979_v41, %s6819_s18 }
 0x1b0   : > { %1657 = vst.msk [vmem:[#allocation3 + $0x30] sm:$0xff] %vm344_vm0, %v1640_v42  ;;  %v1535_v47 = vmul.f32 %v7333_v29, %v1331_v44  ;;  %v1332_v48 = vmax.f32 %v1242_v45, 0.0 }
 0x1b1   : > { %v2088_v50 = vld [vmem:[#allocation2 + $0x78] sm:$0xff] }
 0x1b2   : > { %1569 = vst.msk [vmem:[#allocation2 + $0x88] sm:$0xff] %vm344_vm0, %v1535_v47  ;;  %v1536_v49 = vmul.f32 %v7331_v62, %v1332_v48  ;;  %1884 = vrot.lane.b32.xlu0 %v2115_v40, %s6820_s19  ;;  %v1952_v51 = vld [vmem:[#allocation2 + $0x77] sm:$0xff] }
 0x1b3   : > { %1748 = vrot.lane.b32.xlu1 %v1979_v41, %s6817_s17  ;;  %v1614_v52 = vld [vmem:[#allocation2 + $0x76] sm:$0xff]  ;;  %v1246_v53 = vpop.f32.mrb[32].mxu0  ;;  %v2089_v54 = vld [vmem:[#allocation2 + $0x80] sm:$0xff] }
 0x1b4   : > { %v1953_v55 = vld [vmem:[#allocation2 + $0x7f] sm:$0xff]  ;;  %1570 = vst.msk [vmem:[#allocation2 + $0x90] sm:$0xff] %vm344_vm0, %v1536_v49  ;;  %v1247_v57 = vadd.f32 %v7352_v37, %v1246_v53  ;;  %v6338_v58 = vpop.f32.mrb[33].mxu0  ;;  %v2116_v59 = vpack.c.bf16 %v2089_v54, %v2088_v50 }
 0x1b5   : > { %v1615_v56 = vld [vmem:[#allocation2 + $0x7e] sm:$0xff]  ;;  %v1980_v60 = vpack.c.bf16 %v1953_v55, %v1952_v51  ;;  %v1249_v63 = vpop.f32.mrb[34].mxu0 }
 0x1b6   : > { %v1641_v61 = vpack.c.bf16 %v1615_v56, %v1614_v52  ;;  %v1333_v1 = vmax.f32 %v1247_v57, 0.0  ;;  %v1250_v2 = vadd.f32 %v7352_v37, %v1249_v63  ;;  %2156 = vrot.lane.b32.xlu0 %v2116_v59, %s6821_s20  ;;  %v6339_v3 = vpop.f32.mrb[35].mxu0  ;;  %v7472_v63 = vpop.permute.xlu1 %1453 }
 0x1b7   : > { %2020 = vrot.lane.b32.xlu1 %v1980_v60, %s6819_s18  ;;  %v7478_v3 = vpop.permute.xlu0 %1458 }
 0x1b8   : > { %1658 = vst.msk [vmem:[#allocation3 + $0x38] sm:$0xff] %vm344_vm0, %v1641_v61  ;;  %v1537_v4 = vmul.f32 %v7337_v31, %v1333_v1  ;;  %v1334_v5 = vmax.f32 %v1250_v2, 0.0 }
 0x1b9   : > { %v2090_v7 = vld [vmem:[#allocation2 + $0x88] sm:$0xff] }
 0x1ba   : > { %1571 = vst.msk [vmem:[#allocation2 + $0x98] sm:$0xff] %vm344_vm0, %v1537_v4  ;;  %v1538_v6 = vmul.f32 %v7335_v30, %v1334_v5  ;;  %1886 = vrot.lane.b32.xlu0 %v2116_v59, %s6820_s19  ;;  %v1954_v8 = vld [vmem:[#allocation2 + $0x87] sm:$0xff] }
 0x1bb   : > { %1750 = vrot.lane.b32.xlu1 %v1980_v60, %s6817_s17  ;;  %v1616_v9 = vld [vmem:[#allocation2 + $0x86] sm:$0xff]  ;;  %v1254_v10 = vpop.f32.mrb[36].mxu0  ;;  %v2091_v11 = vld [vmem:[#allocation2 + $0x90] sm:$0xff] }
 0x1bc   : > { %v1955_v12 = vld [vmem:[#allocation2 + $0x8f] sm:$0xff]  ;;  %1572 = vst.msk [vmem:[#allocation2 + $0xa0] sm:$0xff] %vm344_vm0, %v1538_v6  ;;  %v1255_v14 = vadd.f32 %v7352_v37, %v1254_v10  ;;  %v6342_v34 = vpop.f32.mrb[37].mxu0  ;;  %v2117_v35 = vpack.c.bf16 %v2091_v11, %v2090_v7 }
 0x1bd   : > { %v1617_v13 = vld [vmem:[#allocation2 + $0x8e] sm:$0xff]  ;;  %v1981_v36 = vpack.c.bf16 %v1955_v12, %v1954_v8  ;;  %v1257_v39 = vpop.f32.mrb[38].mxu0 }
 0x1be   : > { %v1642_v38 = vpack.c.bf16 %v1617_v13, %v1616_v9  ;;  %v1335_v40 = vmax.f32 %v1255_v14, 0.0  ;;  %v1258_v41 = vadd.f32 %v7352_v37, %v1257_v39  ;;  %2158 = vrot.lane.b32.xlu0 %v2117_v35, %s6821_s20  ;;  %v6343_v42 = vpop.f32.mrb[39].mxu0 }
 0x1bf   : > { %2022 = vrot.lane.b32.xlu1 %v1981_v36, %s6819_s18 }
 0x1c0   : > { %1659 = vst.msk [vmem:[#allocation3 + $0x40] sm:$0xff] %vm344_vm0, %v1642_v38  ;;  %v1539_v43 = vmul.f32 %v7341_v33, %v1335_v40  ;;  %v1336_v44 = vmax.f32 %v1258_v41, 0.0  ;;  %v7487_v41 = vpop.permute.xlu1 %1463 }
 0x1c1   : > { %v2092_v47 = vld [vmem:[#allocation2 + $0x98] sm:$0xff] }
 0x1c2   : > { %1573 = vst.msk [vmem:[#allocation2 + $0xa8] sm:$0xff] %vm344_vm0, %v1539_v43  ;;  %v1540_v45 = vmul.f32 %v7339_v32, %v1336_v44  ;;  %1888 = vrot.lane.b32.xlu0 %v2117_v35, %s6820_s19  ;;  %v1956_v48 = vld [vmem:[#allocation2 + $0x97] sm:$0xff]  ;;  %v7493_v44 = vpop.permute.xlu0 %1468 }
 0x1c3   : > { %v1262_v46 = vpop.f32.mrb[0].mxu1  ;;  %1752 = vrot.lane.b32.xlu1 %v1981_v36, %s6817_s17  ;;  %v1618_v49 = vld [vmem:[#allocation2 + $0x96] sm:$0xff]  ;;  %v2093_v52 = vld [vmem:[#allocation2 + $0xa0] sm:$0xff] }
 0x1c4   : > { %v1263_v50 = vadd.f32 %v7352_v37, %v1262_v46  ;;  %v6346_v51 = vpop.f32.mrb[1].mxu1  ;;  %v1957_v53 = vld [vmem:[#allocation2 + $0x9f] sm:$0xff]  ;;  %1574 = vst.msk [vmem:[#allocation2 + $0xb0] sm:$0xff] %vm344_vm0, %v1540_v45  ;;  %v2118_v56 = vpack.c.bf16 %v2093_v52, %v2092_v47 }
 0x1c5   : > { %v1619_v54 = vld [vmem:[#allocation2 + $0x9e] sm:$0xff]  ;;  %v1265_v55 = vpop.f32.mrb[2].mxu1  ;;  %v1982_v57 = vpack.c.bf16 %v1957_v53, %v1956_v48 }
 0x1c6   : > { %v1643_v58 = vpack.c.bf16 %v1619_v54, %v1618_v49  ;;  %v1337_v59 = vmax.f32 %v1263_v50, 0.0  ;;  %v1266_v60 = vadd.f32 %v7352_v37, %v1265_v55  ;;  %v6347_v61 = vpop.f32.mrb[3].mxu1  ;;  %2160 = vrot.lane.b32.xlu0 %v2118_v56, %s6821_s20 }
 0x1c7   : > { %2024 = vrot.lane.b32.xlu1 %v1982_v57, %s6819_s18 }
 0x1c8   : > { %1660 = vst.msk [vmem:[#allocation3 + $0x48] sm:$0xff] %vm344_vm0, %v1643_v58  ;;  %v1541_v1 = vmul.f32 %v7472_v63, %v1337_v59  ;;  %v1338_v2 = vmax.f32 %v1266_v60, 0.0 }
 0x1c9   : > { %v2094_v6 = vld [vmem:[#allocation2 + $0xa8] sm:$0xff] }
 0x1ca   : > { %1575 = vst.msk [vmem:[#allocation2 + $0xb8] sm:$0xff] %vm344_vm0, %v1541_v1  ;;  %v1542_v4 = vmul.f32 %v7478_v3, %v1338_v2  ;;  %1890 = vrot.lane.b32.xlu0 %v2118_v56, %s6820_s19  ;;  %v1958_v7 = vld [vmem:[#allocation2 + $0xa7] sm:$0xff]  ;;  %v7503_v1 = vpop.permute.xlu1 %1473 }
 0x1cb   : > { %v1270_v5 = vpop.f32.mrb[4].mxu1  ;;  %1754 = vrot.lane.b32.xlu1 %v1982_v57, %s6817_s17  ;;  %v1620_v8 = vld [vmem:[#allocation2 + $0xa6] sm:$0xff]  ;;  %v2095_v11 = vld [vmem:[#allocation2 + $0xb0] sm:$0xff] }
 0x1cc   : > { %1576 = vst.msk [vmem:[#allocation2 + $0xc0] sm:$0xff] %vm344_vm0, %v1542_v4  ;;  %v1271_v9 = vadd.f32 %v7352_v37, %v1270_v5  ;;  %v6350_v10 = vpop.f32.mrb[5].mxu1  ;;  %v1959_v12 = vld [vmem:[#allocation2 + $0xaf] sm:$0xff]  ;;  %v2119_v34 = vpack.c.bf16 %v2095_v11, %v2094_v6  ;;  %v7508_v5 = vpop.permute.xlu0 %1478 }
 0x1cd   : > { %v1621_v13 = vld [vmem:[#allocation2 + $0xae] sm:$0xff]  ;;  %v1273_v14 = vpop.f32.mrb[6].mxu1  ;;  %v1983_v35 = vpack.c.bf16 %v1959_v12, %v1958_v7 }
 0x1ce   : > { %v1644_v36 = vpack.c.bf16 %v1621_v13, %v1620_v8  ;;  %v1339_v38 = vmax.f32 %v1271_v9, 0.0  ;;  %v1274_v39 = vadd.f32 %v7352_v37, %v1273_v14  ;;  %v6351_v40 = vpop.f32.mrb[7].mxu1  ;;  %2162 = vrot.lane.b32.xlu0 %v2119_v34, %s6821_s20 }
 0x1cf   : > { %2026 = vrot.lane.b32.xlu1 %v1983_v35, %s6819_s18 }
 0x1d0   : > { %1661 = vst.msk [vmem:[#allocation3 + $0x50] sm:$0xff] %vm344_vm0, %v1644_v36  ;;  %v1543_v42 = vmul.f32 %v7487_v41, %v1339_v38  ;;  %v1340_v43 = vmax.f32 %v1274_v39, 0.0 }
 0x1d1   : > { %v2096_v46 = vld [vmem:[#allocation2 + $0xb8] sm:$0xff] }
 0x1d2   : > { %1577 = vst.msk [vmem:[#allocation2 + $0xc8] sm:$0xff] %vm344_vm0, %v1543_v42  ;;  %v1544_v45 = vmul.f32 %v7493_v44, %v1340_v43  ;;  %v1960_v47 = vld [vmem:[#allocation2 + $0xb7] sm:$0xff]  ;;  %1892 = vrot.lane.b32.xlu0 %v2119_v34, %s6820_s19 }
 0x1d3   : > { %v1622_v48 = vld [vmem:[#allocation2 + $0xb6] sm:$0xff]  ;;  %v1278_v49 = vpop.f32.mrb[8].mxu1  ;;  %1756 = vrot.lane.b32.xlu1 %v1983_v35, %s6817_s17  ;;  %v2097_v50 = vld [vmem:[#allocation2 + $0xc0] sm:$0xff] }
 0x1d4   : > { %v1961_v51 = vld [vmem:[#allocation2 + $0xbf] sm:$0xff]  ;;  %1578 = vst.msk [vmem:[#allocation2 + $0xd0] sm:$0xff] %vm344_vm0, %v1544_v45  ;;  %v1279_v53 = vadd.f32 %v7352_v37, %v1278_v49  ;;  %v6354_v54 = vpop.f32.mrb[9].mxu1  ;;  %v2120_v55 = vpack.c.bf16 %v2097_v50, %v2096_v46  ;;  %v7518_v45 = vpop.permute.xlu1 %1483 }
 0x1d5   : > { %v1623_v52 = vld [vmem:[#allocation2 + $0xbe] sm:$0xff]  ;;  %v1984_v56 = vpack.c.bf16 %v1961_v51, %v1960_v47  ;;  %v1281_v58 = vpop.f32.mrb[10].mxu1 }
 0x1d6   : > { %v1645_v57 = vpack.c.bf16 %v1623_v52, %v1622_v48  ;;  %v1341_v59 = vmax.f32 %v1279_v53, 0.0  ;;  %v1282_v60 = vadd.f32 %v7352_v37, %v1281_v58  ;;  %v6355_v61 = vpop.f32.mrb[11].mxu1  ;;  %2164 = vrot.lane.b32.xlu0 %v2120_v55, %s6821_s20  ;;  %v7523_v48 = vpop.permute.xlu0 %1488 }
 0x1d7   : > { %2028 = vrot.lane.b32.xlu1 %v1984_v56, %s6819_s18 }
 0x1d8   : > { %1662 = vst.msk [vmem:[#allocation3 + $0x58] sm:$0xff] %vm344_vm0, %v1645_v57  ;;  %v1545_v2 = vmul.f32 %v7503_v1, %v1341_v59  ;;  %v1342_v4 = vmax.f32 %v1282_v60, 0.0 }
 0x1d9   : > { %v2098_v7 = vld [vmem:[#allocation2 + $0xc8] sm:$0xff] }
 0x1da   : > { %1579 = vst.msk [vmem:[#allocation2 + $0xd8] sm:$0xff] %vm344_vm0, %v1545_v2  ;;  %v1546_v6 = vmul.f32 %v7508_v5, %v1342_v4  ;;  %v1962_v8 = vld [vmem:[#allocation2 + $0xc7] sm:$0xff]  ;;  %1894 = vrot.lane.b32.xlu0 %v2120_v55, %s6820_s19 }
 0x1db   : > { %v1624_v9 = vld [vmem:[#allocation2 + $0xc6] sm:$0xff]  ;;  %v1286_v10 = vpop.f32.mrb[12].mxu1  ;;  %1758 = vrot.lane.b32.xlu1 %v1984_v56, %s6817_s17  ;;  %v2099_v11 = vld [vmem:[#allocation2 + $0xd0] sm:$0xff] }
 0x1dc   : > { %v1963_v12 = vld [vmem:[#allocation2 + $0xcf] sm:$0xff]  ;;  %1580 = vst.msk [vmem:[#allocation2 + $0xe0] sm:$0xff] %vm344_vm0, %v1546_v6  ;;  %v1287_v14 = vadd.f32 %v7352_v37, %v1286_v10  ;;  %v6358_v34 = vpop.f32.mrb[13].mxu1  ;;  %v2121_v35 = vpack.c.bf16 %v2099_v11, %v2098_v7 }
 0x1dd   : > { %v1625_v13 = vld [vmem:[#allocation2 + $0xce] sm:$0xff]  ;;  %v1985_v36 = vpack.c.bf16 %v1963_v12, %v1962_v8  ;;  %v1289_v39 = vpop.f32.mrb[14].mxu1  ;;  %v7533_v8 = vpop.permute.xlu1 %1493 }
 0x1de   : > { %v1646_v38 = vpack.c.bf16 %v1625_v13, %v1624_v9  ;;  %v1343_v40 = vmax.f32 %v1287_v14, 0.0  ;;  %v1290_v42 = vadd.f32 %v7352_v37, %v1289_v39  ;;  %v6359_v43 = vpop.f32.mrb[15].mxu1  ;;  %2166 = vrot.lane.b32.xlu0 %v2121_v35, %s6821_s20  ;;  %v7537_v9 = vpop.permute.xlu0 %1498 }
 0x1df   : > { %2030 = vrot.lane.b32.xlu1 %v1985_v36, %s6819_s18 }
 0x1e0   : > { %1663 = vst.msk [vmem:[#allocation3 + $0x60] sm:$0xff] %vm344_vm0, %v1646_v38  ;;  %v1547_v46 = vmul.f32 %v7518_v45, %v1343_v40  ;;  %v1344_v47 = vmax.f32 %v1290_v42, 0.0 }
 0x1e1   : > { %v2100_v50 = vld [vmem:[#allocation2 + $0xd8] sm:$0xff] }
 0x1e2   : > { %1581 = vst.msk [vmem:[#allocation2 + $0xe8] sm:$0xff] %vm344_vm0, %v1547_v46  ;;  %v1548_v49 = vmul.f32 %v7523_v48, %v1344_v47  ;;  %v1964_v51 = vld [vmem:[#allocation2 + $0xd7] sm:$0xff]  ;;  %1896 = vrot.lane.b32.xlu0 %v2121_v35, %s6820_s19 }
 0x1e3   : > { %v1626_v52 = vld [vmem:[#allocation2 + $0xd6] sm:$0xff]  ;;  %v1294_v53 = vpop.f32.mrb[16].mxu1  ;;  %1760 = vrot.lane.b32.xlu1 %v1985_v36, %s6817_s17  ;;  %v2101_v54 = vld [vmem:[#allocation2 + $0xe0] sm:$0xff] }
 0x1e4   : > { %v1965_v55 = vld [vmem:[#allocation2 + $0xdf] sm:$0xff]  ;;  %1582 = vst.msk [vmem:[#allocation2 + $0xf0] sm:$0xff] %vm344_vm0, %v1548_v49  ;;  %v1295_v57 = vadd.f32 %v7352_v37, %v1294_v53  ;;  %v6362_v58 = vpop.f32.mrb[17].mxu1  ;;  %v2122_v59 = vpack.c.bf16 %v2101_v54, %v2100_v50  ;;  %v7546_v50 = vpop.permute.xlu0 %1508 }
 0x1e5   : > { %v1627_v56 = vld [vmem:[#allocation2 + $0xde] sm:$0xff]  ;;  %v1986_v60 = vpack.c.bf16 %v1965_v55, %v1964_v51  ;;  %v1297_v2 = vpop.f32.mrb[18].mxu1  ;;  %v7550_v54 = vpop.permute.xlu1 %1503 }
 0x1e6   : > { %v1647_v61 = vpack.c.bf16 %v1627_v56, %v1626_v52  ;;  %v1345_v4 = vmax.f32 %v1295_v57, 0.0  ;;  %v1298_v6 = vadd.f32 %v7352_v37, %v1297_v2  ;;  %v6363_v7 = vpop.f32.mrb[19].mxu1  ;;  %2168 = vrot.lane.b32.xlu0 %v2122_v59, %s6821_s20 }
 0x1e7   : > { %2032 = vrot.lane.b32.xlu1 %v1986_v60, %s6819_s18 }
 0x1e8   : > { %1664 = vst.msk [vmem:[#allocation3 + $0x68] sm:$0xff] %vm344_vm0, %v1647_v61  ;;  %v1549_v10 = vmul.f32 %v7533_v8, %v1345_v4  ;;  %v1346_v11 = vmax.f32 %v1298_v6, 0.0  ;;  %v7559_v7 = vpop.permute.xlu0 %1518 }
 0x1e9   : > { %v2102_v13 = vld [vmem:[#allocation2 + $0xe8] sm:$0xff] }
 0x1ea   : > { %1583 = vst.msk [vmem:[#allocation2 + $0xf8] sm:$0xff] %vm344_vm0, %v1549_v10  ;;  %v1550_v12 = vmul.f32 %v7537_v9, %v1346_v11  ;;  %v1966_v14 = vld [vmem:[#allocation2 + $0xe7] sm:$0xff]  ;;  %1898 = vrot.lane.b32.xlu0 %v2122_v59, %s6820_s19 }
 0x1eb   : > { %v1628_v34 = vld [vmem:[#allocation2 + $0xe6] sm:$0xff]  ;;  %v1302_v35 = vpop.f32.mrb[20].mxu1  ;;  %1762 = vrot.lane.b32.xlu1 %v1986_v60, %s6817_s17  ;;  %v2103_v36 = vld [vmem:[#allocation2 + $0xf0] sm:$0xff] }
 0x1ec   : > { %v1967_v38 = vld [vmem:[#allocation2 + $0xef] sm:$0xff]  ;;  %1584 = vst.msk [vmem:[#allocation2 + $0x100] sm:$0xff] %vm344_vm0, %v1550_v12  ;;  %v1303_v40 = vadd.f32 %v7352_v37, %v1302_v35  ;;  %v6366_v42 = vpop.f32.mrb[21].mxu1  ;;  %v2123_v43 = vpack.c.bf16 %v2103_v36, %v2102_v13 }
 0x1ed   : > { %v1629_v39 = vld [vmem:[#allocation2 + $0xee] sm:$0xff]  ;;  %v1987_v46 = vpack.c.bf16 %v1967_v38, %v1966_v14  ;;  %v1305_v49 = vpop.f32.mrb[22].mxu1 }
 0x1ee   : > { %v1648_v47 = vpack.c.bf16 %v1629_v39, %v1628_v34  ;;  %v1347_v51 = vmax.f32 %v1303_v40, 0.0  ;;  %v1306_v52 = vadd.f32 %v7352_v37, %v1305_v49  ;;  %v6367_v53 = vpop.f32.mrb[23].mxu1  ;;  %2170 = vrot.lane.b32.xlu0 %v2123_v43, %s6821_s20  ;;  %v7563_v34 = vpop.permute.xlu1 %1513 }
 0x1ef   : > { %2034 = vrot.lane.b32.xlu1 %v1987_v46, %s6819_s18 }
 0x1f0   : > { %1665 = vst.msk [vmem:[#allocation3 + $0x70] sm:$0xff] %vm344_vm0, %v1648_v47  ;;  %v1551_v55 = vmul.f32 %v7550_v54, %v1347_v51  ;;  %v1348_v56 = vmax.f32 %v1306_v52, 0.0 }
 0x1f1   : > { %v2104_v58 = vld [vmem:[#allocation2 + $0xf8] sm:$0xff] }
 0x1f2   : > { %1585 = vst.msk [vmem:[#allocation2 + $0x108] sm:$0xff] %vm344_vm0, %v1551_v55  ;;  %v1552_v57 = vmul.f32 %v7546_v50, %v1348_v56  ;;  %v1968_v59 = vld [vmem:[#allocation2 + $0xf7] sm:$0xff]  ;;  %1900 = vrot.lane.b32.xlu0 %v2123_v43, %s6820_s19 }
 0x1f3   : > { %v1630_v60 = vld [vmem:[#allocation2 + $0xf6] sm:$0xff]  ;;  %v1310_v61 = vpop.f32.mrb[24].mxu1  ;;  %1764 = vrot.lane.b32.xlu1 %v1987_v46, %s6817_s17  ;;  %v2105_v2 = vld [vmem:[#allocation2 + $0x100] sm:$0xff] }
 0x1f4   : > { %v1969_v4 = vld [vmem:[#allocation2 + $0xff] sm:$0xff]  ;;  %1586 = vst.msk [vmem:[#allocation2 + $0x110] sm:$0xff] %vm344_vm0, %v1552_v57  ;;  %v1311_v10 = vadd.f32 %v7352_v37, %v1310_v61  ;;  %v6370_v11 = vpop.f32.mrb[25].mxu1  ;;  %v2124_v12 = vpack.c.bf16 %v2105_v2, %v2104_v58 }
 0x1f5   : > { %v1631_v6 = vld [vmem:[#allocation2 + $0xfe] sm:$0xff]  ;;  %v1988_v13 = vpack.c.bf16 %v1969_v4, %v1968_v59  ;;  %v1313_v35 = vpop.f32.mrb[26].mxu1 }
 0x1f6   : > { %v1649_v14 = vpack.c.bf16 %v1631_v6, %v1630_v60  ;;  %v1349_v36 = vmax.f32 %v1311_v10, 0.0  ;;  %v1314_v38 = vadd.f32 %v7352_v37, %v1313_v35  ;;  %v6371_v39 = vpop.f32.mrb[27].mxu1  ;;  %2172 = vrot.lane.b32.xlu0 %v2124_v12, %s6821_s20 }
 0x1f7   : > { %2036 = vrot.lane.b32.xlu1 %v1988_v13, %s6819_s18 }
 0x1f8   : > { %1666 = vst.msk [vmem:[#allocation3 + $0x78] sm:$0xff] %vm344_vm0, %v1649_v14  ;;  %v1553_v40 = vmul.f32 %v7563_v34, %v1349_v36  ;;  %v1350_v42 = vmax.f32 %v1314_v38, 0.0  ;;  %v2145_v43 = vpop.permute.xlu0 %2144 }
 0x1f9   : > { %v2009_v46 = vpop.permute.xlu1 %2008  ;;  %v2106_v49 = vld [vmem:[#allocation2 + $0x108] sm:$0xff] }
 0x1fa   : > { %1587 = vst.msk [vmem:[#allocation2 + $0x118] sm:$0xff] %vm344_vm0, %v1553_v40  ;;  %v1554_v47 = vmul.f32 %v7559_v7, %v1350_v42  ;;  %v1970_v37 = vld [vmem:[#allocation2 + $0x107] sm:$0xff]  ;;  %1902 = vrot.lane.b32.xlu0 %v2124_v12, %s6820_s19 }
 0x1fb   : > { %2059 = vst.msk [vmem:[#allocation3] sm:$0xff] %vm888_vm4, %v2009_v46  ;;  %v1632_v51 = vld [vmem:[#allocation2 + $0x106] sm:$0xff]  ;;  %1766 = vrot.lane.b32.xlu1 %v1988_v13, %s6817_s17  ;;  %v2107_v52 = vld [vmem:[#allocation2 + $0x110] sm:$0xff] }
 0x1fc   : > { %2195 = vst.msk [vmem:[#allocation3] sm:$0xff] %vm1025_vm5, %v2145_v43  ;;  %v1971_v53 = vld [vmem:[#allocation2 + $0x10f] sm:$0xff]  ;;  %v2125_v56 = vpack.c.bf16 %v2107_v52, %v2106_v49  ;;  %v1875_v59 = vpop.permute.xlu0 %1874 }
 0x1fd   : > { %v1633_v55 = vld [vmem:[#allocation2 + $0x10e] sm:$0xff]  ;;  %1588 = vst.msk [vmem:[#allocation2 + $0x120] sm:$0xff] %vm344_vm0, %v1554_v47  ;;  %v1989_v57 = vpack.c.bf16 %v1971_v53, %v1970_v37  ;;  %v1739_v60 = vpop.permute.xlu1 %1738 }
 0x1fe   : > { %v1650_v58 = vpack.c.bf16 %v1633_v55, %v1632_v51  ;;  %1788 = vst.msk [vmem:[#allocation3 + $0x8] sm:$0xff] %vm614_vm2, %v1739_v60  ;;  %2174 = vrot.lane.b32.xlu0 %v2125_v56, %s6821_s20 }
 0x1ff   : > { %1924 = vst.msk [vmem:[#allocation3 + $0x8] sm:$0xff] %vm751_vm3, %v1875_v59  ;;  %2038 = vrot.lane.b32.xlu1 %v1989_v57, %s6819_s18 }
 0x200   : > { %1667 = vst.msk [vmem:[#allocation3 + $0x80] sm:$0xff] %vm344_vm0, %v1650_v58  ;;  %v2147_v61 = vpop.permute.xlu0 %2146 }
 0x201   : > { %v2011_v2 = vpop.permute.xlu1 %2010  ;;  %v2108_v6 = vld [vmem:[#allocation2 + $0x118] sm:$0xff] }
 0x202   : > { %2060 = vst.msk [vmem:[#allocation3 + $0x8] sm:$0xff] %vm888_vm4, %v2011_v2  ;;  %1904 = vrot.lane.b32.xlu0 %v2125_v56, %s6820_s19  ;;  %v1972_v11 = vld [vmem:[#allocation2 + $0x117] sm:$0xff] }
 0x203   : > { %v2212_v4 = vld [vmem:[#allocation3] sm:$0xff]  ;;  %2196 = vst.msk [vmem:[#allocation3 + $0x8] sm:$0xff] %vm1025_vm5, %v2147_v61  ;;  %1768 = vrot.lane.b32.xlu1 %v1989_v57, %s6817_s17 }
 0x204   : > { %6383 = vmatmul.mubr.msk.bf16.vlgmr.msra.gmra.mrb[28].mxu1 %vm1096_vm6, %v2212_v4  ;;  %v2109_v10 = vld [vmem:[#allocation2 + $0x120] sm:$0xff]  ;;  %v1877_v35 = vpop.permute.xlu0 %1876 }
 0x205   : > { %v1973_v12 = vld [vmem:[#allocation2 + $0x11f] sm:$0xff]  ;;  %v2126_v13 = vpack.c.bf16 %v2109_v10, %v2108_v6  ;;  %6386 = vmatprep.mubr.msk.bf16.mxu1 %vm6818_vm1, %v6816_v0  ;;  %v1741_v36 = vpop.permute.xlu1 %1740 }
 0x206   : > { %v1990_v14 = vpack.c.bf16 %v1973_v12, %v1972_v11  ;;  %1789 = vst.msk [vmem:[#allocation3 + $0x10] sm:$0xff] %vm614_vm2, %v1741_v36 }
 0x207   : > { %1925 = vst.msk [vmem:[#allocation3 + $0x10] sm:$0xff] %vm751_vm3, %v1877_v35  ;;  %2176 = vrot.lane.b32.xlu0 %v2126_v13, %s6821_s20 }
 0x208   : > { %2040 = vrot.lane.b32.xlu1 %v1990_v14, %s6819_s18  ;;  %v2149_v38 = vpop.permute.xlu0 %2148 }
 0x209   : > { %v2013_v39 = vpop.permute.xlu1 %2012 }
 0x20a   : > { %2061 = vst.msk [vmem:[#allocation3 + $0x10] sm:$0xff] %vm888_vm4, %v2013_v39  ;;  %v2213_v40 = vld [vmem:[#allocation3 + $0x8] sm:$0xff] }
 0x20b   : > { %2197 = vst.msk [vmem:[#allocation3 + $0x10] sm:$0xff] %vm1025_vm5, %v2149_v38 }
 0x20c   : > { %6387 = vmatmul.mubr.msk.bf16.gmra.mrb[32].mxu1 %vm1096_vm6, %v2213_v40  ;;  %v1879_v42 = vpop.permute.xlu0 %1878 }
 0x20d   : > { %6390 = vmatprep.mubr.msk.bf16.mxu1 %vm6818_vm1, %v6816_v0  ;;  %v1743_v43 = vpop.permute.xlu1 %1742 }
 0x20e   : > { %1790 = vst.msk [vmem:[#allocation3 + $0x18] sm:$0xff] %vm614_vm2, %v1743_v43 }
 0x20f   : > { %1926 = vst.msk [vmem:[#allocation3 + $0x18] sm:$0xff] %vm751_vm3, %v1879_v42 }
 0x210   : > { %v2151_v46 = vpop.permute.xlu0 %2150 }
 0x211   : > { %v2015_v47 = vpop.permute.xlu1 %2014 }
 0x212   : > { %2062 = vst.msk [vmem:[#allocation3 + $0x18] sm:$0xff] %vm888_vm4, %v2015_v47  ;;  %v2214_v49 = vld [vmem:[#allocation3 + $0x10] sm:$0xff] }
 0x213   : > { %2198 = vst.msk [vmem:[#allocation3 + $0x18] sm:$0xff] %vm1025_vm5, %v2151_v46 }
 0x214   : > { %6391 = vmatmul.mubr.msk.bf16.gmra.mrb[36].mxu1 %vm1096_vm6, %v2214_v49  ;;  %v1881_v37 = vpop.permute.xlu0 %1880 }
 0x215   : > { %6394 = vmatprep.mubr.msk.bf16.mxu1 %vm6818_vm1, %v6816_v0  ;;  %v1745_v51 = vpop.permute.xlu1 %1744 }
 0x216   : > { %1791 = vst.msk [vmem:[#allocation3 + $0x20] sm:$0xff] %vm614_vm2, %v1745_v51 }
 0x217   : > { %1927 = vst.msk [vmem:[#allocation3 + $0x20] sm:$0xff] %vm751_vm3, %v1881_v37 }
 0x218   : > { %v2153_v52 = vpop.permute.xlu0 %2152 }
 0x219   : > { %v2017_v53 = vpop.permute.xlu1 %2016 }
 0x21a   : > { %2063 = vst.msk [vmem:[#allocation3 + $0x20] sm:$0xff] %vm888_vm4, %v2017_v53  ;;  %v2215_v55 = vld [vmem:[#allocation3 + $0x18] sm:$0xff] }
 0x21b   : > { %2199 = vst.msk [vmem:[#allocation3 + $0x20] sm:$0xff] %vm1025_vm5, %v2153_v52 }
 0x21c   : > { %6395 = vmatmul.mubr.msk.bf16.gmra.mrb[40].mxu1 %vm1096_vm6, %v2215_v55  ;;  %v1883_v56 = vpop.permute.xlu0 %1882 }
 0x21d   : > { %6398 = vmatprep.mubr.msk.bf16.mxu1 %vm6818_vm1, %v6816_v0  ;;  %v1747_v57 = vpop.permute.xlu1 %1746 }
 0x21e   : > { %1792 = vst.msk [vmem:[#allocation3 + $0x28] sm:$0xff] %vm614_vm2, %v1747_v57 }
 0x21f   : > { %1928 = vst.msk [vmem:[#allocation3 + $0x28] sm:$0xff] %vm751_vm3, %v1883_v56 }
 0x220   : > { %v2155_v58 = vpop.permute.xlu0 %2154 }
 0x221   : > { %v2019_v59 = vpop.permute.xlu1 %2018 }
 0x222   : > { %2064 = vst.msk [vmem:[#allocation3 + $0x28] sm:$0xff] %vm888_vm4, %v2019_v59  ;;  %v2216_v60 = vld [vmem:[#allocation3 + $0x20] sm:$0xff] }
 0x223   : > { %2200 = vst.msk [vmem:[#allocation3 + $0x28] sm:$0xff] %vm1025_vm5, %v2155_v58 }
 0x224   : > { %6399 = vmatmul.mubr.msk.bf16.gmra.mrb[44].mxu1 %vm1096_vm6, %v2216_v60  ;;  %v1885_v61 = vpop.permute.xlu0 %1884 }
 0x225   : > { %6402 = vmatprep.mubr.msk.bf16.mxu1 %vm6818_vm1, %v6816_v0  ;;  %v1749_v2 = vpop.permute.xlu1 %1748 }
 0x226   : > { %1793 = vst.msk [vmem:[#allocation3 + $0x30] sm:$0xff] %vm614_vm2, %v1749_v2 }
 0x227   : > { %1929 = vst.msk [vmem:[#allocation3 + $0x30] sm:$0xff] %vm751_vm3, %v1885_v61 }
 0x228   : > { %v2157_v4 = vpop.permute.xlu0 %2156 }
 0x229   : > { %v2021_v6 = vpop.permute.xlu1 %2020 }
 0x22a   : > { %2065 = vst.msk [vmem:[#allocation3 + $0x30] sm:$0xff] %vm888_vm4, %v2021_v6  ;;  %v2217_v10 = vld [vmem:[#allocation3 + $0x28] sm:$0xff] }
 0x22b   : > { %2201 = vst.msk [vmem:[#allocation3 + $0x30] sm:$0xff] %vm1025_vm5, %v2157_v4 }
 0x22c   : > { %6403 = vmatmul.mubr.msk.bf16.gmra.mrb[48].mxu1 %vm1096_vm6, %v2217_v10  ;;  %v1887_v11 = vpop.permute.xlu0 %1886 }
 0x22d   : > { %6406 = vmatprep.mubr.msk.bf16.mxu1 %vm6818_vm1, %v6816_v0  ;;  %v1751_v12 = vpop.permute.xlu1 %1750 }
 0x22e   : > { %1794 = vst.msk [vmem:[#allocation3 + $0x38] sm:$0xff] %vm614_vm2, %v1751_v12 }
 0x22f   : > { %1930 = vst.msk [vmem:[#allocation3 + $0x38] sm:$0xff] %vm751_vm3, %v1887_v11 }
 0x230   : > { %v2159_v13 = vpop.permute.xlu0 %2158 }
 0x231   : > { %v2023_v14 = vpop.permute.xlu1 %2022 }
 0x232   : > { %2066 = vst.msk [vmem:[#allocation3 + $0x38] sm:$0xff] %vm888_vm4, %v2023_v14  ;;  %v2218_v35 = vld [vmem:[#allocation3 + $0x30] sm:$0xff] }
 0x233   : > { %2202 = vst.msk [vmem:[#allocation3 + $0x38] sm:$0xff] %vm1025_vm5, %v2159_v13 }
 0x234   : > { %6407 = vmatmul.mubr.msk.bf16.gmra.mrb[52].mxu1 %vm1096_vm6, %v2218_v35  ;;  %v1889_v36 = vpop.permute.xlu0 %1888 }
 0x235   : > { %6410 = vmatprep.mubr.msk.bf16.mxu1 %vm6818_vm1, %v6816_v0  ;;  %v1753_v38 = vpop.permute.xlu1 %1752 }
 0x236   : > { %1795 = vst.msk [vmem:[#allocation3 + $0x40] sm:$0xff] %vm614_vm2, %v1753_v38  ;;  %v2804_v38 = vld [vmem:[#allocation2 + $0x8] sm:$0xff] }
 0x237   : > { %1931 = vst.msk [vmem:[#allocation3 + $0x40] sm:$0xff] %vm751_vm3, %v1889_v36 }
 0x238   : > { %v2161_v39 = vpop.permute.xlu0 %2160 }
 0x239   : > { %v2025_v40 = vpop.permute.xlu1 %2024 }
 0x23a   : > { %2067 = vst.msk [vmem:[#allocation3 + $0x40] sm:$0xff] %vm888_vm4, %v2025_v40  ;;  %v2219_v42 = vld [vmem:[#allocation3 + $0x38] sm:$0xff] }
 0x23b   : > { %2203 = vst.msk [vmem:[#allocation3 + $0x40] sm:$0xff] %vm1025_vm5, %v2161_v39  ;;  %v2805_v39 = vld [vmem:[#allocation2 + $0x10] sm:$0xff]  ;;  %v2668_v40 = vld [vmem:[#allocation2 + $0x7] sm:$0xff] }
 0x23c   : > { %6411 = vmatmul.mubr.msk.bf16.gmra.mrb[56].mxu1 %vm1096_vm6, %v2219_v42  ;;  %v1891_v43 = vpop.permute.xlu0 %1890  ;;  %v2838_v42 = vpack.c.bf16 %v2805_v39, %v2804_v38 }
 0x23d   : > { %6414 = vmatprep.mubr.msk.bf16.mxu1 %vm6818_vm1, %v6816_v0  ;;  %v1755_v46 = vpop.permute.xlu1 %1754 }
 0x23e   : > { %1796 = vst.msk [vmem:[#allocation3 + $0x48] sm:$0xff] %vm614_vm2, %v1755_v46  ;;  %2872 = vrot.lane.b32.xlu0 %v2838_v42, %s6820_s19 }
 0x23f   : > { %1932 = vst.msk [vmem:[#allocation3 + $0x48] sm:$0xff] %vm751_vm3, %v1891_v43  ;;  %v2669_v43 = vld [vmem:[#allocation2 + $0xf] sm:$0xff] }
 0x240   : > { %v2163_v47 = vpop.permute.xlu0 %2162 }
 0x241   : > { %v2027_v49 = vpop.permute.xlu1 %2026 }
 0x242   : > { %2068 = vst.msk [vmem:[#allocation3 + $0x48] sm:$0xff] %vm888_vm4, %v2027_v49  ;;  %v2220_v37 = vld [vmem:[#allocation3 + $0x40] sm:$0xff]  ;;  %v2702_v49 = vpack.c.bf16 %v2669_v43, %v2668_v40 }
 0x243   : > { %2204 = vst.msk [vmem:[#allocation3 + $0x48] sm:$0xff] %vm1025_vm5, %v2163_v47 }
 0x244   : > { %6415 = vmatmul.mubr.msk.bf16.gmra.mrb[60].mxu1 %vm1096_vm6, %v2220_v37  ;;  %v1893_v51 = vpop.permute.xlu0 %1892  ;;  %2736 = vrot.lane.b32.xlu1 %v2702_v49, %s6817_s17 }
 0x245   : > { %6418 = vmatprep.mubr.msk.bf16.mxu1 %vm6818_vm1, %v6816_v0  ;;  %v1757_v52 = vpop.permute.xlu1 %1756 }
 0x246   : > { %1797 = vst.msk [vmem:[#allocation3 + $0x50] sm:$0xff] %vm614_vm2, %v1757_v52 }
 0x247   : > { %1933 = vst.msk [vmem:[#allocation3 + $0x50] sm:$0xff] %vm751_vm3, %v1893_v51 }
 0x248   : > { %v2165_v53 = vpop.permute.xlu0 %2164 }
 0x249   : > { %v2029_v55 = vpop.permute.xlu1 %2028 }
 0x24a   : > { %2069 = vst.msk [vmem:[#allocation3 + $0x50] sm:$0xff] %vm888_vm4, %v2029_v55  ;;  %v2221_v56 = vld [vmem:[#allocation3 + $0x48] sm:$0xff] }
 0x24b   : > { %2205 = vst.msk [vmem:[#allocation3 + $0x50] sm:$0xff] %vm1025_vm5, %v2165_v53 }
 0x24c   : > { %6419 = vmatmul.mubr.msk.bf16.gmra.mrb[64].mxu1 %vm1096_vm6, %v2221_v56  ;;  %v1895_v57 = vpop.permute.xlu0 %1894 }
 0x24d   : > { %6422 = vmatprep.mubr.msk.bf16.mxu1 %vm6818_vm1, %v6816_v0  ;;  %v1759_v58 = vpop.permute.xlu1 %1758 }
 0x24e   : > { %1798 = vst.msk [vmem:[#allocation3 + $0x58] sm:$0xff] %vm614_vm2, %v1759_v58 }
 0x24f   : > { %1934 = vst.msk [vmem:[#allocation3 + $0x58] sm:$0xff] %vm751_vm3, %v1895_v57 }
 0x250   : > { %v2167_v59 = vpop.permute.xlu0 %2166 }
 0x251   : > { %v2031_v60 = vpop.permute.xlu1 %2030 }
 0x252   : > { %2070 = vst.msk [vmem:[#allocation3 + $0x58] sm:$0xff] %vm888_vm4, %v2031_v60  ;;  %v2222_v61 = vld [vmem:[#allocation3 + $0x50] sm:$0xff] }
 0x253   : > { %2206 = vst.msk [vmem:[#allocation3 + $0x58] sm:$0xff] %vm1025_vm5, %v2167_v59 }
 0x254   : > { %6423 = vmatmul.mubr.msk.bf16.gmra.mrb[68].mxu1 %vm1096_vm6, %v2222_v61  ;;  %v1897_v2 = vpop.permute.xlu0 %1896 }
 0x255   : > { %6426 = vmatprep.mubr.msk.bf16.mxu1 %vm6818_vm1, %v6816_v0  ;;  %v1761_v4 = vpop.permute.xlu1 %1760 }
 0x256   : > { %1799 = vst.msk [vmem:[#allocation3 + $0x60] sm:$0xff] %vm614_vm2, %v1761_v4 }
 0x257   : > { %1935 = vst.msk [vmem:[#allocation3 + $0x60] sm:$0xff] %vm751_vm3, %v1897_v2 }
 0x258   : > { %v2169_v6 = vpop.permute.xlu0 %2168 }
 0x259   : > { %v2033_v10 = vpop.permute.xlu1 %2032 }
 0x25a   : > { %2071 = vst.msk [vmem:[#allocation3 + $0x60] sm:$0xff] %vm888_vm4, %v2033_v10  ;;  %v2223_v11 = vld [vmem:[#allocation3 + $0x58] sm:$0xff]  ;;  %v6793_v10 = vld [vmem:[%s8864_s4 + $0x28] sm:$0xff]  }
 0x25b   : > { %2207 = vst.msk [vmem:[#allocation3 + $0x60] sm:$0xff] %vm1025_vm5, %v2169_v6  ;;  %6451 = vmatpush3.bf16.msra.mxu0 %v6793_v10 }
 0x25c   : > { %6427 = vmatmul.mubr.msk.bf16.gmra.mrb[72].mxu1 %vm1096_vm6, %v2223_v11  ;;  %v1899_v12 = vpop.permute.xlu0 %1898  ;;  %v7707_v11 = vld [vmem:[%s8865_s5] ss:$0 sm:$0xff]  ;;  %6452 = vmatprep.subr.bf16.mxu0 %v6816_v0 }
 0x25d   : > { %6430 = vmatprep.mubr.msk.bf16.mxu1 %vm6818_vm1, %v6816_v0  ;;  %v1763_v13 = vpop.permute.xlu1 %1762 }
 0x25e   : > { %1800 = vst.msk [vmem:[#allocation3 + $0x68] sm:$0xff] %vm614_vm2, %v1763_v13  ;;  %v2600_v13 = vld [vmem:[#allocation2 + $0x6] sm:$0xff] }
 0x25f   : > { %1936 = vst.msk [vmem:[#allocation3 + $0x68] sm:$0xff] %vm751_vm3, %v1899_v12  ;;  %v6794_v12 = vld [vmem:[%s8864_s4 + $0x30] sm:$0xff]  }
 0x260   : > { %v2171_v14 = vpop.permute.xlu0 %2170  ;;  %6453 = vmatpush3.bf16.msra.mxu0 %v6794_v12 }
 0x261   : > { %v2035_v35 = vpop.permute.xlu1 %2034  ;;  %6454 = vmatprep.subr.bf16.mxu0 %v6816_v0 }
 0x262   : > { %2072 = vst.msk [vmem:[#allocation3 + $0x68] sm:$0xff] %vm888_vm4, %v2035_v35  ;;  %v2224_v36 = vld [vmem:[#allocation3 + $0x60] sm:$0xff] }
 0x263   : > { %2208 = vst.msk [vmem:[#allocation3 + $0x68] sm:$0xff] %vm1025_vm5, %v2171_v14  ;;  %v2601_v14 = vld [vmem:[#allocation2 + $0xe] sm:$0xff] }
 0x264   : > { %6431 = vmatmul.mubr.msk.bf16.gmra.mrb[76].mxu1 %vm1096_vm6, %v2224_v36  ;;  %v1901_v46 = vpop.permute.xlu0 %1900  ;;  %v2634_v36 = vpack.c.bf16 %v2601_v14, %v2600_v13 }
 0x265   : > { %6434 = vmatprep.mubr.msk.bf16.mxu1 %vm6818_vm1, %v6816_v0  ;;  %v1765_v47 = vpop.permute.xlu1 %1764 }
 0x266   : > { %1801 = vst.msk [vmem:[#allocation3 + $0x70] sm:$0xff] %vm614_vm2, %v1765_v47 }
 0x267   : > { %1937 = vst.msk [vmem:[#allocation3 + $0x70] sm:$0xff] %vm751_vm3, %v1901_v46 }
 0x268   : > { %v2173_v37 = vpop.permute.xlu0 %2172  ;;  %2651 = vst.msk [vmem:[#allocation3] sm:$0xff] %vm344_vm0, %v2634_v36 }
 0x269   : > { %v2037_v51 = vpop.permute.xlu1 %2036 }
 0x26a   : > { %2073 = vst.msk [vmem:[#allocation3 + $0x70] sm:$0xff] %vm888_vm4, %v2037_v51  ;;  %v2225_v52 = vld [vmem:[#allocation3 + $0x68] sm:$0xff] }
 0x26b   : > { %2209 = vst.msk [vmem:[#allocation3 + $0x70] sm:$0xff] %vm1025_vm5, %v2173_v37  ;;  %v6795_v37 = vld [vmem:[%s8864_s4 + $0x38] sm:$0xff]  }
 0x26c   : > { %6435 = vmatmul.mubr.msk.bf16.gmra.mrb[80].mxu1 %vm1096_vm6, %v2225_v52  ;;  %v1903_v53 = vpop.permute.xlu0 %1902  ;;  %6455 = vmatpush3.bf16.msra.mxu0 %v6795_v37 }
 0x26d   : > { %6438 = vmatprep.mubr.msk.bf16.mxu1 %vm6818_vm1, %v6816_v0  ;;  %v1767_v55 = vpop.permute.xlu1 %1766  ;;  %6456 = vmatprep.subr.bf16.mxu0 %v6816_v0 }
 0x26e   : > { %1802 = vst.msk [vmem:[#allocation3 + $0x78] sm:$0xff] %vm614_vm2, %v1767_v55  ;;  %v6796_v55 = vld [vmem:[%s8864_s4 + $0x40] sm:$0xff]  }
 0x26f   : > { %1938 = vst.msk [vmem:[#allocation3 + $0x78] sm:$0xff] %vm751_vm3, %v1903_v53 }
 0x270   : > { %v2175_v56 = vpop.permute.xlu0 %2174  ;;  %6457 = vmatpush3.bf16.msra.mxu0 %v6796_v55 }
 0x271   : > { %v2039_v57 = vpop.permute.xlu1 %2038  ;;  %6458 = vmatprep.subr.bf16.mxu0 %v6816_v0 }
 0x272   : > { %2074 = vst.msk [vmem:[#allocation3 + $0x78] sm:$0xff] %vm888_vm4, %v2039_v57  ;;  %v2226_v58 = vld [vmem:[#allocation3 + $0x70] sm:$0xff] }
 0x273   : > { %2210 = vst.msk [vmem:[#allocation3 + $0x78] sm:$0xff] %vm1025_vm5, %v2175_v56 }
 0x274   : > { %6439 = vmatmul.mubr.msk.bf16.gmra.mrb[84].mxu1 %vm1096_vm6, %v2226_v58  ;;  %v1905_v59 = vpop.permute.xlu0 %1904 }
 0x275   : > { %6442 = vmatprep.mubr.msk.bf16.mxu1 %vm6818_vm1, %v6816_v0  ;;  %v1769_v60 = vpop.permute.xlu1 %1768 }
 0x276   : > { %1803 = vst.msk [vmem:[#allocation3 + $0x80] sm:$0xff] %vm614_vm2, %v1769_v60 }
 0x277   : > { %1939 = vst.msk [vmem:[#allocation3 + $0x80] sm:$0xff] %vm751_vm3, %v1905_v59 }
 0x279   : > { %v2177_v61 = vpop.permute.xlu0 %2176 }
 0x27a   : > { %v2041_v2 = vpop.permute.xlu1 %2040  ;;  %v2227_v4 = vld [vmem:[#allocation3 + $0x78] sm:$0xff] }
 0x27b   : > { %2075 = vst.msk [vmem:[#allocation3 + $0x80] sm:$0xff] %vm888_vm4, %v2041_v2 }
 0x27c   : > { %6443 = vmatmul.mubr.msk.bf16.gmra.mrb[88].mxu1 %vm1096_vm6, %v2227_v4  ;;  %2211 = vst.msk [vmem:[#allocation3 + $0x80] sm:$0xff] %vm1025_vm5, %v2177_v61  ;;  %v6797_v4 = vld [vmem:[%s8864_s4 + $0x48] sm:$0xff]  }
 0x27d   : > { %6446 = vmatprep.mubr.msk.bf16.mxu1 %vm6818_vm1, %v6816_v0  ;;  %6459 = vmatpush3.bf16.msra.mxu0 %v6797_v4 }
 0x27e   : > { %6606 = vmatprep.subr.bf16.mxu0 %v6816_v0 }
 0x283   : > { %v2228_v6 = vld [vmem:[#allocation3 + $0x80] sm:$0xff] }
 0x284   : > { %6447 = vmatmul.mubr.msk.bf16.gmra.mrb[92].mxu1 %vm1096_vm6, %v2228_v6 }
 0x285   : > { %6538 = vmatprep.mubr.msk.bf16.mxu1 %vm6818_vm1, %v6816_v0 }
 0x2b0   : > { %v2873_v42 = vpop.permute.xlu0 %2872 }
 0x2b6   : > { %v2737_v49 = vpop.permute.xlu1 %2736 }
 0x2b7   : > { %2787 = vst.msk [vmem:[#allocation3] sm:$0xff] %vm614_vm2, %v2737_v49 }
 0x2b8   : > { %2923 = vst.msk [vmem:[#allocation3] sm:$0xff] %vm751_vm3, %v2873_v42 }
 0x2d7   : > { %v2350_v35 = vpop.f32.mrb[28].mxu1 }
 0x2d8   : > { %v2351_v38 = vadd.f32 %v7707_v11, %v2350_v35  ;;  %v6384_v39 = vpop.f32.mrb[29].mxu1 }
 0x2d9   : > { %v2353_v40 = vpop.f32.mrb[30].mxu1 }
 0x2da   : > { %v2485_v43 = vmax.f32 %v2351_v38, 0.0  ;;  %v2354_v46 = vadd.f32 %v7707_v11, %v2353_v40  ;;  %v6385_v47 = vpop.f32.mrb[31].mxu1 }
 0x2dc   : > { %v2519_v51 = vmul.f32 %v2485_v43, %v7303_v15  ;;  %v2486_v52 = vmax.f32 %v2354_v46, 0.0 }
 0x2de   : > { %2553 = vst.msk [vmem:[#allocation2 + $0x18] sm:$0xff] %vm344_vm0, %v2519_v51  ;;  %v2520_v53 = vmul.f32 %v2486_v52, %v7305_v16 }
 0x2df   : > { %v2358_v56 = vpop.f32.mrb[32].mxu1 }
 0x2e0   : > { %2554 = vst.msk [vmem:[#allocation2 + $0x20] sm:$0xff] %vm344_vm0, %v2520_v53  ;;  %v2359_v57 = vadd.f32 %v7707_v11, %v2358_v56  ;;  %v6388_v58 = vpop.f32.mrb[33].mxu1 }
 0x2e1   : > { %v2361_v59 = vpop.f32.mrb[34].mxu1 }
 0x2e2   : > { %v2487_v60 = vmax.f32 %v2359_v57, 0.0  ;;  %v2362_v61 = vadd.f32 %v7707_v11, %v2361_v59  ;;  %v6389_v2 = vpop.f32.mrb[35].mxu1 }
 0x2e4   : > { %v2521_v6 = vmul.f32 %v2487_v60, %v7309_v18  ;;  %v2488_v10 = vmax.f32 %v2362_v61, 0.0 }
 0x2e5   : > { %v3076_v13 = vld [vmem:[#allocation2 + $0x18] sm:$0xff] }
 0x2e6   : > { %2555 = vst.msk [vmem:[#allocation2 + $0x28] sm:$0xff] %vm344_vm0, %v2521_v6  ;;  %v2522_v12 = vmul.f32 %v2488_v10, %v7307_v17  ;;  %v2940_v14 = vld [vmem:[#allocation2 + $0x17] sm:$0xff] }
 0x2e7   : > { %v2602_v35 = vld [vmem:[#allocation2 + $0x16] sm:$0xff]  ;;  %v2366_v36 = vpop.f32.mrb[36].mxu1  ;;  %v3077_v38 = vld [vmem:[#allocation2 + $0x20] sm:$0xff] }
 0x2e8   : > { %v2941_v39 = vld [vmem:[#allocation2 + $0x1f] sm:$0xff]  ;;  %2556 = vst.msk [vmem:[#allocation2 + $0x30] sm:$0xff] %vm344_vm0, %v2522_v12  ;;  %v2367_v42 = vadd.f32 %v7707_v11, %v2366_v36  ;;  %v6392_v43 = vpop.f32.mrb[37].mxu1  ;;  %v3110_v46 = vpack.c.bf16 %v3077_v38, %v3076_v13 }
 0x2e9   : > { %v2603_v40 = vld [vmem:[#allocation2 + $0x1e] sm:$0xff]  ;;  %v2974_v47 = vpack.c.bf16 %v2941_v39, %v2940_v14  ;;  %v2369_v37 = vpop.f32.mrb[38].mxu1 }
 0x2ea   : > { %v2635_v49 = vpack.c.bf16 %v2603_v40, %v2602_v35  ;;  %v2489_v51 = vmax.f32 %v2367_v42, 0.0  ;;  %v2370_v52 = vadd.f32 %v7707_v11, %v2369_v37  ;;  %v6393_v53 = vpop.f32.mrb[39].mxu1  ;;  %3144 = vrot.lane.b32.xlu0 %v3110_v46, %s6821_s20 }
 0x2eb   : > { %3008 = vrot.lane.b32.xlu1 %v2974_v47, %s6819_s18 }
 0x2ec   : > { %2652 = vst.msk [vmem:[#allocation3 + $0x8] sm:$0xff] %vm344_vm0, %v2635_v49  ;;  %v2523_v55 = vmul.f32 %v2489_v51, %v7313_v20  ;;  %v2490_v56 = vmax.f32 %v2370_v52, 0.0 }
 0x2ed   : > { %v3078_v58 = vld [vmem:[#allocation2 + $0x28] sm:$0xff] }
 0x2ee   : > { %2557 = vst.msk [vmem:[#allocation2 + $0x38] sm:$0xff] %vm344_vm0, %v2523_v55  ;;  %v2524_v57 = vmul.f32 %v2490_v56, %v7311_v19  ;;  %2874 = vrot.lane.b32.xlu0 %v3110_v46, %s6820_s19  ;;  %v2942_v59 = vld [vmem:[#allocation2 + $0x27] sm:$0xff] }
 0x2ef   : > { %2738 = vrot.lane.b32.xlu1 %v2974_v47, %s6817_s17  ;;  %v2604_v60 = vld [vmem:[#allocation2 + $0x26] sm:$0xff]  ;;  %v2374_v61 = vpop.f32.mrb[40].mxu1  ;;  %v3079_v2 = vld [vmem:[#allocation2 + $0x30] sm:$0xff] }
 0x2f0   : > { %v2943_v4 = vld [vmem:[#allocation2 + $0x2f] sm:$0xff]  ;;  %2558 = vst.msk [vmem:[#allocation2 + $0x40] sm:$0xff] %vm344_vm0, %v2524_v57  ;;  %v2375_v10 = vadd.f32 %v7707_v11, %v2374_v61  ;;  %v6396_v12 = vpop.f32.mrb[41].mxu1  ;;  %v3111_v13 = vpack.c.bf16 %v3079_v2, %v3078_v58 }
 0x2f1   : > { %v2605_v6 = vld [vmem:[#allocation2 + $0x2e] sm:$0xff]  ;;  %v2975_v14 = vpack.c.bf16 %v2943_v4, %v2942_v59  ;;  %v2377_v36 = vpop.f32.mrb[42].mxu1 }
 0x2f2   : > { %v2636_v35 = vpack.c.bf16 %v2605_v6, %v2604_v60  ;;  %v2491_v38 = vmax.f32 %v2375_v10, 0.0  ;;  %v2378_v39 = vadd.f32 %v7707_v11, %v2377_v36  ;;  %v6397_v40 = vpop.f32.mrb[43].mxu1  ;;  %3146 = vrot.lane.b32.xlu0 %v3111_v13, %s6821_s20 }
 0x2f3   : > { %3010 = vrot.lane.b32.xlu1 %v2975_v14, %s6819_s18 }
 0x2f4   : > { %2653 = vst.msk [vmem:[#allocation3 + $0x10] sm:$0xff] %vm344_vm0, %v2636_v35  ;;  %v2525_v42 = vmul.f32 %v2491_v38, %v7317_v22  ;;  %v2492_v43 = vmax.f32 %v2378_v39, 0.0 }
 0x2f5   : > { %v3080_v47 = vld [vmem:[#allocation2 + $0x38] sm:$0xff] }
 0x2f6   : > { %2559 = vst.msk [vmem:[#allocation2 + $0x48] sm:$0xff] %vm344_vm0, %v2525_v42  ;;  %v2526_v46 = vmul.f32 %v2492_v43, %v7315_v21  ;;  %2876 = vrot.lane.b32.xlu0 %v3111_v13, %s6820_s19  ;;  %v2944_v49 = vld [vmem:[#allocation2 + $0x37] sm:$0xff] }
 0x2f7   : > { %2740 = vrot.lane.b32.xlu1 %v2975_v14, %s6817_s17  ;;  %v2606_v37 = vld [vmem:[#allocation2 + $0x36] sm:$0xff]  ;;  %v2382_v51 = vpop.f32.mrb[44].mxu1  ;;  %v3081_v52 = vld [vmem:[#allocation2 + $0x40] sm:$0xff] }
 0x2f8   : > { %v2945_v53 = vld [vmem:[#allocation2 + $0x3f] sm:$0xff]  ;;  %2560 = vst.msk [vmem:[#allocation2 + $0x50] sm:$0xff] %vm344_vm0, %v2526_v46  ;;  %v2383_v56 = vadd.f32 %v7707_v11, %v2382_v51  ;;  %v6400_v57 = vpop.f32.mrb[45].mxu1  ;;  %v3112_v58 = vpack.c.bf16 %v3081_v52, %v3080_v47 }
 0x2f9   : > { %v2607_v55 = vld [vmem:[#allocation2 + $0x3e] sm:$0xff]  ;;  %v2976_v59 = vpack.c.bf16 %v2945_v53, %v2944_v49  ;;  %v2385_v61 = vpop.f32.mrb[46].mxu1 }
 0x2fa   : > { %v2637_v60 = vpack.c.bf16 %v2607_v55, %v2606_v37  ;;  %v2493_v2 = vmax.f32 %v2383_v56, 0.0  ;;  %v2386_v4 = vadd.f32 %v7707_v11, %v2385_v61  ;;  %v6401_v6 = vpop.f32.mrb[47].mxu1  ;;  %3148 = vrot.lane.b32.xlu0 %v3112_v58, %s6821_s20 }
 0x2fb   : > { %3012 = vrot.lane.b32.xlu1 %v2976_v59, %s6819_s18 }
 0x2fc   : > { %2654 = vst.msk [vmem:[#allocation3 + $0x18] sm:$0xff] %vm344_vm0, %v2637_v60  ;;  %v2527_v10 = vmul.f32 %v2493_v2, %v7321_v24  ;;  %v2494_v12 = vmax.f32 %v2386_v4, 0.0 }
 0x2fd   : > { %v3082_v14 = vld [vmem:[#allocation2 + $0x48] sm:$0xff] }
 0x2fe   : > { %2561 = vst.msk [vmem:[#allocation2 + $0x58] sm:$0xff] %vm344_vm0, %v2527_v10  ;;  %v2528_v13 = vmul.f32 %v2494_v12, %v7319_v23  ;;  %2878 = vrot.lane.b32.xlu0 %v3112_v58, %s6820_s19  ;;  %v2946_v35 = vld [vmem:[#allocation2 + $0x47] sm:$0xff] }
 0x2ff   : > { %2742 = vrot.lane.b32.xlu1 %v2976_v59, %s6817_s17  ;;  %v2608_v36 = vld [vmem:[#allocation2 + $0x46] sm:$0xff]  ;;  %v2390_v38 = vpop.f32.mrb[48].mxu1  ;;  %v3083_v39 = vld [vmem:[#allocation2 + $0x50] sm:$0xff] }
 0x300   : > { %v2947_v40 = vld [vmem:[#allocation2 + $0x4f] sm:$0xff]  ;;  %2562 = vst.msk [vmem:[#allocation2 + $0x60] sm:$0xff] %vm344_vm0, %v2528_v13  ;;  %v2391_v43 = vadd.f32 %v7707_v11, %v2390_v38  ;;  %v6404_v46 = vpop.f32.mrb[49].mxu1  ;;  %v3113_v47 = vpack.c.bf16 %v3083_v39, %v3082_v14 }
 0x301   : > { %v2609_v42 = vld [vmem:[#allocation2 + $0x4e] sm:$0xff]  ;;  %v2977_v49 = vpack.c.bf16 %v2947_v40, %v2946_v35  ;;  %v2393_v51 = vpop.f32.mrb[50].mxu1 }
 0x302   : > { %v2638_v37 = vpack.c.bf16 %v2609_v42, %v2608_v36  ;;  %v2495_v52 = vmax.f32 %v2391_v43, 0.0  ;;  %v2394_v53 = vadd.f32 %v7707_v11, %v2393_v51  ;;  %v6405_v55 = vpop.f32.mrb[51].mxu1  ;;  %3150 = vrot.lane.b32.xlu0 %v3113_v47, %s6821_s20 }
 0x303   : > { %3014 = vrot.lane.b32.xlu1 %v2977_v49, %s6819_s18 }
 0x304   : > { %2655 = vst.msk [vmem:[#allocation3 + $0x20] sm:$0xff] %vm344_vm0, %v2638_v37  ;;  %v2529_v56 = vmul.f32 %v2495_v52, %v7325_v26  ;;  %v2496_v57 = vmax.f32 %v2394_v53, 0.0 }
 0x305   : > { %v3084_v59 = vld [vmem:[#allocation2 + $0x58] sm:$0xff] }
 0x306   : > { %2563 = vst.msk [vmem:[#allocation2 + $0x68] sm:$0xff] %vm344_vm0, %v2529_v56  ;;  %v2530_v58 = vmul.f32 %v2496_v57, %v7323_v25  ;;  %2880 = vrot.lane.b32.xlu0 %v3113_v47, %s6820_s19  ;;  %v2948_v60 = vld [vmem:[#allocation2 + $0x57] sm:$0xff] }
 0x307   : > { %2744 = vrot.lane.b32.xlu1 %v2977_v49, %s6817_s17  ;;  %v2610_v61 = vld [vmem:[#allocation2 + $0x56] sm:$0xff]  ;;  %v2398_v2 = vpop.f32.mrb[52].mxu1  ;;  %v3085_v4 = vld [vmem:[#allocation2 + $0x60] sm:$0xff] }
 0x308   : > { %v2949_v6 = vld [vmem:[#allocation2 + $0x5f] sm:$0xff]  ;;  %2564 = vst.msk [vmem:[#allocation2 + $0x70] sm:$0xff] %vm344_vm0, %v2530_v58  ;;  %v2399_v12 = vadd.f32 %v7707_v11, %v2398_v2  ;;  %v6408_v13 = vpop.f32.mrb[53].mxu1  ;;  %v3114_v14 = vpack.c.bf16 %v3085_v4, %v3084_v59 }
 0x309   : > { %v2611_v10 = vld [vmem:[#allocation2 + $0x5e] sm:$0xff]  ;;  %v2978_v35 = vpack.c.bf16 %v2949_v6, %v2948_v60  ;;  %v2401_v38 = vpop.f32.mrb[54].mxu1 }
 0x30a   : > { %v2639_v36 = vpack.c.bf16 %v2611_v10, %v2610_v61  ;;  %v2497_v39 = vmax.f32 %v2399_v12, 0.0  ;;  %v2402_v40 = vadd.f32 %v7707_v11, %v2401_v38  ;;  %v6409_v42 = vpop.f32.mrb[55].mxu1  ;;  %3152 = vrot.lane.b32.xlu0 %v3114_v14, %s6821_s20 }
 0x30b   : > { %3016 = vrot.lane.b32.xlu1 %v2978_v35, %s6819_s18 }
 0x30c   : > { %2656 = vst.msk [vmem:[#allocation3 + $0x28] sm:$0xff] %vm344_vm0, %v2639_v36  ;;  %v2531_v43 = vmul.f32 %v2497_v39, %v7329_v28  ;;  %v2498_v46 = vmax.f32 %v2402_v40, 0.0 }
 0x30d   : > { %v3086_v49 = vld [vmem:[#allocation2 + $0x68] sm:$0xff] }
 0x30e   : > { %2565 = vst.msk [vmem:[#allocation2 + $0x78] sm:$0xff] %vm344_vm0, %v2531_v43  ;;  %v2532_v47 = vmul.f32 %v2498_v46, %v7327_v27  ;;  %2882 = vrot.lane.b32.xlu0 %v3114_v14, %s6820_s19  ;;  %v2950_v37 = vld [vmem:[#allocation2 + $0x67] sm:$0xff] }
 0x30f   : > { %2746 = vrot.lane.b32.xlu1 %v2978_v35, %s6817_s17  ;;  %v2612_v51 = vld [vmem:[#allocation2 + $0x66] sm:$0xff]  ;;  %v2406_v52 = vpop.f32.mrb[56].mxu1  ;;  %v3087_v53 = vld [vmem:[#allocation2 + $0x70] sm:$0xff] }
 0x310   : > { %v2951_v55 = vld [vmem:[#allocation2 + $0x6f] sm:$0xff]  ;;  %2566 = vst.msk [vmem:[#allocation2 + $0x80] sm:$0xff] %vm344_vm0, %v2532_v47  ;;  %v2407_v57 = vadd.f32 %v7707_v11, %v2406_v52  ;;  %v6412_v58 = vpop.f32.mrb[57].mxu1  ;;  %v3115_v59 = vpack.c.bf16 %v3087_v53, %v3086_v49 }
 0x311   : > { %v2613_v56 = vld [vmem:[#allocation2 + $0x6e] sm:$0xff]  ;;  %v2979_v60 = vpack.c.bf16 %v2951_v55, %v2950_v37  ;;  %v2409_v2 = vpop.f32.mrb[58].mxu1 }
 0x312   : > { %v2640_v61 = vpack.c.bf16 %v2613_v56, %v2612_v51  ;;  %v2499_v4 = vmax.f32 %v2407_v57, 0.0  ;;  %v2410_v6 = vadd.f32 %v7707_v11, %v2409_v2  ;;  %v6413_v10 = vpop.f32.mrb[59].mxu1  ;;  %3154 = vrot.lane.b32.xlu0 %v3115_v59, %s6821_s20 }
 0x313   : > { %3018 = vrot.lane.b32.xlu1 %v2979_v60, %s6819_s18 }
 0x314   : > { %2657 = vst.msk [vmem:[#allocation3 + $0x30] sm:$0xff] %vm344_vm0, %v2640_v61  ;;  %v2533_v12 = vmul.f32 %v2499_v4, %v7333_v29  ;;  %v2500_v13 = vmax.f32 %v2410_v6, 0.0 }
 0x315   : > { %v3088_v35 = vld [vmem:[#allocation2 + $0x78] sm:$0xff] }
 0x316   : > { %2567 = vst.msk [vmem:[#allocation2 + $0x88] sm:$0xff] %vm344_vm0, %v2533_v12  ;;  %v2534_v14 = vmul.f32 %v2500_v13, %v7331_v62  ;;  %2884 = vrot.lane.b32.xlu0 %v3115_v59, %s6820_s19  ;;  %v2952_v36 = vld [vmem:[#allocation2 + $0x77] sm:$0xff] }
 0x317   : > { %2748 = vrot.lane.b32.xlu1 %v2979_v60, %s6817_s17  ;;  %v2614_v38 = vld [vmem:[#allocation2 + $0x76] sm:$0xff]  ;;  %v2414_v39 = vpop.f32.mrb[60].mxu1  ;;  %v3089_v40 = vld [vmem:[#allocation2 + $0x80] sm:$0xff] }
 0x318   : > { %v2953_v42 = vld [vmem:[#allocation2 + $0x7f] sm:$0xff]  ;;  %2568 = vst.msk [vmem:[#allocation2 + $0x90] sm:$0xff] %vm344_vm0, %v2534_v14  ;;  %v2415_v46 = vadd.f32 %v7707_v11, %v2414_v39  ;;  %v6416_v47 = vpop.f32.mrb[61].mxu1  ;;  %v3116_v49 = vpack.c.bf16 %v3089_v40, %v3088_v35 }
 0x319   : > { %v2615_v43 = vld [vmem:[#allocation2 + $0x7e] sm:$0xff]  ;;  %v2980_v37 = vpack.c.bf16 %v2953_v42, %v2952_v36  ;;  %v2417_v52 = vpop.f32.mrb[62].mxu1 }
 0x31a   : > { %v2641_v51 = vpack.c.bf16 %v2615_v43, %v2614_v38  ;;  %v2501_v53 = vmax.f32 %v2415_v46, 0.0  ;;  %v2418_v55 = vadd.f32 %v7707_v11, %v2417_v52  ;;  %v6417_v56 = vpop.f32.mrb[63].mxu1  ;;  %3156 = vrot.lane.b32.xlu0 %v3116_v49, %s6821_s20 }
 0x31b   : > { %3020 = vrot.lane.b32.xlu1 %v2980_v37, %s6819_s18 }
 0x31c   : > { %2658 = vst.msk [vmem:[#allocation3 + $0x38] sm:$0xff] %vm344_vm0, %v2641_v51  ;;  %v2535_v57 = vmul.f32 %v2501_v53, %v7337_v31  ;;  %v2502_v58 = vmax.f32 %v2418_v55, 0.0 }
 0x31d   : > { %v3090_v60 = vld [vmem:[#allocation2 + $0x88] sm:$0xff] }
 0x31e   : > { %2569 = vst.msk [vmem:[#allocation2 + $0x98] sm:$0xff] %vm344_vm0, %v2535_v57  ;;  %v2536_v59 = vmul.f32 %v2502_v58, %v7335_v30  ;;  %2886 = vrot.lane.b32.xlu0 %v3116_v49, %s6820_s19  ;;  %v2954_v61 = vld [vmem:[#allocation2 + $0x87] sm:$0xff] }
 0x31f   : > { %2750 = vrot.lane.b32.xlu1 %v2980_v37, %s6817_s17  ;;  %v2616_v2 = vld [vmem:[#allocation2 + $0x86] sm:$0xff]  ;;  %v2422_v4 = vpop.f32.mrb[64].mxu1  ;;  %v3091_v6 = vld [vmem:[#allocation2 + $0x90] sm:$0xff] }
 0x320   : > { %v2955_v10 = vld [vmem:[#allocation2 + $0x8f] sm:$0xff]  ;;  %2570 = vst.msk [vmem:[#allocation2 + $0xa0] sm:$0xff] %vm344_vm0, %v2536_v59  ;;  %v2423_v13 = vadd.f32 %v7707_v11, %v2422_v4  ;;  %v6420_v14 = vpop.f32.mrb[65].mxu1  ;;  %v3117_v35 = vpack.c.bf16 %v3091_v6, %v3090_v60 }
 0x321   : > { %v2617_v12 = vld [vmem:[#allocation2 + $0x8e] sm:$0xff]  ;;  %v2981_v36 = vpack.c.bf16 %v2955_v10, %v2954_v61  ;;  %v2425_v39 = vpop.f32.mrb[66].mxu1 }
 0x322   : > { %v2642_v38 = vpack.c.bf16 %v2617_v12, %v2616_v2  ;;  %v2503_v40 = vmax.f32 %v2423_v13, 0.0  ;;  %v2426_v42 = vadd.f32 %v7707_v11, %v2425_v39  ;;  %v6421_v43 = vpop.f32.mrb[67].mxu1  ;;  %3158 = vrot.lane.b32.xlu0 %v3117_v35, %s6821_s20 }
 0x323   : > { %3022 = vrot.lane.b32.xlu1 %v2981_v36, %s6819_s18 }
 0x324   : > { %2659 = vst.msk [vmem:[#allocation3 + $0x40] sm:$0xff] %vm344_vm0, %v2642_v38  ;;  %v2537_v46 = vmul.f32 %v2503_v40, %v7341_v33  ;;  %v2504_v47 = vmax.f32 %v2426_v42, 0.0 }
 0x325   : > { %v3092_v37 = vld [vmem:[#allocation2 + $0x98] sm:$0xff] }
 0x326   : > { %2571 = vst.msk [vmem:[#allocation2 + $0xa8] sm:$0xff] %vm344_vm0, %v2537_v46  ;;  %v2538_v49 = vmul.f32 %v2504_v47, %v7339_v32  ;;  %2888 = vrot.lane.b32.xlu0 %v3117_v35, %s6820_s19  ;;  %v2956_v51 = vld [vmem:[#allocation2 + $0x97] sm:$0xff] }
 0x327   : > { %2752 = vrot.lane.b32.xlu1 %v2981_v36, %s6817_s17  ;;  %v2618_v52 = vld [vmem:[#allocation2 + $0x96] sm:$0xff]  ;;  %v2430_v53 = vpop.f32.mrb[68].mxu1  ;;  %v3093_v55 = vld [vmem:[#allocation2 + $0xa0] sm:$0xff] }
 0x328   : > { %v2957_v56 = vld [vmem:[#allocation2 + $0x9f] sm:$0xff]  ;;  %2572 = vst.msk [vmem:[#allocation2 + $0xb0] sm:$0xff] %vm344_vm0, %v2538_v49  ;;  %v2431_v58 = vadd.f32 %v7707_v11, %v2430_v53  ;;  %v6424_v59 = vpop.f32.mrb[69].mxu1  ;;  %v3118_v60 = vpack.c.bf16 %v3093_v55, %v3092_v37 }
 0x329   : > { %v2619_v57 = vld [vmem:[#allocation2 + $0x9e] sm:$0xff]  ;;  %v2982_v61 = vpack.c.bf16 %v2957_v56, %v2956_v51  ;;  %v2433_v4 = vpop.f32.mrb[70].mxu1 }
 0x32a   : > { %v2643_v2 = vpack.c.bf16 %v2619_v57, %v2618_v52  ;;  %v2505_v6 = vmax.f32 %v2431_v58, 0.0  ;;  %v2434_v10 = vadd.f32 %v7707_v11, %v2433_v4  ;;  %3160 = vrot.lane.b32.xlu0 %v3118_v60, %s6821_s20  ;;  %v6425_v12 = vpop.f32.mrb[71].mxu1 }
 0x32b   : > { %3024 = vrot.lane.b32.xlu1 %v2982_v61, %s6819_s18 }
 0x32c   : > { %2660 = vst.msk [vmem:[#allocation3 + $0x48] sm:$0xff] %vm344_vm0, %v2643_v2  ;;  %v2539_v13 = vmul.f32 %v2505_v6, %v7472_v63  ;;  %v2506_v14 = vmax.f32 %v2434_v10, 0.0 }
 0x32d   : > { %v3094_v36 = vld [vmem:[#allocation2 + $0xa8] sm:$0xff] }
 0x32e   : > { %2573 = vst.msk [vmem:[#allocation2 + $0xb8] sm:$0xff] %vm344_vm0, %v2539_v13  ;;  %v2540_v35 = vmul.f32 %v2506_v14, %v7478_v3  ;;  %2890 = vrot.lane.b32.xlu0 %v3118_v60, %s6820_s19  ;;  %v2958_v38 = vld [vmem:[#allocation2 + $0xa7] sm:$0xff] }
 0x32f   : > { %2754 = vrot.lane.b32.xlu1 %v2982_v61, %s6817_s17  ;;  %v2620_v39 = vld [vmem:[#allocation2 + $0xa6] sm:$0xff]  ;;  %v2438_v40 = vpop.f32.mrb[72].mxu1  ;;  %v3095_v42 = vld [vmem:[#allocation2 + $0xb0] sm:$0xff] }
 0x330   : > { %v2959_v43 = vld [vmem:[#allocation2 + $0xaf] sm:$0xff]  ;;  %2574 = vst.msk [vmem:[#allocation2 + $0xc0] sm:$0xff] %vm344_vm0, %v2540_v35  ;;  %v2439_v47 = vadd.f32 %v7707_v11, %v2438_v40  ;;  %v6428_v49 = vpop.f32.mrb[73].mxu1  ;;  %v3119_v37 = vpack.c.bf16 %v3095_v42, %v3094_v36 }
 0x331   : > { %v2621_v46 = vld [vmem:[#allocation2 + $0xae] sm:$0xff]  ;;  %v2983_v51 = vpack.c.bf16 %v2959_v43, %v2958_v38  ;;  %v2441_v53 = vpop.f32.mrb[74].mxu1 }
 0x332   : > { %v2644_v52 = vpack.c.bf16 %v2621_v46, %v2620_v39  ;;  %v2507_v55 = vmax.f32 %v2439_v47, 0.0  ;;  %v2442_v56 = vadd.f32 %v7707_v11, %v2441_v53  ;;  %3162 = vrot.lane.b32.xlu0 %v3119_v37, %s6821_s20  ;;  %v6429_v57 = vpop.f32.mrb[75].mxu1 }
 0x333   : > { %3026 = vrot.lane.b32.xlu1 %v2983_v51, %s6819_s18 }
 0x334   : > { %2661 = vst.msk [vmem:[#allocation3 + $0x50] sm:$0xff] %vm344_vm0, %v2644_v52  ;;  %v2541_v58 = vmul.f32 %v2507_v55, %v7487_v41  ;;  %v2508_v59 = vmax.f32 %v2442_v56, 0.0 }
 0x335   : > { %v3096_v61 = vld [vmem:[#allocation2 + $0xb8] sm:$0xff] }
 0x336   : > { %2575 = vst.msk [vmem:[#allocation2 + $0xc8] sm:$0xff] %vm344_vm0, %v2541_v58  ;;  %v2542_v60 = vmul.f32 %v2508_v59, %v7493_v44  ;;  %2892 = vrot.lane.b32.xlu0 %v3119_v37, %s6820_s19  ;;  %v2960_v2 = vld [vmem:[#allocation2 + $0xb7] sm:$0xff] }
 0x337   : > { %2756 = vrot.lane.b32.xlu1 %v2983_v51, %s6817_s17  ;;  %v2622_v4 = vld [vmem:[#allocation2 + $0xb6] sm:$0xff]  ;;  %v2446_v6 = vpop.f32.mrb[76].mxu1  ;;  %v3097_v10 = vld [vmem:[#allocation2 + $0xc0] sm:$0xff] }
 0x338   : > { %v2961_v12 = vld [vmem:[#allocation2 + $0xbf] sm:$0xff]  ;;  %2576 = vst.msk [vmem:[#allocation2 + $0xd0] sm:$0xff] %vm344_vm0, %v2542_v60  ;;  %v2447_v14 = vadd.f32 %v7707_v11, %v2446_v6  ;;  %v6432_v35 = vpop.f32.mrb[77].mxu1  ;;  %v3120_v36 = vpack.c.bf16 %v3097_v10, %v3096_v61 }
 0x339   : > { %v2623_v13 = vld [vmem:[#allocation2 + $0xbe] sm:$0xff]  ;;  %v2984_v38 = vpack.c.bf16 %v2961_v12, %v2960_v2  ;;  %v2449_v40 = vpop.f32.mrb[78].mxu1 }
 0x33a   : > { %v2645_v39 = vpack.c.bf16 %v2623_v13, %v2622_v4  ;;  %v2509_v42 = vmax.f32 %v2447_v14, 0.0  ;;  %v2450_v43 = vadd.f32 %v7707_v11, %v2449_v40  ;;  %3164 = vrot.lane.b32.xlu0 %v3120_v36, %s6821_s20  ;;  %v6433_v46 = vpop.f32.mrb[79].mxu1 }
 0x33b   : > { %3028 = vrot.lane.b32.xlu1 %v2984_v38, %s6819_s18 }
 0x33c   : > { %2662 = vst.msk [vmem:[#allocation3 + $0x58] sm:$0xff] %vm344_vm0, %v2645_v39  ;;  %v2543_v47 = vmul.f32 %v2509_v42, %v7503_v1  ;;  %v2510_v49 = vmax.f32 %v2450_v43, 0.0 }
 0x33d   : > { %v3098_v51 = vld [vmem:[#allocation2 + $0xc8] sm:$0xff] }
 0x33e   : > { %2577 = vst.msk [vmem:[#allocation2 + $0xd8] sm:$0xff] %vm344_vm0, %v2543_v47  ;;  %v2544_v37 = vmul.f32 %v2510_v49, %v7508_v5  ;;  %2894 = vrot.lane.b32.xlu0 %v3120_v36, %s6820_s19  ;;  %v2962_v52 = vld [vmem:[#allocation2 + $0xc7] sm:$0xff] }
 0x33f   : > { %2758 = vrot.lane.b32.xlu1 %v2984_v38, %s6817_s17  ;;  %v2624_v53 = vld [vmem:[#allocation2 + $0xc6] sm:$0xff]  ;;  %v2454_v55 = vpop.f32.mrb[80].mxu1  ;;  %v3099_v56 = vld [vmem:[#allocation2 + $0xd0] sm:$0xff] }
 0x340   : > { %v2963_v57 = vld [vmem:[#allocation2 + $0xcf] sm:$0xff]  ;;  %2578 = vst.msk [vmem:[#allocation2 + $0xe0] sm:$0xff] %vm344_vm0, %v2544_v37  ;;  %v2455_v59 = vadd.f32 %v7707_v11, %v2454_v55  ;;  %v6436_v60 = vpop.f32.mrb[81].mxu1  ;;  %v3121_v61 = vpack.c.bf16 %v3099_v56, %v3098_v51 }
 0x341   : > { %v2625_v58 = vld [vmem:[#allocation2 + $0xce] sm:$0xff]  ;;  %v2985_v2 = vpack.c.bf16 %v2963_v57, %v2962_v52  ;;  %v2457_v6 = vpop.f32.mrb[82].mxu1 }
 0x342   : > { %v2646_v4 = vpack.c.bf16 %v2625_v58, %v2624_v53  ;;  %v2511_v10 = vmax.f32 %v2455_v59, 0.0  ;;  %v2458_v12 = vadd.f32 %v7707_v11, %v2457_v6  ;;  %3166 = vrot.lane.b32.xlu0 %v3121_v61, %s6821_s20  ;;  %v6437_v13 = vpop.f32.mrb[83].mxu1 }
 0x343   : > { %3030 = vrot.lane.b32.xlu1 %v2985_v2, %s6819_s18 }
 0x344   : > { %2663 = vst.msk [vmem:[#allocation3 + $0x60] sm:$0xff] %vm344_vm0, %v2646_v4  ;;  %v2545_v14 = vmul.f32 %v2511_v10, %v7518_v45  ;;  %v2512_v35 = vmax.f32 %v2458_v12, 0.0 }
 0x345   : > { %v3100_v38 = vld [vmem:[#allocation2 + $0xd8] sm:$0xff] }
 0x346   : > { %2579 = vst.msk [vmem:[#allocation2 + $0xe8] sm:$0xff] %vm344_vm0, %v2545_v14  ;;  %v2546_v36 = vmul.f32 %v2512_v35, %v7523_v48  ;;  %2896 = vrot.lane.b32.xlu0 %v3121_v61, %s6820_s19  ;;  %v2964_v39 = vld [vmem:[#allocation2 + $0xd7] sm:$0xff] }
 0x347   : > { %2760 = vrot.lane.b32.xlu1 %v2985_v2, %s6817_s17  ;;  %v2626_v40 = vld [vmem:[#allocation2 + $0xd6] sm:$0xff]  ;;  %v2462_v42 = vpop.f32.mrb[84].mxu1  ;;  %v3101_v43 = vld [vmem:[#allocation2 + $0xe0] sm:$0xff] }
 0x348   : > { %v2965_v46 = vld [vmem:[#allocation2 + $0xdf] sm:$0xff]  ;;  %2580 = vst.msk [vmem:[#allocation2 + $0xf0] sm:$0xff] %vm344_vm0, %v2546_v36  ;;  %v2463_v49 = vadd.f32 %v7707_v11, %v2462_v42  ;;  %v6440_v37 = vpop.f32.mrb[85].mxu1  ;;  %v3122_v51 = vpack.c.bf16 %v3101_v43, %v3100_v38 }
 0x349   : > { %v2627_v47 = vld [vmem:[#allocation2 + $0xde] sm:$0xff]  ;;  %v2986_v52 = vpack.c.bf16 %v2965_v46, %v2964_v39  ;;  %v2465_v55 = vpop.f32.mrb[86].mxu1 }
 0x34a   : > { %v2647_v53 = vpack.c.bf16 %v2627_v47, %v2626_v40  ;;  %v2513_v56 = vmax.f32 %v2463_v49, 0.0  ;;  %v2466_v57 = vadd.f32 %v7707_v11, %v2465_v55  ;;  %3168 = vrot.lane.b32.xlu0 %v3122_v51, %s6821_s20  ;;  %v6441_v58 = vpop.f32.mrb[87].mxu1 }
 0x34b   : > { %3032 = vrot.lane.b32.xlu1 %v2986_v52, %s6819_s18 }
 0x34c   : > { %2664 = vst.msk [vmem:[#allocation3 + $0x68] sm:$0xff] %vm344_vm0, %v2647_v53  ;;  %v2547_v59 = vmul.f32 %v2513_v56, %v7533_v8  ;;  %v2514_v60 = vmax.f32 %v2466_v57, 0.0 }
 0x34d   : > { %v3102_v2 = vld [vmem:[#allocation2 + $0xe8] sm:$0xff] }
 0x34e   : > { %2581 = vst.msk [vmem:[#allocation2 + $0xf8] sm:$0xff] %vm344_vm0, %v2547_v59  ;;  %v2548_v61 = vmul.f32 %v2514_v60, %v7537_v9  ;;  %2898 = vrot.lane.b32.xlu0 %v3122_v51, %s6820_s19  ;;  %v2966_v4 = vld [vmem:[#allocation2 + $0xe7] sm:$0xff] }
 0x34f   : > { %2762 = vrot.lane.b32.xlu1 %v2986_v52, %s6817_s17  ;;  %v2628_v6 = vld [vmem:[#allocation2 + $0xe6] sm:$0xff]  ;;  %v2470_v10 = vpop.f32.mrb[88].mxu1  ;;  %v3103_v12 = vld [vmem:[#allocation2 + $0xf0] sm:$0xff] }
 0x350   : > { %v2967_v13 = vld [vmem:[#allocation2 + $0xef] sm:$0xff]  ;;  %2582 = vst.msk [vmem:[#allocation2 + $0x100] sm:$0xff] %vm344_vm0, %v2548_v61  ;;  %v2471_v35 = vadd.f32 %v7707_v11, %v2470_v10  ;;  %v6444_v36 = vpop.f32.mrb[89].mxu1  ;;  %v3123_v38 = vpack.c.bf16 %v3103_v12, %v3102_v2 }
 0x351   : > { %v2629_v14 = vld [vmem:[#allocation2 + $0xee] sm:$0xff]  ;;  %v2987_v39 = vpack.c.bf16 %v2967_v13, %v2966_v4  ;;  %v2473_v42 = vpop.f32.mrb[90].mxu1 }
 0x352   : > { %v2648_v40 = vpack.c.bf16 %v2629_v14, %v2628_v6  ;;  %v2515_v43 = vmax.f32 %v2471_v35, 0.0  ;;  %v2474_v46 = vadd.f32 %v7707_v11, %v2473_v42  ;;  %3170 = vrot.lane.b32.xlu0 %v3123_v38, %s6821_s20  ;;  %v6445_v47 = vpop.f32.mrb[91].mxu1 }
 0x353   : > { %3034 = vrot.lane.b32.xlu1 %v2987_v39, %s6819_s18 }
 0x354   : > { %2665 = vst.msk [vmem:[#allocation3 + $0x70] sm:$0xff] %vm344_vm0, %v2648_v40  ;;  %v2549_v49 = vmul.f32 %v2515_v43, %v7550_v54  ;;  %v2516_v37 = vmax.f32 %v2474_v46, 0.0 }
 0x355   : > { %v3104_v52 = vld [vmem:[#allocation2 + $0xf8] sm:$0xff] }
 0x356   : > { %2583 = vst.msk [vmem:[#allocation2 + $0x108] sm:$0xff] %vm344_vm0, %v2549_v49  ;;  %v2550_v51 = vmul.f32 %v2516_v37, %v7546_v50  ;;  %2900 = vrot.lane.b32.xlu0 %v3123_v38, %s6820_s19  ;;  %v2968_v53 = vld [vmem:[#allocation2 + $0xf7] sm:$0xff] }
 0x357   : > { %2764 = vrot.lane.b32.xlu1 %v2987_v39, %s6817_s17  ;;  %v2630_v55 = vld [vmem:[#allocation2 + $0xf6] sm:$0xff]  ;;  %v3105_v56 = vld [vmem:[#allocation2 + $0x100] sm:$0xff]  ;;  %v2478_v59 = vpop.f32.mrb[92].mxu1 }
 0x358   : > { %v2969_v57 = vld [vmem:[#allocation2 + $0xff] sm:$0xff]  ;;  %2584 = vst.msk [vmem:[#allocation2 + $0x110] sm:$0xff] %vm344_vm0, %v2550_v51  ;;  %v3124_v60 = vpack.c.bf16 %v3105_v56, %v3104_v52  ;;  %v2479_v4 = vadd.f32 %v7707_v11, %v2478_v59  ;;  %v6448_v6 = vpop.f32.mrb[93].mxu1 }
 0x359   : > { %v2631_v58 = vld [vmem:[#allocation2 + $0xfe] sm:$0xff]  ;;  %v2988_v61 = vpack.c.bf16 %v2969_v57, %v2968_v53  ;;  %v2481_v10 = vpop.f32.mrb[94].mxu1 }
 0x35a   : > { %v2649_v2 = vpack.c.bf16 %v2631_v58, %v2630_v55  ;;  %3172 = vrot.lane.b32.xlu0 %v3124_v60, %s6821_s20  ;;  %v2517_v12 = vmax.f32 %v2479_v4, 0.0  ;;  %v2482_v13 = vadd.f32 %v7707_v11, %v2481_v10  ;;  %v6449_v14 = vpop.f32.mrb[95].mxu1 }
 0x35b   : > { %3036 = vrot.lane.b32.xlu1 %v2988_v61, %s6819_s18 }
 0x35c   : > { %2666 = vst.msk [vmem:[#allocation3 + $0x78] sm:$0xff] %vm344_vm0, %v2649_v2  ;;  %v3145_v35 = vpop.permute.xlu0 %3144  ;;  %v2551_v38 = vmul.f32 %v2517_v12, %v7563_v34  ;;  %v2518_v39 = vmax.f32 %v2482_v13, 0.0 }
 0x35d   : > { %v3009_v36 = vpop.permute.xlu1 %3008  ;;  %v3106_v40 = vld [vmem:[#allocation2 + $0x108] sm:$0xff] }
 0x35e   : > { %3059 = vst.msk [vmem:[#allocation3] sm:$0xff] %vm888_vm4, %v3009_v36  ;;  %2902 = vrot.lane.b32.xlu0 %v3124_v60, %s6820_s19  ;;  %v2970_v42 = vld [vmem:[#allocation2 + $0x107] sm:$0xff]  ;;  %v2552_v11 = vmul.f32 %v2518_v39, %v7559_v7 }
 0x35f   : > { %3195 = vst.msk [vmem:[#allocation3] sm:$0xff] %vm1025_vm5, %v3145_v35  ;;  %2766 = vrot.lane.b32.xlu1 %v2988_v61, %s6817_s17  ;;  %v2632_v43 = vld [vmem:[#allocation2 + $0x106] sm:$0xff]  ;;  %v3107_v46 = vld [vmem:[#allocation2 + $0x110] sm:$0xff] }
 0x360   : > { %2585 = vst.msk [vmem:[#allocation2 + $0x118] sm:$0xff] %vm344_vm0, %v2551_v38  ;;  %v2971_v47 = vld [vmem:[#allocation2 + $0x10f] sm:$0xff]  ;;  %v2875_v37 = vpop.permute.xlu0 %2874  ;;  %v3125_v52 = vpack.c.bf16 %v3107_v46, %v3106_v40  ;;  %2586 = vst.msk [vmem:[#allocation2 + $0x120] sm:$0xff] %vm344_vm0, %v2552_v11 }
 0x361   : > { %v2633_v49 = vld [vmem:[#allocation2 + $0x10e] sm:$0xff]  ;;  %v2739_v51 = vpop.permute.xlu1 %2738  ;;  %v2989_v53 = vpack.c.bf16 %v2971_v47, %v2970_v42 }
 0x362   : > { %v2650_v55 = vpack.c.bf16 %v2633_v49, %v2632_v43  ;;  %2788 = vst.msk [vmem:[#allocation3 + $0x8] sm:$0xff] %vm614_vm2, %v2739_v51  ;;  %3174 = vrot.lane.b32.xlu0 %v3125_v52, %s6821_s20 }
 0x363   : > { %2924 = vst.msk [vmem:[#allocation3 + $0x8] sm:$0xff] %vm751_vm3, %v2875_v37  ;;  %3038 = vrot.lane.b32.xlu1 %v2989_v53, %s6819_s18 }
 0x364   : > { %2667 = vst.msk [vmem:[#allocation3 + $0x80] sm:$0xff] %vm344_vm0, %v2650_v55  ;;  %v3147_v56 = vpop.permute.xlu0 %3146 }
 0x365   : > { %v3011_v57 = vpop.permute.xlu1 %3010 }
 0x366   : > { %3060 = vst.msk [vmem:[#allocation3 + $0x8] sm:$0xff] %vm888_vm4, %v3011_v57  ;;  %v3212_v58 = vld [vmem:[#allocation3] sm:$0xff]  ;;  %2904 = vrot.lane.b32.xlu0 %v3125_v52, %s6820_s19 }
 0x367   : > { %3196 = vst.msk [vmem:[#allocation3 + $0x8] sm:$0xff] %vm1025_vm5, %v3147_v56  ;;  %6461 = vmatmul.mubr.msk.bf16.vlgmr.msra.gmra.mrb[40].mxu0 %vm1096_vm6, %v3212_v58  ;;  %2768 = vrot.lane.b32.xlu1 %v2989_v53, %s6817_s17  ;;  %v3108_v59 = vld [vmem:[#allocation2 + $0x118] sm:$0xff]  ;;  %v3109_v2 = vld [vmem:[#allocation2 + $0x120] sm:$0xff] }
 0x368   : > { %6464 = vmatprep.mubr.msk.bf16.mxu0 %vm6818_vm1, %v6816_v0  ;;  %v2877_v60 = vpop.permute.xlu0 %2876  ;;  %v2972_v4 = vld [vmem:[#allocation2 + $0x117] sm:$0xff]  ;;  %v2973_v6 = vld [vmem:[#allocation2 + $0x11f] sm:$0xff]  ;;  %v3126_v10 = vpack.c.bf16 %v3109_v2, %v3108_v59 }
 0x369   : > { %v2741_v61 = vpop.permute.xlu1 %2740  ;;  %v2990_v12 = vpack.c.bf16 %v2973_v6, %v2972_v4 }
 0x36a   : > { %2789 = vst.msk [vmem:[#allocation3 + $0x10] sm:$0xff] %vm614_vm2, %v2741_v61  ;;  %3176 = vrot.lane.b32.xlu0 %v3126_v10, %s6821_s20 }
 0x36b   : > { %2925 = vst.msk [vmem:[#allocation3 + $0x10] sm:$0xff] %vm751_vm3, %v2877_v60  ;;  %3040 = vrot.lane.b32.xlu1 %v2990_v12, %s6819_s18 }
 0x36c   : > { %v3149_v13 = vpop.permute.xlu0 %3148 }
 0x36d   : > { %v3013_v14 = vpop.permute.xlu1 %3012 }
 0x36e   : > { %3061 = vst.msk [vmem:[#allocation3 + $0x10] sm:$0xff] %vm888_vm4, %v3013_v14  ;;  %v3213_v35 = vld [vmem:[#allocation3 + $0x8] sm:$0xff] }
 0x36f   : > { %3197 = vst.msk [vmem:[#allocation3 + $0x10] sm:$0xff] %vm1025_vm5, %v3149_v13  ;;  %6465 = vmatmul.mubr.msk.bf16.gmra.mrb[44].mxu0 %vm1096_vm6, %v3213_v35 }
 0x370   : > { %6468 = vmatprep.mubr.msk.bf16.mxu0 %vm6818_vm1, %v6816_v0  ;;  %v2879_v36 = vpop.permute.xlu0 %2878 }
 0x371   : > { %v2743_v38 = vpop.permute.xlu1 %2742 }
 0x372   : > { %2790 = vst.msk [vmem:[#allocation3 + $0x18] sm:$0xff] %vm614_vm2, %v2743_v38 }
 0x373   : > { %2926 = vst.msk [vmem:[#allocation3 + $0x18] sm:$0xff] %vm751_vm3, %v2879_v36 }
 0x374   : > { %v3151_v39 = vpop.permute.xlu0 %3150 }
 0x375   : > { %v3015_v40 = vpop.permute.xlu1 %3014 }
 0x376   : > { %3062 = vst.msk [vmem:[#allocation3 + $0x18] sm:$0xff] %vm888_vm4, %v3015_v40  ;;  %v3214_v42 = vld [vmem:[#allocation3 + $0x10] sm:$0xff] }
 0x377   : > { %3198 = vst.msk [vmem:[#allocation3 + $0x18] sm:$0xff] %vm1025_vm5, %v3151_v39  ;;  %6469 = vmatmul.mubr.msk.bf16.gmra.mrb[48].mxu0 %vm1096_vm6, %v3214_v42 }
 0x378   : > { %6472 = vmatprep.mubr.msk.bf16.mxu0 %vm6818_vm1, %v6816_v0  ;;  %v2881_v43 = vpop.permute.xlu0 %2880 }
 0x379   : > { %v2745_v11 = vpop.permute.xlu1 %2744 }
 0x37a   : > { %2791 = vst.msk [vmem:[#allocation3 + $0x20] sm:$0xff] %vm614_vm2, %v2745_v11 }
 0x37b   : > { %2927 = vst.msk [vmem:[#allocation3 + $0x20] sm:$0xff] %vm751_vm3, %v2881_v43 }
 0x37c   : > { %v3153_v46 = vpop.permute.xlu0 %3152 }
 0x37d   : > { %v3017_v47 = vpop.permute.xlu1 %3016 }
 0x37e   : > { %3063 = vst.msk [vmem:[#allocation3 + $0x20] sm:$0xff] %vm888_vm4, %v3017_v47  ;;  %v3215_v49 = vld [vmem:[#allocation3 + $0x18] sm:$0xff] }
 0x37f   : > { %3199 = vst.msk [vmem:[#allocation3 + $0x20] sm:$0xff] %vm1025_vm5, %v3153_v46  ;;  %6473 = vmatmul.mubr.msk.bf16.gmra.mrb[52].mxu0 %vm1096_vm6, %v3215_v49 }
 0x380   : > { %6476 = vmatprep.mubr.msk.bf16.mxu0 %vm6818_vm1, %v6816_v0  ;;  %v2883_v37 = vpop.permute.xlu0 %2882 }
 0x381   : > { %v2747_v51 = vpop.permute.xlu1 %2746 }
 0x382   : > { %2792 = vst.msk [vmem:[#allocation3 + $0x28] sm:$0xff] %vm614_vm2, %v2747_v51 }
 0x383   : > { %2928 = vst.msk [vmem:[#allocation3 + $0x28] sm:$0xff] %vm751_vm3, %v2883_v37 }
 0x384   : > { %v3155_v52 = vpop.permute.xlu0 %3154 }
 0x385   : > { %v3019_v53 = vpop.permute.xlu1 %3018 }
 0x386   : > { %3064 = vst.msk [vmem:[#allocation3 + $0x28] sm:$0xff] %vm888_vm4, %v3019_v53  ;;  %v3216_v55 = vld [vmem:[#allocation3 + $0x20] sm:$0xff] }
 0x387   : > { %3200 = vst.msk [vmem:[#allocation3 + $0x28] sm:$0xff] %vm1025_vm5, %v3155_v52  ;;  %6477 = vmatmul.mubr.msk.bf16.gmra.mrb[56].mxu0 %vm1096_vm6, %v3216_v55 }
 0x388   : > { %6480 = vmatprep.mubr.msk.bf16.mxu0 %vm6818_vm1, %v6816_v0  ;;  %v2885_v56 = vpop.permute.xlu0 %2884 }
 0x389   : > { %v2749_v57 = vpop.permute.xlu1 %2748 }
 0x38a   : > { %2793 = vst.msk [vmem:[#allocation3 + $0x30] sm:$0xff] %vm614_vm2, %v2749_v57 }
 0x38b   : > { %2929 = vst.msk [vmem:[#allocation3 + $0x30] sm:$0xff] %vm751_vm3, %v2885_v56 }
 0x38c   : > { %v3157_v58 = vpop.permute.xlu0 %3156 }
 0x38d   : > { %v3021_v59 = vpop.permute.xlu1 %3020 }
 0x38e   : > { %3065 = vst.msk [vmem:[#allocation3 + $0x30] sm:$0xff] %vm888_vm4, %v3021_v59  ;;  %v3217_v60 = vld [vmem:[#allocation3 + $0x28] sm:$0xff] }
 0x38f   : > { %3201 = vst.msk [vmem:[#allocation3 + $0x30] sm:$0xff] %vm1025_vm5, %v3157_v58  ;;  %6481 = vmatmul.mubr.msk.bf16.gmra.mrb[60].mxu0 %vm1096_vm6, %v3217_v60 }
 0x390   : > { %6484 = vmatprep.mubr.msk.bf16.mxu0 %vm6818_vm1, %v6816_v0  ;;  %v2887_v61 = vpop.permute.xlu0 %2886 }
 0x391   : > { %v2751_v2 = vpop.permute.xlu1 %2750 }
 0x392   : > { %2794 = vst.msk [vmem:[#allocation3 + $0x38] sm:$0xff] %vm614_vm2, %v2751_v2 }
 0x393   : > { %2930 = vst.msk [vmem:[#allocation3 + $0x38] sm:$0xff] %vm751_vm3, %v2887_v61 }
 0x394   : > { %v3159_v4 = vpop.permute.xlu0 %3158 }
 0x395   : > { %v3023_v6 = vpop.permute.xlu1 %3022 }
 0x396   : > { %3066 = vst.msk [vmem:[#allocation3 + $0x38] sm:$0xff] %vm888_vm4, %v3023_v6  ;;  %v3218_v10 = vld [vmem:[#allocation3 + $0x30] sm:$0xff] }
 0x397   : > { %3202 = vst.msk [vmem:[#allocation3 + $0x38] sm:$0xff] %vm1025_vm5, %v3159_v4  ;;  %6485 = vmatmul.mubr.msk.bf16.gmra.mrb[64].mxu0 %vm1096_vm6, %v3218_v10 }
 0x398   : > { %6488 = vmatprep.mubr.msk.bf16.mxu0 %vm6818_vm1, %v6816_v0  ;;  %v2889_v12 = vpop.permute.xlu0 %2888 }
 0x399   : > { %v2753_v13 = vpop.permute.xlu1 %2752 }
 0x39a   : > { %2795 = vst.msk [vmem:[#allocation3 + $0x40] sm:$0xff] %vm614_vm2, %v2753_v13  ;;  %v3804_v13 = vld [vmem:[#allocation2 + $0x8] sm:$0xff] }
 0x39b   : > { %2931 = vst.msk [vmem:[#allocation3 + $0x40] sm:$0xff] %vm751_vm3, %v2889_v12 }
 0x39c   : > { %v3161_v14 = vpop.permute.xlu0 %3160 }
 0x39d   : > { %v3025_v35 = vpop.permute.xlu1 %3024 }
 0x39e   : > { %3067 = vst.msk [vmem:[#allocation3 + $0x40] sm:$0xff] %vm888_vm4, %v3025_v35  ;;  %v3219_v36 = vld [vmem:[#allocation3 + $0x38] sm:$0xff] }
 0x39f   : > { %3203 = vst.msk [vmem:[#allocation3 + $0x40] sm:$0xff] %vm1025_vm5, %v3161_v14  ;;  %6489 = vmatmul.mubr.msk.bf16.gmra.mrb[68].mxu0 %vm1096_vm6, %v3219_v36  ;;  %v3805_v14 = vld [vmem:[#allocation2 + $0x10] sm:$0xff]  ;;  %v3668_v35 = vld [vmem:[#allocation2 + $0x7] sm:$0xff] }
 0x3a0   : > { %6492 = vmatprep.mubr.msk.bf16.mxu0 %vm6818_vm1, %v6816_v0  ;;  %v2891_v38 = vpop.permute.xlu0 %2890  ;;  %v3838_v36 = vpack.c.bf16 %v3805_v14, %v3804_v13 }
 0x3a1   : > { %v2755_v39 = vpop.permute.xlu1 %2754 }
 0x3a2   : > { %2796 = vst.msk [vmem:[#allocation3 + $0x48] sm:$0xff] %vm614_vm2, %v2755_v39  ;;  %3872 = vrot.lane.b32.xlu0 %v3838_v36, %s6820_s19 }
 0x3a3   : > { %2932 = vst.msk [vmem:[#allocation3 + $0x48] sm:$0xff] %vm751_vm3, %v2891_v38  ;;  %v3669_v38 = vld [vmem:[#allocation2 + $0xf] sm:$0xff] }
 0x3a4   : > { %v3163_v40 = vpop.permute.xlu0 %3162 }
 0x3a5   : > { %v3027_v42 = vpop.permute.xlu1 %3026 }
 0x3a6   : > { %3068 = vst.msk [vmem:[#allocation3 + $0x48] sm:$0xff] %vm888_vm4, %v3027_v42  ;;  %v3220_v43 = vld [vmem:[#allocation3 + $0x40] sm:$0xff]  ;;  %v3702_v42 = vpack.c.bf16 %v3669_v38, %v3668_v35 }
 0x3a7   : > { %3204 = vst.msk [vmem:[#allocation3 + $0x48] sm:$0xff] %vm1025_vm5, %v3163_v40  ;;  %6493 = vmatmul.mubr.msk.bf16.gmra.mrb[72].mxu0 %vm1096_vm6, %v3220_v43 }
 0x3a8   : > { %6496 = vmatprep.mubr.msk.bf16.mxu0 %vm6818_vm1, %v6816_v0  ;;  %v2893_v11 = vpop.permute.xlu0 %2892  ;;  %3736 = vrot.lane.b32.xlu1 %v3702_v42, %s6817_s17 }
 0x3a9   : > { %v2757_v46 = vpop.permute.xlu1 %2756 }
 0x3aa   : > { %2797 = vst.msk [vmem:[#allocation3 + $0x50] sm:$0xff] %vm614_vm2, %v2757_v46 }
 0x3ab   : > { %2933 = vst.msk [vmem:[#allocation3 + $0x50] sm:$0xff] %vm751_vm3, %v2893_v11 }
 0x3ac   : > { %v3165_v47 = vpop.permute.xlu0 %3164 }
 0x3ad   : > { %v3029_v49 = vpop.permute.xlu1 %3028 }
 0x3ae   : > { %3069 = vst.msk [vmem:[#allocation3 + $0x50] sm:$0xff] %vm888_vm4, %v3029_v49  ;;  %v3221_v37 = vld [vmem:[#allocation3 + $0x48] sm:$0xff] }
 0x3af   : > { %3205 = vst.msk [vmem:[#allocation3 + $0x50] sm:$0xff] %vm1025_vm5, %v3165_v47  ;;  %6497 = vmatmul.mubr.msk.bf16.gmra.mrb[76].mxu0 %vm1096_vm6, %v3221_v37 }
 0x3b0   : > { %6500 = vmatprep.mubr.msk.bf16.mxu0 %vm6818_vm1, %v6816_v0  ;;  %v2895_v51 = vpop.permute.xlu0 %2894 }
 0x3b1   : > { %v2759_v52 = vpop.permute.xlu1 %2758 }
 0x3b2   : > { %2798 = vst.msk [vmem:[#allocation3 + $0x58] sm:$0xff] %vm614_vm2, %v2759_v52 }
 0x3b3   : > { %2934 = vst.msk [vmem:[#allocation3 + $0x58] sm:$0xff] %vm751_vm3, %v2895_v51 }
 0x3b4   : > { %v3167_v53 = vpop.permute.xlu0 %3166 }
 0x3b5   : > { %v3031_v55 = vpop.permute.xlu1 %3030 }
 0x3b6   : > { %3070 = vst.msk [vmem:[#allocation3 + $0x58] sm:$0xff] %vm888_vm4, %v3031_v55  ;;  %v3222_v56 = vld [vmem:[#allocation3 + $0x50] sm:$0xff] }
 0x3b7   : > { %3206 = vst.msk [vmem:[#allocation3 + $0x58] sm:$0xff] %vm1025_vm5, %v3167_v53  ;;  %6501 = vmatmul.mubr.msk.bf16.gmra.mrb[80].mxu0 %vm1096_vm6, %v3222_v56 }
 0x3b8   : > { %6504 = vmatprep.mubr.msk.bf16.mxu0 %vm6818_vm1, %v6816_v0  ;;  %v2897_v57 = vpop.permute.xlu0 %2896 }
 0x3b9   : > { %v2761_v58 = vpop.permute.xlu1 %2760 }
 0x3ba   : > { %2799 = vst.msk [vmem:[#allocation3 + $0x60] sm:$0xff] %vm614_vm2, %v2761_v58 }
 0x3bb   : > { %2935 = vst.msk [vmem:[#allocation3 + $0x60] sm:$0xff] %vm751_vm3, %v2897_v57 }
 0x3bc   : > { %v3169_v59 = vpop.permute.xlu0 %3168 }
 0x3bd   : > { %v3033_v60 = vpop.permute.xlu1 %3032 }
 0x3be   : > { %3071 = vst.msk [vmem:[#allocation3 + $0x60] sm:$0xff] %vm888_vm4, %v3033_v60  ;;  %v3223_v61 = vld [vmem:[#allocation3 + $0x58] sm:$0xff]  ;;  %v6798_v60 = vld [vmem:[%s8864_s4 + $0x50] sm:$0xff]  }
 0x3bf   : > { %3207 = vst.msk [vmem:[#allocation3 + $0x60] sm:$0xff] %vm1025_vm5, %v3169_v59  ;;  %6505 = vmatmul.mubr.msk.bf16.gmra.mrb[84].mxu0 %vm1096_vm6, %v3223_v61  ;;  %6529 = vmatpush3.bf16.msra.mxu1 %v6798_v60  ;;  %v6799_v61 = vld [vmem:[%s8864_s4 + $0x58] sm:$0xff]  }
 0x3c0   : > { %6508 = vmatprep.mubr.msk.bf16.mxu0 %vm6818_vm1, %v6816_v0  ;;  %v2899_v2 = vpop.permute.xlu0 %2898  ;;  %6530 = vmatprep.subr.bf16.mxu1 %v6816_v0 }
 0x3c1   : > { %v2763_v4 = vpop.permute.xlu1 %2762 }
 0x3c2   : > { %2800 = vst.msk [vmem:[#allocation3 + $0x68] sm:$0xff] %vm614_vm2, %v2763_v4  ;;  %v3600_v4 = vld [vmem:[#allocation2 + $0x6] sm:$0xff] }
 0x3c3   : > { %2936 = vst.msk [vmem:[#allocation3 + $0x68] sm:$0xff] %vm751_vm3, %v2899_v2  ;;  %6531 = vmatpush3.bf16.msra.mxu1 %v6799_v61  ;;  %v8043_v2 = vld [vmem:[%s8865_s5 + $0x1] ss:$0 sm:$0xff] }
 0x3c4   : > { %v3171_v6 = vpop.permute.xlu0 %3170  ;;  %6532 = vmatprep.subr.bf16.mxu1 %v6816_v0 }
 0x3c5   : > { %v3035_v10 = vpop.permute.xlu1 %3034 }
 0x3c6   : > { %3072 = vst.msk [vmem:[#allocation3 + $0x68] sm:$0xff] %vm888_vm4, %v3035_v10  ;;  %v3224_v12 = vld [vmem:[#allocation3 + $0x60] sm:$0xff] }
 0x3c7   : > { %3208 = vst.msk [vmem:[#allocation3 + $0x68] sm:$0xff] %vm1025_vm5, %v3171_v6  ;;  %6509 = vmatmul.mubr.msk.bf16.gmra.mrb[88].mxu0 %vm1096_vm6, %v3224_v12  ;;  %v3601_v6 = vld [vmem:[#allocation2 + $0xe] sm:$0xff] }
 0x3c8   : > { %6512 = vmatprep.mubr.msk.bf16.mxu0 %vm6818_vm1, %v6816_v0  ;;  %v2901_v39 = vpop.permute.xlu0 %2900  ;;  %v3634_v12 = vpack.c.bf16 %v3601_v6, %v3600_v4 }
 0x3c9   : > { %v2765_v40 = vpop.permute.xlu1 %2764 }
 0x3ca   : > { %2801 = vst.msk [vmem:[#allocation3 + $0x70] sm:$0xff] %vm614_vm2, %v2765_v40 }
 0x3cb   : > { %2937 = vst.msk [vmem:[#allocation3 + $0x70] sm:$0xff] %vm751_vm3, %v2901_v39 }
 0x3cc   : > { %v3173_v43 = vpop.permute.xlu0 %3172  ;;  %3651 = vst.msk [vmem:[#allocation3] sm:$0xff] %vm344_vm0, %v3634_v12 }
 0x3cd   : > { %v3037_v11 = vpop.permute.xlu1 %3036 }
 0x3ce   : > { %3073 = vst.msk [vmem:[#allocation3 + $0x70] sm:$0xff] %vm888_vm4, %v3037_v11  ;;  %v3225_v46 = vld [vmem:[#allocation3 + $0x68] sm:$0xff] }
 0x3cf   : > { %3209 = vst.msk [vmem:[#allocation3 + $0x70] sm:$0xff] %vm1025_vm5, %v3173_v43  ;;  %6513 = vmatmul.mubr.msk.bf16.gmra.mrb[92].mxu0 %vm1096_vm6, %v3225_v46  ;;  %v6800_v43 = vld [vmem:[%s8864_s4 + $0x60] sm:$0xff]  }
 0x3d0   : > { %6516 = vmatprep.mubr.msk.bf16.mxu0 %vm6818_vm1, %v6816_v0  ;;  %v2903_v47 = vpop.permute.xlu0 %2902  ;;  %6533 = vmatpush3.bf16.msra.mxu1 %v6800_v43 }
 0x3d1   : > { %v2767_v49 = vpop.permute.xlu1 %2766  ;;  %6534 = vmatprep.subr.bf16.mxu1 %v6816_v0 }
 0x3d2   : > { %2802 = vst.msk [vmem:[#allocation3 + $0x78] sm:$0xff] %vm614_vm2, %v2767_v49  ;;  %v6801_v49 = vld [vmem:[%s8864_s4 + $0x68] sm:$0xff]  }
 0x3d3   : > { %2938 = vst.msk [vmem:[#allocation3 + $0x78] sm:$0xff] %vm751_vm3, %v2903_v47 }
 0x3d4   : > { %v3175_v37 = vpop.permute.xlu0 %3174  ;;  %6535 = vmatpush3.bf16.msra.mxu1 %v6801_v49 }
 0x3d5   : > { %v3039_v51 = vpop.permute.xlu1 %3038  ;;  %6536 = vmatprep.subr.bf16.mxu1 %v6816_v0 }
 0x3d6   : > { %3074 = vst.msk [vmem:[#allocation3 + $0x78] sm:$0xff] %vm888_vm4, %v3039_v51  ;;  %v3226_v52 = vld [vmem:[#allocation3 + $0x70] sm:$0xff] }
 0x3d7   : > { %3210 = vst.msk [vmem:[#allocation3 + $0x78] sm:$0xff] %vm1025_vm5, %v3175_v37  ;;  %6517 = vmatmul.mubr.msk.bf16.gmra.mrb[96].mxu0 %vm1096_vm6, %v3226_v52 }
 0x3d8   : > { %6520 = vmatprep.mubr.msk.bf16.mxu0 %vm6818_vm1, %v6816_v0  ;;  %v2905_v53 = vpop.permute.xlu0 %2904 }
 0x3d9   : > { %v2769_v55 = vpop.permute.xlu1 %2768 }
 0x3da   : > { %2803 = vst.msk [vmem:[#allocation3 + $0x80] sm:$0xff] %vm614_vm2, %v2769_v55 }
 0x3db   : > { %2939 = vst.msk [vmem:[#allocation3 + $0x80] sm:$0xff] %vm751_vm3, %v2905_v53 }
 0x3dc   : > { %v3177_v56 = vpop.permute.xlu0 %3176 }
 0x3dd   : > { %v3041_v57 = vpop.permute.xlu1 %3040 }
 0x3de   : > { %v3227_v58 = vld [vmem:[#allocation3 + $0x78] sm:$0xff]  ;;  %3075 = vst.msk [vmem:[#allocation3 + $0x80] sm:$0xff] %vm888_vm4, %v3041_v57 }
 0x3df   : > { %6521 = vmatmul.mubr.msk.bf16.gmra.mrb[100].mxu0 %vm1096_vm6, %v3227_v58  ;;  %3211 = vst.msk [vmem:[#allocation3 + $0x80] sm:$0xff] %vm1025_vm5, %v3177_v56  ;;  %v6802_v58 = vld [vmem:[%s8864_s4 + $0x70] sm:$0xff]  }
 0x3e0   : > { %6524 = vmatprep.mubr.msk.bf16.mxu0 %vm6818_vm1, %v6816_v0  ;;  %6537 = vmatpush3.bf16.msra.mxu1 %v6802_v58 }
 0x3e6   : > { %v3228_v59 = vld [vmem:[#allocation3 + $0x80] sm:$0xff] }
 0x3e7   : > { %6525 = vmatmul.mubr.msk.bf16.gmra.mrb[104].mxu0 %vm1096_vm6, %v3228_v59 }
 0x3e8   : > { %6616 = vmatprep.mubr.msk.bf16.mxu0 %vm6818_vm1, %v6816_v0 }
 0x414   : > { %v3873_v36 = vpop.permute.xlu0 %3872 }
 0x41a   : > { %v3737_v42 = vpop.permute.xlu1 %3736 }
 0x41b   : > { %3787 = vst.msk [vmem:[#allocation3] sm:$0xff] %vm614_vm2, %v3737_v42 }
 0x41c   : > { %3923 = vst.msk [vmem:[#allocation3] sm:$0xff] %vm751_vm3, %v3873_v36 }
 0x43a   : > { %v3350_v10 = vpop.f32.mrb[40].mxu0 }
 0x43b   : > { %v3351_v13 = vadd.f32 %v8043_v2, %v3350_v10  ;;  %v6462_v14 = vpop.f32.mrb[41].mxu0 }
 0x43c   : > { %v3353_v35 = vpop.f32.mrb[42].mxu0 }
 0x43d   : > { %v3485_v38 = vmax.f32 %v3351_v13, 0.0  ;;  %v3354_v39 = vadd.f32 %v8043_v2, %v3353_v35  ;;  %v6463_v40 = vpop.f32.mrb[43].mxu0 }
 0x43f   : > { %v3519_v11 = vmul.f32 %v3485_v38, %v7303_v15  ;;  %v3486_v46 = vmax.f32 %v3354_v39, 0.0 }
 0x441   : > { %3553 = vst.msk [vmem:[#allocation2 + $0x18] sm:$0xff] %vm344_vm0, %v3519_v11  ;;  %v3520_v47 = vmul.f32 %v3486_v46, %v7305_v16 }
 0x442   : > { %v3358_v37 = vpop.f32.mrb[44].mxu0 }
 0x443   : > { %3554 = vst.msk [vmem:[#allocation2 + $0x20] sm:$0xff] %vm344_vm0, %v3520_v47  ;;  %v3359_v51 = vadd.f32 %v8043_v2, %v3358_v37  ;;  %v6466_v52 = vpop.f32.mrb[45].mxu0 }
 0x444   : > { %v3361_v53 = vpop.f32.mrb[46].mxu0 }
 0x445   : > { %v3487_v55 = vmax.f32 %v3359_v51, 0.0  ;;  %v3362_v56 = vadd.f32 %v8043_v2, %v3361_v53  ;;  %v6467_v57 = vpop.f32.mrb[47].mxu0 }
 0x447   : > { %v3521_v59 = vmul.f32 %v3487_v55, %v7309_v18  ;;  %v3488_v60 = vmax.f32 %v3362_v56, 0.0 }
 0x448   : > { %v4076_v4 = vld [vmem:[#allocation2 + $0x18] sm:$0xff] }
 0x449   : > { %3555 = vst.msk [vmem:[#allocation2 + $0x28] sm:$0xff] %vm344_vm0, %v3521_v59  ;;  %v3522_v61 = vmul.f32 %v3488_v60, %v7307_v17  ;;  %v3940_v6 = vld [vmem:[#allocation2 + $0x17] sm:$0xff] }
 0x44a   : > { %v3602_v10 = vld [vmem:[#allocation2 + $0x16] sm:$0xff]  ;;  %v3366_v12 = vpop.f32.mrb[48].mxu0  ;;  %v4077_v13 = vld [vmem:[#allocation2 + $0x20] sm:$0xff] }
 0x44b   : > { %v3941_v14 = vld [vmem:[#allocation2 + $0x1f] sm:$0xff]  ;;  %3556 = vst.msk [vmem:[#allocation2 + $0x30] sm:$0xff] %vm344_vm0, %v3522_v61  ;;  %v3367_v36 = vadd.f32 %v8043_v2, %v3366_v12  ;;  %v6470_v38 = vpop.f32.mrb[49].mxu0  ;;  %v4110_v39 = vpack.c.bf16 %v4077_v13, %v4076_v4 }
 0x44c   : > { %v3603_v35 = vld [vmem:[#allocation2 + $0x1e] sm:$0xff]  ;;  %v3974_v40 = vpack.c.bf16 %v3941_v14, %v3940_v6  ;;  %v3369_v43 = vpop.f32.mrb[50].mxu0 }
 0x44d   : > { %v3635_v42 = vpack.c.bf16 %v3603_v35, %v3602_v10  ;;  %v3489_v11 = vmax.f32 %v3367_v36, 0.0  ;;  %v3370_v46 = vadd.f32 %v8043_v2, %v3369_v43  ;;  %4144 = vrot.lane.b32.xlu0 %v4110_v39, %s6821_s20  ;;  %v6471_v47 = vpop.f32.mrb[51].mxu0 }
 0x44e   : > { %4008 = vrot.lane.b32.xlu1 %v3974_v40, %s6819_s18 }
 0x44f   : > { %3652 = vst.msk [vmem:[#allocation3 + $0x8] sm:$0xff] %vm344_vm0, %v3635_v42  ;;  %v3523_v49 = vmul.f32 %v3489_v11, %v7313_v20  ;;  %v3490_v37 = vmax.f32 %v3370_v46, 0.0 }
 0x450   : > { %v4078_v52 = vld [vmem:[#allocation2 + $0x28] sm:$0xff] }
 0x451   : > { %3557 = vst.msk [vmem:[#allocation2 + $0x38] sm:$0xff] %vm344_vm0, %v3523_v49  ;;  %v3524_v51 = vmul.f32 %v3490_v37, %v7311_v19  ;;  %3874 = vrot.lane.b32.xlu0 %v4110_v39, %s6820_s19  ;;  %v3942_v53 = vld [vmem:[#allocation2 + $0x27] sm:$0xff] }
 0x452   : > { %3738 = vrot.lane.b32.xlu1 %v3974_v40, %s6817_s17  ;;  %v3604_v55 = vld [vmem:[#allocation2 + $0x26] sm:$0xff]  ;;  %v3374_v56 = vpop.f32.mrb[52].mxu0  ;;  %v4079_v57 = vld [vmem:[#allocation2 + $0x30] sm:$0xff] }
 0x453   : > { %v3943_v58 = vld [vmem:[#allocation2 + $0x2f] sm:$0xff]  ;;  %3558 = vst.msk [vmem:[#allocation2 + $0x40] sm:$0xff] %vm344_vm0, %v3524_v51  ;;  %v3375_v60 = vadd.f32 %v8043_v2, %v3374_v56  ;;  %v6474_v61 = vpop.f32.mrb[53].mxu0  ;;  %v4111_v4 = vpack.c.bf16 %v4079_v57, %v4078_v52 }
 0x454   : > { %v3605_v59 = vld [vmem:[#allocation2 + $0x2e] sm:$0xff]  ;;  %v3975_v6 = vpack.c.bf16 %v3943_v58, %v3942_v53  ;;  %v3377_v12 = vpop.f32.mrb[54].mxu0 }
 0x455   : > { %v3636_v10 = vpack.c.bf16 %v3605_v59, %v3604_v55  ;;  %v3491_v13 = vmax.f32 %v3375_v60, 0.0  ;;  %v3378_v14 = vadd.f32 %v8043_v2, %v3377_v12  ;;  %4146 = vrot.lane.b32.xlu0 %v4111_v4, %s6821_s20  ;;  %v6475_v35 = vpop.f32.mrb[55].mxu0 }
 0x456   : > { %4010 = vrot.lane.b32.xlu1 %v3975_v6, %s6819_s18 }
 0x457   : > { %3653 = vst.msk [vmem:[#allocation3 + $0x10] sm:$0xff] %vm344_vm0, %v3636_v10  ;;  %v3525_v36 = vmul.f32 %v3491_v13, %v7317_v22  ;;  %v3492_v38 = vmax.f32 %v3378_v14, 0.0 }
 0x458   : > { %v4080_v40 = vld [vmem:[#allocation2 + $0x38] sm:$0xff] }
 0x459   : > { %3559 = vst.msk [vmem:[#allocation2 + $0x48] sm:$0xff] %vm344_vm0, %v3525_v36  ;;  %v3526_v39 = vmul.f32 %v3492_v38, %v7315_v21  ;;  %3876 = vrot.lane.b32.xlu0 %v4111_v4, %s6820_s19  ;;  %v3944_v42 = vld [vmem:[#allocation2 + $0x37] sm:$0xff] }
 0x45a   : > { %3740 = vrot.lane.b32.xlu1 %v3975_v6, %s6817_s17  ;;  %v3606_v43 = vld [vmem:[#allocation2 + $0x36] sm:$0xff]  ;;  %v3382_v11 = vpop.f32.mrb[56].mxu0  ;;  %v4081_v46 = vld [vmem:[#allocation2 + $0x40] sm:$0xff] }
 0x45b   : > { %v3945_v47 = vld [vmem:[#allocation2 + $0x3f] sm:$0xff]  ;;  %3560 = vst.msk [vmem:[#allocation2 + $0x50] sm:$0xff] %vm344_vm0, %v3526_v39  ;;  %v3383_v37 = vadd.f32 %v8043_v2, %v3382_v11  ;;  %v6478_v51 = vpop.f32.mrb[57].mxu0  ;;  %v4112_v52 = vpack.c.bf16 %v4081_v46, %v4080_v40 }
 0x45c   : > { %v3607_v49 = vld [vmem:[#allocation2 + $0x3e] sm:$0xff]  ;;  %v3976_v53 = vpack.c.bf16 %v3945_v47, %v3944_v42  ;;  %v3385_v56 = vpop.f32.mrb[58].mxu0 }
 0x45d   : > { %v3637_v55 = vpack.c.bf16 %v3607_v49, %v3606_v43  ;;  %v3493_v57 = vmax.f32 %v3383_v37, 0.0  ;;  %v3386_v58 = vadd.f32 %v8043_v2, %v3385_v56  ;;  %4148 = vrot.lane.b32.xlu0 %v4112_v52, %s6821_s20  ;;  %v6479_v59 = vpop.f32.mrb[59].mxu0 }
 0x45e   : > { %4012 = vrot.lane.b32.xlu1 %v3976_v53, %s6819_s18 }
 0x45f   : > { %3654 = vst.msk [vmem:[#allocation3 + $0x18] sm:$0xff] %vm344_vm0, %v3637_v55  ;;  %v3527_v60 = vmul.f32 %v3493_v57, %v7321_v24  ;;  %v3494_v61 = vmax.f32 %v3386_v58, 0.0 }
 0x460   : > { %v4082_v6 = vld [vmem:[#allocation2 + $0x48] sm:$0xff] }
 0x461   : > { %3561 = vst.msk [vmem:[#allocation2 + $0x58] sm:$0xff] %vm344_vm0, %v3527_v60  ;;  %v3528_v4 = vmul.f32 %v3494_v61, %v7319_v23  ;;  %3878 = vrot.lane.b32.xlu0 %v4112_v52, %s6820_s19  ;;  %v3946_v10 = vld [vmem:[#allocation2 + $0x47] sm:$0xff] }
 0x462   : > { %3742 = vrot.lane.b32.xlu1 %v3976_v53, %s6817_s17  ;;  %v3608_v12 = vld [vmem:[#allocation2 + $0x46] sm:$0xff]  ;;  %v3390_v13 = vpop.f32.mrb[60].mxu0  ;;  %v4083_v14 = vld [vmem:[#allocation2 + $0x50] sm:$0xff] }
 0x463   : > { %v3947_v35 = vld [vmem:[#allocation2 + $0x4f] sm:$0xff]  ;;  %3562 = vst.msk [vmem:[#allocation2 + $0x60] sm:$0xff] %vm344_vm0, %v3528_v4  ;;  %v3391_v38 = vadd.f32 %v8043_v2, %v3390_v13  ;;  %v6482_v39 = vpop.f32.mrb[61].mxu0  ;;  %v4113_v40 = vpack.c.bf16 %v4083_v14, %v4082_v6 }
 0x464   : > { %v3609_v36 = vld [vmem:[#allocation2 + $0x4e] sm:$0xff]  ;;  %v3977_v42 = vpack.c.bf16 %v3947_v35, %v3946_v10  ;;  %v3393_v11 = vpop.f32.mrb[62].mxu0 }
 0x465   : > { %v3638_v43 = vpack.c.bf16 %v3609_v36, %v3608_v12  ;;  %v3495_v46 = vmax.f32 %v3391_v38, 0.0  ;;  %v3394_v47 = vadd.f32 %v8043_v2, %v3393_v11  ;;  %4150 = vrot.lane.b32.xlu0 %v4113_v40, %s6821_s20  ;;  %v6483_v49 = vpop.f32.mrb[63].mxu0 }
 0x466   : > { %4014 = vrot.lane.b32.xlu1 %v3977_v42, %s6819_s18 }
 0x467   : > { %3655 = vst.msk [vmem:[#allocation3 + $0x20] sm:$0xff] %vm344_vm0, %v3638_v43  ;;  %v3529_v37 = vmul.f32 %v3495_v46, %v7325_v26  ;;  %v3496_v51 = vmax.f32 %v3394_v47, 0.0 }
 0x468   : > { %v4084_v53 = vld [vmem:[#allocation2 + $0x58] sm:$0xff] }
 0x469   : > { %3563 = vst.msk [vmem:[#allocation2 + $0x68] sm:$0xff] %vm344_vm0, %v3529_v37  ;;  %v3530_v52 = vmul.f32 %v3496_v51, %v7323_v25  ;;  %3880 = vrot.lane.b32.xlu0 %v4113_v40, %s6820_s19  ;;  %v3948_v55 = vld [vmem:[#allocation2 + $0x57] sm:$0xff] }
 0x46a   : > { %3744 = vrot.lane.b32.xlu1 %v3977_v42, %s6817_s17  ;;  %v3610_v56 = vld [vmem:[#allocation2 + $0x56] sm:$0xff]  ;;  %v3398_v57 = vpop.f32.mrb[64].mxu0  ;;  %v4085_v58 = vld [vmem:[#allocation2 + $0x60] sm:$0xff] }
 0x46b   : > { %v3949_v59 = vld [vmem:[#allocation2 + $0x5f] sm:$0xff]  ;;  %3564 = vst.msk [vmem:[#allocation2 + $0x70] sm:$0xff] %vm344_vm0, %v3530_v52  ;;  %v3399_v61 = vadd.f32 %v8043_v2, %v3398_v57  ;;  %v6486_v4 = vpop.f32.mrb[65].mxu0  ;;  %v4114_v6 = vpack.c.bf16 %v4085_v58, %v4084_v53 }
 0x46c   : > { %v3611_v60 = vld [vmem:[#allocation2 + $0x5e] sm:$0xff]  ;;  %v3978_v10 = vpack.c.bf16 %v3949_v59, %v3948_v55  ;;  %v3401_v13 = vpop.f32.mrb[66].mxu0 }
 0x46d   : > { %v3639_v12 = vpack.c.bf16 %v3611_v60, %v3610_v56  ;;  %v3497_v14 = vmax.f32 %v3399_v61, 0.0  ;;  %v3402_v35 = vadd.f32 %v8043_v2, %v3401_v13  ;;  %4152 = vrot.lane.b32.xlu0 %v4114_v6, %s6821_s20  ;;  %v6487_v36 = vpop.f32.mrb[67].mxu0 }
 0x46e   : > { %4016 = vrot.lane.b32.xlu1 %v3978_v10, %s6819_s18 }
 0x46f   : > { %3656 = vst.msk [vmem:[#allocation3 + $0x28] sm:$0xff] %vm344_vm0, %v3639_v12  ;;  %v3531_v38 = vmul.f32 %v3497_v14, %v7329_v28  ;;  %v3498_v39 = vmax.f32 %v3402_v35, 0.0 }
 0x470   : > { %v4086_v42 = vld [vmem:[#allocation2 + $0x68] sm:$0xff] }
 0x471   : > { %3565 = vst.msk [vmem:[#allocation2 + $0x78] sm:$0xff] %vm344_vm0, %v3531_v38  ;;  %v3532_v40 = vmul.f32 %v3498_v39, %v7327_v27  ;;  %3882 = vrot.lane.b32.xlu0 %v4114_v6, %s6820_s19  ;;  %v3950_v43 = vld [vmem:[#allocation2 + $0x67] sm:$0xff] }
 0x472   : > { %3746 = vrot.lane.b32.xlu1 %v3978_v10, %s6817_s17  ;;  %v3612_v11 = vld [vmem:[#allocation2 + $0x66] sm:$0xff]  ;;  %v3406_v46 = vpop.f32.mrb[68].mxu0  ;;  %v4087_v47 = vld [vmem:[#allocation2 + $0x70] sm:$0xff] }
 0x473   : > { %v3951_v49 = vld [vmem:[#allocation2 + $0x6f] sm:$0xff]  ;;  %3566 = vst.msk [vmem:[#allocation2 + $0x80] sm:$0xff] %vm344_vm0, %v3532_v40  ;;  %v3407_v51 = vadd.f32 %v8043_v2, %v3406_v46  ;;  %v6490_v52 = vpop.f32.mrb[69].mxu0  ;;  %v4115_v53 = vpack.c.bf16 %v4087_v47, %v4086_v42 }
 0x474   : > { %v3613_v37 = vld [vmem:[#allocation2 + $0x6e] sm:$0xff]  ;;  %v3979_v55 = vpack.c.bf16 %v3951_v49, %v3950_v43  ;;  %v3409_v57 = vpop.f32.mrb[70].mxu0 }
 0x475   : > { %v3640_v56 = vpack.c.bf16 %v3613_v37, %v3612_v11  ;;  %v3499_v58 = vmax.f32 %v3407_v51, 0.0  ;;  %v3410_v59 = vadd.f32 %v8043_v2, %v3409_v57  ;;  %4154 = vrot.lane.b32.xlu0 %v4115_v53, %s6821_s20  ;;  %v6491_v60 = vpop.f32.mrb[71].mxu0 }
 0x476   : > { %4018 = vrot.lane.b32.xlu1 %v3979_v55, %s6819_s18 }
 0x477   : > { %3657 = vst.msk [vmem:[#allocation3 + $0x30] sm:$0xff] %vm344_vm0, %v3640_v56  ;;  %v3533_v61 = vmul.f32 %v3499_v58, %v7333_v29  ;;  %v3500_v4 = vmax.f32 %v3410_v59, 0.0 }
 0x478   : > { %v4088_v10 = vld [vmem:[#allocation2 + $0x78] sm:$0xff] }
 0x479   : > { %3567 = vst.msk [vmem:[#allocation2 + $0x88] sm:$0xff] %vm344_vm0, %v3533_v61  ;;  %v3534_v6 = vmul.f32 %v3500_v4, %v7331_v62  ;;  %3884 = vrot.lane.b32.xlu0 %v4115_v53, %s6820_s19  ;;  %v3952_v12 = vld [vmem:[#allocation2 + $0x77] sm:$0xff] }
 0x47a   : > { %3748 = vrot.lane.b32.xlu1 %v3979_v55, %s6817_s17  ;;  %v3614_v13 = vld [vmem:[#allocation2 + $0x76] sm:$0xff]  ;;  %v3414_v14 = vpop.f32.mrb[72].mxu0  ;;  %v4089_v35 = vld [vmem:[#allocation2 + $0x80] sm:$0xff] }
 0x47b   : > { %v3953_v36 = vld [vmem:[#allocation2 + $0x7f] sm:$0xff]  ;;  %3568 = vst.msk [vmem:[#allocation2 + $0x90] sm:$0xff] %vm344_vm0, %v3534_v6  ;;  %v3415_v39 = vadd.f32 %v8043_v2, %v3414_v14  ;;  %v6494_v40 = vpop.f32.mrb[73].mxu0  ;;  %v4116_v42 = vpack.c.bf16 %v4089_v35, %v4088_v10 }
 0x47c   : > { %v3615_v38 = vld [vmem:[#allocation2 + $0x7e] sm:$0xff]  ;;  %v3980_v43 = vpack.c.bf16 %v3953_v36, %v3952_v12  ;;  %v3417_v46 = vpop.f32.mrb[74].mxu0 }
 0x47d   : > { %v3641_v11 = vpack.c.bf16 %v3615_v38, %v3614_v13  ;;  %v3501_v47 = vmax.f32 %v3415_v39, 0.0  ;;  %v3418_v49 = vadd.f32 %v8043_v2, %v3417_v46  ;;  %4156 = vrot.lane.b32.xlu0 %v4116_v42, %s6821_s20  ;;  %v6495_v37 = vpop.f32.mrb[75].mxu0 }
 0x47e   : > { %4020 = vrot.lane.b32.xlu1 %v3980_v43, %s6819_s18 }
 0x47f   : > { %3658 = vst.msk [vmem:[#allocation3 + $0x38] sm:$0xff] %vm344_vm0, %v3641_v11  ;;  %v3535_v51 = vmul.f32 %v3501_v47, %v7337_v31  ;;  %v3502_v52 = vmax.f32 %v3418_v49, 0.0 }
 0x480   : > { %v4090_v55 = vld [vmem:[#allocation2 + $0x88] sm:$0xff] }
 0x481   : > { %3569 = vst.msk [vmem:[#allocation2 + $0x98] sm:$0xff] %vm344_vm0, %v3535_v51  ;;  %v3536_v53 = vmul.f32 %v3502_v52, %v7335_v30  ;;  %3886 = vrot.lane.b32.xlu0 %v4116_v42, %s6820_s19  ;;  %v3954_v56 = vld [vmem:[#allocation2 + $0x87] sm:$0xff] }
 0x482   : > { %3750 = vrot.lane.b32.xlu1 %v3980_v43, %s6817_s17  ;;  %v3616_v57 = vld [vmem:[#allocation2 + $0x86] sm:$0xff]  ;;  %v3422_v58 = vpop.f32.mrb[76].mxu0  ;;  %v4091_v59 = vld [vmem:[#allocation2 + $0x90] sm:$0xff] }
 0x483   : > { %v3955_v60 = vld [vmem:[#allocation2 + $0x8f] sm:$0xff]  ;;  %3570 = vst.msk [vmem:[#allocation2 + $0xa0] sm:$0xff] %vm344_vm0, %v3536_v53  ;;  %v3423_v4 = vadd.f32 %v8043_v2, %v3422_v58  ;;  %v6498_v6 = vpop.f32.mrb[77].mxu0  ;;  %v4117_v10 = vpack.c.bf16 %v4091_v59, %v4090_v55 }
 0x484   : > { %v3617_v61 = vld [vmem:[#allocation2 + $0x8e] sm:$0xff]  ;;  %v3981_v12 = vpack.c.bf16 %v3955_v60, %v3954_v56  ;;  %v3425_v14 = vpop.f32.mrb[78].mxu0 }
 0x485   : > { %v3642_v13 = vpack.c.bf16 %v3617_v61, %v3616_v57  ;;  %v3503_v35 = vmax.f32 %v3423_v4, 0.0  ;;  %v3426_v36 = vadd.f32 %v8043_v2, %v3425_v14  ;;  %4158 = vrot.lane.b32.xlu0 %v4117_v10, %s6821_s20  ;;  %v6499_v38 = vpop.f32.mrb[79].mxu0 }
 0x486   : > { %4022 = vrot.lane.b32.xlu1 %v3981_v12, %s6819_s18 }
 0x487   : > { %3659 = vst.msk [vmem:[#allocation3 + $0x40] sm:$0xff] %vm344_vm0, %v3642_v13  ;;  %v3537_v39 = vmul.f32 %v3503_v35, %v7341_v33  ;;  %v3504_v40 = vmax.f32 %v3426_v36, 0.0 }
 0x488   : > { %v4092_v43 = vld [vmem:[#allocation2 + $0x98] sm:$0xff] }
 0x489   : > { %3571 = vst.msk [vmem:[#allocation2 + $0xa8] sm:$0xff] %vm344_vm0, %v3537_v39  ;;  %v3538_v42 = vmul.f32 %v3504_v40, %v7339_v32  ;;  %3888 = vrot.lane.b32.xlu0 %v4117_v10, %s6820_s19  ;;  %v3956_v11 = vld [vmem:[#allocation2 + $0x97] sm:$0xff] }
 0x48a   : > { %3752 = vrot.lane.b32.xlu1 %v3981_v12, %s6817_s17  ;;  %v3618_v46 = vld [vmem:[#allocation2 + $0x96] sm:$0xff]  ;;  %v3430_v47 = vpop.f32.mrb[80].mxu0  ;;  %v4093_v49 = vld [vmem:[#allocation2 + $0xa0] sm:$0xff] }
 0x48b   : > { %v3957_v37 = vld [vmem:[#allocation2 + $0x9f] sm:$0xff]  ;;  %3572 = vst.msk [vmem:[#allocation2 + $0xb0] sm:$0xff] %vm344_vm0, %v3538_v42  ;;  %v3431_v52 = vadd.f32 %v8043_v2, %v3430_v47  ;;  %v6502_v53 = vpop.f32.mrb[81].mxu0  ;;  %v4118_v55 = vpack.c.bf16 %v4093_v49, %v4092_v43 }
 0x48c   : > { %v3619_v51 = vld [vmem:[#allocation2 + $0x9e] sm:$0xff]  ;;  %v3982_v56 = vpack.c.bf16 %v3957_v37, %v3956_v11  ;;  %v3433_v58 = vpop.f32.mrb[82].mxu0 }
 0x48d   : > { %v3643_v57 = vpack.c.bf16 %v3619_v51, %v3618_v46  ;;  %v3505_v59 = vmax.f32 %v3431_v52, 0.0  ;;  %v3434_v60 = vadd.f32 %v8043_v2, %v3433_v58  ;;  %4160 = vrot.lane.b32.xlu0 %v4118_v55, %s6821_s20  ;;  %v6503_v61 = vpop.f32.mrb[83].mxu0 }
 0x48e   : > { %4024 = vrot.lane.b32.xlu1 %v3982_v56, %s6819_s18 }
 0x48f   : > { %3660 = vst.msk [vmem:[#allocation3 + $0x48] sm:$0xff] %vm344_vm0, %v3643_v57  ;;  %v3539_v4 = vmul.f32 %v3505_v59, %v7472_v63  ;;  %v3506_v6 = vmax.f32 %v3434_v60, 0.0 }
 0x490   : > { %v4094_v12 = vld [vmem:[#allocation2 + $0xa8] sm:$0xff] }
 0x491   : > { %3573 = vst.msk [vmem:[#allocation2 + $0xb8] sm:$0xff] %vm344_vm0, %v3539_v4  ;;  %v3540_v10 = vmul.f32 %v3506_v6, %v7478_v3  ;;  %3890 = vrot.lane.b32.xlu0 %v4118_v55, %s6820_s19  ;;  %v3958_v13 = vld [vmem:[#allocation2 + $0xa7] sm:$0xff] }
 0x492   : > { %3754 = vrot.lane.b32.xlu1 %v3982_v56, %s6817_s17  ;;  %v3620_v14 = vld [vmem:[#allocation2 + $0xa6] sm:$0xff]  ;;  %v3438_v35 = vpop.f32.mrb[84].mxu0  ;;  %v4095_v36 = vld [vmem:[#allocation2 + $0xb0] sm:$0xff] }
 0x493   : > { %v3959_v38 = vld [vmem:[#allocation2 + $0xaf] sm:$0xff]  ;;  %3574 = vst.msk [vmem:[#allocation2 + $0xc0] sm:$0xff] %vm344_vm0, %v3540_v10  ;;  %v3439_v40 = vadd.f32 %v8043_v2, %v3438_v35  ;;  %v6506_v42 = vpop.f32.mrb[85].mxu0  ;;  %v4119_v43 = vpack.c.bf16 %v4095_v36, %v4094_v12 }
 0x494   : > { %v3621_v39 = vld [vmem:[#allocation2 + $0xae] sm:$0xff]  ;;  %v3983_v11 = vpack.c.bf16 %v3959_v38, %v3958_v13  ;;  %v3441_v47 = vpop.f32.mrb[86].mxu0 }
 0x495   : > { %v3644_v46 = vpack.c.bf16 %v3621_v39, %v3620_v14  ;;  %v3507_v49 = vmax.f32 %v3439_v40, 0.0  ;;  %v3442_v37 = vadd.f32 %v8043_v2, %v3441_v47  ;;  %4162 = vrot.lane.b32.xlu0 %v4119_v43, %s6821_s20  ;;  %v6507_v51 = vpop.f32.mrb[87].mxu0 }
 0x496   : > { %4026 = vrot.lane.b32.xlu1 %v3983_v11, %s6819_s18 }
 0x497   : > { %3661 = vst.msk [vmem:[#allocation3 + $0x50] sm:$0xff] %vm344_vm0, %v3644_v46  ;;  %v3541_v52 = vmul.f32 %v3507_v49, %v7487_v41  ;;  %v3508_v53 = vmax.f32 %v3442_v37, 0.0 }
 0x498   : > { %v4096_v56 = vld [vmem:[#allocation2 + $0xb8] sm:$0xff] }
 0x499   : > { %3575 = vst.msk [vmem:[#allocation2 + $0xc8] sm:$0xff] %vm344_vm0, %v3541_v52  ;;  %v3542_v55 = vmul.f32 %v3508_v53, %v7493_v44  ;;  %3892 = vrot.lane.b32.xlu0 %v4119_v43, %s6820_s19  ;;  %v3960_v57 = vld [vmem:[#allocation2 + $0xb7] sm:$0xff] }
 0x49a   : > { %3756 = vrot.lane.b32.xlu1 %v3983_v11, %s6817_s17  ;;  %v3622_v58 = vld [vmem:[#allocation2 + $0xb6] sm:$0xff]  ;;  %v3446_v59 = vpop.f32.mrb[88].mxu0  ;;  %v4097_v60 = vld [vmem:[#allocation2 + $0xc0] sm:$0xff] }
 0x49b   : > { %v3961_v61 = vld [vmem:[#allocation2 + $0xbf] sm:$0xff]  ;;  %3576 = vst.msk [vmem:[#allocation2 + $0xd0] sm:$0xff] %vm344_vm0, %v3542_v55  ;;  %v3447_v6 = vadd.f32 %v8043_v2, %v3446_v59  ;;  %v6510_v10 = vpop.f32.mrb[89].mxu0  ;;  %v4120_v12 = vpack.c.bf16 %v4097_v60, %v4096_v56 }
 0x49c   : > { %v3623_v4 = vld [vmem:[#allocation2 + $0xbe] sm:$0xff]  ;;  %v3984_v13 = vpack.c.bf16 %v3961_v61, %v3960_v57  ;;  %v3449_v35 = vpop.f32.mrb[90].mxu0 }
 0x49d   : > { %v3645_v14 = vpack.c.bf16 %v3623_v4, %v3622_v58  ;;  %v3509_v36 = vmax.f32 %v3447_v6, 0.0  ;;  %v3450_v38 = vadd.f32 %v8043_v2, %v3449_v35  ;;  %4164 = vrot.lane.b32.xlu0 %v4120_v12, %s6821_s20  ;;  %v6511_v39 = vpop.f32.mrb[91].mxu0 }
 0x49e   : > { %4028 = vrot.lane.b32.xlu1 %v3984_v13, %s6819_s18 }
 0x49f   : > { %3662 = vst.msk [vmem:[#allocation3 + $0x58] sm:$0xff] %vm344_vm0, %v3645_v14  ;;  %v3543_v40 = vmul.f32 %v3509_v36, %v7503_v1  ;;  %v3510_v42 = vmax.f32 %v3450_v38, 0.0 }
 0x4a0   : > { %v4098_v11 = vld [vmem:[#allocation2 + $0xc8] sm:$0xff] }
 0x4a1   : > { %3577 = vst.msk [vmem:[#allocation2 + $0xd8] sm:$0xff] %vm344_vm0, %v3543_v40  ;;  %v3544_v43 = vmul.f32 %v3510_v42, %v7508_v5  ;;  %3894 = vrot.lane.b32.xlu0 %v4120_v12, %s6820_s19  ;;  %v3962_v46 = vld [vmem:[#allocation2 + $0xc7] sm:$0xff] }
 0x4a2   : > { %3758 = vrot.lane.b32.xlu1 %v3984_v13, %s6817_s17  ;;  %v3624_v47 = vld [vmem:[#allocation2 + $0xc6] sm:$0xff]  ;;  %v3454_v49 = vpop.f32.mrb[92].mxu0  ;;  %v4099_v37 = vld [vmem:[#allocation2 + $0xd0] sm:$0xff] }
 0x4a3   : > { %v3963_v51 = vld [vmem:[#allocation2 + $0xcf] sm:$0xff]  ;;  %3578 = vst.msk [vmem:[#allocation2 + $0xe0] sm:$0xff] %vm344_vm0, %v3544_v43  ;;  %v3455_v53 = vadd.f32 %v8043_v2, %v3454_v49  ;;  %v6514_v55 = vpop.f32.mrb[93].mxu0  ;;  %v4121_v56 = vpack.c.bf16 %v4099_v37, %v4098_v11 }
 0x4a4   : > { %v3625_v52 = vld [vmem:[#allocation2 + $0xce] sm:$0xff]  ;;  %v3985_v57 = vpack.c.bf16 %v3963_v51, %v3962_v46  ;;  %v3457_v59 = vpop.f32.mrb[94].mxu0 }
 0x4a5   : > { %v3646_v58 = vpack.c.bf16 %v3625_v52, %v3624_v47  ;;  %v3511_v60 = vmax.f32 %v3455_v53, 0.0  ;;  %v3458_v61 = vadd.f32 %v8043_v2, %v3457_v59  ;;  %4166 = vrot.lane.b32.xlu0 %v4121_v56, %s6821_s20  ;;  %v6515_v4 = vpop.f32.mrb[95].mxu0 }
 0x4a6   : > { %4030 = vrot.lane.b32.xlu1 %v3985_v57, %s6819_s18 }
 0x4a7   : > { %3663 = vst.msk [vmem:[#allocation3 + $0x60] sm:$0xff] %vm344_vm0, %v3646_v58  ;;  %v3545_v6 = vmul.f32 %v3511_v60, %v7518_v45  ;;  %v3512_v10 = vmax.f32 %v3458_v61, 0.0 }
 0x4a8   : > { %v4100_v13 = vld [vmem:[#allocation2 + $0xd8] sm:$0xff] }
 0x4a9   : > { %3579 = vst.msk [vmem:[#allocation2 + $0xe8] sm:$0xff] %vm344_vm0, %v3545_v6  ;;  %v3546_v12 = vmul.f32 %v3512_v10, %v7523_v48  ;;  %3896 = vrot.lane.b32.xlu0 %v4121_v56, %s6820_s19  ;;  %v3964_v14 = vld [vmem:[#allocation2 + $0xd7] sm:$0xff] }
 0x4aa   : > { %3760 = vrot.lane.b32.xlu1 %v3985_v57, %s6817_s17  ;;  %v3626_v35 = vld [vmem:[#allocation2 + $0xd6] sm:$0xff]  ;;  %v3462_v36 = vpop.f32.mrb[96].mxu0  ;;  %v4101_v38 = vld [vmem:[#allocation2 + $0xe0] sm:$0xff] }
 0x4ab   : > { %v3965_v39 = vld [vmem:[#allocation2 + $0xdf] sm:$0xff]  ;;  %3580 = vst.msk [vmem:[#allocation2 + $0xf0] sm:$0xff] %vm344_vm0, %v3546_v12  ;;  %v3463_v42 = vadd.f32 %v8043_v2, %v3462_v36  ;;  %v6518_v43 = vpop.f32.mrb[97].mxu0  ;;  %v4122_v11 = vpack.c.bf16 %v4101_v38, %v4100_v13 }
 0x4ac   : > { %v3627_v40 = vld [vmem:[#allocation2 + $0xde] sm:$0xff]  ;;  %v3986_v46 = vpack.c.bf16 %v3965_v39, %v3964_v14  ;;  %v3465_v49 = vpop.f32.mrb[98].mxu0 }
 0x4ad   : > { %v3647_v47 = vpack.c.bf16 %v3627_v40, %v3626_v35  ;;  %v3513_v37 = vmax.f32 %v3463_v42, 0.0  ;;  %v3466_v51 = vadd.f32 %v8043_v2, %v3465_v49  ;;  %4168 = vrot.lane.b32.xlu0 %v4122_v11, %s6821_s20  ;;  %v6519_v52 = vpop.f32.mrb[99].mxu0 }
 0x4ae   : > { %4032 = vrot.lane.b32.xlu1 %v3986_v46, %s6819_s18 }
 0x4af   : > { %3664 = vst.msk [vmem:[#allocation3 + $0x68] sm:$0xff] %vm344_vm0, %v3647_v47  ;;  %v3547_v53 = vmul.f32 %v3513_v37, %v7533_v8  ;;  %v3514_v55 = vmax.f32 %v3466_v51, 0.0 }
 0x4b0   : > { %v4102_v57 = vld [vmem:[#allocation2 + $0xe8] sm:$0xff] }
 0x4b1   : > { %3581 = vst.msk [vmem:[#allocation2 + $0xf8] sm:$0xff] %vm344_vm0, %v3547_v53  ;;  %v3548_v56 = vmul.f32 %v3514_v55, %v7537_v9  ;;  %3898 = vrot.lane.b32.xlu0 %v4122_v11, %s6820_s19  ;;  %v3966_v58 = vld [vmem:[#allocation2 + $0xe7] sm:$0xff] }
 0x4b2   : > { %3762 = vrot.lane.b32.xlu1 %v3986_v46, %s6817_s17  ;;  %v3628_v59 = vld [vmem:[#allocation2 + $0xe6] sm:$0xff]  ;;  %v3470_v60 = vpop.f32.mrb[100].mxu0  ;;  %v4103_v61 = vld [vmem:[#allocation2 + $0xf0] sm:$0xff] }
 0x4b3   : > { %v3967_v4 = vld [vmem:[#allocation2 + $0xef] sm:$0xff]  ;;  %3582 = vst.msk [vmem:[#allocation2 + $0x100] sm:$0xff] %vm344_vm0, %v3548_v56  ;;  %v3471_v10 = vadd.f32 %v8043_v2, %v3470_v60  ;;  %v6522_v12 = vpop.f32.mrb[101].mxu0  ;;  %v4123_v13 = vpack.c.bf16 %v4103_v61, %v4102_v57 }
 0x4b4   : > { %v3629_v6 = vld [vmem:[#allocation2 + $0xee] sm:$0xff]  ;;  %v3987_v14 = vpack.c.bf16 %v3967_v4, %v3966_v58  ;;  %v3473_v36 = vpop.f32.mrb[102].mxu0 }
 0x4b5   : > { %v3648_v35 = vpack.c.bf16 %v3629_v6, %v3628_v59  ;;  %v3515_v38 = vmax.f32 %v3471_v10, 0.0  ;;  %v3474_v39 = vadd.f32 %v8043_v2, %v3473_v36  ;;  %4170 = vrot.lane.b32.xlu0 %v4123_v13, %s6821_s20  ;;  %v6523_v40 = vpop.f32.mrb[103].mxu0 }
 0x4b6   : > { %4034 = vrot.lane.b32.xlu1 %v3987_v14, %s6819_s18 }
 0x4b7   : > { %3665 = vst.msk [vmem:[#allocation3 + $0x70] sm:$0xff] %vm344_vm0, %v3648_v35  ;;  %v3549_v42 = vmul.f32 %v3515_v38, %v7550_v54  ;;  %v3516_v43 = vmax.f32 %v3474_v39, 0.0 }
 0x4b8   : > { %v4104_v46 = vld [vmem:[#allocation2 + $0xf8] sm:$0xff] }
 0x4b9   : > { %3583 = vst.msk [vmem:[#allocation2 + $0x108] sm:$0xff] %vm344_vm0, %v3549_v42  ;;  %v3550_v11 = vmul.f32 %v3516_v43, %v7546_v50  ;;  %3900 = vrot.lane.b32.xlu0 %v4123_v13, %s6820_s19  ;;  %v3968_v47 = vld [vmem:[#allocation2 + $0xf7] sm:$0xff] }
 0x4ba   : > { %3764 = vrot.lane.b32.xlu1 %v3987_v14, %s6817_s17  ;;  %v3630_v49 = vld [vmem:[#allocation2 + $0xf6] sm:$0xff]  ;;  %v4105_v37 = vld [vmem:[#allocation2 + $0x100] sm:$0xff]  ;;  %v3478_v53 = vpop.f32.mrb[104].mxu0 }
 0x4bb   : > { %v3969_v51 = vld [vmem:[#allocation2 + $0xff] sm:$0xff]  ;;  %3584 = vst.msk [vmem:[#allocation2 + $0x110] sm:$0xff] %vm344_vm0, %v3550_v11  ;;  %v4124_v55 = vpack.c.bf16 %v4105_v37, %v4104_v46  ;;  %v3479_v58 = vadd.f32 %v8043_v2, %v3478_v53  ;;  %v6526_v59 = vpop.f32.mrb[105].mxu0 }
 0x4bc   : > { %v3631_v52 = vld [vmem:[#allocation2 + $0xfe] sm:$0xff]  ;;  %v3988_v56 = vpack.c.bf16 %v3969_v51, %v3968_v47  ;;  %v3481_v60 = vpop.f32.mrb[106].mxu0 }
 0x4bd   : > { %v3649_v57 = vpack.c.bf16 %v3631_v52, %v3630_v49  ;;  %4172 = vrot.lane.b32.xlu0 %v4124_v55, %s6821_s20  ;;  %v3517_v61 = vmax.f32 %v3479_v58, 0.0  ;;  %v3482_v4 = vadd.f32 %v8043_v2, %v3481_v60  ;;  %v6527_v6 = vpop.f32.mrb[107].mxu0 }
 0x4be   : > { %4036 = vrot.lane.b32.xlu1 %v3988_v56, %s6819_s18 }
 0x4bf   : > { %3666 = vst.msk [vmem:[#allocation3 + $0x78] sm:$0xff] %vm344_vm0, %v3649_v57  ;;  %v4145_v10 = vpop.permute.xlu0 %4144  ;;  %v3551_v13 = vmul.f32 %v3517_v61, %v7563_v34  ;;  %v3518_v14 = vmax.f32 %v3482_v4, 0.0 }
 0x4c0   : > { %v4009_v12 = vpop.permute.xlu1 %4008  ;;  %v4106_v35 = vld [vmem:[#allocation2 + $0x108] sm:$0xff] }
 0x4c1   : > { %4059 = vst.msk [vmem:[#allocation3] sm:$0xff] %vm888_vm4, %v4009_v12  ;;  %3902 = vrot.lane.b32.xlu0 %v4124_v55, %s6820_s19  ;;  %v3970_v36 = vld [vmem:[#allocation2 + $0x107] sm:$0xff]  ;;  %v3552_v2 = vmul.f32 %v3518_v14, %v7559_v7 }
 0x4c2   : > { %4195 = vst.msk [vmem:[#allocation3] sm:$0xff] %vm1025_vm5, %v4145_v10  ;;  %3766 = vrot.lane.b32.xlu1 %v3988_v56, %s6817_s17  ;;  %v3632_v38 = vld [vmem:[#allocation2 + $0x106] sm:$0xff]  ;;  %v4107_v39 = vld [vmem:[#allocation2 + $0x110] sm:$0xff] }
 0x4c3   : > { %3585 = vst.msk [vmem:[#allocation2 + $0x118] sm:$0xff] %vm344_vm0, %v3551_v13  ;;  %v3971_v40 = vld [vmem:[#allocation2 + $0x10f] sm:$0xff]  ;;  %v3875_v43 = vpop.permute.xlu0 %3874  ;;  %v4125_v46 = vpack.c.bf16 %v4107_v39, %v4106_v35  ;;  %3586 = vst.msk [vmem:[#allocation2 + $0x120] sm:$0xff] %vm344_vm0, %v3552_v2 }
 0x4c4   : > { %v3633_v42 = vld [vmem:[#allocation2 + $0x10e] sm:$0xff]  ;;  %v3739_v11 = vpop.permute.xlu1 %3738  ;;  %v3989_v47 = vpack.c.bf16 %v3971_v40, %v3970_v36 }
 0x4c5   : > { %v3650_v49 = vpack.c.bf16 %v3633_v42, %v3632_v38  ;;  %3788 = vst.msk [vmem:[#allocation3 + $0x8] sm:$0xff] %vm614_vm2, %v3739_v11  ;;  %4174 = vrot.lane.b32.xlu0 %v4125_v46, %s6821_s20 }
 0x4c6   : > { %3924 = vst.msk [vmem:[#allocation3 + $0x8] sm:$0xff] %vm751_vm3, %v3875_v43  ;;  %4038 = vrot.lane.b32.xlu1 %v3989_v47, %s6819_s18 }
 0x4c7   : > { %3667 = vst.msk [vmem:[#allocation3 + $0x80] sm:$0xff] %vm344_vm0, %v3650_v49  ;;  %v4147_v37 = vpop.permute.xlu0 %4146 }
 0x4c8   : > { %v4011_v51 = vpop.permute.xlu1 %4010 }
 0x4c9   : > { %4060 = vst.msk [vmem:[#allocation3 + $0x8] sm:$0xff] %vm888_vm4, %v4011_v51  ;;  %v4212_v52 = vld [vmem:[#allocation3] sm:$0xff]  ;;  %3904 = vrot.lane.b32.xlu0 %v4125_v46, %s6820_s19 }
 0x4ca   : > { %4196 = vst.msk [vmem:[#allocation3 + $0x8] sm:$0xff] %vm1025_vm5, %v4147_v37  ;;  %6539 = vmatmul.mubr.msk.bf16.vlgmr.msra.gmra.mrb[96].mxu1 %vm1096_vm6, %v4212_v52  ;;  %3768 = vrot.lane.b32.xlu1 %v3989_v47, %s6817_s17  ;;  %v4108_v53 = vld [vmem:[#allocation2 + $0x118] sm:$0xff]  ;;  %v4109_v57 = vld [vmem:[#allocation2 + $0x120] sm:$0xff] }
 0x4cb   : > { %6542 = vmatprep.mubr.msk.bf16.mxu1 %vm6818_vm1, %v6816_v0  ;;  %v3877_v55 = vpop.permute.xlu0 %3876  ;;  %v3972_v58 = vld [vmem:[#allocation2 + $0x117] sm:$0xff]  ;;  %v3973_v59 = vld [vmem:[#allocation2 + $0x11f] sm:$0xff]  ;;  %v4126_v60 = vpack.c.bf16 %v4109_v57, %v4108_v53 }
 0x4cc   : > { %v3741_v56 = vpop.permute.xlu1 %3740  ;;  %v3990_v61 = vpack.c.bf16 %v3973_v59, %v3972_v58 }
 0x4cd   : > { %3789 = vst.msk [vmem:[#allocation3 + $0x10] sm:$0xff] %vm614_vm2, %v3741_v56  ;;  %4176 = vrot.lane.b32.xlu0 %v4126_v60, %s6821_s20 }
 0x4ce   : > { %3925 = vst.msk [vmem:[#allocation3 + $0x10] sm:$0xff] %vm751_vm3, %v3877_v55  ;;  %4040 = vrot.lane.b32.xlu1 %v3990_v61, %s6819_s18 }
 0x4cf   : > { %v4149_v4 = vpop.permute.xlu0 %4148 }
 0x4d0   : > { %v4013_v6 = vpop.permute.xlu1 %4012 }
 0x4d1   : > { %4061 = vst.msk [vmem:[#allocation3 + $0x10] sm:$0xff] %vm888_vm4, %v4013_v6  ;;  %v4213_v10 = vld [vmem:[#allocation3 + $0x8] sm:$0xff] }
 0x4d2   : > { %4197 = vst.msk [vmem:[#allocation3 + $0x10] sm:$0xff] %vm1025_vm5, %v4149_v4  ;;  %6543 = vmatmul.mubr.msk.bf16.gmra.mrb[100].mxu1 %vm1096_vm6, %v4213_v10 }
 0x4d3   : > { %6546 = vmatprep.mubr.msk.bf16.mxu1 %vm6818_vm1, %v6816_v0  ;;  %v3879_v12 = vpop.permute.xlu0 %3878 }
 0x4d4   : > { %v3743_v13 = vpop.permute.xlu1 %3742 }
 0x4d5   : > { %3790 = vst.msk [vmem:[#allocation3 + $0x18] sm:$0xff] %vm614_vm2, %v3743_v13 }
 0x4d6   : > { %3926 = vst.msk [vmem:[#allocation3 + $0x18] sm:$0xff] %vm751_vm3, %v3879_v12 }
 0x4d7   : > { %v4151_v14 = vpop.permute.xlu0 %4150 }
 0x4d8   : > { %v4015_v35 = vpop.permute.xlu1 %4014 }
 0x4d9   : > { %4062 = vst.msk [vmem:[#allocation3 + $0x18] sm:$0xff] %vm888_vm4, %v4015_v35  ;;  %v4214_v36 = vld [vmem:[#allocation3 + $0x10] sm:$0xff] }
 0x4da   : > { %4198 = vst.msk [vmem:[#allocation3 + $0x18] sm:$0xff] %vm1025_vm5, %v4151_v14  ;;  %6547 = vmatmul.mubr.msk.bf16.gmra.mrb[104].mxu1 %vm1096_vm6, %v4214_v36 }
 0x4db   : > { %6550 = vmatprep.mubr.msk.bf16.mxu1 %vm6818_vm1, %v6816_v0  ;;  %v3881_v38 = vpop.permute.xlu0 %3880 }
 0x4dc   : > { %v3745_v2 = vpop.permute.xlu1 %3744 }
 0x4dd   : > { %3791 = vst.msk [vmem:[#allocation3 + $0x20] sm:$0xff] %vm614_vm2, %v3745_v2 }
 0x4de   : > { %3927 = vst.msk [vmem:[#allocation3 + $0x20] sm:$0xff] %vm751_vm3, %v3881_v38 }
 0x4df   : > { %v4153_v39 = vpop.permute.xlu0 %4152 }
 0x4e0   : > { %v4017_v40 = vpop.permute.xlu1 %4016 }
 0x4e1   : > { %4063 = vst.msk [vmem:[#allocation3 + $0x20] sm:$0xff] %vm888_vm4, %v4017_v40  ;;  %v4215_v42 = vld [vmem:[#allocation3 + $0x18] sm:$0xff] }
 0x4e2   : > { %4199 = vst.msk [vmem:[#allocation3 + $0x20] sm:$0xff] %vm1025_vm5, %v4153_v39  ;;  %6551 = vmatmul.mubr.msk.bf16.gmra.mrb[108].mxu1 %vm1096_vm6, %v4215_v42 }
 0x4e3   : > { %6554 = vmatprep.mubr.msk.bf16.mxu1 %vm6818_vm1, %v6816_v0  ;;  %v3883_v43 = vpop.permute.xlu0 %3882 }
 0x4e4   : > { %v3747_v11 = vpop.permute.xlu1 %3746 }
 0x4e5   : > { %3792 = vst.msk [vmem:[#allocation3 + $0x28] sm:$0xff] %vm614_vm2, %v3747_v11 }
 0x4e6   : > { %3928 = vst.msk [vmem:[#allocation3 + $0x28] sm:$0xff] %vm751_vm3, %v3883_v43 }
 0x4e7   : > { %v4155_v46 = vpop.permute.xlu0 %4154 }
 0x4e8   : > { %v4019_v47 = vpop.permute.xlu1 %4018 }
 0x4e9   : > { %4064 = vst.msk [vmem:[#allocation3 + $0x28] sm:$0xff] %vm888_vm4, %v4019_v47  ;;  %v4216_v49 = vld [vmem:[#allocation3 + $0x20] sm:$0xff] }
 0x4ea   : > { %4200 = vst.msk [vmem:[#allocation3 + $0x28] sm:$0xff] %vm1025_vm5, %v4155_v46  ;;  %6555 = vmatmul.mubr.msk.bf16.gmra.mrb[112].mxu1 %vm1096_vm6, %v4216_v49 }
 0x4eb   : > { %6558 = vmatprep.mubr.msk.bf16.mxu1 %vm6818_vm1, %v6816_v0  ;;  %v3885_v37 = vpop.permute.xlu0 %3884 }
 0x4ec   : > { %v3749_v51 = vpop.permute.xlu1 %3748 }
 0x4ed   : > { %3793 = vst.msk [vmem:[#allocation3 + $0x30] sm:$0xff] %vm614_vm2, %v3749_v51 }
 0x4ee   : > { %3929 = vst.msk [vmem:[#allocation3 + $0x30] sm:$0xff] %vm751_vm3, %v3885_v37 }
 0x4ef   : > { %v4157_v52 = vpop.permute.xlu0 %4156 }
 0x4f0   : > { %v4021_v53 = vpop.permute.xlu1 %4020 }
 0x4f1   : > { %4065 = vst.msk [vmem:[#allocation3 + $0x30] sm:$0xff] %vm888_vm4, %v4021_v53  ;;  %v4217_v55 = vld [vmem:[#allocation3 + $0x28] sm:$0xff] }
 0x4f2   : > { %4201 = vst.msk [vmem:[#allocation3 + $0x30] sm:$0xff] %vm1025_vm5, %v4157_v52  ;;  %6559 = vmatmul.mubr.msk.bf16.gmra.mrb[116].mxu1 %vm1096_vm6, %v4217_v55 }
 0x4f3   : > { %6562 = vmatprep.mubr.msk.bf16.mxu1 %vm6818_vm1, %v6816_v0  ;;  %v3887_v56 = vpop.permute.xlu0 %3886 }
 0x4f4   : > { %v3751_v57 = vpop.permute.xlu1 %3750 }
 0x4f5   : > { %3794 = vst.msk [vmem:[#allocation3 + $0x38] sm:$0xff] %vm614_vm2, %v3751_v57 }
 0x4f6   : > { %3930 = vst.msk [vmem:[#allocation3 + $0x38] sm:$0xff] %vm751_vm3, %v3887_v56 }
 0x4f7   : > { %v4159_v58 = vpop.permute.xlu0 %4158 }
 0x4f8   : > { %v4023_v59 = vpop.permute.xlu1 %4022 }
 0x4f9   : > { %4066 = vst.msk [vmem:[#allocation3 + $0x38] sm:$0xff] %vm888_vm4, %v4023_v59  ;;  %v4218_v60 = vld [vmem:[#allocation3 + $0x30] sm:$0xff] }
 0x4fa   : > { %4202 = vst.msk [vmem:[#allocation3 + $0x38] sm:$0xff] %vm1025_vm5, %v4159_v58  ;;  %6563 = vmatmul.mubr.msk.bf16.gmra.mrb[120].mxu1 %vm1096_vm6, %v4218_v60 }
 0x4fb   : > { %6566 = vmatprep.mubr.msk.bf16.mxu1 %vm6818_vm1, %v6816_v0  ;;  %v3889_v61 = vpop.permute.xlu0 %3888 }
 0x4fc   : > { %v3753_v4 = vpop.permute.xlu1 %3752 }
 0x4fd   : > { %3795 = vst.msk [vmem:[#allocation3 + $0x40] sm:$0xff] %vm614_vm2, %v3753_v4  ;;  %v4804_v4 = vld [vmem:[#allocation2 + $0x8] sm:$0xff] }
 0x4fe   : > { %3931 = vst.msk [vmem:[#allocation3 + $0x40] sm:$0xff] %vm751_vm3, %v3889_v61 }
 0x4ff   : > { %v4161_v6 = vpop.permute.xlu0 %4160 }
 0x500   : > { %v4025_v10 = vpop.permute.xlu1 %4024 }
 0x501   : > { %4067 = vst.msk [vmem:[#allocation3 + $0x40] sm:$0xff] %vm888_vm4, %v4025_v10  ;;  %v4219_v12 = vld [vmem:[#allocation3 + $0x38] sm:$0xff] }
 0x502   : > { %4203 = vst.msk [vmem:[#allocation3 + $0x40] sm:$0xff] %vm1025_vm5, %v4161_v6  ;;  %6567 = vmatmul.mubr.msk.bf16.gmra.mrb[124].mxu1 %vm1096_vm6, %v4219_v12  ;;  %v4805_v6 = vld [vmem:[#allocation2 + $0x10] sm:$0xff]  ;;  %v4668_v10 = vld [vmem:[#allocation2 + $0x7] sm:$0xff] }
 0x503   : > { %6570 = vmatprep.mubr.msk.bf16.mxu1 %vm6818_vm1, %v6816_v0  ;;  %v3891_v13 = vpop.permute.xlu0 %3890  ;;  %v4838_v12 = vpack.c.bf16 %v4805_v6, %v4804_v4 }
 0x504   : > { %v3755_v14 = vpop.permute.xlu1 %3754 }
 0x505   : > { %3796 = vst.msk [vmem:[#allocation3 + $0x48] sm:$0xff] %vm614_vm2, %v3755_v14  ;;  %4872 = vrot.lane.b32.xlu0 %v4838_v12, %s6820_s19 }
 0x506   : > { %3932 = vst.msk [vmem:[#allocation3 + $0x48] sm:$0xff] %vm751_vm3, %v3891_v13  ;;  %v4669_v13 = vld [vmem:[#allocation2 + $0xf] sm:$0xff] }
 0x507   : > { %v4163_v35 = vpop.permute.xlu0 %4162 }
 0x508   : > { %v4027_v36 = vpop.permute.xlu1 %4026 }
 0x509   : > { %4068 = vst.msk [vmem:[#allocation3 + $0x48] sm:$0xff] %vm888_vm4, %v4027_v36  ;;  %v4220_v38 = vld [vmem:[#allocation3 + $0x40] sm:$0xff]  ;;  %v4702_v36 = vpack.c.bf16 %v4669_v13, %v4668_v10 }
 0x50a   : > { %4204 = vst.msk [vmem:[#allocation3 + $0x48] sm:$0xff] %vm1025_vm5, %v4163_v35  ;;  %6571 = vmatmul.mubr.msk.bf16.gmra.mrb[128].mxu1 %vm1096_vm6, %v4220_v38 }
 0x50b   : > { %6574 = vmatprep.mubr.msk.bf16.mxu1 %vm6818_vm1, %v6816_v0  ;;  %v3893_v2 = vpop.permute.xlu0 %3892  ;;  %4736 = vrot.lane.b32.xlu1 %v4702_v36, %s6817_s17 }
 0x50c   : > { %v3757_v39 = vpop.permute.xlu1 %3756 }
 0x50d   : > { %3797 = vst.msk [vmem:[#allocation3 + $0x50] sm:$0xff] %vm614_vm2, %v3757_v39 }
 0x50e   : > { %3933 = vst.msk [vmem:[#allocation3 + $0x50] sm:$0xff] %vm751_vm3, %v3893_v2 }
 0x50f   : > { %v4165_v40 = vpop.permute.xlu0 %4164 }
 0x510   : > { %v4029_v42 = vpop.permute.xlu1 %4028 }
 0x511   : > { %4069 = vst.msk [vmem:[#allocation3 + $0x50] sm:$0xff] %vm888_vm4, %v4029_v42  ;;  %v4221_v43 = vld [vmem:[#allocation3 + $0x48] sm:$0xff] }
 0x512   : > { %4205 = vst.msk [vmem:[#allocation3 + $0x50] sm:$0xff] %vm1025_vm5, %v4165_v40  ;;  %6575 = vmatmul.mubr.msk.bf16.gmra.mrb[132].mxu1 %vm1096_vm6, %v4221_v43 }
 0x513   : > { %6578 = vmatprep.mubr.msk.bf16.mxu1 %vm6818_vm1, %v6816_v0  ;;  %v3895_v11 = vpop.permute.xlu0 %3894 }
 0x514   : > { %v3759_v46 = vpop.permute.xlu1 %3758 }
 0x515   : > { %3798 = vst.msk [vmem:[#allocation3 + $0x58] sm:$0xff] %vm614_vm2, %v3759_v46 }
 0x516   : > { %3934 = vst.msk [vmem:[#allocation3 + $0x58] sm:$0xff] %vm751_vm3, %v3895_v11 }
 0x517   : > { %v4167_v47 = vpop.permute.xlu0 %4166 }
 0x518   : > { %v4031_v49 = vpop.permute.xlu1 %4030 }
 0x519   : > { %4070 = vst.msk [vmem:[#allocation3 + $0x58] sm:$0xff] %vm888_vm4, %v4031_v49  ;;  %v4222_v37 = vld [vmem:[#allocation3 + $0x50] sm:$0xff] }
 0x51a   : > { %4206 = vst.msk [vmem:[#allocation3 + $0x58] sm:$0xff] %vm1025_vm5, %v4167_v47  ;;  %6579 = vmatmul.mubr.msk.bf16.gmra.mrb[136].mxu1 %vm1096_vm6, %v4222_v37 }
 0x51b   : > { %6582 = vmatprep.mubr.msk.bf16.mxu1 %vm6818_vm1, %v6816_v0  ;;  %v3897_v51 = vpop.permute.xlu0 %3896 }
 0x51c   : > { %v3761_v52 = vpop.permute.xlu1 %3760 }
 0x51d   : > { %3799 = vst.msk [vmem:[#allocation3 + $0x60] sm:$0xff] %vm614_vm2, %v3761_v52 }
 0x51e   : > { %3935 = vst.msk [vmem:[#allocation3 + $0x60] sm:$0xff] %vm751_vm3, %v3897_v51 }
 0x51f   : > { %v4169_v53 = vpop.permute.xlu0 %4168 }
 0x520   : > { %v4033_v55 = vpop.permute.xlu1 %4032 }
 0x521   : > { %4071 = vst.msk [vmem:[#allocation3 + $0x60] sm:$0xff] %vm888_vm4, %v4033_v55  ;;  %v4223_v56 = vld [vmem:[#allocation3 + $0x58] sm:$0xff]  ;;  %v6803_v55 = vld [vmem:[%s8864_s4 + $0x78] sm:$0xff]  }
 0x522   : > { %4207 = vst.msk [vmem:[#allocation3 + $0x60] sm:$0xff] %vm1025_vm5, %v4169_v53  ;;  %6583 = vmatmul.mubr.msk.bf16.gmra.mrb[140].mxu1 %vm1096_vm6, %v4223_v56  ;;  %6607 = vmatpush3.bf16.msra.mxu0 %v6803_v55  ;;  %v6804_v56 = vld [vmem:[%s8864_s4 + $0x80] sm:$0xff]  }
 0x523   : > { %6586 = vmatprep.mubr.msk.bf16.mxu1 %vm6818_vm1, %v6816_v0  ;;  %v3899_v57 = vpop.permute.xlu0 %3898  ;;  %6608 = vmatprep.subr.bf16.mxu0 %v6816_v0 }
 0x524   : > { %v3763_v58 = vpop.permute.xlu1 %3762 }
 0x525   : > { %3800 = vst.msk [vmem:[#allocation3 + $0x68] sm:$0xff] %vm614_vm2, %v3763_v58  ;;  %v4600_v58 = vld [vmem:[#allocation2 + $0x6] sm:$0xff] }
 0x526   : > { %3936 = vst.msk [vmem:[#allocation3 + $0x68] sm:$0xff] %vm751_vm3, %v3899_v57  ;;  %6609 = vmatpush3.bf16.msra.mxu0 %v6804_v56  ;;  %v8371_v57 = vld [vmem:[%s8865_s5 + $0x2] ss:$0 sm:$0xff] }
 0x527   : > { %v4171_v59 = vpop.permute.xlu0 %4170  ;;  %6610 = vmatprep.subr.bf16.mxu0 %v6816_v0 }
 0x528   : > { %v4035_v60 = vpop.permute.xlu1 %4034 }
 0x529   : > { %4072 = vst.msk [vmem:[#allocation3 + $0x68] sm:$0xff] %vm888_vm4, %v4035_v60  ;;  %v4224_v61 = vld [vmem:[#allocation3 + $0x60] sm:$0xff] }
 0x52a   : > { %4208 = vst.msk [vmem:[#allocation3 + $0x68] sm:$0xff] %vm1025_vm5, %v4171_v59  ;;  %6587 = vmatmul.mubr.msk.bf16.gmra.mrb[144].mxu1 %vm1096_vm6, %v4224_v61  ;;  %v4601_v59 = vld [vmem:[#allocation2 + $0xe] sm:$0xff] }
 0x52b   : > { %6590 = vmatprep.mubr.msk.bf16.mxu1 %vm6818_vm1, %v6816_v0  ;;  %v3901_v14 = vpop.permute.xlu0 %3900  ;;  %v4634_v61 = vpack.c.bf16 %v4601_v59, %v4600_v58 }
 0x52c   : > { %v3765_v35 = vpop.permute.xlu1 %3764 }
 0x52d   : > { %3801 = vst.msk [vmem:[#allocation3 + $0x70] sm:$0xff] %vm614_vm2, %v3765_v35 }
 0x52e   : > { %3937 = vst.msk [vmem:[#allocation3 + $0x70] sm:$0xff] %vm751_vm3, %v3901_v14 }
 0x52f   : > { %v4173_v38 = vpop.permute.xlu0 %4172  ;;  %4651 = vst.msk [vmem:[#allocation3] sm:$0xff] %vm344_vm0, %v4634_v61 }
 0x530   : > { %v4037_v2 = vpop.permute.xlu1 %4036 }
 0x531   : > { %4073 = vst.msk [vmem:[#allocation3 + $0x70] sm:$0xff] %vm888_vm4, %v4037_v2  ;;  %v4225_v39 = vld [vmem:[#allocation3 + $0x68] sm:$0xff] }
 0x532   : > { %4209 = vst.msk [vmem:[#allocation3 + $0x70] sm:$0xff] %vm1025_vm5, %v4173_v38  ;;  %6591 = vmatmul.mubr.msk.bf16.gmra.mrb[148].mxu1 %vm1096_vm6, %v4225_v39  ;;  %v6805_v38 = vld [vmem:[%s8864_s4 + $0x88] sm:$0xff]  }
 0x533   : > { %6594 = vmatprep.mubr.msk.bf16.mxu1 %vm6818_vm1, %v6816_v0  ;;  %v3903_v40 = vpop.permute.xlu0 %3902  ;;  %6611 = vmatpush3.bf16.msra.mxu0 %v6805_v38 }
 0x534   : > { %v3767_v42 = vpop.permute.xlu1 %3766  ;;  %6612 = vmatprep.subr.bf16.mxu0 %v6816_v0 }
 0x535   : > { %3802 = vst.msk [vmem:[#allocation3 + $0x78] sm:$0xff] %vm614_vm2, %v3767_v42  ;;  %v6806_v42 = vld [vmem:[%s8864_s4 + $0x90] sm:$0xff]  }
 0x536   : > { %3938 = vst.msk [vmem:[#allocation3 + $0x78] sm:$0xff] %vm751_vm3, %v3903_v40 }
 0x537   : > { %v4175_v43 = vpop.permute.xlu0 %4174  ;;  %6613 = vmatpush3.bf16.msra.mxu0 %v6806_v42 }
 0x538   : > { %v4039_v11 = vpop.permute.xlu1 %4038  ;;  %6614 = vmatprep.subr.bf16.mxu0 %v6816_v0 }
 0x539   : > { %4074 = vst.msk [vmem:[#allocation3 + $0x78] sm:$0xff] %vm888_vm4, %v4039_v11  ;;  %v4226_v46 = vld [vmem:[#allocation3 + $0x70] sm:$0xff] }
 0x53a   : > { %4210 = vst.msk [vmem:[#allocation3 + $0x78] sm:$0xff] %vm1025_vm5, %v4175_v43  ;;  %6595 = vmatmul.mubr.msk.bf16.gmra.mrb[152].mxu1 %vm1096_vm6, %v4226_v46 }
 0x53b   : > { %6598 = vmatprep.mubr.msk.bf16.mxu1 %vm6818_vm1, %v6816_v0  ;;  %v3905_v47 = vpop.permute.xlu0 %3904 }
 0x53c   : > { %v3769_v49 = vpop.permute.xlu1 %3768 }
 0x53d   : > { %3803 = vst.msk [vmem:[#allocation3 + $0x80] sm:$0xff] %vm614_vm2, %v3769_v49 }
 0x53e   : > { %3939 = vst.msk [vmem:[#allocation3 + $0x80] sm:$0xff] %vm751_vm3, %v3905_v47 }
 0x53f   : > { %v4177_v37 = vpop.permute.xlu0 %4176 }
 0x540   : > { %v4041_v51 = vpop.permute.xlu1 %4040 }
 0x541   : > { %v4227_v52 = vld [vmem:[#allocation3 + $0x78] sm:$0xff]  ;;  %4075 = vst.msk [vmem:[#allocation3 + $0x80] sm:$0xff] %vm888_vm4, %v4041_v51 }
 0x542   : > { %6599 = vmatmul.mubr.msk.bf16.gmra.mrb[156].mxu1 %vm1096_vm6, %v4227_v52  ;;  %4211 = vst.msk [vmem:[#allocation3 + $0x80] sm:$0xff] %vm1025_vm5, %v4177_v37  ;;  %v6807_v52 = vld [vmem:[%s8864_s4 + $0x98] sm:$0xff]  }
 0x543   : > { %6602 = vmatprep.mubr.msk.bf16.mxu1 %vm6818_vm1, %v6816_v0  ;;  %6615 = vmatpush3.bf16.msra.mxu0 %v6807_v52 }
 0x549   : > { %v4228_v53 = vld [vmem:[#allocation3 + $0x80] sm:$0xff] }
 0x54a   : > { %6603 = vmatmul.mubr.msk.bf16.gmra.mrb[160].mxu1 %vm1096_vm6, %v4228_v53 }
 0x577   : > { %v4873_v12 = vpop.permute.xlu0 %4872 }
 0x57d   : > { %v4737_v36 = vpop.permute.xlu1 %4736 }
 0x57e   : > { %4787 = vst.msk [vmem:[#allocation3] sm:$0xff] %vm614_vm2, %v4737_v36 }
 0x57f   : > { %4923 = vst.msk [vmem:[#allocation3] sm:$0xff] %vm751_vm3, %v4873_v12 }
 0x59d   : > { %v4350_v60 = vpop.f32.mrb[96].mxu1 }
 0x59e   : > { %v4351_v4 = vadd.f32 %v8371_v57, %v4350_v60  ;;  %v6540_v6 = vpop.f32.mrb[97].mxu1 }
 0x59f   : > { %v4353_v10 = vpop.f32.mrb[98].mxu1 }
 0x5a0   : > { %v4485_v13 = vmax.f32 %v4351_v4, 0.0  ;;  %v4354_v14 = vadd.f32 %v8371_v57, %v4353_v10  ;;  %v6541_v35 = vpop.f32.mrb[99].mxu1 }
 0x5a2   : > { %v4519_v2 = vmul.f32 %v4485_v13, %v7303_v15  ;;  %v4486_v39 = vmax.f32 %v4354_v14, 0.0 }
 0x5a4   : > { %4553 = vst.msk [vmem:[#allocation2 + $0x18] sm:$0xff] %vm344_vm0, %v4519_v2  ;;  %v4520_v40 = vmul.f32 %v4486_v39, %v7305_v16 }
 0x5a5   : > { %v4358_v43 = vpop.f32.mrb[100].mxu1 }
 0x5a6   : > { %4554 = vst.msk [vmem:[#allocation2 + $0x20] sm:$0xff] %vm344_vm0, %v4520_v40  ;;  %v4359_v11 = vadd.f32 %v8371_v57, %v4358_v43  ;;  %v6544_v46 = vpop.f32.mrb[101].mxu1 }
 0x5a7   : > { %v4361_v47 = vpop.f32.mrb[102].mxu1 }
 0x5a8   : > { %v4487_v49 = vmax.f32 %v4359_v11, 0.0  ;;  %v4362_v37 = vadd.f32 %v8371_v57, %v4361_v47  ;;  %v6545_v51 = vpop.f32.mrb[103].mxu1 }
 0x5aa   : > { %v4521_v53 = vmul.f32 %v4487_v49, %v7309_v18  ;;  %v4488_v55 = vmax.f32 %v4362_v37, 0.0 }
 0x5ab   : > { %v5076_v58 = vld [vmem:[#allocation2 + $0x18] sm:$0xff] }
 0x5ac   : > { %4555 = vst.msk [vmem:[#allocation2 + $0x28] sm:$0xff] %vm344_vm0, %v4521_v53  ;;  %v4522_v56 = vmul.f32 %v4488_v55, %v7307_v17  ;;  %v4940_v59 = vld [vmem:[#allocation2 + $0x17] sm:$0xff] }
 0x5ad   : > { %v4602_v60 = vld [vmem:[#allocation2 + $0x16] sm:$0xff]  ;;  %v4366_v61 = vpop.f32.mrb[104].mxu1  ;;  %v5077_v4 = vld [vmem:[#allocation2 + $0x20] sm:$0xff] }
 0x5ae   : > { %v4941_v6 = vld [vmem:[#allocation2 + $0x1f] sm:$0xff]  ;;  %4556 = vst.msk [vmem:[#allocation2 + $0x30] sm:$0xff] %vm344_vm0, %v4522_v56  ;;  %v4367_v12 = vadd.f32 %v8371_v57, %v4366_v61  ;;  %v6548_v13 = vpop.f32.mrb[105].mxu1  ;;  %v5110_v14 = vpack.c.bf16 %v5077_v4, %v5076_v58 }
 0x5af   : > { %v4603_v10 = vld [vmem:[#allocation2 + $0x1e] sm:$0xff]  ;;  %v4974_v35 = vpack.c.bf16 %v4941_v6, %v4940_v59  ;;  %v4369_v38 = vpop.f32.mrb[106].mxu1 }
 0x5b0   : > { %v4635_v36 = vpack.c.bf16 %v4603_v10, %v4602_v60  ;;  %v4489_v2 = vmax.f32 %v4367_v12, 0.0  ;;  %v4370_v39 = vadd.f32 %v8371_v57, %v4369_v38  ;;  %v6549_v40 = vpop.f32.mrb[107].mxu1  ;;  %5144 = vrot.lane.b32.xlu0 %v5110_v14, %s6821_s20 }
 0x5b1   : > { %5008 = vrot.lane.b32.xlu1 %v4974_v35, %s6819_s18 }
 0x5b2   : > { %4652 = vst.msk [vmem:[#allocation3 + $0x8] sm:$0xff] %vm344_vm0, %v4635_v36  ;;  %v4523_v42 = vmul.f32 %v4489_v2, %v7313_v20  ;;  %v4490_v43 = vmax.f32 %v4370_v39, 0.0 }
 0x5b3   : > { %v5078_v46 = vld [vmem:[#allocation2 + $0x28] sm:$0xff] }
 0x5b4   : > { %4557 = vst.msk [vmem:[#allocation2 + $0x38] sm:$0xff] %vm344_vm0, %v4523_v42  ;;  %v4524_v11 = vmul.f32 %v4490_v43, %v7311_v19  ;;  %4874 = vrot.lane.b32.xlu0 %v5110_v14, %s6820_s19  ;;  %v4942_v47 = vld [vmem:[#allocation2 + $0x27] sm:$0xff] }
 0x5b5   : > { %4738 = vrot.lane.b32.xlu1 %v4974_v35, %s6817_s17  ;;  %v4604_v49 = vld [vmem:[#allocation2 + $0x26] sm:$0xff]  ;;  %v4374_v37 = vpop.f32.mrb[108].mxu1  ;;  %v5079_v51 = vld [vmem:[#allocation2 + $0x30] sm:$0xff] }
 0x5b6   : > { %v4943_v52 = vld [vmem:[#allocation2 + $0x2f] sm:$0xff]  ;;  %4558 = vst.msk [vmem:[#allocation2 + $0x40] sm:$0xff] %vm344_vm0, %v4524_v11  ;;  %v4375_v55 = vadd.f32 %v8371_v57, %v4374_v37  ;;  %v6552_v56 = vpop.f32.mrb[109].mxu1  ;;  %v5111_v58 = vpack.c.bf16 %v5079_v51, %v5078_v46 }
 0x5b7   : > { %v4605_v53 = vld [vmem:[#allocation2 + $0x2e] sm:$0xff]  ;;  %v4975_v59 = vpack.c.bf16 %v4943_v52, %v4942_v47  ;;  %v4377_v61 = vpop.f32.mrb[110].mxu1 }
 0x5b8   : > { %v4636_v60 = vpack.c.bf16 %v4605_v53, %v4604_v49  ;;  %v4491_v4 = vmax.f32 %v4375_v55, 0.0  ;;  %v4378_v6 = vadd.f32 %v8371_v57, %v4377_v61  ;;  %v6553_v10 = vpop.f32.mrb[111].mxu1  ;;  %5146 = vrot.lane.b32.xlu0 %v5111_v58, %s6821_s20 }
 0x5b9   : > { %5010 = vrot.lane.b32.xlu1 %v4975_v59, %s6819_s18 }
 0x5ba   : > { %4653 = vst.msk [vmem:[#allocation3 + $0x10] sm:$0xff] %vm344_vm0, %v4636_v60  ;;  %v4525_v12 = vmul.f32 %v4491_v4, %v7317_v22  ;;  %v4492_v13 = vmax.f32 %v4378_v6, 0.0 }
 0x5bb   : > { %v5080_v35 = vld [vmem:[#allocation2 + $0x38] sm:$0xff] }
 0x5bc   : > { %4559 = vst.msk [vmem:[#allocation2 + $0x48] sm:$0xff] %vm344_vm0, %v4525_v12  ;;  %v4526_v14 = vmul.f32 %v4492_v13, %v7315_v21  ;;  %4876 = vrot.lane.b32.xlu0 %v5111_v58, %s6820_s19  ;;  %v4944_v36 = vld [vmem:[#allocation2 + $0x37] sm:$0xff] }
 0x5bd   : > { %4740 = vrot.lane.b32.xlu1 %v4975_v59, %s6817_s17  ;;  %v4606_v38 = vld [vmem:[#allocation2 + $0x36] sm:$0xff]  ;;  %v4382_v2 = vpop.f32.mrb[112].mxu1  ;;  %v5081_v39 = vld [vmem:[#allocation2 + $0x40] sm:$0xff] }
 0x5be   : > { %v4945_v40 = vld [vmem:[#allocation2 + $0x3f] sm:$0xff]  ;;  %4560 = vst.msk [vmem:[#allocation2 + $0x50] sm:$0xff] %vm344_vm0, %v4526_v14  ;;  %v4383_v43 = vadd.f32 %v8371_v57, %v4382_v2  ;;  %v6556_v11 = vpop.f32.mrb[113].mxu1  ;;  %v5112_v46 = vpack.c.bf16 %v5081_v39, %v5080_v35 }
 0x5bf   : > { %v4607_v42 = vld [vmem:[#allocation2 + $0x3e] sm:$0xff]  ;;  %v4976_v47 = vpack.c.bf16 %v4945_v40, %v4944_v36  ;;  %v4385_v37 = vpop.f32.mrb[114].mxu1 }
 0x5c0   : > { %v4637_v49 = vpack.c.bf16 %v4607_v42, %v4606_v38  ;;  %v4493_v51 = vmax.f32 %v4383_v43, 0.0  ;;  %v4386_v52 = vadd.f32 %v8371_v57, %v4385_v37  ;;  %v6557_v53 = vpop.f32.mrb[115].mxu1  ;;  %5148 = vrot.lane.b32.xlu0 %v5112_v46, %s6821_s20 }
 0x5c1   : > { %5012 = vrot.lane.b32.xlu1 %v4976_v47, %s6819_s18 }
 0x5c2   : > { %4654 = vst.msk [vmem:[#allocation3 + $0x18] sm:$0xff] %vm344_vm0, %v4637_v49  ;;  %v4527_v55 = vmul.f32 %v4493_v51, %v7321_v24  ;;  %v4494_v56 = vmax.f32 %v4386_v52, 0.0 }
 0x5c3   : > { %v5082_v59 = vld [vmem:[#allocation2 + $0x48] sm:$0xff] }
 0x5c4   : > { %4561 = vst.msk [vmem:[#allocation2 + $0x58] sm:$0xff] %vm344_vm0, %v4527_v55  ;;  %v4528_v58 = vmul.f32 %v4494_v56, %v7319_v23  ;;  %4878 = vrot.lane.b32.xlu0 %v5112_v46, %s6820_s19  ;;  %v4946_v60 = vld [vmem:[#allocation2 + $0x47] sm:$0xff] }
 0x5c5   : > { %4742 = vrot.lane.b32.xlu1 %v4976_v47, %s6817_s17  ;;  %v4608_v61 = vld [vmem:[#allocation2 + $0x46] sm:$0xff]  ;;  %v4390_v4 = vpop.f32.mrb[116].mxu1  ;;  %v5083_v6 = vld [vmem:[#allocation2 + $0x50] sm:$0xff] }
 0x5c6   : > { %v4947_v10 = vld [vmem:[#allocation2 + $0x4f] sm:$0xff]  ;;  %4562 = vst.msk [vmem:[#allocation2 + $0x60] sm:$0xff] %vm344_vm0, %v4528_v58  ;;  %v4391_v13 = vadd.f32 %v8371_v57, %v4390_v4  ;;  %v6560_v14 = vpop.f32.mrb[117].mxu1  ;;  %v5113_v35 = vpack.c.bf16 %v5083_v6, %v5082_v59 }
 0x5c7   : > { %v4609_v12 = vld [vmem:[#allocation2 + $0x4e] sm:$0xff]  ;;  %v4977_v36 = vpack.c.bf16 %v4947_v10, %v4946_v60  ;;  %v4393_v2 = vpop.f32.mrb[118].mxu1 }
 0x5c8   : > { %v4638_v38 = vpack.c.bf16 %v4609_v12, %v4608_v61  ;;  %v4495_v39 = vmax.f32 %v4391_v13, 0.0  ;;  %v4394_v40 = vadd.f32 %v8371_v57, %v4393_v2  ;;  %v6561_v42 = vpop.f32.mrb[119].mxu1  ;;  %5150 = vrot.lane.b32.xlu0 %v5113_v35, %s6821_s20 }
 0x5c9   : > { %5014 = vrot.lane.b32.xlu1 %v4977_v36, %s6819_s18 }
 0x5ca   : > { %4655 = vst.msk [vmem:[#allocation3 + $0x20] sm:$0xff] %vm344_vm0, %v4638_v38  ;;  %v4529_v43 = vmul.f32 %v4495_v39, %v7325_v26  ;;  %v4496_v11 = vmax.f32 %v4394_v40, 0.0 }
 0x5cb   : > { %v5084_v47 = vld [vmem:[#allocation2 + $0x58] sm:$0xff] }
 0x5cc   : > { %4563 = vst.msk [vmem:[#allocation2 + $0x68] sm:$0xff] %vm344_vm0, %v4529_v43  ;;  %v4530_v46 = vmul.f32 %v4496_v11, %v7323_v25  ;;  %4880 = vrot.lane.b32.xlu0 %v5113_v35, %s6820_s19  ;;  %v4948_v49 = vld [vmem:[#allocation2 + $0x57] sm:$0xff] }
 0x5cd   : > { %4744 = vrot.lane.b32.xlu1 %v4977_v36, %s6817_s17  ;;  %v4610_v37 = vld [vmem:[#allocation2 + $0x56] sm:$0xff]  ;;  %v4398_v51 = vpop.f32.mrb[120].mxu1  ;;  %v5085_v52 = vld [vmem:[#allocation2 + $0x60] sm:$0xff] }
 0x5ce   : > { %v4949_v53 = vld [vmem:[#allocation2 + $0x5f] sm:$0xff]  ;;  %4564 = vst.msk [vmem:[#allocation2 + $0x70] sm:$0xff] %vm344_vm0, %v4530_v46  ;;  %v4399_v56 = vadd.f32 %v8371_v57, %v4398_v51  ;;  %v6564_v58 = vpop.f32.mrb[121].mxu1  ;;  %v5114_v59 = vpack.c.bf16 %v5085_v52, %v5084_v47 }
 0x5cf   : > { %v4611_v55 = vld [vmem:[#allocation2 + $0x5e] sm:$0xff]  ;;  %v4978_v60 = vpack.c.bf16 %v4949_v53, %v4948_v49  ;;  %v4401_v4 = vpop.f32.mrb[122].mxu1 }
 0x5d0   : > { %v4639_v61 = vpack.c.bf16 %v4611_v55, %v4610_v37  ;;  %v4497_v6 = vmax.f32 %v4399_v56, 0.0  ;;  %v4402_v10 = vadd.f32 %v8371_v57, %v4401_v4  ;;  %v6565_v12 = vpop.f32.mrb[123].mxu1  ;;  %5152 = vrot.lane.b32.xlu0 %v5114_v59, %s6821_s20 }
 0x5d1   : > { %5016 = vrot.lane.b32.xlu1 %v4978_v60, %s6819_s18 }
 0x5d2   : > { %4656 = vst.msk [vmem:[#allocation3 + $0x28] sm:$0xff] %vm344_vm0, %v4639_v61  ;;  %v4531_v13 = vmul.f32 %v4497_v6, %v7329_v28  ;;  %v4498_v14 = vmax.f32 %v4402_v10, 0.0 }
 0x5d3   : > { %v5086_v36 = vld [vmem:[#allocation2 + $0x68] sm:$0xff] }
 0x5d4   : > { %4565 = vst.msk [vmem:[#allocation2 + $0x78] sm:$0xff] %vm344_vm0, %v4531_v13  ;;  %v4532_v35 = vmul.f32 %v4498_v14, %v7327_v27  ;;  %4882 = vrot.lane.b32.xlu0 %v5114_v59, %s6820_s19  ;;  %v4950_v38 = vld [vmem:[#allocation2 + $0x67] sm:$0xff] }
 0x5d5   : > { %4746 = vrot.lane.b32.xlu1 %v4978_v60, %s6817_s17  ;;  %v4612_v2 = vld [vmem:[#allocation2 + $0x66] sm:$0xff]  ;;  %v4406_v39 = vpop.f32.mrb[124].mxu1  ;;  %v5087_v40 = vld [vmem:[#allocation2 + $0x70] sm:$0xff] }
 0x5d6   : > { %v4951_v42 = vld [vmem:[#allocation2 + $0x6f] sm:$0xff]  ;;  %4566 = vst.msk [vmem:[#allocation2 + $0x80] sm:$0xff] %vm344_vm0, %v4532_v35  ;;  %v4407_v11 = vadd.f32 %v8371_v57, %v4406_v39  ;;  %v6568_v46 = vpop.f32.mrb[125].mxu1  ;;  %v5115_v47 = vpack.c.bf16 %v5087_v40, %v5086_v36 }
 0x5d7   : > { %v4613_v43 = vld [vmem:[#allocation2 + $0x6e] sm:$0xff]  ;;  %v4979_v49 = vpack.c.bf16 %v4951_v42, %v4950_v38  ;;  %v4409_v51 = vpop.f32.mrb[126].mxu1 }
 0x5d8   : > { %v4640_v37 = vpack.c.bf16 %v4613_v43, %v4612_v2  ;;  %v4499_v52 = vmax.f32 %v4407_v11, 0.0  ;;  %v4410_v53 = vadd.f32 %v8371_v57, %v4409_v51  ;;  %v6569_v55 = vpop.f32.mrb[127].mxu1  ;;  %5154 = vrot.lane.b32.xlu0 %v5115_v47, %s6821_s20 }
 0x5d9   : > { %5018 = vrot.lane.b32.xlu1 %v4979_v49, %s6819_s18 }
 0x5da   : > { %4657 = vst.msk [vmem:[#allocation3 + $0x30] sm:$0xff] %vm344_vm0, %v4640_v37  ;;  %v4533_v56 = vmul.f32 %v4499_v52, %v7333_v29  ;;  %v4500_v58 = vmax.f32 %v4410_v53, 0.0 }
 0x5db   : > { %v5088_v60 = vld [vmem:[#allocation2 + $0x78] sm:$0xff] }
 0x5dc   : > { %4567 = vst.msk [vmem:[#allocation2 + $0x88] sm:$0xff] %vm344_vm0, %v4533_v56  ;;  %v4534_v59 = vmul.f32 %v4500_v58, %v7331_v62  ;;  %4884 = vrot.lane.b32.xlu0 %v5115_v47, %s6820_s19  ;;  %v4952_v61 = vld [vmem:[#allocation2 + $0x77] sm:$0xff] }
 0x5dd   : > { %4748 = vrot.lane.b32.xlu1 %v4979_v49, %s6817_s17  ;;  %v4614_v4 = vld [vmem:[#allocation2 + $0x76] sm:$0xff]  ;;  %v4414_v6 = vpop.f32.mrb[128].mxu1  ;;  %v5089_v10 = vld [vmem:[#allocation2 + $0x80] sm:$0xff] }
 0x5de   : > { %v4953_v12 = vld [vmem:[#allocation2 + $0x7f] sm:$0xff]  ;;  %4568 = vst.msk [vmem:[#allocation2 + $0x90] sm:$0xff] %vm344_vm0, %v4534_v59  ;;  %v4415_v14 = vadd.f32 %v8371_v57, %v4414_v6  ;;  %v6572_v35 = vpop.f32.mrb[129].mxu1  ;;  %v5116_v36 = vpack.c.bf16 %v5089_v10, %v5088_v60 }
 0x5df   : > { %v4615_v13 = vld [vmem:[#allocation2 + $0x7e] sm:$0xff]  ;;  %v4980_v38 = vpack.c.bf16 %v4953_v12, %v4952_v61  ;;  %v4417_v39 = vpop.f32.mrb[130].mxu1 }
 0x5e0   : > { %v4641_v2 = vpack.c.bf16 %v4615_v13, %v4614_v4  ;;  %v4501_v40 = vmax.f32 %v4415_v14, 0.0  ;;  %v4418_v42 = vadd.f32 %v8371_v57, %v4417_v39  ;;  %v6573_v43 = vpop.f32.mrb[131].mxu1  ;;  %5156 = vrot.lane.b32.xlu0 %v5116_v36, %s6821_s20 }
 0x5e1   : > { %5020 = vrot.lane.b32.xlu1 %v4980_v38, %s6819_s18 }
 0x5e2   : > { %4658 = vst.msk [vmem:[#allocation3 + $0x38] sm:$0xff] %vm344_vm0, %v4641_v2  ;;  %v4535_v11 = vmul.f32 %v4501_v40, %v7337_v31  ;;  %v4502_v46 = vmax.f32 %v4418_v42, 0.0 }
 0x5e3   : > { %v5090_v49 = vld [vmem:[#allocation2 + $0x88] sm:$0xff] }
 0x5e4   : > { %4569 = vst.msk [vmem:[#allocation2 + $0x98] sm:$0xff] %vm344_vm0, %v4535_v11  ;;  %v4536_v47 = vmul.f32 %v4502_v46, %v7335_v30  ;;  %4886 = vrot.lane.b32.xlu0 %v5116_v36, %s6820_s19  ;;  %v4954_v37 = vld [vmem:[#allocation2 + $0x87] sm:$0xff] }
 0x5e5   : > { %4750 = vrot.lane.b32.xlu1 %v4980_v38, %s6817_s17  ;;  %v4616_v51 = vld [vmem:[#allocation2 + $0x86] sm:$0xff]  ;;  %v4422_v52 = vpop.f32.mrb[132].mxu1  ;;  %v5091_v53 = vld [vmem:[#allocation2 + $0x90] sm:$0xff] }
 0x5e6   : > { %v4955_v55 = vld [vmem:[#allocation2 + $0x8f] sm:$0xff]  ;;  %4570 = vst.msk [vmem:[#allocation2 + $0xa0] sm:$0xff] %vm344_vm0, %v4536_v47  ;;  %v4423_v58 = vadd.f32 %v8371_v57, %v4422_v52  ;;  %v6576_v59 = vpop.f32.mrb[133].mxu1  ;;  %v5117_v60 = vpack.c.bf16 %v5091_v53, %v5090_v49 }
 0x5e7   : > { %v4617_v56 = vld [vmem:[#allocation2 + $0x8e] sm:$0xff]  ;;  %v4981_v61 = vpack.c.bf16 %v4955_v55, %v4954_v37  ;;  %v4425_v6 = vpop.f32.mrb[134].mxu1 }
 0x5e8   : > { %v4642_v4 = vpack.c.bf16 %v4617_v56, %v4616_v51  ;;  %v4503_v10 = vmax.f32 %v4423_v58, 0.0  ;;  %v4426_v12 = vadd.f32 %v8371_v57, %v4425_v6  ;;  %v6577_v13 = vpop.f32.mrb[135].mxu1  ;;  %5158 = vrot.lane.b32.xlu0 %v5117_v60, %s6821_s20 }
 0x5e9   : > { %5022 = vrot.lane.b32.xlu1 %v4981_v61, %s6819_s18 }
 0x5ea   : > { %4659 = vst.msk [vmem:[#allocation3 + $0x40] sm:$0xff] %vm344_vm0, %v4642_v4  ;;  %v4537_v14 = vmul.f32 %v4503_v10, %v7341_v33  ;;  %v4504_v35 = vmax.f32 %v4426_v12, 0.0 }
 0x5eb   : > { %v5092_v38 = vld [vmem:[#allocation2 + $0x98] sm:$0xff] }
 0x5ec   : > { %4571 = vst.msk [vmem:[#allocation2 + $0xa8] sm:$0xff] %vm344_vm0, %v4537_v14  ;;  %v4538_v36 = vmul.f32 %v4504_v35, %v7339_v32  ;;  %4888 = vrot.lane.b32.xlu0 %v5117_v60, %s6820_s19  ;;  %v4956_v2 = vld [vmem:[#allocation2 + $0x97] sm:$0xff] }
 0x5ed   : > { %4752 = vrot.lane.b32.xlu1 %v4981_v61, %s6817_s17  ;;  %v4618_v39 = vld [vmem:[#allocation2 + $0x96] sm:$0xff]  ;;  %v4430_v40 = vpop.f32.mrb[136].mxu1  ;;  %v5093_v42 = vld [vmem:[#allocation2 + $0xa0] sm:$0xff] }
 0x5ee   : > { %v4957_v43 = vld [vmem:[#allocation2 + $0x9f] sm:$0xff]  ;;  %4572 = vst.msk [vmem:[#allocation2 + $0xb0] sm:$0xff] %vm344_vm0, %v4538_v36  ;;  %v4431_v46 = vadd.f32 %v8371_v57, %v4430_v40  ;;  %v6580_v47 = vpop.f32.mrb[137].mxu1  ;;  %v5118_v49 = vpack.c.bf16 %v5093_v42, %v5092_v38 }
 0x5ef   : > { %v4619_v11 = vld [vmem:[#allocation2 + $0x9e] sm:$0xff]  ;;  %v4982_v37 = vpack.c.bf16 %v4957_v43, %v4956_v2  ;;  %v4433_v52 = vpop.f32.mrb[138].mxu1 }
 0x5f0   : > { %v4643_v51 = vpack.c.bf16 %v4619_v11, %v4618_v39  ;;  %v4505_v53 = vmax.f32 %v4431_v46, 0.0  ;;  %v4434_v55 = vadd.f32 %v8371_v57, %v4433_v52  ;;  %v6581_v56 = vpop.f32.mrb[139].mxu1  ;;  %5160 = vrot.lane.b32.xlu0 %v5118_v49, %s6821_s20 }
 0x5f1   : > { %5024 = vrot.lane.b32.xlu1 %v4982_v37, %s6819_s18 }
 0x5f2   : > { %4660 = vst.msk [vmem:[#allocation3 + $0x48] sm:$0xff] %vm344_vm0, %v4643_v51  ;;  %v4539_v58 = vmul.f32 %v4505_v53, %v7472_v63  ;;  %v4506_v59 = vmax.f32 %v4434_v55, 0.0 }
 0x5f3   : > { %v5094_v61 = vld [vmem:[#allocation2 + $0xa8] sm:$0xff] }
 0x5f4   : > { %4573 = vst.msk [vmem:[#allocation2 + $0xb8] sm:$0xff] %vm344_vm0, %v4539_v58  ;;  %v4540_v60 = vmul.f32 %v4506_v59, %v7478_v3  ;;  %4890 = vrot.lane.b32.xlu0 %v5118_v49, %s6820_s19  ;;  %v4958_v4 = vld [vmem:[#allocation2 + $0xa7] sm:$0xff] }
 0x5f5   : > { %4754 = vrot.lane.b32.xlu1 %v4982_v37, %s6817_s17  ;;  %v4620_v6 = vld [vmem:[#allocation2 + $0xa6] sm:$0xff]  ;;  %v4438_v10 = vpop.f32.mrb[140].mxu1  ;;  %v5095_v12 = vld [vmem:[#allocation2 + $0xb0] sm:$0xff] }
 0x5f6   : > { %v4959_v13 = vld [vmem:[#allocation2 + $0xaf] sm:$0xff]  ;;  %4574 = vst.msk [vmem:[#allocation2 + $0xc0] sm:$0xff] %vm344_vm0, %v4540_v60  ;;  %v4439_v35 = vadd.f32 %v8371_v57, %v4438_v10  ;;  %v6584_v36 = vpop.f32.mrb[141].mxu1  ;;  %v5119_v38 = vpack.c.bf16 %v5095_v12, %v5094_v61 }
 0x5f7   : > { %v4621_v14 = vld [vmem:[#allocation2 + $0xae] sm:$0xff]  ;;  %v4983_v2 = vpack.c.bf16 %v4959_v13, %v4958_v4  ;;  %v4441_v40 = vpop.f32.mrb[142].mxu1 }
 0x5f8   : > { %v4644_v39 = vpack.c.bf16 %v4621_v14, %v4620_v6  ;;  %v4507_v42 = vmax.f32 %v4439_v35, 0.0  ;;  %v4442_v43 = vadd.f32 %v8371_v57, %v4441_v40  ;;  %v6585_v11 = vpop.f32.mrb[143].mxu1  ;;  %5162 = vrot.lane.b32.xlu0 %v5119_v38, %s6821_s20 }
 0x5f9   : > { %5026 = vrot.lane.b32.xlu1 %v4983_v2, %s6819_s18 }
 0x5fa   : > { %4661 = vst.msk [vmem:[#allocation3 + $0x50] sm:$0xff] %vm344_vm0, %v4644_v39  ;;  %v4541_v46 = vmul.f32 %v4507_v42, %v7487_v41  ;;  %v4508_v47 = vmax.f32 %v4442_v43, 0.0 }
 0x5fb   : > { %v5096_v37 = vld [vmem:[#allocation2 + $0xb8] sm:$0xff] }
 0x5fc   : > { %4575 = vst.msk [vmem:[#allocation2 + $0xc8] sm:$0xff] %vm344_vm0, %v4541_v46  ;;  %v4542_v49 = vmul.f32 %v4508_v47, %v7493_v44  ;;  %4892 = vrot.lane.b32.xlu0 %v5119_v38, %s6820_s19  ;;  %v4960_v51 = vld [vmem:[#allocation2 + $0xb7] sm:$0xff] }
 0x5fd   : > { %4756 = vrot.lane.b32.xlu1 %v4983_v2, %s6817_s17  ;;  %v4622_v52 = vld [vmem:[#allocation2 + $0xb6] sm:$0xff]  ;;  %v4446_v53 = vpop.f32.mrb[144].mxu1  ;;  %v5097_v55 = vld [vmem:[#allocation2 + $0xc0] sm:$0xff] }
 0x5fe   : > { %v4961_v56 = vld [vmem:[#allocation2 + $0xbf] sm:$0xff]  ;;  %4576 = vst.msk [vmem:[#allocation2 + $0xd0] sm:$0xff] %vm344_vm0, %v4542_v49  ;;  %v4447_v59 = vadd.f32 %v8371_v57, %v4446_v53  ;;  %v6588_v60 = vpop.f32.mrb[145].mxu1  ;;  %v5120_v61 = vpack.c.bf16 %v5097_v55, %v5096_v37 }
 0x5ff   : > { %v4623_v58 = vld [vmem:[#allocation2 + $0xbe] sm:$0xff]  ;;  %v4984_v4 = vpack.c.bf16 %v4961_v56, %v4960_v51  ;;  %v4449_v10 = vpop.f32.mrb[146].mxu1 }
 0x600   : > { %v4645_v6 = vpack.c.bf16 %v4623_v58, %v4622_v52  ;;  %v4509_v12 = vmax.f32 %v4447_v59, 0.0  ;;  %v4450_v13 = vadd.f32 %v8371_v57, %v4449_v10  ;;  %v6589_v14 = vpop.f32.mrb[147].mxu1  ;;  %5164 = vrot.lane.b32.xlu0 %v5120_v61, %s6821_s20 }
 0x601   : > { %5028 = vrot.lane.b32.xlu1 %v4984_v4, %s6819_s18 }
 0x602   : > { %4662 = vst.msk [vmem:[#allocation3 + $0x58] sm:$0xff] %vm344_vm0, %v4645_v6  ;;  %v4543_v35 = vmul.f32 %v4509_v12, %v7503_v1  ;;  %v4510_v36 = vmax.f32 %v4450_v13, 0.0 }
 0x603   : > { %v5098_v2 = vld [vmem:[#allocation2 + $0xc8] sm:$0xff] }
 0x604   : > { %4577 = vst.msk [vmem:[#allocation2 + $0xd8] sm:$0xff] %vm344_vm0, %v4543_v35  ;;  %v4544_v38 = vmul.f32 %v4510_v36, %v7508_v5  ;;  %4894 = vrot.lane.b32.xlu0 %v5120_v61, %s6820_s19  ;;  %v4962_v39 = vld [vmem:[#allocation2 + $0xc7] sm:$0xff] }
 0x605   : > { %4758 = vrot.lane.b32.xlu1 %v4984_v4, %s6817_s17  ;;  %v4624_v40 = vld [vmem:[#allocation2 + $0xc6] sm:$0xff]  ;;  %v4454_v42 = vpop.f32.mrb[148].mxu1  ;;  %v5099_v43 = vld [vmem:[#allocation2 + $0xd0] sm:$0xff] }
 0x606   : > { %v4963_v11 = vld [vmem:[#allocation2 + $0xcf] sm:$0xff]  ;;  %4578 = vst.msk [vmem:[#allocation2 + $0xe0] sm:$0xff] %vm344_vm0, %v4544_v38  ;;  %v4455_v47 = vadd.f32 %v8371_v57, %v4454_v42  ;;  %v6592_v49 = vpop.f32.mrb[149].mxu1  ;;  %v5121_v37 = vpack.c.bf16 %v5099_v43, %v5098_v2 }
 0x607   : > { %v4625_v46 = vld [vmem:[#allocation2 + $0xce] sm:$0xff]  ;;  %v4985_v51 = vpack.c.bf16 %v4963_v11, %v4962_v39  ;;  %v4457_v53 = vpop.f32.mrb[150].mxu1 }
 0x608   : > { %v4646_v52 = vpack.c.bf16 %v4625_v46, %v4624_v40  ;;  %v4511_v55 = vmax.f32 %v4455_v47, 0.0  ;;  %v4458_v56 = vadd.f32 %v8371_v57, %v4457_v53  ;;  %v6593_v58 = vpop.f32.mrb[151].mxu1  ;;  %5166 = vrot.lane.b32.xlu0 %v5121_v37, %s6821_s20 }
 0x609   : > { %5030 = vrot.lane.b32.xlu1 %v4985_v51, %s6819_s18 }
 0x60a   : > { %4663 = vst.msk [vmem:[#allocation3 + $0x60] sm:$0xff] %vm344_vm0, %v4646_v52  ;;  %v4545_v59 = vmul.f32 %v4511_v55, %v7518_v45  ;;  %v4512_v60 = vmax.f32 %v4458_v56, 0.0 }
 0x60b   : > { %v5100_v4 = vld [vmem:[#allocation2 + $0xd8] sm:$0xff] }
 0x60c   : > { %4579 = vst.msk [vmem:[#allocation2 + $0xe8] sm:$0xff] %vm344_vm0, %v4545_v59  ;;  %v4546_v61 = vmul.f32 %v4512_v60, %v7523_v48  ;;  %4896 = vrot.lane.b32.xlu0 %v5121_v37, %s6820_s19  ;;  %v4964_v6 = vld [vmem:[#allocation2 + $0xd7] sm:$0xff] }
 0x60d   : > { %4760 = vrot.lane.b32.xlu1 %v4985_v51, %s6817_s17  ;;  %v4626_v10 = vld [vmem:[#allocation2 + $0xd6] sm:$0xff]  ;;  %v4462_v12 = vpop.f32.mrb[152].mxu1  ;;  %v5101_v13 = vld [vmem:[#allocation2 + $0xe0] sm:$0xff] }
 0x60e   : > { %v4965_v14 = vld [vmem:[#allocation2 + $0xdf] sm:$0xff]  ;;  %4580 = vst.msk [vmem:[#allocation2 + $0xf0] sm:$0xff] %vm344_vm0, %v4546_v61  ;;  %v4463_v36 = vadd.f32 %v8371_v57, %v4462_v12  ;;  %v6596_v38 = vpop.f32.mrb[153].mxu1  ;;  %v5122_v2 = vpack.c.bf16 %v5101_v13, %v5100_v4 }
 0x60f   : > { %v4627_v35 = vld [vmem:[#allocation2 + $0xde] sm:$0xff]  ;;  %v4986_v39 = vpack.c.bf16 %v4965_v14, %v4964_v6  ;;  %v4465_v42 = vpop.f32.mrb[154].mxu1 }
 0x610   : > { %v4647_v40 = vpack.c.bf16 %v4627_v35, %v4626_v10  ;;  %v4513_v43 = vmax.f32 %v4463_v36, 0.0  ;;  %v4466_v11 = vadd.f32 %v8371_v57, %v4465_v42  ;;  %v6597_v46 = vpop.f32.mrb[155].mxu1  ;;  %5168 = vrot.lane.b32.xlu0 %v5122_v2, %s6821_s20 }
 0x611   : > { %5032 = vrot.lane.b32.xlu1 %v4986_v39, %s6819_s18 }
 0x612   : > { %4664 = vst.msk [vmem:[#allocation3 + $0x68] sm:$0xff] %vm344_vm0, %v4647_v40  ;;  %v4547_v47 = vmul.f32 %v4513_v43, %v7533_v8  ;;  %v4514_v49 = vmax.f32 %v4466_v11, 0.0 }
 0x613   : > { %v5102_v51 = vld [vmem:[#allocation2 + $0xe8] sm:$0xff] }
 0x614   : > { %4581 = vst.msk [vmem:[#allocation2 + $0xf8] sm:$0xff] %vm344_vm0, %v4547_v47  ;;  %v4548_v37 = vmul.f32 %v4514_v49, %v7537_v9  ;;  %4898 = vrot.lane.b32.xlu0 %v5122_v2, %s6820_s19  ;;  %v4966_v52 = vld [vmem:[#allocation2 + $0xe7] sm:$0xff] }
 0x615   : > { %4762 = vrot.lane.b32.xlu1 %v4986_v39, %s6817_s17  ;;  %v4628_v53 = vld [vmem:[#allocation2 + $0xe6] sm:$0xff]  ;;  %v4470_v55 = vpop.f32.mrb[156].mxu1  ;;  %v5103_v56 = vld [vmem:[#allocation2 + $0xf0] sm:$0xff] }
 0x616   : > { %v4967_v58 = vld [vmem:[#allocation2 + $0xef] sm:$0xff]  ;;  %4582 = vst.msk [vmem:[#allocation2 + $0x100] sm:$0xff] %vm344_vm0, %v4548_v37  ;;  %v4471_v60 = vadd.f32 %v8371_v57, %v4470_v55  ;;  %v6600_v61 = vpop.f32.mrb[157].mxu1  ;;  %v5123_v4 = vpack.c.bf16 %v5103_v56, %v5102_v51 }
 0x617   : > { %v4629_v59 = vld [vmem:[#allocation2 + $0xee] sm:$0xff]  ;;  %v4987_v6 = vpack.c.bf16 %v4967_v58, %v4966_v52  ;;  %v4473_v12 = vpop.f32.mrb[158].mxu1 }
 0x618   : > { %v4648_v10 = vpack.c.bf16 %v4629_v59, %v4628_v53  ;;  %v4515_v13 = vmax.f32 %v4471_v60, 0.0  ;;  %v4474_v14 = vadd.f32 %v8371_v57, %v4473_v12  ;;  %v6601_v35 = vpop.f32.mrb[159].mxu1  ;;  %5170 = vrot.lane.b32.xlu0 %v5123_v4, %s6821_s20 }
 0x619   : > { %5034 = vrot.lane.b32.xlu1 %v4987_v6, %s6819_s18 }
 0x61a   : > { %4665 = vst.msk [vmem:[#allocation3 + $0x70] sm:$0xff] %vm344_vm0, %v4648_v10  ;;  %v4549_v36 = vmul.f32 %v4515_v13, %v7550_v54  ;;  %v4516_v38 = vmax.f32 %v4474_v14, 0.0 }
 0x61b   : > { %v5104_v39 = vld [vmem:[#allocation2 + $0xf8] sm:$0xff] }
 0x61c   : > { %4583 = vst.msk [vmem:[#allocation2 + $0x108] sm:$0xff] %vm344_vm0, %v4549_v36  ;;  %v4550_v2 = vmul.f32 %v4516_v38, %v7546_v50  ;;  %4900 = vrot.lane.b32.xlu0 %v5123_v4, %s6820_s19  ;;  %v4968_v40 = vld [vmem:[#allocation2 + $0xf7] sm:$0xff] }
 0x61d   : > { %4764 = vrot.lane.b32.xlu1 %v4987_v6, %s6817_s17  ;;  %v4630_v42 = vld [vmem:[#allocation2 + $0xf6] sm:$0xff]  ;;  %v5105_v43 = vld [vmem:[#allocation2 + $0x100] sm:$0xff]  ;;  %v4478_v47 = vpop.f32.mrb[160].mxu1 }
 0x61e   : > { %v4969_v11 = vld [vmem:[#allocation2 + $0xff] sm:$0xff]  ;;  %4584 = vst.msk [vmem:[#allocation2 + $0x110] sm:$0xff] %vm344_vm0, %v4550_v2  ;;  %v5124_v49 = vpack.c.bf16 %v5105_v43, %v5104_v39  ;;  %v4479_v52 = vadd.f32 %v8371_v57, %v4478_v47  ;;  %v6604_v53 = vpop.f32.mrb[161].mxu1 }
 0x61f   : > { %v4631_v46 = vld [vmem:[#allocation2 + $0xfe] sm:$0xff]  ;;  %v4988_v37 = vpack.c.bf16 %v4969_v11, %v4968_v40  ;;  %v4481_v55 = vpop.f32.mrb[162].mxu1 }
 0x620   : > { %v4649_v51 = vpack.c.bf16 %v4631_v46, %v4630_v42  ;;  %5172 = vrot.lane.b32.xlu0 %v5124_v49, %s6821_s20  ;;  %v4517_v56 = vmax.f32 %v4479_v52, 0.0  ;;  %v4482_v58 = vadd.f32 %v8371_v57, %v4481_v55  ;;  %v6605_v59 = vpop.f32.mrb[163].mxu1 }
 0x621   : > { %5036 = vrot.lane.b32.xlu1 %v4988_v37, %s6819_s18 }
 0x622   : > { %4666 = vst.msk [vmem:[#allocation3 + $0x78] sm:$0xff] %vm344_vm0, %v4649_v51  ;;  %v5145_v60 = vpop.permute.xlu0 %5144  ;;  %v4551_v4 = vmul.f32 %v4517_v56, %v7563_v34  ;;  %v4518_v6 = vmax.f32 %v4482_v58, 0.0 }
 0x623   : > { %v5009_v61 = vpop.permute.xlu1 %5008  ;;  %v5106_v10 = vld [vmem:[#allocation2 + $0x108] sm:$0xff] }
 0x624   : > { %5059 = vst.msk [vmem:[#allocation3] sm:$0xff] %vm888_vm4, %v5009_v61  ;;  %4902 = vrot.lane.b32.xlu0 %v5124_v49, %s6820_s19  ;;  %v4970_v12 = vld [vmem:[#allocation2 + $0x107] sm:$0xff]  ;;  %v4552_v57 = vmul.f32 %v4518_v6, %v7559_v7 }
 0x625   : > { %5195 = vst.msk [vmem:[#allocation3] sm:$0xff] %vm1025_vm5, %v5145_v60  ;;  %4766 = vrot.lane.b32.xlu1 %v4988_v37, %s6817_s17  ;;  %v4632_v13 = vld [vmem:[#allocation2 + $0x106] sm:$0xff]  ;;  %v5107_v14 = vld [vmem:[#allocation2 + $0x110] sm:$0xff]  ;;  %v5625_v60 = vld [vmem:[%s8867_s7] sm:$0xf] }
 0x626   : > { %4585 = vst.msk [vmem:[#allocation2 + $0x118] sm:$0xff] %vm344_vm0, %v4551_v4  ;;  %v4971_v35 = vld [vmem:[#allocation2 + $0x10f] sm:$0xff]  ;;  %v4875_v38 = vpop.permute.xlu0 %4874  ;;  %v5125_v39 = vpack.c.bf16 %v5107_v14, %v5106_v10  ;;  %4586 = vst.msk [vmem:[#allocation2 + $0x120] sm:$0xff] %vm344_vm0, %v4552_v57 }
 0x627   : > { %v4633_v36 = vld [vmem:[#allocation2 + $0x10e] sm:$0xff]  ;;  %v4739_v2 = vpop.permute.xlu1 %4738  ;;  %v4989_v40 = vpack.c.bf16 %v4971_v35, %v4970_v12 }
 0x628   : > { %v4650_v42 = vpack.c.bf16 %v4633_v36, %v4632_v13  ;;  %4788 = vst.msk [vmem:[#allocation3 + $0x8] sm:$0xff] %vm614_vm2, %v4739_v2  ;;  %5174 = vrot.lane.b32.xlu0 %v5125_v39, %s6821_s20 }
 0x629   : > { %4924 = vst.msk [vmem:[#allocation3 + $0x8] sm:$0xff] %vm751_vm3, %v4875_v38  ;;  %5038 = vrot.lane.b32.xlu1 %v4989_v40, %s6819_s18 }
 0x62a   : > { %4667 = vst.msk [vmem:[#allocation3 + $0x80] sm:$0xff] %vm344_vm0, %v4650_v42  ;;  %v5147_v43 = vpop.permute.xlu0 %5146 }
 0x62b   : > { %v5011_v11 = vpop.permute.xlu1 %5010 }
 0x62c   : > { %5060 = vst.msk [vmem:[#allocation3 + $0x8] sm:$0xff] %vm888_vm4, %v5011_v11  ;;  %v5212_v46 = vld [vmem:[#allocation3] sm:$0xff]  ;;  %4904 = vrot.lane.b32.xlu0 %v5125_v39, %s6820_s19 }
 0x62d   : > { %5196 = vst.msk [vmem:[#allocation3 + $0x8] sm:$0xff] %vm1025_vm5, %v5147_v43  ;;  %4768 = vrot.lane.b32.xlu1 %v4989_v40, %s6817_s17  ;;  %6617 = vmatmul.mubr.msk.bf16.vlgmr.msra.gmra.mrb[108].mxu0 %vm1096_vm6, %v5212_v46  ;;  %v5108_v47 = vld [vmem:[#allocation2 + $0x118] sm:$0xff]  ;;  %v5109_v51 = vld [vmem:[#allocation2 + $0x120] sm:$0xff] }
 0x62e   : > { %v4877_v49 = vpop.permute.xlu0 %4876  ;;  %v4972_v52 = vld [vmem:[#allocation2 + $0x117] sm:$0xff]  ;;  %v4973_v53 = vld [vmem:[#allocation2 + $0x11f] sm:$0xff]  ;;  %6620 = vmatprep.mubr.msk.bf16.mxu0 %vm6818_vm1, %v6816_v0  ;;  %v5126_v55 = vpack.c.bf16 %v5109_v51, %v5108_v47 }
 0x62f   : > { %v4741_v37 = vpop.permute.xlu1 %4740  ;;  %v4990_v56 = vpack.c.bf16 %v4973_v53, %v4972_v52 }
 0x630   : > { %4789 = vst.msk [vmem:[#allocation3 + $0x10] sm:$0xff] %vm614_vm2, %v4741_v37  ;;  %5176 = vrot.lane.b32.xlu0 %v5126_v55, %s6821_s20 }
 0x631   : > { %4925 = vst.msk [vmem:[#allocation3 + $0x10] sm:$0xff] %vm751_vm3, %v4877_v49  ;;  %5040 = vrot.lane.b32.xlu1 %v4990_v56, %s6819_s18 }
 0x632   : > { %v5149_v58 = vpop.permute.xlu0 %5148 }
 0x633   : > { %v5013_v59 = vpop.permute.xlu1 %5012 }
 0x634   : > { %5061 = vst.msk [vmem:[#allocation3 + $0x10] sm:$0xff] %vm888_vm4, %v5013_v59  ;;  %v5213_v61 = vld [vmem:[#allocation3 + $0x8] sm:$0xff] }
 0x635   : > { %5197 = vst.msk [vmem:[#allocation3 + $0x10] sm:$0xff] %vm1025_vm5, %v5149_v58  ;;  %5628 = vperm.xlu1 %6782, %v5625_v60   ;;  %6621 = vmatmul.mubr.msk.bf16.gmra.mrb[112].mxu0 %vm1096_vm6, %v5213_v61 }
 0x636   : > { %v4879_v4 = vpop.permute.xlu0 %4878  ;;  %6624 = vmatprep.mubr.msk.bf16.mxu0 %vm6818_vm1, %v6816_v0 }
 0x637   : > { %v4743_v6 = vpop.permute.xlu1 %4742 }
 0x638   : > { %4790 = vst.msk [vmem:[#allocation3 + $0x18] sm:$0xff] %vm614_vm2, %v4743_v6 }
 0x639   : > { %4926 = vst.msk [vmem:[#allocation3 + $0x18] sm:$0xff] %vm751_vm3, %v4879_v4 }
 0x63a   : > { %v5151_v10 = vpop.permute.xlu0 %5150 }
 0x63b   : > { %v5015_v12 = vpop.permute.xlu1 %5014 }
 0x63c   : > { %5062 = vst.msk [vmem:[#allocation3 + $0x18] sm:$0xff] %vm888_vm4, %v5015_v12  ;;  %v5214_v13 = vld [vmem:[#allocation3 + $0x10] sm:$0xff] }
 0x63d   : > { %5198 = vst.msk [vmem:[#allocation3 + $0x18] sm:$0xff] %vm1025_vm5, %v5151_v10  ;;  %6625 = vmatmul.mubr.msk.bf16.gmra.mrb[116].mxu0 %vm1096_vm6, %v5214_v13 }
 0x63e   : > { %v4881_v57 = vpop.permute.xlu0 %4880  ;;  %6628 = vmatprep.mubr.msk.bf16.mxu0 %vm6818_vm1, %v6816_v0 }
 0x63f   : > { %v4745_v14 = vpop.permute.xlu1 %4744 }
 0x640   : > { %4791 = vst.msk [vmem:[#allocation3 + $0x20] sm:$0xff] %vm614_vm2, %v4745_v14 }
 0x641   : > { %4927 = vst.msk [vmem:[#allocation3 + $0x20] sm:$0xff] %vm751_vm3, %v4881_v57 }
 0x642   : > { %v5153_v35 = vpop.permute.xlu0 %5152 }
 0x643   : > { %v5017_v36 = vpop.permute.xlu1 %5016 }
 0x644   : > { %5063 = vst.msk [vmem:[#allocation3 + $0x20] sm:$0xff] %vm888_vm4, %v5017_v36  ;;  %v5215_v38 = vld [vmem:[#allocation3 + $0x18] sm:$0xff] }
 0x645   : > { %5199 = vst.msk [vmem:[#allocation3 + $0x20] sm:$0xff] %vm1025_vm5, %v5153_v35  ;;  %6629 = vmatmul.mubr.msk.bf16.gmra.mrb[120].mxu0 %vm1096_vm6, %v5215_v38 }
 0x646   : > { %v4883_v2 = vpop.permute.xlu0 %4882  ;;  %6632 = vmatprep.mubr.msk.bf16.mxu0 %vm6818_vm1, %v6816_v0 }
 0x647   : > { %v4747_v39 = vpop.permute.xlu1 %4746 }
 0x648   : > { %4792 = vst.msk [vmem:[#allocation3 + $0x28] sm:$0xff] %vm614_vm2, %v4747_v39 }
 0x649   : > { %4928 = vst.msk [vmem:[#allocation3 + $0x28] sm:$0xff] %vm751_vm3, %v4883_v2 }
 0x64a   : > { %v5155_v40 = vpop.permute.xlu0 %5154 }
 0x64b   : > { %v5019_v42 = vpop.permute.xlu1 %5018 }
 0x64c   : > { %5064 = vst.msk [vmem:[#allocation3 + $0x28] sm:$0xff] %vm888_vm4, %v5019_v42  ;;  %v5216_v43 = vld [vmem:[#allocation3 + $0x20] sm:$0xff] }
 0x64d   : > { %5200 = vst.msk [vmem:[#allocation3 + $0x28] sm:$0xff] %vm1025_vm5, %v5155_v40  ;;  %6633 = vmatmul.mubr.msk.bf16.gmra.mrb[124].mxu0 %vm1096_vm6, %v5216_v43 }
 0x64e   : > { %v4885_v11 = vpop.permute.xlu0 %4884  ;;  %6636 = vmatprep.mubr.msk.bf16.mxu0 %vm6818_vm1, %v6816_v0 }
 0x64f   : > { %v4749_v46 = vpop.permute.xlu1 %4748 }
 0x650   : > { %4793 = vst.msk [vmem:[#allocation3 + $0x30] sm:$0xff] %vm614_vm2, %v4749_v46 }
 0x651   : > { %4929 = vst.msk [vmem:[#allocation3 + $0x30] sm:$0xff] %vm751_vm3, %v4885_v11 }
 0x652   : > { %v5157_v47 = vpop.permute.xlu0 %5156 }
 0x653   : > { %v5021_v49 = vpop.permute.xlu1 %5020 }
 0x654   : > { %5065 = vst.msk [vmem:[#allocation3 + $0x30] sm:$0xff] %vm888_vm4, %v5021_v49  ;;  %v5217_v37 = vld [vmem:[#allocation3 + $0x28] sm:$0xff] }
 0x655   : > { %5201 = vst.msk [vmem:[#allocation3 + $0x30] sm:$0xff] %vm1025_vm5, %v5157_v47  ;;  %6637 = vmatmul.mubr.msk.bf16.gmra.mrb[128].mxu0 %vm1096_vm6, %v5217_v37 }
 0x656   : > { %v4887_v51 = vpop.permute.xlu0 %4886  ;;  %6640 = vmatprep.mubr.msk.bf16.mxu0 %vm6818_vm1, %v6816_v0 }
 0x657   : > { %v4751_v52 = vpop.permute.xlu1 %4750 }
 0x658   : > { %4794 = vst.msk [vmem:[#allocation3 + $0x38] sm:$0xff] %vm614_vm2, %v4751_v52 }
 0x659   : > { %4930 = vst.msk [vmem:[#allocation3 + $0x38] sm:$0xff] %vm751_vm3, %v4887_v51 }
 0x65a   : > { %v5159_v53 = vpop.permute.xlu0 %5158 }
 0x65b   : > { %v5023_v55 = vpop.permute.xlu1 %5022 }
 0x65c   : > { %5066 = vst.msk [vmem:[#allocation3 + $0x38] sm:$0xff] %vm888_vm4, %v5023_v55  ;;  %v5218_v56 = vld [vmem:[#allocation3 + $0x30] sm:$0xff] }
 0x65d   : > { %5202 = vst.msk [vmem:[#allocation3 + $0x38] sm:$0xff] %vm1025_vm5, %v5159_v53  ;;  %6641 = vmatmul.mubr.msk.bf16.gmra.mrb[132].mxu0 %vm1096_vm6, %v5218_v56 }
 0x65e   : > { %v4889_v58 = vpop.permute.xlu0 %4888  ;;  %6644 = vmatprep.mubr.msk.bf16.mxu0 %vm6818_vm1, %v6816_v0 }
 0x65f   : > { %v4753_v59 = vpop.permute.xlu1 %4752 }
 0x660   : > { %4795 = vst.msk [vmem:[#allocation3 + $0x40] sm:$0xff] %vm614_vm2, %v4753_v59 }
 0x661   : > { %4931 = vst.msk [vmem:[#allocation3 + $0x40] sm:$0xff] %vm751_vm3, %v4889_v58 }
 0x662   : > { %v5161_v60 = vpop.permute.xlu0 %5160 }
 0x663   : > { %v5025_v61 = vpop.permute.xlu1 %5024 }
 0x664   : > { %5067 = vst.msk [vmem:[#allocation3 + $0x40] sm:$0xff] %vm888_vm4, %v5025_v61  ;;  %v5219_v4 = vld [vmem:[#allocation3 + $0x38] sm:$0xff] }
 0x665   : > { %5203 = vst.msk [vmem:[#allocation3 + $0x40] sm:$0xff] %vm1025_vm5, %v5161_v60  ;;  %6645 = vmatmul.mubr.msk.bf16.gmra.mrb[136].mxu0 %vm1096_vm6, %v5219_v4 }
 0x666   : > { %v4891_v6 = vpop.permute.xlu0 %4890  ;;  %6648 = vmatprep.mubr.msk.bf16.mxu0 %vm6818_vm1, %v6816_v0 }
 0x667   : > { %v4755_v10 = vpop.permute.xlu1 %4754 }
 0x668   : > { %4796 = vst.msk [vmem:[#allocation3 + $0x48] sm:$0xff] %vm614_vm2, %v4755_v10 }
 0x669   : > { %4932 = vst.msk [vmem:[#allocation3 + $0x48] sm:$0xff] %vm751_vm3, %v4891_v6 }
 0x66a   : > { %v5163_v12 = vpop.permute.xlu0 %5162 }
 0x66b   : > { %v5027_v13 = vpop.permute.xlu1 %5026 }
 0x66c   : > { %5068 = vst.msk [vmem:[#allocation3 + $0x48] sm:$0xff] %vm888_vm4, %v5027_v13  ;;  %v5220_v57 = vld [vmem:[#allocation3 + $0x40] sm:$0xff] }
 0x66d   : > { %5204 = vst.msk [vmem:[#allocation3 + $0x48] sm:$0xff] %vm1025_vm5, %v5163_v12  ;;  %6649 = vmatmul.mubr.msk.bf16.gmra.mrb[140].mxu0 %vm1096_vm6, %v5220_v57 }
 0x66e   : > { %v4893_v14 = vpop.permute.xlu0 %4892  ;;  %6652 = vmatprep.mubr.msk.bf16.mxu0 %vm6818_vm1, %v6816_v0 }
 0x66f   : > { %v4757_v35 = vpop.permute.xlu1 %4756 }
 0x670   : > { %4797 = vst.msk [vmem:[#allocation3 + $0x50] sm:$0xff] %vm614_vm2, %v4757_v35 }
 0x671   : > { %4933 = vst.msk [vmem:[#allocation3 + $0x50] sm:$0xff] %vm751_vm3, %v4893_v14 }
 0x672   : > { %v5165_v36 = vpop.permute.xlu0 %5164 }
 0x673   : > { %v5029_v38 = vpop.permute.xlu1 %5028 }
 0x674   : > { %5069 = vst.msk [vmem:[#allocation3 + $0x50] sm:$0xff] %vm888_vm4, %v5029_v38  ;;  %v5221_v2 = vld [vmem:[#allocation3 + $0x48] sm:$0xff] }
 0x675   : > { %5205 = vst.msk [vmem:[#allocation3 + $0x50] sm:$0xff] %vm1025_vm5, %v5165_v36  ;;  %6653 = vmatmul.mubr.msk.bf16.gmra.mrb[144].mxu0 %vm1096_vm6, %v5221_v2 }
 0x676   : > { %v4895_v39 = vpop.permute.xlu0 %4894  ;;  %6656 = vmatprep.mubr.msk.bf16.mxu0 %vm6818_vm1, %v6816_v0 }
 0x677   : > { %v4759_v40 = vpop.permute.xlu1 %4758 }
 0x678   : > { %4798 = vst.msk [vmem:[#allocation3 + $0x58] sm:$0xff] %vm614_vm2, %v4759_v40 }
 0x679   : > { %4934 = vst.msk [vmem:[#allocation3 + $0x58] sm:$0xff] %vm751_vm3, %v4895_v39 }
 0x67a   : > { %v5167_v42 = vpop.permute.xlu0 %5166 }
 0x67b   : > { %v5031_v43 = vpop.permute.xlu1 %5030 }
 0x67c   : > { %5070 = vst.msk [vmem:[#allocation3 + $0x58] sm:$0xff] %vm888_vm4, %v5031_v43  ;;  %v5222_v11 = vld [vmem:[#allocation3 + $0x50] sm:$0xff] }
 0x67d   : > { %5206 = vst.msk [vmem:[#allocation3 + $0x58] sm:$0xff] %vm1025_vm5, %v5167_v42  ;;  %6657 = vmatmul.mubr.msk.bf16.gmra.mrb[148].mxu0 %vm1096_vm6, %v5222_v11  ;;  %v8692_v42 = vld [vmem:[%s8865_s5 + $0x3] ss:$0 sm:$0xff] }
 0x67e   : > { %v4897_v46 = vpop.permute.xlu0 %4896  ;;  %6660 = vmatprep.mubr.msk.bf16.mxu0 %vm6818_vm1, %v6816_v0 }
 0x67f   : > { %v4761_v47 = vpop.permute.xlu1 %4760 }
 0x680   : > { %4799 = vst.msk [vmem:[#allocation3 + $0x60] sm:$0xff] %vm614_vm2, %v4761_v47 }
 0x681   : > { %4935 = vst.msk [vmem:[#allocation3 + $0x60] sm:$0xff] %vm751_vm3, %v4897_v46 }
 0x682   : > { %v5169_v49 = vpop.permute.xlu0 %5168 }
 0x683   : > { %v5033_v37 = vpop.permute.xlu1 %5032 }
 0x684   : > { %5071 = vst.msk [vmem:[#allocation3 + $0x60] sm:$0xff] %vm888_vm4, %v5033_v37  ;;  %v5223_v51 = vld [vmem:[#allocation3 + $0x58] sm:$0xff] }
 0x685   : > { %5207 = vst.msk [vmem:[#allocation3 + $0x60] sm:$0xff] %vm1025_vm5, %v5169_v49  ;;  %6661 = vmatmul.mubr.msk.bf16.gmra.mrb[152].mxu0 %vm1096_vm6, %v5223_v51 }
 0x686   : > { %v4899_v52 = vpop.permute.xlu0 %4898  ;;  %6664 = vmatprep.mubr.msk.bf16.mxu0 %vm6818_vm1, %v6816_v0 }
 0x687   : > { %v4763_v53 = vpop.permute.xlu1 %4762 }
 0x688   : > { %4800 = vst.msk [vmem:[#allocation3 + $0x68] sm:$0xff] %vm614_vm2, %v4763_v53 }
 0x689   : > { %4936 = vst.msk [vmem:[#allocation3 + $0x68] sm:$0xff] %vm751_vm3, %v4899_v52 }
 0x68a   : > { %v5171_v55 = vpop.permute.xlu0 %5170 }
 0x68b   : > { %v5035_v56 = vpop.permute.xlu1 %5034 }
 0x68c   : > { %5072 = vst.msk [vmem:[#allocation3 + $0x68] sm:$0xff] %vm888_vm4, %v5035_v56  ;;  %v5224_v58 = vld [vmem:[#allocation3 + $0x60] sm:$0xff]  ;;  %v8702_v56 = vld [vmem:[%s8866_s6] sm:$0xf] }
 0x68d   : > { %5208 = vst.msk [vmem:[#allocation3 + $0x68] sm:$0xff] %vm1025_vm5, %v5171_v55  ;;  %6665 = vmatmul.mubr.msk.bf16.gmra.mrb[156].mxu0 %vm1096_vm6, %v5224_v58  ;;  %6286 = vmatprep.mubr.msk.f32.mxu1 %vm344_vm0, %v8702_v56 }
 0x68e   : > { %v4901_v59 = vpop.permute.xlu0 %4900  ;;  %6668 = vmatprep.mubr.msk.bf16.mxu0 %vm6818_vm1, %v6816_v0 }
 0x68f   : > { %v4765_v60 = vpop.permute.xlu1 %4764 }
 0x690   : > { %4801 = vst.msk [vmem:[#allocation3 + $0x70] sm:$0xff] %vm614_vm2, %v4765_v60 }
 0x691   : > { %4937 = vst.msk [vmem:[#allocation3 + $0x70] sm:$0xff] %vm751_vm3, %v4901_v59 }
 0x692   : > { %v5173_v61 = vpop.permute.xlu0 %5172 }
 0x693   : > { %v5037_v4 = vpop.permute.xlu1 %5036 }
 0x694   : > { %5073 = vst.msk [vmem:[#allocation3 + $0x70] sm:$0xff] %vm888_vm4, %v5037_v4  ;;  %v5225_v6 = vld [vmem:[#allocation3 + $0x68] sm:$0xff] }
 0x695   : > { %5209 = vst.msk [vmem:[#allocation3 + $0x70] sm:$0xff] %vm1025_vm5, %v5173_v61  ;;  %6669 = vmatmul.mubr.msk.bf16.gmra.mrb[160].mxu0 %vm1096_vm6, %v5225_v6 }
 0x696   : > { %v4903_v10 = vpop.permute.xlu0 %4902  ;;  %6672 = vmatprep.mubr.msk.bf16.mxu0 %vm6818_vm1, %v6816_v0 }
 0x697   : > { %v4767_v12 = vpop.permute.xlu1 %4766 }
 0x698   : > { %4802 = vst.msk [vmem:[#allocation3 + $0x78] sm:$0xff] %vm614_vm2, %v4767_v12 }
 0x699   : > { %4938 = vst.msk [vmem:[#allocation3 + $0x78] sm:$0xff] %vm751_vm3, %v4903_v10 }
 0x69a   : > { %v5175_v13 = vpop.permute.xlu0 %5174 }
 0x69b   : > { %v5039_v57 = vpop.permute.xlu1 %5038 }
 0x69c   : > { %5074 = vst.msk [vmem:[#allocation3 + $0x78] sm:$0xff] %vm888_vm4, %v5039_v57  ;;  %v5226_v14 = vld [vmem:[#allocation3 + $0x70] sm:$0xff] }
 0x69d   : > { %5210 = vst.msk [vmem:[#allocation3 + $0x78] sm:$0xff] %vm1025_vm5, %v5175_v13  ;;  %6673 = vmatmul.mubr.msk.bf16.gmra.mrb[164].mxu0 %vm1096_vm6, %v5226_v14 }
 0x69e   : > { %v4905_v35 = vpop.permute.xlu0 %4904  ;;  %6676 = vmatprep.mubr.msk.bf16.mxu0 %vm6818_vm1, %v6816_v0 }
 0x69f   : > { %v4769_v36 = vpop.permute.xlu1 %4768 }
 0x6a0   : > { %4803 = vst.msk [vmem:[#allocation3 + $0x80] sm:$0xff] %vm614_vm2, %v4769_v36 }
 0x6a1   : > { %4939 = vst.msk [vmem:[#allocation3 + $0x80] sm:$0xff] %vm751_vm3, %v4905_v35 }
 0x6a2   : > { %v5177_v38 = vpop.permute.xlu0 %5176 }
 0x6a3   : > { %v5041_v2 = vpop.permute.xlu1 %5040 }
 0x6a4   : > { %v5227_v39 = vld [vmem:[#allocation3 + $0x78] sm:$0xff]  ;;  %5075 = vst.msk [vmem:[#allocation3 + $0x80] sm:$0xff] %vm888_vm4, %v5041_v2 }
 0x6a5   : > { %5211 = vst.msk [vmem:[#allocation3 + $0x80] sm:$0xff] %vm1025_vm5, %v5177_v38  ;;  %6677 = vmatmul.mubr.msk.bf16.gmra.mrb[168].mxu0 %vm1096_vm6, %v5227_v39 }
 0x6a6   : > { %6680 = vmatprep.mubr.msk.bf16.mxu0 %vm6818_vm1, %v6816_v0 }
 0x6ac   : > { %v5228_v40 = vld [vmem:[#allocation3 + $0x80] sm:$0xff] }
 0x6ad   : > { %6681 = vmatmul.mubr.msk.bf16.gmra.mrb[172].mxu0 %vm1096_vm6, %v5228_v40 }
 0x700   : > { %v5350_v43 = vpop.f32.mrb[108].mxu0 }
 0x701   : > { %v5351_v11 = vadd.f32 %v8692_v42, %v5350_v43  ;;  %v6618_v46 = vpop.f32.mrb[109].mxu0 }
 0x702   : > { %v5353_v47 = vpop.f32.mrb[110].mxu0 }
 0x703   : > { %v5485_v49 = vmax.f32 %v5351_v11, 0.0  ;;  %v5354_v37 = vadd.f32 %v8692_v42, %v5353_v47  ;;  %v6619_v51 = vpop.f32.mrb[111].mxu0 }
 0x705   : > { %v5519_v52 = vmul.f32 %v5485_v49, %v7303_v15  ;;  %v5486_v53 = vmax.f32 %v5354_v37, 0.0 }
 0x707   : > { %5553 = vst.msk [vmem:[#allocation2 + $0x18] sm:$0xff] %vm344_vm0, %v5519_v52  ;;  %v5520_v55 = vmul.f32 %v5486_v53, %v7305_v16 }
 0x708   : > { %v5358_v58 = vpop.f32.mrb[112].mxu0 }
 0x709   : > { %5554 = vst.msk [vmem:[#allocation2 + $0x20] sm:$0xff] %vm344_vm0, %v5520_v55  ;;  %v5359_v59 = vadd.f32 %v8692_v42, %v5358_v58  ;;  %v6622_v60 = vpop.f32.mrb[113].mxu0 }
 0x70a   : > { %v5361_v15 = vpop.f32.mrb[114].mxu0 }
 0x70b   : > { %v5487_v61 = vmax.f32 %v5359_v59, 0.0  ;;  %v5362_v4 = vadd.f32 %v8692_v42, %v5361_v15  ;;  %v6623_v6 = vpop.f32.mrb[115].mxu0 }
 0x70d   : > { %v5521_v16 = vmul.f32 %v5487_v61, %v7309_v18  ;;  %v5488_v10 = vmax.f32 %v5362_v4, 0.0 }
 0x70f   : > { %5555 = vst.msk [vmem:[#allocation2 + $0x28] sm:$0xff] %vm344_vm0, %v5521_v16  ;;  %v5522_v12 = vmul.f32 %v5488_v10, %v7307_v17 }
 0x710   : > { %v5366_v13 = vpop.f32.mrb[116].mxu0 }
 0x711   : > { %5556 = vst.msk [vmem:[#allocation2 + $0x30] sm:$0xff] %vm344_vm0, %v5522_v12  ;;  %v5367_v57 = vadd.f32 %v8692_v42, %v5366_v13  ;;  %v6626_v14 = vpop.f32.mrb[117].mxu0 }
 0x712   : > { %v5369_v35 = vpop.f32.mrb[118].mxu0 }
 0x713   : > { %v5489_v36 = vmax.f32 %v5367_v57, 0.0  ;;  %v5370_v38 = vadd.f32 %v8692_v42, %v5369_v35  ;;  %v6627_v2 = vpop.f32.mrb[119].mxu0 }
 0x715   : > { %v5523_v39 = vmul.f32 %v5489_v36, %v7313_v20  ;;  %v5490_v40 = vmax.f32 %v5370_v38, 0.0 }
 0x717   : > { %5557 = vst.msk [vmem:[#allocation2 + $0x38] sm:$0xff] %vm344_vm0, %v5523_v39  ;;  %v5524_v18 = vmul.f32 %v5490_v40, %v7311_v19 }
 0x718   : > { %v5374_v43 = vpop.f32.mrb[120].mxu0 }
 0x719   : > { %5558 = vst.msk [vmem:[#allocation2 + $0x40] sm:$0xff] %vm344_vm0, %v5524_v18  ;;  %v5375_v17 = vadd.f32 %v8692_v42, %v5374_v43  ;;  %v6630_v11 = vpop.f32.mrb[121].mxu0 }
 0x71a   : > { %v5377_v46 = vpop.f32.mrb[122].mxu0 }
 0x71b   : > { %v5491_v47 = vmax.f32 %v5375_v17, 0.0  ;;  %v5378_v49 = vadd.f32 %v8692_v42, %v5377_v46  ;;  %v6631_v37 = vpop.f32.mrb[123].mxu0 }
 0x71d   : > { %v5525_v51 = vmul.f32 %v5491_v47, %v7317_v22  ;;  %v5492_v52 = vmax.f32 %v5378_v49, 0.0 }
 0x71f   : > { %5559 = vst.msk [vmem:[#allocation2 + $0x48] sm:$0xff] %vm344_vm0, %v5525_v51  ;;  %v5526_v20 = vmul.f32 %v5492_v52, %v7315_v21 }
 0x720   : > { %v5382_v53 = vpop.f32.mrb[124].mxu0 }
 0x721   : > { %5560 = vst.msk [vmem:[#allocation2 + $0x50] sm:$0xff] %vm344_vm0, %v5526_v20  ;;  %v5383_v19 = vadd.f32 %v8692_v42, %v5382_v53  ;;  %v6634_v55 = vpop.f32.mrb[125].mxu0 }
 0x722   : > { %v5385_v58 = vpop.f32.mrb[126].mxu0 }
 0x723   : > { %v5493_v59 = vmax.f32 %v5383_v19, 0.0  ;;  %v5386_v60 = vadd.f32 %v8692_v42, %v5385_v58  ;;  %v6635_v15 = vpop.f32.mrb[127].mxu0 }
 0x724   : > { %v5588_v15 = vld [vmem:[#allocation2] sm:$0xff] }
 0x725   : > { %v5527_v61 = vmul.f32 %v5493_v59, %v7321_v24  ;;  %v5494_v4 = vmax.f32 %v5386_v60, 0.0 }
 0x727   : > { %5561 = vst.msk [vmem:[#allocation2 + $0x58] sm:$0xff] %vm344_vm0, %v5527_v61  ;;  %v5528_v22 = vmul.f32 %v5494_v4, %v7319_v23  ;;  %v5589_v61 = vld [vmem:[#allocation2 + $0x8] sm:$0xff] }
 0x728   : > { %v5390_v6 = vpop.f32.mrb[128].mxu0 }
 0x729   : > { %5562 = vst.msk [vmem:[#allocation2 + $0x60] sm:$0xff] %vm344_vm0, %v5528_v22  ;;  %v5391_v21 = vadd.f32 %v8692_v42, %v5390_v6  ;;  %v6638_v16 = vpop.f32.mrb[129].mxu0 }
 0x72a   : > { %v5393_v10 = vpop.f32.mrb[130].mxu0 }
 0x72b   : > { %v5495_v12 = vmax.f32 %v5391_v21, 0.0  ;;  %v5394_v13 = vadd.f32 %v8692_v42, %v5393_v10  ;;  %v6639_v57 = vpop.f32.mrb[131].mxu0  ;;  %v6700_v21 = vpack.c.bf16 %v5589_v61, %v5588_v15 }
 0x72d   : > { %v5529_v14 = vmul.f32 %v5495_v12, %v7325_v26  ;;  %v5496_v35 = vmax.f32 %v5394_v13, 0.0 }
 0x72f   : > { %5563 = vst.msk [vmem:[#allocation2 + $0x68] sm:$0xff] %vm344_vm0, %v5529_v14  ;;  %v5530_v24 = vmul.f32 %v5496_v35, %v7323_v25 }
 0x730   : > { %v5398_v36 = vpop.f32.mrb[132].mxu0 }
 0x731   : > { %5564 = vst.msk [vmem:[#allocation2 + $0x70] sm:$0xff] %vm344_vm0, %v5530_v24  ;;  %v5399_v23 = vadd.f32 %v8692_v42, %v5398_v36  ;;  %v6642_v38 = vpop.f32.mrb[133].mxu0 }
 0x732   : > { %v5401_v2 = vpop.f32.mrb[134].mxu0  ;;  %v5591_v38 = vld [vmem:[#allocation2 + $0x18] sm:$0xff] }
 0x733   : > { %v5497_v39 = vmax.f32 %v5399_v23, 0.0  ;;  %v5402_v40 = vadd.f32 %v8692_v42, %v5401_v2  ;;  %v6643_v18 = vpop.f32.mrb[135].mxu0  ;;  %v5590_v23 = vld [vmem:[#allocation2 + $0x10] sm:$0xff] }
 0x735   : > { %v5531_v43 = vmul.f32 %v5497_v39, %v7329_v28  ;;  %v5498_v17 = vmax.f32 %v5402_v40, 0.0 }
 0x737   : > { %5565 = vst.msk [vmem:[#allocation2 + $0x78] sm:$0xff] %vm344_vm0, %v5531_v43  ;;  %v5532_v26 = vmul.f32 %v5498_v17, %v7327_v27  ;;  %v6706_v17 = vpack.c.bf16 %v5591_v38, %v5590_v23 }
 0x738   : > { %v5406_v11 = vpop.f32.mrb[136].mxu0 }
 0x739   : > { %5566 = vst.msk [vmem:[#allocation2 + $0x80] sm:$0xff] %vm344_vm0, %v5532_v26  ;;  %v5407_v25 = vadd.f32 %v8692_v42, %v5406_v11  ;;  %v6646_v46 = vpop.f32.mrb[137].mxu0 }
 0x73a   : > { %v5409_v47 = vpop.f32.mrb[138].mxu0 }
 0x73b   : > { %v5499_v49 = vmax.f32 %v5407_v25, 0.0  ;;  %v5410_v37 = vadd.f32 %v8692_v42, %v5409_v47  ;;  %v6647_v51 = vpop.f32.mrb[139].mxu0 }
 0x73d   : > { %v5533_v52 = vmul.f32 %v5499_v49, %v7333_v29  ;;  %v5500_v20 = vmax.f32 %v5410_v37, 0.0  ;;  %v5593_v37 = vld [vmem:[#allocation2 + $0x28] sm:$0xff] }
 0x73f   : > { %5567 = vst.msk [vmem:[#allocation2 + $0x88] sm:$0xff] %vm344_vm0, %v5533_v52  ;;  %v5534_v28 = vmul.f32 %v5500_v20, %v7331_v62 }
 0x740   : > { %v5414_v53 = vpop.f32.mrb[140].mxu0  ;;  %v5604_v22 = vld [vmem:[#allocation2 + $0x80] sm:$0xff] }
 0x741   : > { %5568 = vst.msk [vmem:[#allocation2 + $0x90] sm:$0xff] %vm344_vm0, %v5534_v28  ;;  %v5415_v27 = vadd.f32 %v8692_v42, %v5414_v53  ;;  %v6650_v19 = vpop.f32.mrb[141].mxu0  ;;  %v5592_v53 = vld [vmem:[#allocation2 + $0x20] sm:$0xff] }
 0x742   : > { %v5417_v55 = vpop.f32.mrb[142].mxu0  ;;  %v6712_v19 = vpack.c.bf16 %v5593_v37, %v5592_v53 }
 0x743   : > { %v5501_v58 = vmax.f32 %v5415_v27, 0.0  ;;  %v5418_v59 = vadd.f32 %v8692_v42, %v5417_v55  ;;  %v6651_v60 = vpop.f32.mrb[143].mxu0 }
 0x745   : > { %v5535_v29 = vmul.f32 %v5501_v58, %v7337_v31  ;;  %v5502_v4 = vmax.f32 %v5418_v59, 0.0 }
 0x746   : > { %v5605_v6 = vld [vmem:[#allocation2 + $0x88] sm:$0xff] }
 0x747   : > { %5569 = vst.msk [vmem:[#allocation2 + $0x98] sm:$0xff] %vm344_vm0, %v5535_v29  ;;  %v5536_v16 = vmul.f32 %v5502_v4, %v7335_v30  ;;  %v6697_v10 = vpack.c.bf16 %v5605_v6, %v5604_v22  ;;  %v5595_v29 = vld [vmem:[#allocation2 + $0x38] sm:$0xff] }
 0x748   : > { %v5422_v12 = vpop.f32.mrb[144].mxu0  ;;  %v5606_v2 = vld [vmem:[#allocation2 + $0x90] sm:$0xff] }
 0x749   : > { %5570 = vst.msk [vmem:[#allocation2 + $0xa0] sm:$0xff] %vm344_vm0, %v5536_v16  ;;  %v5423_v31 = vadd.f32 %v8692_v42, %v5422_v12  ;;  %v6654_v13 = vpop.f32.mrb[145].mxu0  ;;  %6699 = vmatprep.subr.msk.bf16.mxu1 %vm8754_vm7, %v6697_v10  ;;  %v5594_v16 = vld [vmem:[#allocation2 + $0x30] sm:$0xff] }
 0x74a   : > { %v5425_v57 = vpop.f32.mrb[146].mxu0  ;;  %6702 = vmatpush3.bf16.xpose.msk.msra.mxu1 %vm8754_vm7, %v6700_v21  ;;  %v6718_v12 = vpack.c.bf16 %v5595_v29, %v5594_v16 }
 0x74b   : > { %v5503_v14 = vmax.f32 %v5423_v31, 0.0  ;;  %v5426_v35 = vadd.f32 %v8692_v42, %v5425_v57  ;;  %v6655_v24 = vpop.f32.mrb[147].mxu0 }
 0x74d   : > { %v5537_v30 = vmul.f32 %v5503_v14, %v7341_v33  ;;  %v5504_v36 = vmax.f32 %v5426_v35, 0.0 }
 0x74e   : > { %v5607_v39 = vld [vmem:[#allocation2 + $0x98] sm:$0xff] }
 0x74f   : > { %5571 = vst.msk [vmem:[#allocation2 + $0xa8] sm:$0xff] %vm344_vm0, %v5537_v30  ;;  %v5538_v40 = vmul.f32 %v5504_v36, %v7339_v32  ;;  %v6703_v18 = vpack.c.bf16 %v5607_v39, %v5606_v2  ;;  %v5597_v30 = vld [vmem:[#allocation2 + $0x48] sm:$0xff]  ;;  %v5596_v39 = vld [vmem:[#allocation2 + $0x40] sm:$0xff] }
 0x750   : > { %v5430_v43 = vpop.f32.mrb[148].mxu0  ;;  %v5608_v51 = vld [vmem:[#allocation2 + $0xa0] sm:$0xff] }
 0x751   : > { %5572 = vst.msk [vmem:[#allocation2 + $0xb0] sm:$0xff] %vm344_vm0, %v5538_v40  ;;  %v5431_v26 = vadd.f32 %v8692_v42, %v5430_v43  ;;  %v6658_v11 = vpop.f32.mrb[149].mxu0  ;;  %6705 = vmatprep.subr.msk.bf16.mxu1 %vm8754_vm7, %v6703_v18  ;;  %v6724_v18 = vpack.c.bf16 %v5597_v30, %v5596_v39 }
 0x752   : > { %v5433_v33 = vpop.f32.mrb[150].mxu0  ;;  %6708 = vmatpush3.bf16.xpose.msk.msra.mxu1 %vm8754_vm7, %v6706_v17 }
 0x753   : > { %v5505_v25 = vmax.f32 %v5431_v26, 0.0  ;;  %v5434_v46 = vadd.f32 %v8692_v42, %v5433_v33  ;;  %v6659_v47 = vpop.f32.mrb[151].mxu0 }
 0x755   : > { %v5539_v32 = vmul.f32 %v5505_v25, %v7472_v63  ;;  %v5506_v49 = vmax.f32 %v5434_v46, 0.0  ;;  %v5599_v46 = vld [vmem:[#allocation2 + $0x58] sm:$0xff] }
 0x756   : > { %v5609_v52 = vld [vmem:[#allocation2 + $0xa8] sm:$0xff] }
 0x757   : > { %5573 = vst.msk [vmem:[#allocation2 + $0xb8] sm:$0xff] %vm344_vm0, %v5539_v32  ;;  %v5540_v20 = vmul.f32 %v5506_v49, %v7478_v3  ;;  %v6709_v28 = vpack.c.bf16 %v5609_v52, %v5608_v51  ;;  %v5598_v51 = vld [vmem:[#allocation2 + $0x50] sm:$0xff] }
 0x758   : > { %v5438_v27 = vpop.f32.mrb[152].mxu0  ;;  %v5610_v4 = vld [vmem:[#allocation2 + $0xb0] sm:$0xff] }
 0x759   : > { %5574 = vst.msk [vmem:[#allocation2 + $0xc0] sm:$0xff] %vm344_vm0, %v5540_v20  ;;  %v5439_v55 = vadd.f32 %v8692_v42, %v5438_v27  ;;  %v6662_v58 = vpop.f32.mrb[153].mxu0  ;;  %6711 = vmatprep.subr.msk.bf16.mxu1 %vm8754_vm7, %v6709_v28  ;;  %v6730_v20 = vpack.c.bf16 %v5599_v46, %v5598_v51 }
 0x75a   : > { %v5441_v63 = vpop.f32.mrb[154].mxu0  ;;  %6714 = vmatpush3.bf16.xpose.msk.msra.mxu1 %vm8754_vm7, %v6712_v19 }
 0x75b   : > { %v5507_v59 = vmax.f32 %v5439_v55, 0.0  ;;  %v5442_v60 = vadd.f32 %v8692_v42, %v5441_v63  ;;  %v6663_v3 = vpop.f32.mrb[155].mxu0  ;;  %v5601_v63 = vld [vmem:[#allocation2 + $0x68] sm:$0xff] }
 0x75d   : > { %v5541_v15 = vmul.f32 %v5507_v59, %v7487_v41  ;;  %v5508_v61 = vmax.f32 %v5442_v60, 0.0 }
 0x75e   : > { %v5611_v22 = vld [vmem:[#allocation2 + $0xb8] sm:$0xff] }
 0x75f   : > { %5575 = vst.msk [vmem:[#allocation2 + $0xc8] sm:$0xff] %vm344_vm0, %v5541_v15  ;;  %v5542_v6 = vmul.f32 %v5508_v61, %v7493_v44  ;;  %v6715_v21 = vpack.c.bf16 %v5611_v22, %v5610_v4  ;;  %v5600_v61 = vld [vmem:[#allocation2 + $0x60] sm:$0xff] }
 0x760   : > { %v5446_v10 = vpop.f32.mrb[156].mxu0  ;;  %v5612_v36 = vld [vmem:[#allocation2 + $0xc0] sm:$0xff]  ;;  %v6736_v4 = vpack.c.bf16 %v5601_v63, %v5600_v61 }
 0x761   : > { %5576 = vst.msk [vmem:[#allocation2 + $0xd0] sm:$0xff] %vm344_vm0, %v5542_v6  ;;  %v5447_v31 = vadd.f32 %v8692_v42, %v5446_v10  ;;  %v6666_v13 = vpop.f32.mrb[157].mxu0  ;;  %6717 = vmatprep.subr.msk.bf16.mxu1 %vm8754_vm7, %v6715_v21 }
 0x762   : > { %v5449_v41 = vpop.f32.mrb[158].mxu0  ;;  %6720 = vmatpush3.bf16.xpose.msk.msra.mxu1 %vm8754_vm7, %v6718_v12 }
 0x763   : > { %v5509_v57 = vmax.f32 %v5447_v31, 0.0  ;;  %v5450_v14 = vadd.f32 %v8692_v42, %v5449_v41  ;;  %v6667_v44 = vpop.f32.mrb[159].mxu0  ;;  %v5603_v31 = vld [vmem:[#allocation2 + $0x78] sm:$0xff] }
 0x764   : > { %v5602_v44 = vld [vmem:[#allocation2 + $0x70] sm:$0xff] }
 0x765   : > { %v5543_v35 = vmul.f32 %v5509_v57, %v7503_v1  ;;  %v5510_v24 = vmax.f32 %v5450_v14, 0.0 }
 0x766   : > { %v5613_v23 = vld [vmem:[#allocation2 + $0xc8] sm:$0xff] }
 0x767   : > { %5577 = vst.msk [vmem:[#allocation2 + $0xd8] sm:$0xff] %vm344_vm0, %v5543_v35  ;;  %v5544_v38 = vmul.f32 %v5510_v24, %v7508_v5  ;;  %v6721_v2 = vpack.c.bf16 %v5613_v23, %v5612_v36  ;;  %v6742_v24 = vpack.c.bf16 %v5603_v31, %v5602_v44 }
 0x768   : > { %v5454_v40 = vpop.f32.mrb[160].mxu0  ;;  %v5614_v47 = vld [vmem:[#allocation2 + $0xd0] sm:$0xff] }
 0x769   : > { %5578 = vst.msk [vmem:[#allocation2 + $0xe0] sm:$0xff] %vm344_vm0, %v5544_v38  ;;  %v5455_v43 = vadd.f32 %v8692_v42, %v5454_v40  ;;  %v6670_v17 = vpop.f32.mrb[161].mxu0  ;;  %6723 = vmatprep.subr.msk.bf16.mxu1 %vm8754_vm7, %v6721_v2  ;;  %v6823_v2 = vmov 0.0|0.0  }
 0x76a   : > { %v5457_v1 = vpop.f32.mrb[162].mxu0  ;;  %6726 = vmatpush3.bf16.xpose.msk.msra.mxu1 %vm8754_vm7, %v6724_v18 }
 0x76b   : > { %v5511_v26 = vmax.f32 %v5455_v43, 0.0  ;;  %v5458_v11 = vadd.f32 %v8692_v42, %v5457_v1  ;;  %v6671_v5 = vpop.f32.mrb[163].mxu0 }
 0x76d   : > { %v5545_v33 = vmul.f32 %v5511_v26, %v7518_v45  ;;  %v5512_v25 = vmax.f32 %v5458_v11, 0.0  ;;  %v5629_v11 = vpop.permute.xlu1 %5628 }
 0x76e   : > { %v5615_v32 = vld [vmem:[#allocation2 + $0xd8] sm:$0xff] }
 0x76f   : > { %5579 = vst.msk [vmem:[#allocation2 + $0xe8] sm:$0xff] %vm344_vm0, %v5545_v33  ;;  %v5546_v49 = vmul.f32 %v5512_v25, %v7523_v48  ;;  %v6727_v37 = vpack.c.bf16 %v5615_v32, %v5614_v47 }
 0x770   : > { %v5462_v52 = vpop.f32.mrb[164].mxu0  ;;  %v5616_v59 = vld [vmem:[#allocation2 + $0xe0] sm:$0xff] }
 0x771   : > { %5580 = vst.msk [vmem:[#allocation2 + $0xf0] sm:$0xff] %vm344_vm0, %v5546_v49  ;;  %v5463_v28 = vadd.f32 %v8692_v42, %v5462_v52  ;;  %v6674_v53 = vpop.f32.mrb[165].mxu0  ;;  %6729 = vmatprep.subr.msk.bf16.mxu1 %vm8754_vm7, %v6727_v37 }
 0x772   : > { %v5465_v45 = vpop.f32.mrb[166].mxu0  ;;  %6732 = vmatpush3.bf16.xpose.msk.msra.mxu1 %vm8754_vm7, %v6730_v20 }
 0x773   : > { %v5513_v27 = vmax.f32 %v5463_v28, 0.0  ;;  %v5466_v19 = vadd.f32 %v8692_v42, %v5465_v45  ;;  %v6675_v48 = vpop.f32.mrb[167].mxu0 }
 0x775   : > { %v5547_v55 = vmul.f32 %v5513_v27, %v7533_v8  ;;  %v5514_v58 = vmax.f32 %v5466_v19, 0.0 }
 0x776   : > { %v5617_v60 = vld [vmem:[#allocation2 + $0xe8] sm:$0xff] }
 0x777   : > { %5581 = vst.msk [vmem:[#allocation2 + $0xf8] sm:$0xff] %vm344_vm0, %v5547_v55  ;;  %v5548_v3 = vmul.f32 %v5514_v58, %v7537_v9  ;;  %v6733_v15 = vpack.c.bf16 %v5617_v60, %v5616_v59 }
 0x778   : > { %v5470_v29 = vpop.f32.mrb[168].mxu0  ;;  %v5618_v13 = vld [vmem:[#allocation2 + $0xf0] sm:$0xff] }
 0x779   : > { %5582 = vst.msk [vmem:[#allocation2 + $0x100] sm:$0xff] %vm344_vm0, %v5548_v3  ;;  %v5471_v22 = vadd.f32 %v8692_v42, %v5470_v29  ;;  %v6678_v6 = vpop.f32.mrb[169].mxu0  ;;  %6735 = vmatprep.subr.msk.bf16.mxu1 %vm8754_vm7, %v6733_v15 }
 0x77a   : > { %v5473_v8 = vpop.f32.mrb[170].mxu0  ;;  %6738 = vmatpush3.bf16.xpose.msk.msra.mxu1 %vm8754_vm7, %v6736_v4 }
 0x77b   : > { %v5515_v21 = vmax.f32 %v5471_v22, 0.0  ;;  %v5474_v16 = vadd.f32 %v8692_v42, %v5473_v8  ;;  %v6679_v9 = vpop.f32.mrb[171].mxu0 }
 0x77d   : > { %v5549_v10 = vmul.f32 %v5515_v21, %v7550_v54  ;;  %v5516_v12 = vmax.f32 %v5474_v16, 0.0 }
 0x77e   : > { %v5619_v41 = vld [vmem:[#allocation2 + $0xf8] sm:$0xff] }
 0x77f   : > { %5583 = vst.msk [vmem:[#allocation2 + $0x108] sm:$0xff] %vm344_vm0, %v5549_v10  ;;  %v5550_v57 = vmul.f32 %v5516_v12, %v7546_v50  ;;  %v6739_v14 = vpack.c.bf16 %v5619_v41, %v5618_v13 }
 0x780   : > { %v5478_v35 = vpop.f32.mrb[172].mxu0  ;;  %v5620_v18 = vld [vmem:[#allocation2 + $0x100] sm:$0xff] }
 0x781   : > { %5584 = vst.msk [vmem:[#allocation2 + $0x110] sm:$0xff] %vm344_vm0, %v5550_v57  ;;  %v5479_v30 = vadd.f32 %v8692_v42, %v5478_v35  ;;  %v6682_v36 = vpop.f32.mrb[173].mxu0  ;;  %6741 = vmatprep.subr.msk.bf16.mxu1 %vm8754_vm7, %v6739_v14 }
 0x782   : > { %v5481_v54 = vpop.f32.mrb[174].mxu0  ;;  %6744 = vmatpush3.bf16.xpose.msk.msra.mxu1 %vm8754_vm7, %v6742_v24 }
 0x783   : > { %v5517_v23 = vmax.f32 %v5479_v30, 0.0  ;;  %v5482_v38 = vadd.f32 %v8692_v42, %v5481_v54  ;;  %v6683_v50 = vpop.f32.mrb[175].mxu0  ;;  %6745 = vmatprep.subr.bf16.mxu1 %v6823_v2 }
 0x785   : > { %v5551_v39 = vmul.f32 %v5517_v23, %v7563_v34  ;;  %v5518_v40 = vmax.f32 %v5482_v38, 0.0 }
 0x786   : > { %v5621_v43 = vld [vmem:[#allocation2 + $0x108] sm:$0xff] }
 0x787   : > { %5585 = vst.msk [vmem:[#allocation2 + $0x118] sm:$0xff] %vm344_vm0, %v5551_v39  ;;  %v5552_v17 = vmul.f32 %v5518_v40, %v7559_v7  ;;  %v6746_v1 = vpack.c.bf16 %v5621_v43, %v5620_v18 }
 0x788   : > { %v5622_v34 = vld [vmem:[#allocation2 + $0x110] sm:$0xff] }
 0x789   : > { %5586 = vst.msk [vmem:[#allocation2 + $0x120] sm:$0xff] %vm344_vm0, %v5552_v17  ;;  %6287 = vmatmul.mubr.msk.f32.vlgmr.msra.gmra.mrb[164].mxu1 %vm344_vm0, %v8702_v56 }
 0x78a   : > { %6748 = vmatpush3.bf16.xpose.msk.msra.mxu1 %vm8754_vm7, %v6746_v1  ;;  %6694 = vmatprep.mubr.msk.f32.mxu1 %vm6818_vm1, %v6816_v0 }
 0x78b   : > { %6749 = vmatprep.subr.bf16.mxu1 %v6823_v2 }
 0x78e   : > { %v5623_v42 = vld [vmem:[#allocation2 + $0x118] sm:$0xff] }
 0x78f   : > { %v6750_v26 = vpack.c.bf16 %v5623_v42, %v5622_v34 }
 0x790   : > { %v5624_v7 = vld [vmem:[#allocation2 + $0x120] sm:$0xff] }
 0x792   : > { %6752 = vmatpush3.bf16.xpose.msk.msra.mxu1 %vm8754_vm7, %v6750_v26 }
 0x793   : > { %6692 = vmatprep.subr.mxu1 %v6816_v0 }
 0x79a   : > { %6693 = vmatpush3.xpose.msk.msra.mxu1 %vm344_vm0, %v5624_v7 }
 0x79d   : > { %6695 = vmatmul.mubr.msk.f32.vlgmr.msra.gmra.mrb[166].mxu1 %vm344_vm0, %v8702_v56 }
 0x85c   : > { %v5811_v5 = vpop.f32.mrb[164].mxu1 }
 0x85d   : > { %v5812_v33 = vadd.f32 %v5811_v5, %v5629_v11  ;;  %v5813_v25 = vpop.f32.mrb[165].mxu1 }
 0x85e   : > { %v5814_v46 = vadd.f32 %v5813_v25, %v5629_v11 }
 0x860   : > { %v5888_v62 = vcombine.low %v5812_v33, %v5814_v46 }
 0x862   : > { %5890 = vst [vmem:[%s305_s14] sm:$0xff] %v5888_v62 }
 0x870   : > { %v5882_v47 = vpop.f32.mrb[166].mxu1 }
 0x871   : > { %v5883_v0 = vadd.f32 %v5882_v47, %v5629_v11  ;;  %v6696_v32 = vpop.f32.mrb[167].mxu1 }
 0x873   : > { %5892 = vst.msk [vmem:[%s305_s14 + $0x8] sm:$0xf] %vm5891_vm8, %v5883_v0 }
 0x874 PF: > { %s18_s27 = sadd.s32 1, %s6814_s27  }
 0x875   : > { %p15_p4 = scmp.ge.s32.totalorder %s18_s27, 4  }
 0x877   :  { %17 = sbr.rel (!%p15_p4) target bundleno = 1 (0x1), region = 88 }

</bundles_post_ra>
